<compile_context>
chip_gen: v6e
topology: v6e:2x2x1
jax: 0.10.0
libtpu: 0.0.40
codegen_flags: <defaults>
</compile_context>

<pallas_src>
import math

import jax
import jax.numpy as jnp
from jax.experimental import pallas as pl
from jax.experimental.pallas import tpu as pltpu


NUM_LAYERS = 6
LANE = 128                                     # padded per-layer feature width
LAYER_DIMS = [(3, 32), (32, 32), (32, 64), (64, 64), (64, 128), (128, 128)]
CAT_W = NUM_LAYERS * LANE                      # 768-wide padded concat
HEAD_H1 = 384                                  # seq1 width (3 * 128, lane aligned)
HEAD_H2 = 256                                  # seq2 width


# ----------------------------------------------------------------------------
# Fused Pallas kernel: one grid step = one tile of whole graphs
# ----------------------------------------------------------------------------
def ginnet_kernel(eps_ref,                     # SMEM (6,) f32 : per-layer eps
                  adj_ref,                     # bf16 [tn, tn]   diagonal block
                  x_ref,                       # f32  [tn, 128]  padded node feats
                  pool_ref,                    # bf16 [tg, tn]   0/1 indicator
                  invc_ref,                    # f32  [tg, 1]    1/|graph|
                  w1s_ref, b1s_ref,            # bf16 (6,128,128), f32 (6,128)
                  w2s_ref, b2s_ref,            # bf16 (6,128,128), f32 (6,128)
                  w1h_ref, b1h_ref,            # bf16 (768,384),   f32 (1,384)
                  w2h_ref, b2h_ref,            # bf16 (384,256),   f32 (1,256)
                  wl_ref, bl_ref,              # f32 (1,256), f32 (1,1)
                  out_ref,                     # f32 [tg, 1]
                  cat_ref):                    # VMEM scratch bf16 [tn, 768]
    adj = adj_ref[...]                                   # bf16 [tn, tn]
    h_f32 = x_ref[...]                                   # f32  [tn, 128]
    h_bf = h_f32.astype(jnp.bfloat16)                    # cast once, reuse

    for l in range(NUM_LAYERS):                          # static unroll; all 128-wide
        coef = 1.0 + eps_ref[l]
        # GIN aggregation: sum_{j in N(i)} h_j + (1+eps) * h_i
        agg = jnp.dot(adj, h_bf, preferred_element_type=jnp.float32)
        z = agg + coef * h_f32
        # MLP (BN folded into W/b): Linear -> ReLU -> Linear -> ReLU
        z = jnp.dot(z.astype(jnp.bfloat16), w1s_ref[l],
                    preferred_element_type=jnp.float32) + b1s_ref[l:l + 1, :]
        z = jnp.maximum(z, 0.0)
        z = jnp.dot(z.astype(jnp.bfloat16), w2s_ref[l],
                    preferred_element_type=jnp.float32) + b2s_ref[l:l + 1, :]
        h_f32 = jnp.maximum(z, 0.0)                      # padded cols stay exactly 0
        h_bf = h_f32.astype(jnp.bfloat16)                # single cast per layer
        # concat: write layer output at its lane offset; no 6x accumulate dots
        cat_ref[:, l * LANE:(l + 1) * LANE] = h_bf

    # head.seq1 as ONE K=768 matmul (MXU accumulates over K internally)
    s = jnp.maximum(
        jnp.dot(cat_ref[...], w1h_ref[...],
                preferred_element_type=jnp.float32) + b1h_ref[...], 0.0)  # [tn,384]
    # global_mean_pool: exact 0/1 bf16 indicator matmul + exact f32 1/count scale
    p = jnp.dot(pool_ref[...], s.astype(jnp.bfloat16),
                preferred_element_type=jnp.float32)      # [tg, 384]
    p = p * invc_ref[...]
    # head.seq2
    h2 = jnp.dot(p.astype(jnp.bfloat16), w2h_ref[...],
                 preferred_element_type=jnp.float32) + b2h_ref[...]
    h2 = jnp.maximum(h2, 0.0)                            # [tg, 256]
    # TODO(synk): F.dropout(p=0.1) treated as identity (deterministic inference).
    # Final Linear(256,1) as VPU multiply + cross-lane reduce (no 1-col matmul).
    logit = jnp.sum(h2 * wl_ref[...], axis=-1, keepdims=True) + bl_ref[...]
    out_ref[...] = jax.nn.sigmoid(logit)                 # [tg, 1]


# ----------------------------------------------------------------------------
# Host-side parameter packing: fold BN, zero-pad to 128 lanes, cast to bf16
# ----------------------------------------------------------------------------
def pack_params(params):
    eps_list, gin_params, seq1_p, seq2_p, lin_p = params

    def fold(w, b, scale, shift):
        # (x @ w + b) * scale + shift == x @ (w*scale) + (b*scale + shift)
        return w * scale, b * scale + shift

    def pad2(a, rows, cols):
        out = jnp.zeros((rows, cols), jnp.float32)
        return out.at[:a.shape[0], :a.shape[1]].set(a)

    def pad_row(b, cols):                     # (1,C) bias -> dense (cols,) row
        out = jnp.zeros((cols,), jnp.float32)
        return out.at[:b.shape[-1]].set(b.reshape(-1))

    w1_blk, b1_blk, w2_blk, b2_blk = [], [], [], []
    for (cin, hdim), (w1, b1, s1, t1, w2, b2, s2, t2) in zip(LAYER_DIMS, gin_params):
        w1f, b1f = fold(w1, b1, s1, t1)
        w2f, b2f = fold(w2, b2, s2, t2)
        w1_blk.append(pad2(w1f, LANE, LANE))
        b1_blk.append(pad_row(b1f, LANE))
        w2_blk.append(pad2(w2f, LANE, LANE))
        b2_blk.append(pad_row(b2f, LANE))
    w1s = jnp.stack(w1_blk).astype(jnp.bfloat16)          # (6,128,128)
    b1s = jnp.stack(b1_blk)                               # (6,128) f32
    w2s = jnp.stack(w2_blk).astype(jnp.bfloat16)
    b2s = jnp.stack(b2_blk)

    # Head seq1: fold BN, place the 448 real rows at 128-aligned offsets inside a
    # single zero-padded (768, 384) weight matching the padded concat layout.
    w_s1, b_s1, s_s1, t_s1 = seq1_p
    w1hf, b1h = fold(w_s1, b_s1, s_s1, t_s1)              # (448,384), (1,384)
    w1h = jnp.zeros((CAT_W, HEAD_H1), jnp.float32)
    off = 0
    for l, (_, hdim) in enumerate(LAYER_DIMS):
        w1h = w1h.at[l * LANE:l * LANE + hdim, :].set(w1hf[off:off + hdim, :])
        off += hdim
    w1h = w1h.astype(jnp.bfloat16)                        # (768,384)

    w2h_f, b2h = seq2_p                                   # (384,256), (1,256)
    w2h = w2h_f.astype(jnp.bfloat16)
    wl_f, bl = lin_p                                      # (256,1), (1,1)
    wl = wl_f.reshape(1, HEAD_H2)                         # f32 row for VPU reduce

    eps = jnp.concatenate(eps_list).astype(jnp.float32)   # (6,)
    return (eps, w1s, b1s, w2s, b2s, w1h, b1h, w2h, b2h, wl, bl)


# ----------------------------------------------------------------------------
# Wrapper: grid over graph tiles (adjacency is block-diagonal per graph)
# ----------------------------------------------------------------------------
def ginnet_forward(x, adj, pool_ind, inv_counts, packed, *,
                   graphs_per_tile, nodes_per_graph):
    eps, w1s, b1s, w2s, b2s, w1h, b1h, w2h, b2h, wl, bl = packed
    n = x.shape[0]
    g = pool_ind.shape[0]
    tile_g = graphs_per_tile
    tile_n = graphs_per_tile * nodes_per_graph
    assert n == g * nodes_per_graph and g % tile_g == 0
    assert tile_n % 128 == 0 and tile_g % 8 == 0          # lane/sublane aligned tiles
    num_tiles = g // tile_g

    x_pad = jnp.zeros((n, LANE), jnp.float32).at[:, :x.shape[1]].set(x)
    adj_b = adj.astype(jnp.bfloat16)          # 0/1 edge multiplicities -> exact
    pool_b = pool_ind.astype(jnp.bfloat16)    # 0/1 indicator -> exact
    invc = inv_counts.astype(jnp.float32)     # exact f32 mean post-scale

    args = (eps, adj_b, x_pad, pool_b, invc,
            w1s, b1s, w2s, b2s, w1h, b1h, w2h, b2h, wl, bl)

    # Advisory cost estimate for XLA scheduling.
    flops = num_tiles * (
        NUM_LAYERS * (2 * tile_n * tile_n * LANE          # adj @ h
                      + 2 * (2 * tile_n * LANE * LANE))   # 2 MLP matmuls
        + 2 * tile_n * CAT_W * HEAD_H1                    # single K=768 seq1 matmul
        + 2 * tile_g * tile_n * HEAD_H1                   # pooling matmul
        + 2 * tile_g * HEAD_H1 * HEAD_H2                  # seq2
        + 2 * tile_g * HEAD_H2)                           # final reduce
    bytes_accessed = sum(int(a.size) * a.dtype.itemsize for a in args) + g * 4
    cost = pl.CostEstimate(flops=int(flops), transcendentals=int(g),
                           bytes_accessed=int(bytes_accessed))

    smem = pl.BlockSpec(memory_space=pltpu.MemorySpace.SMEM)
    const2 = lambda i: (0, 0)
    const3 = lambda i: (0, 0, 0)
    in_specs = [
        smem,                                                     # eps (6,)
        pl.BlockSpec((tile_n, tile_n), lambda i: (i, i)),         # adj diag block
        pl.BlockSpec((tile_n, LANE), lambda i: (i, 0)),           # node features
        pl.BlockSpec((tile_g, tile_n), lambda i: (i, i)),         # pool diag block
        pl.BlockSpec((tile_g, 1), lambda i: (i, 0)),              # 1/|graph|
        pl.BlockSpec((NUM_LAYERS, LANE, LANE), const3),           # w1s
        pl.BlockSpec((NUM_LAYERS, LANE), const2),                 # b1s
        pl.BlockSpec((NUM_LAYERS, LANE, LANE), const3),           # w2s
        pl.BlockSpec((NUM_LAYERS, LANE), const2),                 # b2s
        pl.BlockSpec((CAT_W, HEAD_H1), const2),                   # w1h (768,384)
        pl.BlockSpec((1, HEAD_H1), const2),                       # b1h
        pl.BlockSpec((HEAD_H1, HEAD_H2), const2),                 # w2h
        pl.BlockSpec((1, HEAD_H2), const2),                       # b2h
        pl.BlockSpec((1, HEAD_H2), const2),                       # wl
        pl.BlockSpec((1, 1), const2),                             # bl
    ]
    out_specs = pl.BlockSpec((tile_g, 1), lambda i: (i, 0))

    return pl.pallas_call(
        ginnet_kernel,
        out_shape=jax.ShapeDtypeStruct((g, 1), jnp.float32),
        grid=(num_tiles,),
        in_specs=in_specs,
        out_specs=out_specs,
        scratch_shapes=[pltpu.VMEM((tile_n, CAT_W), jnp.bfloat16)],  # concat scratch
        compiler_params=pltpu.CompilerParams(
            # graph tiles are independent -> shard across v7x's 2 TensorCores
            dimension_semantics=("parallel",),
            # explicit scoped-VMEM budget; raise this when scaling tile_n
            vmem_limit_bytes=32 * 1024 * 1024),
        cost_estimate=cost,
    )(*args)


# ----------------------------------------------------------------------------
# Deterministic parameter initialization (mirrors the torch module's shapes)
# ----------------------------------------------------------------------------
def init_linear(key, fin, fout):
    kw, kb = jax.random.split(key)
    bound = 1.0 / math.sqrt(fin)
    w = jax.random.uniform(kw, (fin, fout), jnp.float32, -bound, bound)
    b = jax.random.uniform(kb, (1, fout), jnp.float32, -bound, bound)
    return w, b


def init_bn(key, c):
    # gamma=1, beta=0, slightly perturbed running stats -> folded affine.
    km, kv = jax.random.split(key)
    mean = 0.01 * jax.random.normal(km, (1, c), jnp.float32)
    var = 1.0 + 0.1 * jax.random.uniform(kv, (1, c), jnp.float32)
    scale = 1.0 / jnp.sqrt(var + 1e-5)           # gamma / sqrt(var + eps)
    shift = -mean * scale                        # beta - mean * scale
    return scale, shift


def init_gin_params(key, cin, h):
    k1, k2, k3, k4 = jax.random.split(key, 4)
    w1, b1 = init_linear(k1, cin, h)
    s1, t1 = init_bn(k2, h)
    w2, b2 = init_linear(k3, h, h)
    s2, t2 = init_bn(k4, h)
    return (w1, b1, s1, t1, w2, b2, s2, t2)


def init_all_params(key):
    ks = jax.random.split(key, 10)
    gin_params = [init_gin_params(ks[i], cin, h)
                  for i, (cin, h) in enumerate(LAYER_DIMS)]
    # train_eps=True, PyG default initial value eps = 0.0 (learnable scalar)
    eps_list = [jnp.zeros((1,), jnp.float32) for _ in range(NUM_LAYERS)]
    # seq1: Linear(448, 384) + BN + ReLU
    w_s1, b_s1 = init_linear(ks[6], 448, HEAD_H1)
    s_s1, t_s1 = init_bn(ks[7], HEAD_H1)
    seq1_p = (w_s1, b_s1, s_s1, t_s1)
    # seq2: Linear(384, 256) + ReLU
    seq2_p = init_linear(ks[8], HEAD_H1, HEAD_H2)
    # lin: Linear(256, 1)
    lin_p = init_linear(ks[9], HEAD_H2, 1)
    return (eps_list, gin_params, seq1_p, seq2_p, lin_p)


# ----------------------------------------------------------------------------
# Main
# ----------------------------------------------------------------------------
if __name__ == "__main__":
    key = jax.random.PRNGKey(0)
    k_x, k_p = jax.random.split(key)

    # Batched synthetic graphs: 64 graphs x 8 nodes, 3 input features per node.
    # 32 graphs (256 node rows) per grid tile -> 2 parallel grid steps.
    NODES_PER_GRAPH = 8
    GRAPHS_PER_TILE = 32
    NUM_TILES = 2
    G = GRAPHS_PER_TILE * NUM_TILES            # 64 graphs
    N = G * NODES_PER_GRAPH                    # 512 nodes
    F_IN = 3

    x = jax.random.normal(k_x, (N, F_IN), jnp.float32)
    batch = jnp.repeat(jnp.arange(G, dtype=jnp.int32), NODES_PER_GRAPH)

    # Edges: bidirectional ring inside each graph -> edge_index [2, E].
    src_list, dst_list = [], []
    for gi in range(G):
        base = gi * NODES_PER_GRAPH
        for i in range(NODES_PER_GRAPH):
            a, b = base + i, base + (i + 1) % NODES_PER_GRAPH
            src_list += [a, b]
            dst_list += [b, a]
    edge_index = jnp.array([src_list, dst_list], dtype=jnp.int32)

    # Dense adjacency (A[dst, src] += 1), block-diagonal per graph.
    adj = jnp.zeros((N, N), jnp.float32).at[edge_index[1], edge_index[0]].add(1.0)
    # 0/1 pool indicator (exact in bf16) + separate f32 1/|graph| post-scale.
    pool_ind = jnp.zeros((G, N), jnp.float32).at[batch, jnp.arange(N)].set(1.0)
    counts = jnp.zeros((G,), jnp.float32).at[batch].add(1.0)
    inv_counts = (1.0 / counts).reshape(G, 1)

    params = init_all_params(k_p)
    packed = pack_params(params)     # fold BN, pad to 128 lanes, cast to bf16

    out = ginnet_forward(x, adj, pool_ind, inv_counts, packed,
                         graphs_per_tile=GRAPHS_PER_TILE,
                         nodes_per_graph=NODES_PER_GRAPH)
    out = jax.block_until_ready(out)
    assert out.shape == (G, 1)
    assert bool(jnp.all(jnp.isfinite(out)))
    assert bool(jnp.all((out >= 0.0) & (out <= 1.0)))
    print("KERNEL_OK")
</pallas_src>

<mosaic_0001>
module attributes {stable_mosaic.version = 11 : i64} {
  func.func @ginnet_kernel(%arg0: i32, %arg1: memref<6xf32, #tpu.memory_space<smem>>, %arg2: memref<256x256xbf16, #tpu.memory_space<vmem>>, %arg3: memref<256x128xf32, #tpu.memory_space<vmem>>, %arg4: memref<32x256xbf16, #tpu.memory_space<vmem>>, %arg5: memref<32x1xf32, #tpu.memory_space<vmem>>, %arg6: memref<6x128x128xbf16, #tpu.memory_space<vmem>>, %arg7: memref<6x128xf32, #tpu.memory_space<vmem>>, %arg8: memref<6x128x128xbf16, #tpu.memory_space<vmem>>, %arg9: memref<6x128xf32, #tpu.memory_space<vmem>>, %arg10: memref<768x384xbf16, #tpu.memory_space<vmem>>, %arg11: memref<1x384xf32, #tpu.memory_space<vmem>>, %arg12: memref<384x256xbf16, #tpu.memory_space<vmem>>, %arg13: memref<1x256xf32, #tpu.memory_space<vmem>>, %arg14: memref<1x256xf32, #tpu.memory_space<vmem>>, %arg15: memref<1x1xf32, #tpu.memory_space<vmem>>, %arg16: memref<32x1xf32, #tpu.memory_space<vmem>>, %arg17: memref<256x768xbf16, #tpu.memory_space<vmem>>) attributes {dimension_semantics = [#tpu.dimension_semantics<parallel>], iteration_bounds = array<i64: 2>, scalar_prefetch = 0 : i64, scratch_operands = 1 : i64, tpu.core_type = #tpu.core_type<tc>, window_params = [{transform_indices = @transform_0, window_bounds = array<i64: 6>}, {transform_indices = @transform_1, window_bounds = array<i64: 256, 256>}, {transform_indices = @transform_2, window_bounds = array<i64: 256, 128>}, {transform_indices = @transform_3, window_bounds = array<i64: 32, 256>}, {transform_indices = @transform_4, window_bounds = array<i64: 32, 1>}, {pipeline_mode = #tpu.pipeline_mode<synchronous>, transform_indices = @transform_5, window_bounds = array<i64: 6, 128, 128>}, {pipeline_mode = #tpu.pipeline_mode<synchronous>, transform_indices = @transform_6, window_bounds = array<i64: 6, 128>}, {pipeline_mode = #tpu.pipeline_mode<synchronous>, transform_indices = @transform_7, window_bounds = array<i64: 6, 128, 128>}, {pipeline_mode = #tpu.pipeline_mode<synchronous>, transform_indices = @transform_8, window_bounds = array<i64: 6, 128>}, {pipeline_mode = #tpu.pipeline_mode<synchronous>, transform_indices = @transform_9, window_bounds = array<i64: 768, 384>}, {pipeline_mode = #tpu.pipeline_mode<synchronous>, transform_indices = @transform_10, window_bounds = array<i64: 1, 384>}, {pipeline_mode = #tpu.pipeline_mode<synchronous>, transform_indices = @transform_11, window_bounds = array<i64: 384, 256>}, {pipeline_mode = #tpu.pipeline_mode<synchronous>, transform_indices = @transform_12, window_bounds = array<i64: 1, 256>}, {pipeline_mode = #tpu.pipeline_mode<synchronous>, transform_indices = @transform_13, window_bounds = array<i64: 1, 256>}, {pipeline_mode = #tpu.pipeline_mode<synchronous>, transform_indices = @transform_14, window_bounds = array<i64: 1, 1>}, {transform_indices = @transform_15, window_bounds = array<i64: 32, 1>}]} {
    %c0 = arith.constant 0 : index
    %c0_0 = arith.constant 0 : index
    %0 = vector.load %arg2[%c0, %c0_0] : memref<256x256xbf16, #tpu.memory_space<vmem>>, vector<256x256xbf16>
    %c0_1 = arith.constant 0 : index
    %c0_2 = arith.constant 0 : index
    %1 = vector.load %arg3[%c0_1, %c0_2] : memref<256x128xf32, #tpu.memory_space<vmem>>, vector<256x128xf32>
    %2 = arith.truncf %1 : vector<256x128xf32> to vector<256x128xbf16>
    %c0_3 = arith.constant 0 : index
    %3 = memref.load %arg1[%c0_3] : memref<6xf32, #tpu.memory_space<smem>>
    %cst = arith.constant 1.000000e+00 : f32
    %4 = arith.addf %cst, %3 : f32
    %cst_4 = arith.constant dense<0.000000e+00> : vector<256x128xf32>
    %5 = tpu.matmul %0, %2, %cst_4 {dimension_numbers = #tpu.dot_dimension_numbers<[1], [0], [0], [1], [0, 0, 1, 1], [], []>} : vector<256x256xbf16>, vector<256x128xbf16>, vector<256x128xf32> -> vector<256x128xf32>
    %6 = vector.broadcast %4 : f32 to vector<256x128xf32>
    %7 = arith.mulf %6, %1 : vector<256x128xf32>
    %8 = arith.addf %5, %7 : vector<256x128xf32>
    %9 = arith.truncf %8 : vector<256x128xf32> to vector<256x128xbf16>
    %c0_5 = arith.constant 0 : index
    %c0_6 = arith.constant 0 : index
    %c0_7 = arith.constant 0 : index
    %10 = vector.load %arg6[%c0_5, %c0_6, %c0_7] : memref<6x128x128xbf16, #tpu.memory_space<vmem>>, vector<1x128x128xbf16>
    %11 = vector.shape_cast %10 : vector<1x128x128xbf16> to vector<128x128xbf16>
    %cst_8 = arith.constant dense<0.000000e+00> : vector<256x128xf32>
    %12 = tpu.matmul %9, %11, %cst_8 {dimension_numbers = #tpu.dot_dimension_numbers<[1], [0], [0], [1], [0, 0, 1, 1], [], []>} : vector<256x128xbf16>, vector<128x128xbf16>, vector<256x128xf32> -> vector<256x128xf32>
    %c0_9 = arith.constant 0 : index
    %c0_10 = arith.constant 0 : index
    %13 = vector.load %arg7[%c0_9, %c0_10] : memref<6x128xf32, #tpu.memory_space<vmem>>, vector<1x128xf32>
    %14 = vector.broadcast %13 : vector<1x128xf32> to vector<256x128xf32>
    %15 = arith.addf %12, %14 : vector<256x128xf32>
    %cst_11 = arith.constant 0.000000e+00 : f32
    %16 = vector.broadcast %cst_11 : f32 to vector<256x128xf32>
    %17 = arith.maximumf %15, %16 : vector<256x128xf32>
    %18 = arith.truncf %17 : vector<256x128xf32> to vector<256x128xbf16>
    %c0_12 = arith.constant 0 : index
    %c0_13 = arith.constant 0 : index
    %c0_14 = arith.constant 0 : index
    %19 = vector.load %arg8[%c0_12, %c0_13, %c0_14] : memref<6x128x128xbf16, #tpu.memory_space<vmem>>, vector<1x128x128xbf16>
    %20 = vector.shape_cast %19 : vector<1x128x128xbf16> to vector<128x128xbf16>
    %cst_15 = arith.constant dense<0.000000e+00> : vector<256x128xf32>
    %21 = tpu.matmul %18, %20, %cst_15 {dimension_numbers = #tpu.dot_dimension_numbers<[1], [0], [0], [1], [0, 0, 1, 1], [], []>} : vector<256x128xbf16>, vector<128x128xbf16>, vector<256x128xf32> -> vector<256x128xf32>
    %c0_16 = arith.constant 0 : index
    %c0_17 = arith.constant 0 : index
    %22 = vector.load %arg9[%c0_16, %c0_17] : memref<6x128xf32, #tpu.memory_space<vmem>>, vector<1x128xf32>
    %23 = vector.broadcast %22 : vector<1x128xf32> to vector<256x128xf32>
    %24 = arith.addf %21, %23 : vector<256x128xf32>
    %cst_18 = arith.constant 0.000000e+00 : f32
    %25 = vector.broadcast %cst_18 : f32 to vector<256x128xf32>
    %26 = arith.maximumf %24, %25 : vector<256x128xf32>
    %27 = arith.truncf %26 : vector<256x128xf32> to vector<256x128xbf16>
    %c0_19 = arith.constant 0 : index
    %c0_20 = arith.constant 0 : index
    %28 = vector.load %arg17[%c0_19, %c0_20] : memref<256x768xbf16, #tpu.memory_space<vmem>>, vector<256x128xbf16>
    tpu.vector_store %arg17[%c0_19, %c0_20], %27 {strides = array<i32>} : memref<256x768xbf16, #tpu.memory_space<vmem>>, vector<256x128xbf16>,
    %c1 = arith.constant 1 : index
    %29 = memref.load %arg1[%c1] : memref<6xf32, #tpu.memory_space<smem>>
    %cst_21 = arith.constant 1.000000e+00 : f32
    %30 = arith.addf %cst_21, %29 : f32
    %cst_22 = arith.constant dense<0.000000e+00> : vector<256x128xf32>
    %31 = tpu.matmul %0, %27, %cst_22 {dimension_numbers = #tpu.dot_dimension_numbers<[1], [0], [0], [1], [0, 0, 1, 1], [], []>} : vector<256x256xbf16>, vector<256x128xbf16>, vector<256x128xf32> -> vector<256x128xf32>
    %32 = vector.broadcast %30 : f32 to vector<256x128xf32>
    %33 = arith.mulf %32, %26 : vector<256x128xf32>
    %34 = arith.addf %31, %33 : vector<256x128xf32>
    %35 = arith.truncf %34 : vector<256x128xf32> to vector<256x128xbf16>
    %c1_23 = arith.constant 1 : index
    %c0_24 = arith.constant 0 : index
    %c0_25 = arith.constant 0 : index
    %36 = vector.load %arg6[%c1_23, %c0_24, %c0_25] : memref<6x128x128xbf16, #tpu.memory_space<vmem>>, vector<1x128x128xbf16>
    %37 = vector.shape_cast %36 : vector<1x128x128xbf16> to vector<128x128xbf16>
    %cst_26 = arith.constant dense<0.000000e+00> : vector<256x128xf32>
    %38 = tpu.matmul %35, %37, %cst_26 {dimension_numbers = #tpu.dot_dimension_numbers<[1], [0], [0], [1], [0, 0, 1, 1], [], []>} : vector<256x128xbf16>, vector<128x128xbf16>, vector<256x128xf32> -> vector<256x128xf32>
    %c1_27 = arith.constant 1 : index
    %c0_28 = arith.constant 0 : index
    %39 = vector.load %arg7[%c1_27, %c0_28] : memref<6x128xf32, #tpu.memory_space<vmem>>, vector<1x128xf32>
    %40 = vector.broadcast %39 : vector<1x128xf32> to vector<256x128xf32>
    %41 = arith.addf %38, %40 : vector<256x128xf32>
    %cst_29 = arith.constant 0.000000e+00 : f32
    %42 = vector.broadcast %cst_29 : f32 to vector<256x128xf32>
    %43 = arith.maximumf %41, %42 : vector<256x128xf32>
    %44 = arith.truncf %43 : vector<256x128xf32> to vector<256x128xbf16>
    %c1_30 = arith.constant 1 : index
    %c0_31 = arith.constant 0 : index
    %c0_32 = arith.constant 0 : index
    %45 = vector.load %arg8[%c1_30, %c0_31, %c0_32] : memref<6x128x128xbf16, #tpu.memory_space<vmem>>, vector<1x128x128xbf16>
    %46 = vector.shape_cast %45 : vector<1x128x128xbf16> to vector<128x128xbf16>
    %cst_33 = arith.constant dense<0.000000e+00> : vector<256x128xf32>
    %47 = tpu.matmul %44, %46, %cst_33 {dimension_numbers = #tpu.dot_dimension_numbers<[1], [0], [0], [1], [0, 0, 1, 1], [], []>} : vector<256x128xbf16>, vector<128x128xbf16>, vector<256x128xf32> -> vector<256x128xf32>
    %c1_34 = arith.constant 1 : index
    %c0_35 = arith.constant 0 : index
    %48 = vector.load %arg9[%c1_34, %c0_35] : memref<6x128xf32, #tpu.memory_space<vmem>>, vector<1x128xf32>
    %49 = vector.broadcast %48 : vector<1x128xf32> to vector<256x128xf32>
    %50 = arith.addf %47, %49 : vector<256x128xf32>
    %cst_36 = arith.constant 0.000000e+00 : f32
    %51 = vector.broadcast %cst_36 : f32 to vector<256x128xf32>
    %52 = arith.maximumf %50, %51 : vector<256x128xf32>
    %53 = arith.truncf %52 : vector<256x128xf32> to vector<256x128xbf16>
    %c0_37 = arith.constant 0 : index
    %c128 = arith.constant 128 : index
    %54 = vector.load %arg17[%c0_37, %c128] : memref<256x768xbf16, #tpu.memory_space<vmem>>, vector<256x128xbf16>
    tpu.vector_store %arg17[%c0_37, %c128], %53 {strides = array<i32>} : memref<256x768xbf16, #tpu.memory_space<vmem>>, vector<256x128xbf16>,
    %c2 = arith.constant 2 : index
    %55 = memref.load %arg1[%c2] : memref<6xf32, #tpu.memory_space<smem>>
    %cst_38 = arith.constant 1.000000e+00 : f32
    %56 = arith.addf %cst_38, %55 : f32
    %cst_39 = arith.constant dense<0.000000e+00> : vector<256x128xf32>
    %57 = tpu.matmul %0, %53, %cst_39 {dimension_numbers = #tpu.dot_dimension_numbers<[1], [0], [0], [1], [0, 0, 1, 1], [], []>} : vector<256x256xbf16>, vector<256x128xbf16>, vector<256x128xf32> -> vector<256x128xf32>
    %58 = vector.broadcast %56 : f32 to vector<256x128xf32>
    %59 = arith.mulf %58, %52 : vector<256x128xf32>
    %60 = arith.addf %57, %59 : vector<256x128xf32>
    %61 = arith.truncf %60 : vector<256x128xf32> to vector<256x128xbf16>
    %c2_40 = arith.constant 2 : index
    %c0_41 = arith.constant 0 : index
    %c0_42 = arith.constant 0 : index
    %62 = vector.load %arg6[%c2_40, %c0_41, %c0_42] : memref<6x128x128xbf16, #tpu.memory_space<vmem>>, vector<1x128x128xbf16>
    %63 = vector.shape_cast %62 : vector<1x128x128xbf16> to vector<128x128xbf16>
    %cst_43 = arith.constant dense<0.000000e+00> : vector<256x128xf32>
    %64 = tpu.matmul %61, %63, %cst_43 {dimension_numbers = #tpu.dot_dimension_numbers<[1], [0], [0], [1], [0, 0, 1, 1], [], []>} : vector<256x128xbf16>, vector<128x128xbf16>, vector<256x128xf32> -> vector<256x128xf32>
    %c2_44 = arith.constant 2 : index
    %c0_45 = arith.constant 0 : index
    %65 = vector.load %arg7[%c2_44, %c0_45] : memref<6x128xf32, #tpu.memory_space<vmem>>, vector<1x128xf32>
    %66 = vector.broadcast %65 : vector<1x128xf32> to vector<256x128xf32>
    %67 = arith.addf %64, %66 : vector<256x128xf32>
    %cst_46 = arith.constant 0.000000e+00 : f32
    %68 = vector.broadcast %cst_46 : f32 to vector<256x128xf32>
    %69 = arith.maximumf %67, %68 : vector<256x128xf32>
    %70 = arith.truncf %69 : vector<256x128xf32> to vector<256x128xbf16>
    %c2_47 = arith.constant 2 : index
    %c0_48 = arith.constant 0 : index
    %c0_49 = arith.constant 0 : index
    %71 = vector.load %arg8[%c2_47, %c0_48, %c0_49] : memref<6x128x128xbf16, #tpu.memory_space<vmem>>, vector<1x128x128xbf16>
    %72 = vector.shape_cast %71 : vector<1x128x128xbf16> to vector<128x128xbf16>
    %cst_50 = arith.constant dense<0.000000e+00> : vector<256x128xf32>
    %73 = tpu.matmul %70, %72, %cst_50 {dimension_numbers = #tpu.dot_dimension_numbers<[1], [0], [0], [1], [0, 0, 1, 1], [], []>} : vector<256x128xbf16>, vector<128x128xbf16>, vector<256x128xf32> -> vector<256x128xf32>
    %c2_51 = arith.constant 2 : index
    %c0_52 = arith.constant 0 : index
    %74 = vector.load %arg9[%c2_51, %c0_52] : memref<6x128xf32, #tpu.memory_space<vmem>>, vector<1x128xf32>
    %75 = vector.broadcast %74 : vector<1x128xf32> to vector<256x128xf32>
    %76 = arith.addf %73, %75 : vector<256x128xf32>
    %cst_53 = arith.constant 0.000000e+00 : f32
    %77 = vector.broadcast %cst_53 : f32 to vector<256x128xf32>
    %78 = arith.maximumf %76, %77 : vector<256x128xf32>
    %79 = arith.truncf %78 : vector<256x128xf32> to vector<256x128xbf16>
    %c0_54 = arith.constant 0 : index
    %c256 = arith.constant 256 : index
    %80 = vector.load %arg17[%c0_54, %c256] : memref<256x768xbf16, #tpu.memory_space<vmem>>, vector<256x128xbf16>
    tpu.vector_store %arg17[%c0_54, %c256], %79 {strides = array<i32>} : memref<256x768xbf16, #tpu.memory_space<vmem>>, vector<256x128xbf16>,
    %c3 = arith.constant 3 : index
    %81 = memref.load %arg1[%c3] : memref<6xf32, #tpu.memory_space<smem>>
    %cst_55 = arith.constant 1.000000e+00 : f32
    %82 = arith.addf %cst_55, %81 : f32
    %cst_56 = arith.constant dense<0.000000e+00> : vector<256x128xf32>
    %83 = tpu.matmul %0, %79, %cst_56 {dimension_numbers = #tpu.dot_dimension_numbers<[1], [0], [0], [1], [0, 0, 1, 1], [], []>} : vector<256x256xbf16>, vector<256x128xbf16>, vector<256x128xf32> -> vector<256x128xf32>
    %84 = vector.broadcast %82 : f32 to vector<256x128xf32>
    %85 = arith.mulf %84, %78 : vector<256x128xf32>
    %86 = arith.addf %83, %85 : vector<256x128xf32>
    %87 = arith.truncf %86 : vector<256x128xf32> to vector<256x128xbf16>
    %c3_57 = arith.constant 3 : index
    %c0_58 = arith.constant 0 : index
    %c0_59 = arith.constant 0 : index
    %88 = vector.load %arg6[%c3_57, %c0_58, %c0_59] : memref<6x128x128xbf16, #tpu.memory_space<vmem>>, vector<1x128x128xbf16>
    %89 = vector.shape_cast %88 : vector<1x128x128xbf16> to vector<128x128xbf16>
    %cst_60 = arith.constant dense<0.000000e+00> : vector<256x128xf32>
    %90 = tpu.matmul %87, %89, %cst_60 {dimension_numbers = #tpu.dot_dimension_numbers<[1], [0], [0], [1], [0, 0, 1, 1], [], []>} : vector<256x128xbf16>, vector<128x128xbf16>, vector<256x128xf32> -> vector<256x128xf32>
    %c3_61 = arith.constant 3 : index
    %c0_62 = arith.constant 0 : index
    %91 = vector.load %arg7[%c3_61, %c0_62] : memref<6x128xf32, #tpu.memory_space<vmem>>, vector<1x128xf32>
    %92 = vector.broadcast %91 : vector<1x128xf32> to vector<256x128xf32>
    %93 = arith.addf %90, %92 : vector<256x128xf32>
    %cst_63 = arith.constant 0.000000e+00 : f32
    %94 = vector.broadcast %cst_63 : f32 to vector<256x128xf32>
    %95 = arith.maximumf %93, %94 : vector<256x128xf32>
    %96 = arith.truncf %95 : vector<256x128xf32> to vector<256x128xbf16>
    %c3_64 = arith.constant 3 : index
    %c0_65 = arith.constant 0 : index
    %c0_66 = arith.constant 0 : index
    %97 = vector.load %arg8[%c3_64, %c0_65, %c0_66] : memref<6x128x128xbf16, #tpu.memory_space<vmem>>, vector<1x128x128xbf16>
    %98 = vector.shape_cast %97 : vector<1x128x128xbf16> to vector<128x128xbf16>
    %cst_67 = arith.constant dense<0.000000e+00> : vector<256x128xf32>
    %99 = tpu.matmul %96, %98, %cst_67 {dimension_numbers = #tpu.dot_dimension_numbers<[1], [0], [0], [1], [0, 0, 1, 1], [], []>} : vector<256x128xbf16>, vector<128x128xbf16>, vector<256x128xf32> -> vector<256x128xf32>
    %c3_68 = arith.constant 3 : index
    %c0_69 = arith.constant 0 : index
    %100 = vector.load %arg9[%c3_68, %c0_69] : memref<6x128xf32, #tpu.memory_space<vmem>>, vector<1x128xf32>
    %101 = vector.broadcast %100 : vector<1x128xf32> to vector<256x128xf32>
    %102 = arith.addf %99, %101 : vector<256x128xf32>
    %cst_70 = arith.constant 0.000000e+00 : f32
    %103 = vector.broadcast %cst_70 : f32 to vector<256x128xf32>
    %104 = arith.maximumf %102, %103 : vector<256x128xf32>
    %105 = arith.truncf %104 : vector<256x128xf32> to vector<256x128xbf16>
    %c0_71 = arith.constant 0 : index
    %c384 = arith.constant 384 : index
    %106 = vector.load %arg17[%c0_71, %c384] : memref<256x768xbf16, #tpu.memory_space<vmem>>, vector<256x128xbf16>
    tpu.vector_store %arg17[%c0_71, %c384], %105 {strides = array<i32>} : memref<256x768xbf16, #tpu.memory_space<vmem>>, vector<256x128xbf16>,
    %c4 = arith.constant 4 : index
    %107 = memref.load %arg1[%c4] : memref<6xf32, #tpu.memory_space<smem>>
    %cst_72 = arith.constant 1.000000e+00 : f32
    %108 = arith.addf %cst_72, %107 : f32
    %cst_73 = arith.constant dense<0.000000e+00> : vector<256x128xf32>
    %109 = tpu.matmul %0, %105, %cst_73 {dimension_numbers = #tpu.dot_dimension_numbers<[1], [0], [0], [1], [0, 0, 1, 1], [], []>} : vector<256x256xbf16>, vector<256x128xbf16>, vector<256x128xf32> -> vector<256x128xf32>
    %110 = vector.broadcast %108 : f32 to vector<256x128xf32>
    %111 = arith.mulf %110, %104 : vector<256x128xf32>
    %112 = arith.addf %109, %111 : vector<256x128xf32>
    %113 = arith.truncf %112 : vector<256x128xf32> to vector<256x128xbf16>
    %c4_74 = arith.constant 4 : index
    %c0_75 = arith.constant 0 : index
    %c0_76 = arith.constant 0 : index
    %114 = vector.load %arg6[%c4_74, %c0_75, %c0_76] : memref<6x128x128xbf16, #tpu.memory_space<vmem>>, vector<1x128x128xbf16>
    %115 = vector.shape_cast %114 : vector<1x128x128xbf16> to vector<128x128xbf16>
    %cst_77 = arith.constant dense<0.000000e+00> : vector<256x128xf32>
    %116 = tpu.matmul %113, %115, %cst_77 {dimension_numbers = #tpu.dot_dimension_numbers<[1], [0], [0], [1], [0, 0, 1, 1], [], []>} : vector<256x128xbf16>, vector<128x128xbf16>, vector<256x128xf32> -> vector<256x128xf32>
    %c4_78 = arith.constant 4 : index
    %c0_79 = arith.constant 0 : index
    %117 = vector.load %arg7[%c4_78, %c0_79] : memref<6x128xf32, #tpu.memory_space<vmem>>, vector<1x128xf32>
    %118 = vector.broadcast %117 : vector<1x128xf32> to vector<256x128xf32>
    %119 = arith.addf %116, %118 : vector<256x128xf32>
    %cst_80 = arith.constant 0.000000e+00 : f32
    %120 = vector.broadcast %cst_80 : f32 to vector<256x128xf32>
    %121 = arith.maximumf %119, %120 : vector<256x128xf32>
    %122 = arith.truncf %121 : vector<256x128xf32> to vector<256x128xbf16>
    %c4_81 = arith.constant 4 : index
    %c0_82 = arith.constant 0 : index
    %c0_83 = arith.constant 0 : index
    %123 = vector.load %arg8[%c4_81, %c0_82, %c0_83] : memref<6x128x128xbf16, #tpu.memory_space<vmem>>, vector<1x128x128xbf16>
    %124 = vector.shape_cast %123 : vector<1x128x128xbf16> to vector<128x128xbf16>
    %cst_84 = arith.constant dense<0.000000e+00> : vector<256x128xf32>
    %125 = tpu.matmul %122, %124, %cst_84 {dimension_numbers = #tpu.dot_dimension_numbers<[1], [0], [0], [1], [0, 0, 1, 1], [], []>} : vector<256x128xbf16>, vector<128x128xbf16>, vector<256x128xf32> -> vector<256x128xf32>
    %c4_85 = arith.constant 4 : index
    %c0_86 = arith.constant 0 : index
    %126 = vector.load %arg9[%c4_85, %c0_86] : memref<6x128xf32, #tpu.memory_space<vmem>>, vector<1x128xf32>
    %127 = vector.broadcast %126 : vector<1x128xf32> to vector<256x128xf32>
    %128 = arith.addf %125, %127 : vector<256x128xf32>
    %cst_87 = arith.constant 0.000000e+00 : f32
    %129 = vector.broadcast %cst_87 : f32 to vector<256x128xf32>
    %130 = arith.maximumf %128, %129 : vector<256x128xf32>
    %131 = arith.truncf %130 : vector<256x128xf32> to vector<256x128xbf16>
    %c0_88 = arith.constant 0 : index
    %c512 = arith.constant 512 : index
    %132 = vector.load %arg17[%c0_88, %c512] : memref<256x768xbf16, #tpu.memory_space<vmem>>, vector<256x128xbf16>
    tpu.vector_store %arg17[%c0_88, %c512], %131 {strides = array<i32>} : memref<256x768xbf16, #tpu.memory_space<vmem>>, vector<256x128xbf16>,
    %c5 = arith.constant 5 : index
    %133 = memref.load %arg1[%c5] : memref<6xf32, #tpu.memory_space<smem>>
    %cst_89 = arith.constant 1.000000e+00 : f32
    %134 = arith.addf %cst_89, %133 : f32
    %cst_90 = arith.constant dense<0.000000e+00> : vector<256x128xf32>
    %135 = tpu.matmul %0, %131, %cst_90 {dimension_numbers = #tpu.dot_dimension_numbers<[1], [0], [0], [1], [0, 0, 1, 1], [], []>} : vector<256x256xbf16>, vector<256x128xbf16>, vector<256x128xf32> -> vector<256x128xf32>
    %136 = vector.broadcast %134 : f32 to vector<256x128xf32>
    %137 = arith.mulf %136, %130 : vector<256x128xf32>
    %138 = arith.addf %135, %137 : vector<256x128xf32>
    %139 = arith.truncf %138 : vector<256x128xf32> to vector<256x128xbf16>
    %c5_91 = arith.constant 5 : index
    %c0_92 = arith.constant 0 : index
    %c0_93 = arith.constant 0 : index
    %140 = vector.load %arg6[%c5_91, %c0_92, %c0_93] : memref<6x128x128xbf16, #tpu.memory_space<vmem>>, vector<1x128x128xbf16>
    %141 = vector.shape_cast %140 : vector<1x128x128xbf16> to vector<128x128xbf16>
    %cst_94 = arith.constant dense<0.000000e+00> : vector<256x128xf32>
    %142 = tpu.matmul %139, %141, %cst_94 {dimension_numbers = #tpu.dot_dimension_numbers<[1], [0], [0], [1], [0, 0, 1, 1], [], []>} : vector<256x128xbf16>, vector<128x128xbf16>, vector<256x128xf32> -> vector<256x128xf32>
    %c5_95 = arith.constant 5 : index
    %c0_96 = arith.constant 0 : index
    %143 = vector.load %arg7[%c5_95, %c0_96] : memref<6x128xf32, #tpu.memory_space<vmem>>, vector<1x128xf32>
    %144 = vector.broadcast %143 : vector<1x128xf32> to vector<256x128xf32>
    %145 = arith.addf %142, %144 : vector<256x128xf32>
    %cst_97 = arith.constant 0.000000e+00 : f32
    %146 = vector.broadcast %cst_97 : f32 to vector<256x128xf32>
    %147 = arith.maximumf %145, %146 : vector<256x128xf32>
    %148 = arith.truncf %147 : vector<256x128xf32> to vector<256x128xbf16>
    %c5_98 = arith.constant 5 : index
    %c0_99 = arith.constant 0 : index
    %c0_100 = arith.constant 0 : index
    %149 = vector.load %arg8[%c5_98, %c0_99, %c0_100] : memref<6x128x128xbf16, #tpu.memory_space<vmem>>, vector<1x128x128xbf16>
    %150 = vector.shape_cast %149 : vector<1x128x128xbf16> to vector<128x128xbf16>
    %cst_101 = arith.constant dense<0.000000e+00> : vector<256x128xf32>
    %151 = tpu.matmul %148, %150, %cst_101 {dimension_numbers = #tpu.dot_dimension_numbers<[1], [0], [0], [1], [0, 0, 1, 1], [], []>} : vector<256x128xbf16>, vector<128x128xbf16>, vector<256x128xf32> -> vector<256x128xf32>
    %c5_102 = arith.constant 5 : index
    %c0_103 = arith.constant 0 : index
    %152 = vector.load %arg9[%c5_102, %c0_103] : memref<6x128xf32, #tpu.memory_space<vmem>>, vector<1x128xf32>
    %153 = vector.broadcast %152 : vector<1x128xf32> to vector<256x128xf32>
    %154 = arith.addf %151, %153 : vector<256x128xf32>
    %cst_104 = arith.constant 0.000000e+00 : f32
    %155 = vector.broadcast %cst_104 : f32 to vector<256x128xf32>
    %156 = arith.maximumf %154, %155 : vector<256x128xf32>
    %157 = arith.truncf %156 : vector<256x128xf32> to vector<256x128xbf16>
    %c0_105 = arith.constant 0 : index
    %c640 = arith.constant 640 : index
    %158 = vector.load %arg17[%c0_105, %c640] : memref<256x768xbf16, #tpu.memory_space<vmem>>, vector<256x128xbf16>
    tpu.vector_store %arg17[%c0_105, %c640], %157 {strides = array<i32>} : memref<256x768xbf16, #tpu.memory_space<vmem>>, vector<256x128xbf16>,
    %c0_106 = arith.constant 0 : index
    %c0_107 = arith.constant 0 : index
    %159 = vector.load %arg17[%c0_106, %c0_107] : memref<256x768xbf16, #tpu.memory_space<vmem>>, vector<256x768xbf16>
    %c0_108 = arith.constant 0 : index
    %c0_109 = arith.constant 0 : index
    %160 = vector.load %arg10[%c0_108, %c0_109] : memref<768x384xbf16, #tpu.memory_space<vmem>>, vector<768x384xbf16>
    %cst_110 = arith.constant dense<0.000000e+00> : vector<256x384xf32>
    %161 = tpu.matmul %159, %160, %cst_110 {dimension_numbers = #tpu.dot_dimension_numbers<[1], [0], [0], [1], [0, 0, 1, 1], [], []>} : vector<256x768xbf16>, vector<768x384xbf16>, vector<256x384xf32> -> vector<256x384xf32>
    %c0_111 = arith.constant 0 : index
    %c0_112 = arith.constant 0 : index
    %162 = vector.load %arg11[%c0_111, %c0_112] : memref<1x384xf32, #tpu.memory_space<vmem>>, vector<1x384xf32>
    %163 = vector.broadcast %162 : vector<1x384xf32> to vector<256x384xf32>
    %164 = arith.addf %161, %163 : vector<256x384xf32>
    %cst_113 = arith.constant 0.000000e+00 : f32
    %165 = vector.broadcast %cst_113 : f32 to vector<256x384xf32>
    %166 = arith.maximumf %164, %165 : vector<256x384xf32>
    %c0_114 = arith.constant 0 : index
    %c0_115 = arith.constant 0 : index
    %167 = vector.load %arg4[%c0_114, %c0_115] : memref<32x256xbf16, #tpu.memory_space<vmem>>, vector<32x256xbf16>
    %168 = arith.truncf %166 : vector<256x384xf32> to vector<256x384xbf16>
    %cst_116 = arith.constant dense<0.000000e+00> : vector<32x384xf32>
    %169 = tpu.matmul %167, %168, %cst_116 {dimension_numbers = #tpu.dot_dimension_numbers<[1], [0], [0], [1], [0, 0, 1, 1], [], []>} : vector<32x256xbf16>, vector<256x384xbf16>, vector<32x384xf32> -> vector<32x384xf32>
    %c0_117 = arith.constant 0 : index
    %c0_118 = arith.constant 0 : index
    %170 = vector.load %arg5[%c0_117, %c0_118] : memref<32x1xf32, #tpu.memory_space<vmem>>, vector<32x1xf32>
    %171 = vector.broadcast %170 : vector<32x1xf32> to vector<32x384xf32>
    %172 = arith.mulf %169, %171 : vector<32x384xf32>
    %173 = arith.truncf %172 : vector<32x384xf32> to vector<32x384xbf16>
    %c0_119 = arith.constant 0 : index
    %c0_120 = arith.constant 0 : index
    %174 = vector.load %arg12[%c0_119, %c0_120] : memref<384x256xbf16, #tpu.memory_space<vmem>>, vector<384x256xbf16>
    %cst_121 = arith.constant dense<0.000000e+00> : vector<32x256xf32>
    %175 = tpu.matmul %173, %174, %cst_121 {dimension_numbers = #tpu.dot_dimension_numbers<[1], [0], [0], [1], [0, 0, 1, 1], [], []>} : vector<32x384xbf16>, vector<384x256xbf16>, vector<32x256xf32> -> vector<32x256xf32>
    %c0_122 = arith.constant 0 : index
    %c0_123 = arith.constant 0 : index
    %176 = vector.load %arg13[%c0_122, %c0_123] : memref<1x256xf32, #tpu.memory_space<vmem>>, vector<1x256xf32>
    %177 = vector.broadcast %176 : vector<1x256xf32> to vector<32x256xf32>
    %178 = arith.addf %175, %177 : vector<32x256xf32>
    %cst_124 = arith.constant 0.000000e+00 : f32
    %179 = vector.broadcast %cst_124 : f32 to vector<32x256xf32>
    %180 = arith.maximumf %178, %179 : vector<32x256xf32>
    %c0_125 = arith.constant 0 : index
    %c0_126 = arith.constant 0 : index
    %181 = vector.load %arg14[%c0_125, %c0_126] : memref<1x256xf32, #tpu.memory_space<vmem>>, vector<1x256xf32>
    %182 = vector.broadcast %181 : vector<1x256xf32> to vector<32x256xf32>
    %183 = arith.mulf %180, %182 : vector<32x256xf32>
    %cst_127 = arith.constant dense<0.000000e+00> : vector<32xf32>
    %184 = vector.multi_reduction <add>, %183, %cst_127 [1] : vector<32x256xf32> to vector<32xf32>
    %185 = vector.shape_cast %184 : vector<32xf32> to vector<32x1xf32>
    %c0_128 = arith.constant 0 : index
    %c0_129 = arith.constant 0 : index
    %186 = vector.load %arg15[%c0_128, %c0_129] : memref<1x1xf32, #tpu.memory_space<vmem>>, vector<1x1xf32>
    %187 = vector.broadcast %186 : vector<1x1xf32> to vector<32x1xf32>
    %188 = arith.addf %185, %187 : vector<32x1xf32>
    %189 = arith.negf %188 : vector<32x1xf32>
    %190 = math.exp %189 : vector<32x1xf32>
    %cst_130 = arith.constant 1.000000e+00 : f32
    %191 = vector.broadcast %cst_130 : f32 to vector<32x1xf32>
    %192 = arith.addf %191, %190 : vector<32x1xf32>
    %193 = arith.divf %191, %192 : vector<32x1xf32>
    %c0_131 = arith.constant 0 : index
    %c0_132 = arith.constant 0 : index
    %194 = vector.load %arg16[%c0_131, %c0_132] : memref<32x1xf32, #tpu.memory_space<vmem>>, vector<32x1xf32>
    tpu.vector_store %arg16[%c0_131, %c0_132], %193 {strides = array<i32>} : memref<32x1xf32, #tpu.memory_space<vmem>>, vector<32x1xf32>,
    return
  }
  func.func @transform_0(%arg0: i32) -> i32 {
    %c0_i32 = arith.constant 0 : i32
    %c0_i32_0 = arith.constant 0 : i32
    return %c0_i32 : i32
  }
  func.func @transform_1(%arg0: i32) -> (i32, i32) {
    %c0_i32 = arith.constant 0 : i32
    return %arg0, %arg0 : i32, i32
  }
  func.func @transform_2(%arg0: i32) -> (i32, i32) {
    %c0_i32 = arith.constant 0 : i32
    %c0_i32_0 = arith.constant 0 : i32
    return %arg0, %c0_i32 : i32, i32
  }
  func.func @transform_3(%arg0: i32) -> (i32, i32) {
    %c0_i32 = arith.constant 0 : i32
    return %arg0, %arg0 : i32, i32
  }
  func.func @transform_4(%arg0: i32) -> (i32, i32) {
    %c0_i32 = arith.constant 0 : i32
    %c0_i32_0 = arith.constant 0 : i32
    return %arg0, %c0_i32 : i32, i32
  }
  func.func @transform_5(%arg0: i32) -> (i32, i32, i32) {
    %c0_i32 = arith.constant 0 : i32
    %c0_i32_0 = arith.constant 0 : i32
    %c0_i32_1 = arith.constant 0 : i32
    %c0_i32_2 = arith.constant 0 : i32
    return %c0_i32, %c0_i32_0, %c0_i32_1 : i32, i32, i32
  }
  func.func @transform_6(%arg0: i32) -> (i32, i32) {
    %c0_i32 = arith.constant 0 : i32
    %c0_i32_0 = arith.constant 0 : i32
    %c0_i32_1 = arith.constant 0 : i32
    return %c0_i32, %c0_i32_0 : i32, i32
  }
  func.func @transform_7(%arg0: i32) -> (i32, i32, i32) {
    %c0_i32 = arith.constant 0 : i32
    %c0_i32_0 = arith.constant 0 : i32
    %c0_i32_1 = arith.constant 0 : i32
    %c0_i32_2 = arith.constant 0 : i32
    return %c0_i32, %c0_i32_0, %c0_i32_1 : i32, i32, i32
  }
  func.func @transform_8(%arg0: i32) -> (i32, i32) {
    %c0_i32 = arith.constant 0 : i32
    %c0_i32_0 = arith.constant 0 : i32
    %c0_i32_1 = arith.constant 0 : i32
    return %c0_i32, %c0_i32_0 : i32, i32
  }
  func.func @transform_9(%arg0: i32) -> (i32, i32) {
    %c0_i32 = arith.constant 0 : i32
    %c0_i32_0 = arith.constant 0 : i32
    %c0_i32_1 = arith.constant 0 : i32
    return %c0_i32, %c0_i32_0 : i32, i32
  }
  func.func @transform_10(%arg0: i32) -> (i32, i32) {
    %c0_i32 = arith.constant 0 : i32
    %c0_i32_0 = arith.constant 0 : i32
    %c0_i32_1 = arith.constant 0 : i32
    return %c0_i32, %c0_i32_0 : i32, i32
  }
  func.func @transform_11(%arg0: i32) -> (i32, i32) {
    %c0_i32 = arith.constant 0 : i32
    %c0_i32_0 = arith.constant 0 : i32
    %c0_i32_1 = arith.constant 0 : i32
    return %c0_i32, %c0_i32_0 : i32, i32
  }
  func.func @transform_12(%arg0: i32) -> (i32, i32) {
    %c0_i32 = arith.constant 0 : i32
    %c0_i32_0 = arith.constant 0 : i32
    %c0_i32_1 = arith.constant 0 : i32
    return %c0_i32, %c0_i32_0 : i32, i32
  }
  func.func @transform_13(%arg0: i32) -> (i32, i32) {
    %c0_i32 = arith.constant 0 : i32
    %c0_i32_0 = arith.constant 0 : i32
    %c0_i32_1 = arith.constant 0 : i32
    return %c0_i32, %c0_i32_0 : i32, i32
  }
  func.func @transform_14(%arg0: i32) -> (i32, i32) {
    %c0_i32 = arith.constant 0 : i32
    %c0_i32_0 = arith.constant 0 : i32
    %c0_i32_1 = arith.constant 0 : i32
    return %c0_i32, %c0_i32_0 : i32, i32
  }
  func.func @transform_15(%arg0: i32) -> (i32, i32) {
    %c0_i32 = arith.constant 0 : i32
    %c0_i32_0 = arith.constant 0 : i32
    return %arg0, %c0_i32 : i32, i32
  }
}

</mosaic_0001>

<bundles_post_ra>
// kernel: tpu_custom_call.1
= control target key start
LH: loop header
LB: loop body
LE: loop exit
PB: predicated region body
PF: predicated region fallthrough
CT: control target
= control target key end

     0   :  { %s17479_s0 = inlined_call_operand.vmem [shape: f32[6], index: 0, kind: input, shape index: {}]   ;;  %s17480_s1 = inlined_call_operand.hbm [shape: bf16[512,512], index: 1, kind: input, shape index: {}]   ;;  %s17481_s2 = inlined_call_operand.hbm [shape: f32[512,128], index: 2, kind: input, shape index: {}]   ;;  %s17482_s3 = inlined_call_operand.hbm [shape: bf16[64,512], index: 3, kind: input, shape index: {}]   ;;  %s17483_s4 = inlined_call_operand.vmem [shape: f32[64,1], index: 4, kind: input, shape index: {}]   ;;  %s17484_s5 = inlined_call_operand.hbm [shape: bf16[6,128,128], index: 5, kind: input, shape index: {}]   ;;  %s17485_s6 = inlined_call_operand.vmem [shape: f32[6,128], index: 6, kind: input, shape index: {}]   ;;  %s17486_s7 = inlined_call_operand.hbm [shape: bf16[6,128,128], index: 7, kind: input, shape index: {}]   ;;  %s17487_s8 = inlined_call_operand.vmem [shape: f32[6,128], index: 8, kind: input, shape index: {}]   ;;  %s17488_s9 = inlined_call_operand.hbm [shape: bf16[768,384], index: 9, kind: input, shape index: {}]   ;;  %s17489_s10 = inlined_call_operand.vmem [shape: f32[1,384], index: 10, kind: input, shape index: {}]   ;;  %s17490_s11 = inlined_call_operand.hbm [shape: bf16[384,256], index: 11, kind: input, shape index: {}]   ;;  %s17491_s12 = inlined_call_operand.vmem [shape: f32[1,256], index: 12, kind: input, shape index: {}]   ;;  %s17492_s13 = inlined_call_operand.vmem [shape: f32[1,256], index: 13, kind: input, shape index: {}]   ;;  %s17493_s14 = inlined_call_operand.<no memory space> [shape: f32[1,1], index: 14, kind: input, shape index: {}]   ;;  %s17494_s15 = inlined_call_operand.vmem [shape: f32[64,1], index: 15, kind: output, shape index: {}]  }
   0x1   :  { %17541 = sst [smem:[#allocation79_spill]] %s17479_s0  ;;  %v20_v0 = vstv %s17493_s14 }
   0x2   :  { %17542 = sst [smem:[#allocation80_spill]] %s17483_s4  ;;  %21 = vst [vmem:[#allocation3] sm:$0x1] %v20_v0 }
   0x3   :  { %17543 = sst [smem:[#allocation81_spill]] %s17484_s5 }
   0x4   :  { %17544 = sst [smem:[#allocation82_spill]] %s17485_s6 }
   0x5   :  { %17545 = sst [smem:[#allocation83_spill]] %s17487_s8 }
   0x6   :  { %17546 = sst [smem:[#allocation84_spill]] %s17488_s9 }
   0x7   :  { %17547 = sst [smem:[#allocation85_spill]] %s17489_s10 }
   0x8   :  { %17548 = sst [smem:[#allocation86_spill]] %s17491_s12 }
   0x9   :  { %17549 = sst [smem:[#allocation87_spill]] %s17492_s13 }
   0xa   :  { %17550 = sst [smem:[#allocation88_spill]] %s17494_s15 }
   0xb   :  { %22 = vsyncpa [#allocation6], 0 }
   0xc   :  { %23 = vsyncpa [#allocation5], 0 }
   0xd   :  { %25 = vsyncpa [#allocation5 + $0x1], 0 }
   0xe   :  { %26 = vsyncpa [#allocation9], 0 }
   0xf   :  { %28 = vsyncpa [#allocation9 + $0x1], 0 }
  0x10   :  { %29 = vsyncpa [#allocation12], 0 }
  0x11   :  { %30 = vsyncpa [#allocation15], 0  ;;  %s14131_s20 = smov 0   ;;  %s14133_s21 = smov 0  }
  0x12   :  { %s14135_s22 = smov 0   ;;  %s14137_s23 = smov 0  }
  0x13   :  { %s14139_s24 = smov 0   ;;  %s14141_s25 = smov 0  }
  0x14   :  { %s14143_s14 = smov 0  }
  0x15 LB: > { %17551 = sst [smem:[#allocation23_spill]] %s14014_s22  ;;  %s14032_s26 = smov [#allocation11]   ;;  %s14030_s14 = sphi %s14143_s14, %s17714_s14   ;;  %s14026_s25 = sphi %s14141_s25, %s17721_s25   ;;  %s14022_s24 = sphi %s14139_s24, %s17720_s24   ;;  %s14018_s23 = sphi %s14137_s23, %s17719_s23   ;;  %s14014_s22 = sphi %s14135_s22, %s17716_s22   ;;  %s14010_s21 = sphi %s14133_s21, %s17718_s21   ;;  %s14006_s20 = sphi %s14131_s20, %s17717_s20  }
  0x16   : > { %s429_s27 = sshll.u32 %s14032_s26, 4  ;;  %s14167_s28 = sadd.s32 4294967295, %s14030_s14   ;;  %s430_s27 = int_to_ptr.vmem [resolvable:$true] %s429_s27 }
  0x17   : > { %p10020_p0 = scmp.ge.s32.totalorder %s14030_s14, 1  ;;  %p17504_p1 = scmp.eq.s32.totalorder %s14167_s28, 0 }
  0x18   : > { %p406_p2 = scmp.lt.s32.totalorder %s14030_s14, 3  ;;  %s14033_s30 = smov [#allocation14]  }
  0x19   : > { %s461_s16 = sshll.u32 %s14033_s30, 4  ;;  %s13760_s19 = scalar_lea.vmem %s430_s27, 6144  ;;  %s462_s16 = int_to_ptr.vmem [resolvable:$true] %s461_s16 }
  0x1a   : > { %p14172_p3 = pnand %p10020_p0, %p406_p2  ;;  %p13761_p7 = scmp.ne.s32.totalorder %s430_s27, %s13760_s19 }
  0x1b   : > { %p13768_p10 = scmp.lt.s32.totalorder %s430_s27, %s430_s27  ;;  %p13769_p11 = scmp.lt.s32.totalorder %s13760_s19, %s13760_s19 }
  0x1c   : > { %s17552_s29 = scalar_select %p14172_p3, 1, 0 }
  0x1d   : > { %p12810_p4 = pneg %p14172_p3  ;;  %p13770_p12 = por %p13769_p11, %p13768_p10 }
  0x1f   : > { %p14180_p5 = pnand %p12810_p4, %p17504_p1 }
  0x21   : > { %s17553_s17 = scalar_select %p14180_p5, 1, 0 }
  0x22   : > { %p14186_p6 = pneg %p14180_p5 }
  0x24   : > { %s17554_s18 = scalar_select %p14186_p6, 1, 0 }
  0x25   : > { %p13763_p8 = pnand %p13761_p7, %p14186_p6 }
  0x27   : > { %p13764_p9 = pneg %p13763_p8 }
  0x29   : > { %p13771_p13 = pnand %p13770_p12, %p13764_p9 }
  0x2b   : > { %13774 = shalt.err (!%p13771_p13)
}
  0x2c   : > { %s17495_s26 = smov 64   ;;  %s17496_s30 = smov 4  }
  0x2d   : > { %s17555_s5 = sld [smem:[#allocation81_spill]]  ;;  %s13786_s12 = scalar_lea.vmem %s462_s16, 18432 }
  0x2e   : > { %p13787_p0 = scmp.ne.s32.totalorder %s462_s16, %s13786_s12  ;;  %p13794_p7 = scmp.lt.s32.totalorder %s462_s16, %s462_s16 }
  0x2f   : > { %p13795_p8 = scmp.lt.s32.totalorder %s13786_s12, %s13786_s12 }
  0x30   : > { %p13789_p2 = pnand %p13787_p0, %p14186_p6 }
  0x31   : > { %p13796_p9 = por %p13795_p8, %p13794_p7 }
  0x32   : > { %p13790_p4 = pneg %p13789_p2 }
  0x33   : > { %12816 = dma.hbm_to_vmem [thread:$0]  (!%p14180_p5), %s17555_s5, 6144, %s430_s27, [#allocation12], %s17495_s26, %s17495_s26, %s17496_s30  }
  0x34   : > { %p13797_p10 = pnand %p13796_p9, %p13790_p4 }
  0x36   : > { %13800 = shalt.err (!%p13797_p10)
}
  0x37   : > { %s14036_s19 = smov 192   ;;  %s14037_s13 = smov 12  }
  0x38   : > { %s17556_s9 = sld [smem:[#allocation84_spill]]  ;;  %s14208_s27 = sadd.s32 1, %s14030_s14  }
  0x39   : > { %17557 = sst [smem:[#allocation24_spill]] %s14208_s27  ;;  %p17505_p11 = scmp.eq.s32.totalorder %s14030_s14, 0 }
  0x3a   : > { %s61_s26 = ssub.s32 %s14030_s14, %s14208_s27  ;;  %s92_s30 = sadd.s32 1, %s14014_s22 }
  0x3b   : > { %s63_s5 = sor.u32 %s61_s26, %s61_s26  ;;  %p90_p12 = scmp.eq.s32.totalorder %s61_s26, 0 }
  0x3c   : > { %p14214_p13 = scmp.eq.s32.totalorder %s63_s5, 0  ;;  %p99_p0 = scmp.ne.s32.totalorder %s14014_s22, %s14010_s21 }
  0x3d   : > { %s14221_s10 = scalar_select %p90_p12, %s14014_s22, %s92_s30  }
  0x3e   : > { %12822 = dma.hbm_to_vmem [thread:$0]  (!%p14180_p5), %s17556_s9, 18432, %s462_s16, [#allocation15], %s14036_s19, %s14036_s19, %s14037_s13  }
  0x3f   : > { %s17558_s4 = scalar_select %p14214_p13, 1, 0 }
  0x40   : > { %17559 = sst [smem:[#allocation25_spill]] %s14221_s10  ;;  %p101_p2 = por %p99_p0, %p17505_p11 }
  0x41   : > { %p105_p4 = scmp.ne.s32.totalorder %s14010_s21, %s14006_s20  ;;  %p17503_p8 = scmp.lt.s32.totalorder %s14030_s14, 2 }
  0x42   : > { %s524_s19 = sand.u32 1, %s14030_s14   ;;  %s526_s13 = sand.u32 1, %s14014_s22  }
  0x43   : > { %p14229_p7 = por %p105_p4, %p17504_p1  ;;  %s10032_s26 = sshll.u32 %s526_s13, 8 }
  0x44   : > { %s10690_s12 = sshll.u32 %s14030_s14, 12  ;;  %s528_s30 = scalar_lea.vmem [#allocation8], %s10032_s26 }
  0x45   : > { %s17560_s16 = scalar_select %p14229_p7, 1, 0 }
  0x46   : > { %s14240_s9 = scalar_lea.hbm %s17481_s2, %s10690_s12  ;;  %s535_s20 = sshll.u32 %s528_s30, 4  ;;  %s14242_s20 = int_to_ptr.vmem [resolvable:$true] %s535_s20 }
  0x47   : > { %p14246_p9 = pnand %p17503_p8, %p101_p2  ;;  %s17562_s0 = sld [smem:[#allocation79_spill]] }
  0x48   : > { %s14255_s12 = scalar_lea.sflag [#allocation9], %s524_s19  ;;  %s13801_s5 = scalar_lea.hbm %s14240_s9, 4096 }
  0x49   : > { %p13802_p10 = scmp.ne.s32.totalorder %s14240_s9, %s13801_s5  ;;  %p13803_p12 = pneg %p14246_p9 }
  0x4a   : > { %s13806_s30 = scalar_lea.hbm %s17481_s2, 8192  ;;  %p13807_p2 = scmp.lt.s32.totalorder %s14240_s9, %s17481_s2 }
  0x4b   : > { %p13804_p0 = pnand %p13803_p12, %p13802_p10  ;;  %p13808_p8 = scmp.lt.s32.totalorder %s13806_s30, %s13801_s5 }
  0x4d   : > { %s419_s27 = sshll.u32 %s17562_s0, 4  ;;  %p13805_p4 = pneg %p13804_p0  ;;  %s14253_s27 = int_to_ptr.vmem [resolvable:$true] %s419_s27 }
  0x4e   : > { %p13809_p1 = por %p13808_p8, %p13807_p2 }
  0x50   : > { %p13810_p11 = pnand %p13809_p1, %p13805_p4 }
  0x52   : > { %13813 = shalt.err (!%p13810_p11)
}
  0x53   : > { %s13814_s22 = scalar_lea.vmem %s14242_s20, 4096  ;;  %s14038_s19 = smov [#allocation8]  }
  0x54   : > { %p13815_p7 = scmp.ne.s32.totalorder %s14242_s20, %s13814_s22  ;;  %s13819_s13 = sshll.u32 %s14038_s19, 4  ;;  %s13820_s13 = int_to_ptr.vmem [resolvable:$false] %s13819_s13 }
  0x55   : > { %s13821_s26 = scalar_lea.vmem %s13820_s13, 8192  ;;  %p13822_p0 = scmp.lt.s32.totalorder %s14242_s20, %s13820_s13 }
  0x56   : > { %p13817_p3 = pnand %p13815_p7, %p13803_p12  ;;  %p13823_p13 = scmp.lt.s32.totalorder %s13821_s26, %s13814_s22 }
  0x58   : > { %p13818_p10 = pneg %p13817_p3  ;;  %p13824_p5 = por %p13823_p13, %p13822_p0 }
  0x5a   : > { %p13825_p6 = pnand %p13824_p5, %p13818_p10 }
  0x5c   : > { %13828 = shalt.err (!%p13825_p6)
}
  0x5d   : > { %s17512_s6 = smov 128   ;;  %s17514_s8 = smov 8  }
  0x5e   : > { %12832 = dma.hbm_to_vmem [thread:$0]  (!%p14246_p9), %s14240_s9, 4096, %s14242_s20, %s14255_s12, %s17512_s6, %s17512_s6, %s17514_s8  }
  0x5f   : > { %s13829_s5 = scalar_lea.vmem %s14253_s27, 16  ;;  %p17563_p3 = scmp.ne.s32.totalorder %s17554_s18, 0 }
  0x60   : > { %p13830_p1 = scmp.ne.s32.totalorder %s14253_s27, %s13829_s5  ;;  %p13837_p11 = scmp.lt.s32.totalorder %s14253_s27, %s14253_s27 }
  0x61   : > { %p13838_p13 = scmp.lt.s32.totalorder %s13829_s5, %s13829_s5 }
  0x62   : > { %p13832_p5 = pnand %p13830_p1, %p17563_p3 }
  0x63   : > { %p13839_p7 = por %p13838_p13, %p13837_p11 }
  0x64   : > { %p13833_p6 = pneg %p13832_p5 }
  0x66   : > { %p13840_p8 = pnand %p13839_p7, %p13833_p6 }
  0x68   : > { %13843 = shalt.err (!%p13840_p8)
}
  0x69   : > { %s14041_s15 = smov [#allocation4]   ;;  %p17564_p12 = scmp.ne.s32.totalorder %s17553_s17, 0 }
  0x6a   : > { %s14042_s10 = smov [#allocation13]   ;;  %s14043_s9 = smov [#allocation16]  }
  0x6b   : > { %12813 = dma.vmem_to_smem (!%p17564_p12), %s14253_s27, 16, %s14041_s15, [#allocation6]  }
  0x6c   : > { %s445_s30 = sshll.u32 %s14042_s10, 4  ;;  %s477_s20 = sshll.u32 %s14043_s9, 4  ;;  %s446_s30 = int_to_ptr.vmem [resolvable:$true] %s445_s30  ;;  %s478_s20 = int_to_ptr.vmem [resolvable:$true] %s477_s20 }
  0x6d   : > { %s13855_s22 = scalar_lea.vmem %s446_s30, 6144  ;;  %p13863_p10 = scmp.lt.s32.totalorder %s446_s30, %s446_s30 }
  0x6e   : > { %p13856_p9 = scmp.ne.s32.totalorder %s446_s30, %s13855_s22  ;;  %p13864_p0 = scmp.lt.s32.totalorder %s13855_s22, %s13855_s22 }
  0x70   : > { %p13858_p4 = pnand %p13856_p9, %p17563_p3  ;;  %p13865_p1 = por %p13864_p0, %p13863_p10 }
  0x72   : > { %p13859_p2 = pneg %p13858_p4 }
  0x74   : > { %p13866_p5 = pnand %p13865_p1, %p13859_p2 }
  0x76   : > { %13869 = shalt.err (!%p13866_p5)
}
  0x77   : > { %s17565_s19 = smov 4   ;;  %s17566_s27 = smov 64  }
  0x78   : > { %12819 = dma.hbm_to_vmem [thread:$0]  (!%p17564_p12), %s17486_s7, 6144, %s446_s30, [#allocation12], %s17566_s27, %s17566_s27, %s17565_s19  }
  0x79   : > { %s13881_s5 = scalar_lea.vmem %s478_s20, 6144  ;;  %p13889_p7 = scmp.lt.s32.totalorder %s478_s20, %s478_s20 }
  0x7a   : > { %p13882_p6 = scmp.ne.s32.totalorder %s478_s20, %s13881_s5  ;;  %p13890_p8 = scmp.lt.s32.totalorder %s13881_s5, %s13881_s5 }
  0x7c   : > { %p13884_p11 = pnand %p13882_p6, %p17563_p3  ;;  %p13891_p9 = por %p13890_p8, %p13889_p7 }
  0x7e   : > { %p13885_p13 = pneg %p13884_p11 }
  0x80   : > { %p13892_p4 = pnand %p13891_p9, %p13885_p13 }
  0x82   : > { %13895 = shalt.err (!%p13892_p4)
}
  0x83   : > { %12825 = dma.hbm_to_vmem [thread:$0]  (!%p17564_p12), %s17490_s11, 6144, %s478_s20, [#allocation15], %s17512_s6, %s17512_s6, %s17514_s8  }
  0x84   : > { %s66_s17 = sadd.s32 1, %s14026_s25  ;;  %p73_p3 = scmp.ne.s32.totalorder %s14026_s25, %s14022_s24 }
  0x85   : > { %p17567_p2 = scmp.ne.s32.totalorder %s17558_s4, 0  ;;  %p17568_p10 = scmp.eq.s32.totalorder %s14030_s14, 0 }
  0x86   : > { %p79_p1 = scmp.ne.s32.totalorder %s14022_s24, %s14018_s23  ;;  %s14325_s9 = sand.u32 1, %s14026_s25  }
  0x87   : > { %s14314_s18 = scalar_select %p17567_p2, %s14026_s25, %s66_s17  }
  0x88   : > { %p14318_p0 = por %p17568_p10, %p73_p3  ;;  %s10029_s20 = sshll.u32 %s14030_s14, 1 }
  0x89   : > { %p17570_p12 = scmp.eq.s32.totalorder %s14167_s28, 0  ;;  %s10027_s4 = sshll.u32 %s14325_s9, 8 }
  0x8a   : > { %s10689_s19 = sshll.u32 %s14030_s14, 7  ;;  %s504_s26 = scalar_lea.vmem [#allocation7], %s10027_s4 }
  0x8b   : > { %p14330_p5 = por %p17570_p12, %p79_p1  ;;  %s511_s27 = sadd.s32 %s10689_s19, %s10029_s20 }
  0x8c   : > { %s10031_s13 = sshll.u32 %s511_s27, 6  ;;  %s514_s5 = sshll.u32 %s504_s26, 4  ;;  %s14341_s5 = int_to_ptr.vmem [resolvable:$true] %s514_s5 }
  0x8d   : > { %s17571_s22 = scalar_select %p14330_p5, 1, 0 }
  0x8e   : > { %s14339_s23 = scalar_lea.hbm %s17480_s1, %s10031_s13  ;;  %p17572_p6 = scmp.lt.s32.totalorder %s14030_s14, 2 }
  0x8f   : > { %s10691_s4 = sshll.u32 %s14030_s14, 4  ;;  %s10035_s19 = sshll.u32 %s14325_s9, 5 }
  0x90   : > { %p14347_p11 = pnand %p17572_p6, %p14318_p0  ;;  %s14353_s27 = sadd.s32 %s10691_s4, %s10029_s20 }
  0x91   : > { %s501_s26 = scalar_lea.sflag [#allocation5], %s14325_s9  ;;  %s13896_s13 = scalar_lea.hbm %s14339_s23, 4096 }
  0x92   : > { %p13897_p13 = scmp.ne.s32.totalorder %s14339_s23, %s13896_s13  ;;  %p13898_p7 = pneg %p14347_p11 }
  0x93   : > { %s13901_s10 = scalar_lea.hbm %s17480_s1, 16384  ;;  %p13902_p4 = scmp.lt.s32.totalorder %s14339_s23, %s17480_s1 }
  0x94   : > { %p13899_p8 = pnand %p13898_p7, %p13897_p13  ;;  %p13903_p3 = scmp.lt.s32.totalorder %s13901_s10, %s13896_s13 }
  0x96   : > { %p13900_p9 = pneg %p13899_p8  ;;  %p13904_p2 = por %p13903_p3, %p13902_p4 }
  0x98   : > { %p13905_p10 = pnand %p13904_p2, %p13900_p9 }
  0x9a   : > { %13908 = shalt.err (!%p13905_p10)
}
  0x9b   : > { %s13909_s14 = scalar_lea.vmem %s14341_s5, 4096  ;;  %s14044_s20 = smov [#allocation7]  }
  0x9c   : > { %p13910_p0 = scmp.ne.s32.totalorder %s14341_s5, %s13909_s14  ;;  %s13914_s4 = sshll.u32 %s14044_s20, 4  ;;  %s13915_s4 = int_to_ptr.vmem [resolvable:$false] %s13914_s4 }
  0x9d   : > { %s13916_s30 = scalar_lea.vmem %s13915_s4, 8192  ;;  %p13917_p6 = scmp.lt.s32.totalorder %s14341_s5, %s13915_s4 }
  0x9e   : > { %p13912_p1 = pnand %p13910_p0, %p13898_p7  ;;  %p13918_p13 = scmp.lt.s32.totalorder %s13916_s30, %s13909_s14 }
  0xa0   : > { %p13913_p12 = pneg %p13912_p1  ;;  %p13919_p8 = por %p13918_p13, %p13917_p6 }
  0xa2   : > { %p13920_p4 = pnand %p13919_p8, %p13913_p12 }
  0xa4   : > { %13923 = shalt.err (!%p13920_p4)
}
  0xa5   : > { %s14045_s6 = smov 256   ;;  %s17574_s8 = smov 8  }
  0xa6   : > { %s17575_s13 = smov 128   ;;  %s10039_s15 = sshll.u32 %s14353_s27, 6 }
  0xa7   : > { %12829 = dma.hbm_to_vmem [thread:$0]  (!%p14347_p11), %s14339_s23, 4096, %s14341_s5, %s501_s26, %s14045_s6, %s17575_s13, %s17574_s8  }
  0xa8   : > { %s14389_s20 = scalar_lea.hbm %s17482_s3, %s10039_s15  ;;  %s549_s4 = scalar_lea.vmem [#allocation10], %s10035_s19 }
  0xa9   : > { %s559_s30 = sshll.u32 %s549_s4, 4  ;;  %s13924_s0 = scalar_lea.hbm %s14389_s20, 512  ;;  %s560_s30 = int_to_ptr.vmem [resolvable:$true] %s559_s30 }
  0xaa   : > { %p13925_p9 = scmp.ne.s32.totalorder %s14389_s20, %s13924_s0  ;;  %s13929_s27 = scalar_lea.hbm %s17482_s3, 2048 }
  0xab   : > { %p13930_p10 = scmp.lt.s32.totalorder %s14389_s20, %s17482_s3  ;;  %p13931_p0 = scmp.lt.s32.totalorder %s13929_s27, %s13924_s0 }
  0xac   : > { %p13927_p3 = pnand %p13925_p9, %p13898_p7 }
  0xad   : > { %p13932_p1 = por %p13931_p0, %p13930_p10 }
  0xae   : > { %p13928_p2 = pneg %p13927_p3 }
  0xb0   : > { %p13933_p12 = pnand %p13932_p1, %p13928_p2 }
  0xb2   : > { %13936 = shalt.err (!%p13933_p12)
}
  0xb3   : > { %s13937_s9 = scalar_lea.vmem %s560_s30, 512  ;;  %s14046_s19 = smov [#allocation10]  }
  0xb4   : > { %p13938_p6 = scmp.ne.s32.totalorder %s560_s30, %s13937_s9  ;;  %s13942_s10 = sshll.u32 %s14046_s19, 4  ;;  %s13943_s10 = int_to_ptr.vmem [resolvable:$false] %s13942_s10 }
  0xb5   : > { %s13944_s14 = scalar_lea.vmem %s13943_s10, 1024  ;;  %p13945_p4 = scmp.lt.s32.totalorder %s560_s30, %s13943_s10 }
  0xb6   : > { %p13940_p13 = pnand %p13938_p6, %p13898_p7  ;;  %p13946_p9 = scmp.lt.s32.totalorder %s13944_s14, %s13937_s9 }
  0xb8   : > { %p13941_p8 = pneg %p13940_p13  ;;  %p13947_p3 = por %p13946_p9, %p13945_p4 }
  0xba   : > { %p13948_p5 = pnand %p13947_p3, %p13941_p8 }
  0xbc   : > { %13951 = shalt.err (!%p13948_p5)
}
  0xbd   : > { %12835 = dma.hbm_to_vmem [thread:$0]  (!%p14347_p11), %s14389_s20, 512, %s560_s30, %s14255_s12, %s14045_s6, %s17575_s13, %s17574_s8  }
  0xbe   : > { %p17576_p7 = scmp.ne.s32.totalorder %s17552_s29, 0 }
  0xc0   : > { %580 = sbr.rel (%p17576_p7) target bundleno = 5833 (0x16c9), region = 80 }
  0xc5   : > { %p17577_p2 = scmp.eq.s32.totalorder %s14167_s28, 0 }
  0xc7   : > { %13981 = dma.done.wait (%p17577_p2), [#allocation6], 16   ;;  %p17578_p10 = pmov %p17577_p2 }
  0xc8   : > { %s586_s0 = sand.u32 1, %s14022_s24   ;;  %p17579_p5 = scmp.ne.s32.totalorder %s17571_s22, 0 }
  0xc9   : > { %13983 = vsyncadd (%p17578_p10), [#allocation6], 4294967280  ;;  %s10042_s4 = sshll.u32 %s586_s0, 8  ;;  %s587_s17 = scalar_lea.sflag [#allocation5], %s586_s0 }
  0xca   : > { %s14422_s5 = scalar_lea.vmem [#allocation7], %s10042_s4 }
  0xcb   : > { %13985 = dma.done.wait (%p17579_p5), %s587_s17, 4096  }
  0xcc   : > { %13987 = vsyncadd (%p17579_p5), %s587_s17, 4294963200  ;;  %s595_s29 = sand.u32 1, %s14167_s28   ;;  %s597_s12 = sand.u32 1, %s14010_s21  }
  0xcd   : > { %s10043_s6 = sshll.u32 %s597_s12, 8  ;;  %s596_s8 = scalar_lea.sflag [#allocation9], %s595_s29 }
  0xce   : > { %s14430_s13 = scalar_lea.vmem [#allocation8], %s10043_s6  ;;  %p17580_p11 = scmp.ne.s32.totalorder %s17560_s16, 0 }
  0xd0   : > { %13989 = dma.done.wait (%p17580_p11), %s596_s8, 4096  }
  0xd1   : > { %13991 = vsyncadd (%p17580_p11), %s596_s8, 4294963200  ;;  %s10044_s20 = sshll.u32 %s586_s0, 5 }
  0xd2   : > { %s14436_s30 = scalar_lea.vmem [#allocation10], %s10044_s20 }
  0xd3   : > { %13993 = dma.done.wait (%p17579_p5), %s596_s8, 512  }
  0xd4   : > { %13995 = vsyncadd (%p17579_p5), %s596_s8, 4294966784  ;;  %p17581_p0 = pmov %p17577_p2 }
  0xd6   : > { %13997 = dma.done.wait (%p17581_p0), [#allocation12], 12288   ;;  %p17582_p1 = pmov %p17581_p0 }
  0xd7   : > { %p17583_p12 = pmov %p17581_p0 }
  0xd8   : > { %13999 = vsyncadd (%p17582_p1), [#allocation12], 4294955008 }
  0xd9   : > { %14001 = dma.done.wait (%p17583_p12), [#allocation15], 24576   ;;  %p17584_p6 = pmov %p17581_p0 }
  0xdb   : > { %14003 = vsyncadd (%p17584_p6), [#allocation15], 4294942720 }
  0xdc   : > { %629 = sfence }
  0xdd   : > { %v767_v1 = vld [vmem:[%s14430_s13 + $0xf0] sm:$0xff]  ;;  %v768_v2 = vld [vmem:[%s14430_s13 + $0xf8] sm:$0xff]  ;;  %v765_v6 = vld [vmem:[%s14430_s13 + $0xe0] sm:$0xff]  ;;  %s785_s16 = sld [smem:[#allocation4]]  ;;  %vm9835_vm0 = vcmask 7168  }
  0xde   : > { %v751_v3 = vld [vmem:[%s14430_s13 + $0x70] sm:$0xff]  ;;  %v784_v4 = vpack.c.bf16 %v768_v2, %v767_v1  ;;  %v752_v5 = vld [vmem:[%s14430_s13 + $0x78] sm:$0xff]  ;;  %v766_v7 = vld [vmem:[%s14430_s13 + $0xe8] sm:$0xff]  ;;  %s17585_s26 = sld [smem:[#allocation82_spill]] }
  0xdf   : > { %v776_v8 = vpack.c.bf16 %v752_v5, %v751_v3  ;;  %v783_v9 = vpack.c.bf16 %v766_v7, %v765_v6  ;;  %v749_v10 = vld [vmem:[%s14430_s13 + $0x60] sm:$0xff]  ;;  %v750_v11 = vld [vmem:[%s14430_s13 + $0x68] sm:$0xff]  ;;  %v763_v12 = vld [vmem:[%s14430_s13 + $0xd0] sm:$0xff]  ;;  %s17586_s19 = sld [smem:[#allocation83_spill]] }
  0xe0   : > { %10884 = vmatprep.subr.bf16.mxu0 %v784_v4  ;;  %v764_v13 = vld [vmem:[%s14430_s13 + $0xd8] sm:$0xff]  ;;  %v775_v14 = vpack.c.bf16 %v750_v11, %v749_v10  ;;  %v747_v16 = vld [vmem:[%s14430_s13 + $0x50] sm:$0xff]  ;;  %v761_v18 = vld [vmem:[%s14430_s13 + $0xc0] sm:$0xff]  ;;  %s10135_s10 = sld [smem:[#allocation4 + $0x1]] }
  0xe1   : > { %10885 = vmatpush3.bf16.msra.mxu0 %v776_v8  ;;  %v782_v15 = vpack.c.bf16 %v764_v13, %v763_v12  ;;  %v748_v17 = vld [vmem:[%s14430_s13 + $0x58] sm:$0xff]  ;;  %v762_v19 = vld [vmem:[%s14430_s13 + $0xc8] sm:$0xff]  ;;  %v745_v22 = vld [vmem:[%s14430_s13 + $0x40] sm:$0xff]  ;;  %s10186_s12 = sld [smem:[#allocation4 + $0x2]] }
  0xe2   : > { %10886 = vmatprep.subr.bf16.mxu0 %v783_v9  ;;  %v774_v20 = vpack.c.bf16 %v748_v17, %v747_v16  ;;  %v781_v21 = vpack.c.bf16 %v762_v19, %v761_v18  ;;  %v746_v23 = vld [vmem:[%s14430_s13 + $0x48] sm:$0xff]  ;;  %v759_v24 = vld [vmem:[%s14430_s13 + $0xb0] sm:$0xff]  ;;  %v760_v25 = vld [vmem:[%s14430_s13 + $0xb8] sm:$0xff]  ;;  %s17607_s27 = sld [smem:[#allocation85_spill]] }
  0xe3   : > { %v12918_v26 = vld [vmem:[%s14422_s5 + $0x4] ss:$8 sps:$4 sm:$0xff]   ;;  %v773_v27 = vpack.c.bf16 %v746_v23, %v745_v22  ;;  %v743_v28 = vld [vmem:[%s14430_s13 + $0x30] sm:$0xff]  ;;  %v780_v29 = vpack.c.bf16 %v760_v25, %v759_v24  ;;  %v744_v30 = vld [vmem:[%s14430_s13 + $0x38] sm:$0xff]  ;;  %s786_s22 = sadd.f32 1.0, %s785_s16 }
  0xe4   : > { %1012 = vmatprep.mubr.bf16.mxu0 %v12918_v26  ;;  %v757_v31 = vld [vmem:[%s14430_s13 + $0xa0] sm:$0xff]  ;;  %v758_v32 = vld [vmem:[%s14430_s13 + $0xa8] sm:$0xff]  ;;  %v772_v33 = vpack.c.bf16 %v744_v30, %v743_v28  ;;  %v755_v37 = vld [vmem:[%s14430_s13 + $0x90] sm:$0xff]  ;;  %s17712_s8 = sld [smem:[#allocation87_spill]] }
  0xe5   : > { %10887 = vmatpush3.bf16.msra.mxu0 %v775_v14  ;;  %v741_v34 = vld [vmem:[%s14430_s13 + $0x20] sm:$0xff]  ;;  %v779_v35 = vpack.c.bf16 %v758_v32, %v757_v31  ;;  %v742_v36 = vld [vmem:[%s14430_s13 + $0x28] sm:$0xff]  ;;  %v756_v38 = vld [vmem:[%s14430_s13 + $0x98] sm:$0xff]  ;;  %s17713_s16 = sld [smem:[#allocation88_spill]] }
  0xe6   : > { %10888 = vmatprep.subr.bf16.mxu0 %v782_v15  ;;  %v771_v39 = vpack.c.bf16 %v742_v36, %v741_v34  ;;  %v739_v40 = vld [vmem:[%s14430_s13 + $0x10] sm:$0xff]  ;;  %v778_v41 = vpack.c.bf16 %v756_v38, %v755_v37  ;;  %v740_v42 = vld [vmem:[%s14430_s13 + $0x18] sm:$0xff]  ;;  %v753_v43 = vld [vmem:[%s14430_s13 + $0x80] sm:$0xff]  ;;  %s1858_s14 = sadd.f32 1.0, %s10135_s10 }
  0xe7   : > { %v754_v44 = vld [vmem:[%s14430_s13 + $0x88] sm:$0xff]  ;;  %v770_v45 = vpack.c.bf16 %v740_v42, %v739_v40  ;;  %v737_v46 = vld [vmem:[%s14430_s13] sm:$0xff]  ;;  %v12921_v51 = vld [vmem:[%s14422_s5 + $0x14] ss:$8 sps:$4 sm:$0xff]   ;;  %s2772_s6 = sadd.f32 1.0, %s10186_s12 }
  0xe8   : > { %v777_v47 = vpack.c.bf16 %v754_v44, %v753_v43  ;;  %v738_v48 = vld [vmem:[%s14430_s13 + $0x8] sm:$0xff]  ;;  %v12966_v52 = vld [vmem:[#allocation11 + $0x38] sm:$0xff]   ;;  %v12967_v53 = vld [vmem:[#allocation11 + $0x30] sm:$0xff]   ;;  %s17709_s12 = sld [smem:[#allocation86_spill]] }
  0xe9   : > { %10889 = vmatpush3.bf16.msra.mxu0 %v774_v20  ;;  %v769_v49 = vpack.c.bf16 %v738_v48, %v737_v46  ;;  %v12920_v50 = vld [vmem:[%s14422_s5] ss:$8 sps:$4 sm:$0xff]   ;;  %12208 = vmatprep.subr.bf16.mxu1 %v12966_v52  ;;  %v12923_v55 = vld [vmem:[%s14422_s5 + $0x10] ss:$8 sps:$4 sm:$0xff]   ;;  %v12924_v56 = vld [vmem:[%s14422_s5 + $0x24] ss:$8 sps:$4 sm:$0xff]  }
  0xea   : > { %10890 = vmatprep.subr.bf16.mxu0 %v781_v21  ;;  %v12968_v54 = vld [vmem:[#allocation11 + $0x28] sm:$0xff]   ;;  %12209 = vmatpush3.bf16.msra.mxu1 %v12966_v52  ;;  %v12927_v58 = vld [vmem:[%s14422_s5 + $0x34] ss:$8 sps:$4 sm:$0xff]   ;;  %v12929_v59 = vld [vmem:[%s14422_s5 + $0x30] ss:$8 sps:$4 sm:$0xff]  }
  0xeb   : > { %12210 = vmatprep.subr.bf16.mxu1 %v12967_v53  ;;  %v12926_v57 = vld [vmem:[%s14422_s5 + $0x20] ss:$8 sps:$4 sm:$0xff]   ;;  %v12930_v60 = vld [vmem:[%s14422_s5 + $0x44] ss:$8 sps:$4 sm:$0xff]   ;;  %v12933_v62 = vld [vmem:[%s14422_s5 + $0x54] ss:$8 sps:$4 sm:$0xff]  }
  0xec   : > { %v12932_v61 = vld [vmem:[%s14422_s5 + $0x40] ss:$8 sps:$4 sm:$0xff]   ;;  %v12935_v63 = vld [vmem:[%s14422_s5 + $0x50] ss:$8 sps:$4 sm:$0xff]   ;;  %v12936_v0 = vld [vmem:[%s14422_s5 + $0x64] ss:$8 sps:$4 sm:$0xff]  }
  0xed   : > { %10891 = vmatpush3.bf16.msra.mxu0 %v773_v27  ;;  %v12938_v1 = vld [vmem:[%s14422_s5 + $0x60] ss:$8 sps:$4 sm:$0xff]   ;;  %v12939_v2 = vld [vmem:[%s14422_s5 + $0x74] ss:$8 sps:$4 sm:$0xff]   ;;  %v12941_v3 = vld [vmem:[%s14422_s5 + $0x70] ss:$8 sps:$4 sm:$0xff]   ;;  %v14515_v27 = vstv %s786_s22 }
  0xee   : > { %10892 = vmatprep.subr.bf16.mxu0 %v780_v29  ;;  %12211 = vmatpush3.bf16.msra.mxu1 %v12967_v53  ;;  %v12942_v4 = vld [vmem:[%s14422_s5 + $0x84] ss:$8 sps:$4 sm:$0xff]   ;;  %v12944_v5 = vld [vmem:[%s14422_s5 + $0x80] ss:$8 sps:$4 sm:$0xff]   ;;  %v12945_v6 = vld [vmem:[%s14422_s5 + $0x94] ss:$8 sps:$4 sm:$0xff]  }
  0xef   : > { %12212 = vmatprep.subr.bf16.mxu1 %v12968_v54  ;;  %v12969_v7 = vld [vmem:[#allocation11 + $0x20] sm:$0xff]   ;;  %v12947_v8 = vld [vmem:[%s14422_s5 + $0x90] ss:$8 sps:$4 sm:$0xff]   ;;  %v12951_v13 = vld [vmem:[%s14422_s5 + $0xb4] ss:$8 sps:$4 sm:$0xff]   ;;  %s10237_s22 = sld [smem:[#allocation4 + $0x3]] }
  0xf0   : > { %v12948_v9 = vld [vmem:[%s14422_s5 + $0xa4] ss:$8 sps:$4 sm:$0xff]   ;;  %v12970_v10 = vld [vmem:[#allocation11 + $0x18] sm:$0xff]   ;;  %v12971_v11 = vld [vmem:[#allocation11 + $0x10] sm:$0xff]  }
  0xf1   : > { %10893 = vmatpush3.bf16.msra.mxu0 %v772_v33  ;;  %v12950_v12 = vld [vmem:[%s14422_s5 + $0xa0] ss:$8 sps:$4 sm:$0xff]   ;;  %v12953_v16 = vld [vmem:[%s14422_s5 + $0xb0] ss:$8 sps:$4 sm:$0xff]   ;;  %v12954_v17 = vld [vmem:[%s14422_s5 + $0xc4] ss:$8 sps:$4 sm:$0xff]  }
  0xf2   : > { %10894 = vmatprep.subr.bf16.mxu0 %v779_v35  ;;  %12213 = vmatpush3.bf16.msra.mxu1 %v12968_v54  ;;  %v12972_v14 = vld [vmem:[#allocation11 + $0x8] sm:$0xff]   ;;  %v12973_v15 = vld [vmem:[#allocation11] sm:$0xff]   ;;  %v12957_v19 = vld [vmem:[%s14422_s5 + $0xd4] ss:$8 sps:$4 sm:$0xff]  }
  0xf3   : > { %12214 = vmatprep.subr.bf16.mxu1 %v12969_v7  ;;  %v12956_v18 = vld [vmem:[%s14422_s5 + $0xc0] ss:$8 sps:$4 sm:$0xff]   ;;  %v12959_v20 = vld [vmem:[%s14422_s5 + $0xd0] ss:$8 sps:$4 sm:$0xff]   ;;  %v12960_v21 = vld [vmem:[%s14422_s5 + $0xe4] ss:$8 sps:$4 sm:$0xff]  }
  0xf4   : > { %v12962_v22 = vld [vmem:[%s14422_s5 + $0xe0] ss:$8 sps:$4 sm:$0xff]   ;;  %v12963_v23 = vld [vmem:[%s14422_s5 + $0xf4] ss:$8 sps:$4 sm:$0xff]   ;;  %v12965_v24 = vld [vmem:[%s14422_s5 + $0xf0] ss:$8 sps:$4 sm:$0xff]  }
  0xf5   : > { %10895 = vmatpush3.bf16.msra.mxu0 %v771_v39  ;;  %v13492_v25 = vld [vmem:[%s14422_s5 + $0x4] ss:$8 sps:$4 sm:$0xff]   ;;  %v12974_v35 = vld [vmem:[#allocation13 + $0x38] sm:$0xff]   ;;  %v13495_v44 = vld [vmem:[%s14430_s13 + $0x10] sm:$0xff]  ;;  %s3686_s23 = sadd.f32 1.0, %s10237_s22 }
  0xf6   : > { %10896 = vmatprep.subr.bf16.mxu0 %v778_v41  ;;  %12215 = vmatpush3.bf16.msra.mxu1 %v12969_v7  ;;  %v13493_v31 = vld [vmem:[%s14430_s13] sm:$0xff]  ;;  %v13494_v33 = vld [vmem:[%s14430_s13 + $0x8] sm:$0xff] }
  0xf7   : > { %12216 = vmatprep.subr.bf16.mxu1 %v12970_v10  ;;  %v788_v32 = vmul.f32 %v13493_v31, %v14515_v27  ;;  %v789_v34 = vmul.f32 %v13494_v33, %v14515_v27  ;;  %v12977_v7 = vld [vmem:[#allocation13 + $0x20] sm:$0xff]  }
  0xf9   : > { %10897 = vmatpush3.bf16.msra.mxu0 %v770_v45  ;;  %v790_v45 = vmul.f32 %v13495_v44, %v14515_v27 }
  0xfa   : > { %10898 = vmatprep.subr.bf16.mxu0 %v777_v47  ;;  %12217 = vmatpush3.bf16.msra.mxu1 %v12970_v10  ;;  %v13496_v47 = vld [vmem:[%s14430_s13 + $0x18] sm:$0xff] }
  0xfb   : > { %12218 = vmatprep.subr.bf16.mxu1 %v12971_v11  ;;  %v791_v48 = vmul.f32 %v13496_v47, %v14515_v27 }
  0xfd   : > { %10899 = vmatpush3.bf16.msra.mxu0 %v769_v49 }
  0xfe   : > { %12219 = vmatpush3.bf16.msra.mxu1 %v12971_v11 }
  0xff   : > { %12220 = vmatprep.subr.bf16.mxu1 %v12972_v14 }
 0x100   : > { %1013 = vmatmul.mubr.bf16.vlgmr.msra.gmra.mxu0 %v12920_v50 }
 0x101   : > { %1020 = vmatprep.mubr.bf16.mxu0 %v12921_v51 }
 0x102   : > { %12221 = vmatpush3.bf16.msra.mxu1 %v12972_v14 }
 0x103   : > { %12222 = vmatprep.subr.bf16.mxu1 %v12973_v15 }
 0x106   : > { %12223 = vmatpush3.bf16.msra.mxu1 %v12973_v15 }
 0x107   : > { %12256 = vmatprep.subr.bf16.mxu1 %v12974_v35 }
 0x108   : > { %1021 = vmatmul.mubr.bf16.gmra.mxu0 %v12923_v55 }
 0x109   : > { %1028 = vmatprep.mubr.bf16.mxu0 %v12924_v56  ;;  %v12975_v56 = vld [vmem:[#allocation13 + $0x30] sm:$0xff]  }
 0x110   : > { %1029 = vmatmul.mubr.bf16.gmra.mxu0 %v12926_v57 }
 0x111   : > { %1036 = vmatprep.mubr.bf16.mxu0 %v12927_v58  ;;  %v13497_v58 = vld [vmem:[%s14430_s13 + $0x20] sm:$0xff] }
 0x118   : > { %1037 = vmatmul.mubr.bf16.gmra.mxu0 %v12929_v59  ;;  %v792_v59 = vmul.f32 %v13497_v58, %v14515_v27 }
 0x119   : > { %1044 = vmatprep.mubr.bf16.mxu0 %v12930_v60 }
 0x120   : > { %1045 = vmatmul.mubr.bf16.gmra.mxu0 %v12932_v61  ;;  %v13498_v61 = vld [vmem:[%s14430_s13 + $0x28] sm:$0xff] }
 0x121   : > { %1052 = vmatprep.mubr.bf16.mxu0 %v12933_v62  ;;  %v793_v62 = vmul.f32 %v13498_v61, %v14515_v27 }
 0x128   : > { %1053 = vmatmul.mubr.bf16.gmra.mxu0 %v12935_v63 }
 0x129   : > { %1060 = vmatprep.mubr.bf16.mxu0 %v12936_v0 }
 0x130   : > { %1061 = vmatmul.mubr.bf16.gmra.mxu0 %v12938_v1  ;;  %v12976_v1 = vld [vmem:[#allocation13 + $0x28] sm:$0xff]  }
 0x131   : > { %1068 = vmatprep.mubr.bf16.mxu0 %v12939_v2 }
 0x138   : > { %1069 = vmatmul.mubr.bf16.gmra.mxu0 %v12941_v3 }
 0x139   : > { %1076 = vmatprep.mubr.bf16.mxu0 %v12942_v4 }
 0x140   : > { %1077 = vmatmul.mubr.bf16.gmra.mxu0 %v12944_v5 }
 0x141   : > { %1084 = vmatprep.mubr.bf16.mxu0 %v12945_v6 }
 0x148   : > { %1085 = vmatmul.mubr.bf16.gmra.mxu0 %v12947_v8 }
 0x149   : > { %1092 = vmatprep.mubr.bf16.mxu0 %v12948_v9  ;;  %v13499_v9 = vld [vmem:[%s14430_s13 + $0x30] sm:$0xff] }
 0x14a   : > { %v794_v10 = vmul.f32 %v13499_v9, %v14515_v27 }
 0x150   : > { %1093 = vmatmul.mubr.bf16.gmra.mxu0 %v12950_v12  ;;  %v13500_v12 = vld [vmem:[%s14430_s13 + $0x38] sm:$0xff] }
 0x151   : > { %1100 = vmatprep.mubr.bf16.mxu0 %v12951_v13  ;;  %v795_v13 = vmul.f32 %v13500_v12, %v14515_v27  ;;  %v13509_v12 = vld [vmem:[%s14430_s13 + $0x80] sm:$0xff] }
 0x158   : > { %1101 = vmatmul.mubr.bf16.gmra.mxu0 %v12953_v16  ;;  %v12978_v16 = vld [vmem:[#allocation13 + $0x18] sm:$0xff]  }
 0x159   : > { %1108 = vmatprep.mubr.bf16.mxu0 %v12954_v17 }
 0x160   : > { %1109 = vmatmul.mubr.bf16.gmra.mxu0 %v12956_v18 }
 0x161   : > { %1116 = vmatprep.mubr.bf16.mxu0 %v12957_v19 }
 0x168   : > { %1117 = vmatmul.mubr.bf16.gmra.mxu0 %v12959_v20 }
 0x169   : > { %1124 = vmatprep.mubr.bf16.mxu0 %v12960_v21 }
 0x170   : > { %1125 = vmatmul.mubr.bf16.gmra.mxu0 %v12962_v22 }
 0x171   : > { %1132 = vmatprep.mubr.bf16.mxu0 %v12963_v23  ;;  %v13501_v23 = vld [vmem:[%s14430_s13 + $0x40] sm:$0xff] }
 0x178   : > { %1133 = vmatmul.mubr.bf16.gmra.mxu0 %v12965_v24  ;;  %v796_v24 = vmul.f32 %v13501_v23, %v14515_v27 }
 0x179   : > { %1924 = vmatprep.mubr.bf16.mxu0 %v13492_v25 }
 0x1c0   : > { %v10900_v26 = vpop.f32.mrf.mxu0 }
 0x1c2   : > { %v10901_v28 = vpop.f32.mrf.mxu0 }
 0x1c3   : > { %v10902_v30 = vadd.f32 %v10901_v28, %v10900_v26  ;;  %v13502_v26 = vld [vmem:[%s14430_s13 + $0x48] sm:$0xff] }
 0x1c4   : > { %v10903_v29 = vpop.f32.mrf.mxu0  ;;  %v797_v28 = vmul.f32 %v13502_v26, %v14515_v27 }
 0x1c5   : > { %v1015_v39 = vadd.f32 %v10902_v30, %v788_v32 }
 0x1c6   : > { %v10904_v36 = vpop.f32.mrf.mxu0 }
 0x1c7   : > { %v10905_v37 = vadd.f32 %v10904_v36, %v10903_v29 }
 0x1c8   : > { %v10906_v38 = vpop.f32.mrf.mxu0 }
 0x1c9   : > { %v1018_v40 = vadd.f32 %v10905_v37, %v789_v34  ;;  %v13503_v37 = vld [vmem:[%s14430_s13 + $0x50] sm:$0xff] }
 0x1ca   : > { %v10907_v41 = vpop.f32.mrf.mxu0 }
 0x1cb   : > { %v1141_v42 = vpack.c.bf16 %v1018_v40, %v1015_v39  ;;  %v10908_v46 = vadd.f32 %v10907_v41, %v10906_v38  ;;  %v798_v38 = vmul.f32 %v13503_v37, %v14515_v27  ;;  %v13504_v40 = vld [vmem:[%s14430_s13 + $0x58] sm:$0xff] }
 0x1cc   : > { %v10909_v43 = vpop.f32.mrf.mxu0  ;;  %v799_v41 = vmul.f32 %v13504_v40, %v14515_v27 }
 0x1cd   : > { %12224 = vmatprep.mubr.bf16.mxu1 %v1141_v42  ;;  %v1023_v52 = vadd.f32 %v10908_v46, %v790_v45 }
 0x1ce   : > { %v10910_v49 = vpop.f32.mrf.mxu0 }
 0x1cf   : > { %v10911_v50 = vadd.f32 %v10910_v49, %v10909_v43 }
 0x1d0   : > { %v10912_v51 = vpop.f32.mrf.mxu0 }
 0x1d1   : > { %v1026_v53 = vadd.f32 %v10911_v50, %v791_v48  ;;  %v13505_v50 = vld [vmem:[%s14430_s13 + $0x60] sm:$0xff] }
 0x1d2   : > { %v10913_v54 = vpop.f32.mrf.mxu0 }
 0x1d3   : > { %v1142_v55 = vpack.c.bf16 %v1026_v53, %v1023_v52  ;;  %v10914_v60 = vadd.f32 %v10913_v54, %v10912_v51  ;;  %v800_v51 = vmul.f32 %v13505_v50, %v14515_v27  ;;  %v13506_v53 = vld [vmem:[%s14430_s13 + $0x68] sm:$0xff] }
 0x1d4   : > { %v10915_v57 = vpop.f32.mrf.mxu0  ;;  %v801_v54 = vmul.f32 %v13506_v53, %v14515_v27  ;;  %v12980_v50 = vld [vmem:[#allocation13 + $0x8] sm:$0xff]  }
 0x1d5   : > { %12225 = vmatmul.mubr.bf16.vlgmr.msra.gmra.mxu1 %v1142_v55  ;;  %v1031_v3 = vadd.f32 %v10914_v60, %v792_v59 }
 0x1d6   : > { %v10916_v63 = vpop.f32.mrf.mxu0  ;;  %12257 = vmatpush3.bf16.msra.mxu1 %v12974_v35 }
 0x1d7   : > { %v10917_v0 = vadd.f32 %v10916_v63, %v10915_v57  ;;  %12258 = vmatprep.subr.bf16.mxu1 %v12975_v56  ;;  %v13507_v63 = vld [vmem:[%s14430_s13 + $0x70] sm:$0xff] }
 0x1d8   : > { %v10918_v2 = vpop.f32.mrf.mxu0 }
 0x1d9   : > { %v1034_v4 = vadd.f32 %v10917_v0, %v793_v62  ;;  %v802_v0 = vmul.f32 %v13507_v63, %v14515_v27 }
 0x1da   : > { %v10919_v5 = vpop.f32.mrf.mxu0  ;;  %12259 = vmatpush3.bf16.msra.mxu1 %v12975_v56 }
 0x1db   : > { %v1143_v6 = vpack.c.bf16 %v1034_v4, %v1031_v3  ;;  %12260 = vmatprep.subr.bf16.mxu1 %v12976_v1  ;;  %v10920_v11 = vadd.f32 %v10919_v5, %v10918_v2 }
 0x1dc   : > { %v10921_v8 = vpop.f32.mrf.mxu0 }
 0x1dd   : > { %12228 = vmatprep.mubr.bf16.mxu1 %v1143_v6  ;;  %v1039_v18 = vadd.f32 %v10920_v11, %v794_v10 }
 0x1de   : > { %v10922_v14 = vpop.f32.mrf.mxu0  ;;  %12261 = vmatpush3.bf16.msra.mxu1 %v12976_v1  ;;  %v13508_v1 = vld [vmem:[%s14430_s13 + $0x78] sm:$0xff] }
 0x1df   : > { %v10923_v15 = vadd.f32 %v10922_v14, %v10921_v8  ;;  %12262 = vmatprep.subr.bf16.mxu1 %v12977_v7  ;;  %v803_v2 = vmul.f32 %v13508_v1, %v14515_v27 }
 0x1e0   : > { %v10924_v17 = vpop.f32.mrf.mxu0 }
 0x1e1   : > { %v1042_v19 = vadd.f32 %v10923_v15, %v795_v13  ;;  %v804_v13 = vmul.f32 %v13509_v12, %v14515_v27  ;;  %v13510_v15 = vld [vmem:[%s14430_s13 + $0x88] sm:$0xff] }
 0x1e2   : > { %v10925_v20 = vpop.f32.mrf.mxu0  ;;  %12263 = vmatpush3.bf16.msra.mxu1 %v12977_v7 }
 0x1e3   : > { %v1144_v21 = vpack.c.bf16 %v1042_v19, %v1039_v18  ;;  %12264 = vmatprep.subr.bf16.mxu1 %v12978_v16  ;;  %v10926_v25 = vadd.f32 %v10925_v20, %v10924_v17 }
 0x1e4   : > { %v10927_v22 = vpop.f32.mrf.mxu0 }
 0x1e5   : > { %12229 = vmatmul.mubr.bf16.gmra.mxu1 %v1144_v21  ;;  %v1047_v32 = vadd.f32 %v10926_v25, %v796_v24  ;;  %v13511_v25 = vld [vmem:[%s14430_s13 + $0x90] sm:$0xff] }
 0x1e6   : > { %v10928_v29 = vpop.f32.mrf.mxu0  ;;  %12265 = vmatpush3.bf16.msra.mxu1 %v12978_v16  ;;  %v805_v16 = vmul.f32 %v13510_v15, %v14515_v27  ;;  %v806_v26 = vmul.f32 %v13511_v25, %v14515_v27 }
 0x1e7   : > { %v10929_v30 = vadd.f32 %v10928_v29, %v10927_v22  ;;  %v13512_v29 = vld [vmem:[%s14430_s13 + $0x98] sm:$0xff] }
 0x1e8   : > { %v10930_v31 = vpop.f32.mrf.mxu0 }
 0x1e9   : > { %v1050_v33 = vadd.f32 %v10929_v30, %v797_v28  ;;  %v807_v30 = vmul.f32 %v13512_v29, %v14515_v27 }
 0x1ea   : > { %v10931_v34 = vpop.f32.mrf.mxu0 }
 0x1eb   : > { %v1145_v35 = vpack.c.bf16 %v1050_v33, %v1047_v32  ;;  %v10932_v39 = vadd.f32 %v10931_v34, %v10930_v31 }
 0x1ec   : > { %v10933_v36 = vpop.f32.mrf.mxu0 }
 0x1ed   : > { %12232 = vmatprep.mubr.bf16.mxu1 %v1145_v35  ;;  %v1055_v45 = vadd.f32 %v10932_v39, %v798_v38  ;;  %v13513_v39 = vld [vmem:[%s14430_s13 + $0xa0] sm:$0xff] }
 0x1ee   : > { %v10934_v42 = vpop.f32.mrf.mxu0  ;;  %v808_v40 = vmul.f32 %v13513_v39, %v14515_v27 }
 0x1ef   : > { %v10935_v43 = vadd.f32 %v10934_v42, %v10933_v36  ;;  %v13514_v42 = vld [vmem:[%s14430_s13 + $0xa8] sm:$0xff] }
 0x1f0   : > { %v10936_v44 = vpop.f32.mrf.mxu0 }
 0x1f1   : > { %v1058_v46 = vadd.f32 %v10935_v43, %v799_v41  ;;  %v809_v43 = vmul.f32 %v13514_v42, %v14515_v27 }
 0x1f2   : > { %v10937_v47 = vpop.f32.mrf.mxu0 }
 0x1f3   : > { %v1146_v48 = vpack.c.bf16 %v1058_v46, %v1055_v45  ;;  %v10938_v52 = vadd.f32 %v10937_v47, %v10936_v44  ;;  %v12979_v44 = vld [vmem:[#allocation13 + $0x10] sm:$0xff]  }
 0x1f4   : > { %v10939_v49 = vpop.f32.mrf.mxu0  ;;  %12266 = vmatprep.subr.bf16.mxu1 %v12979_v44 }
 0x1f5   : > { %12233 = vmatmul.mubr.bf16.gmra.mxu1 %v1146_v48  ;;  %v1063_v58 = vadd.f32 %v10938_v52, %v800_v51 }
 0x1f6   : > { %v10940_v55 = vpop.f32.mrf.mxu0  ;;  %12267 = vmatpush3.bf16.msra.mxu1 %v12979_v44  ;;  %v13523_v44 = vld [vmem:[%s14430_s13 + $0xf0] sm:$0xff] }
 0x1f7   : > { %v10941_v56 = vadd.f32 %v10940_v55, %v10939_v49  ;;  %12268 = vmatprep.subr.bf16.mxu1 %v12980_v50 }
 0x1f8   : > { %v10942_v57 = vpop.f32.mrf.mxu0 }
 0x1f9   : > { %v1066_v59 = vadd.f32 %v10941_v56, %v801_v54  ;;  %v13515_v54 = vld [vmem:[%s14430_s13 + $0xb0] sm:$0xff] }
 0x1fa   : > { %v10943_v60 = vpop.f32.mrf.mxu0  ;;  %12269 = vmatpush3.bf16.msra.mxu1 %v12980_v50  ;;  %v810_v55 = vmul.f32 %v13515_v54, %v14515_v27 }
 0x1fb   : > { %v1147_v61 = vpack.c.bf16 %v1066_v59, %v1063_v58  ;;  %v10944_v3 = vadd.f32 %v10943_v60, %v10942_v57  ;;  %v13516_v57 = vld [vmem:[%s14430_s13 + $0xb8] sm:$0xff]  ;;  %v12981_v59 = vld [vmem:[#allocation13] sm:$0xff]  }
 0x1fc   : > { %v10945_v62 = vpop.f32.mrf.mxu0  ;;  %v811_v58 = vmul.f32 %v13516_v57, %v14515_v27  ;;  %12270 = vmatprep.subr.bf16.mxu1 %v12981_v59 }
 0x1fd   : > { %12236 = vmatprep.mubr.bf16.mxu1 %v1147_v61  ;;  %v1071_v7 = vadd.f32 %v10944_v3, %v802_v0 }
 0x1fe   : > { %v10946_v4 = vpop.f32.mrf.mxu0  ;;  %12271 = vmatpush3.bf16.msra.mxu1 %v12981_v59 }
 0x1ff   : > { %v10947_v5 = vadd.f32 %v10946_v4, %v10945_v62  ;;  %v13517_v4 = vld [vmem:[%s14430_s13 + $0xc0] sm:$0xff] }
 0x200   : > { %v10948_v6 = vpop.f32.mrf.mxu0 }
 0x201   : > { %v1074_v8 = vadd.f32 %v10947_v5, %v803_v2  ;;  %v812_v5 = vmul.f32 %v13517_v4, %v14515_v27 }
 0x202   : > { %v10949_v9 = vpop.f32.mrf.mxu0 }
 0x203   : > { %v1148_v10 = vpack.c.bf16 %v1074_v8, %v1071_v7  ;;  %v10950_v14 = vadd.f32 %v10949_v9, %v10948_v6  ;;  %v13518_v7 = vld [vmem:[%s14430_s13 + $0xc8] sm:$0xff] }
 0x204   : > { %v10951_v11 = vpop.f32.mrf.mxu0  ;;  %v813_v8 = vmul.f32 %v13518_v7, %v14515_v27 }
 0x205   : > { %12237 = vmatmul.mubr.bf16.gmra.mxu1 %v1148_v10  ;;  %v1079_v20 = vadd.f32 %v10950_v14, %v804_v13 }
 0x206   : > { %v10952_v17 = vpop.f32.mrf.mxu0 }
 0x207   : > { %v10953_v18 = vadd.f32 %v10952_v17, %v10951_v11  ;;  %v13519_v17 = vld [vmem:[%s14430_s13 + $0xd0] sm:$0xff] }
 0x208   : > { %v10954_v19 = vpop.f32.mrf.mxu0 }
 0x209   : > { %v1082_v21 = vadd.f32 %v10953_v18, %v805_v16  ;;  %v814_v18 = vmul.f32 %v13519_v17, %v14515_v27 }
 0x20a   : > { %v10955_v22 = vpop.f32.mrf.mxu0 }
 0x20b   : > { %v1149_v23 = vpack.c.bf16 %v1082_v21, %v1079_v20  ;;  %v10956_v28 = vadd.f32 %v10955_v22, %v10954_v19  ;;  %v13520_v20 = vld [vmem:[%s14430_s13 + $0xd8] sm:$0xff] }
 0x20c   : > { %v10957_v24 = vpop.f32.mrf.mxu0  ;;  %v815_v21 = vmul.f32 %v13520_v20, %v14515_v27 }
 0x20d   : > { %12240 = vmatprep.mubr.bf16.mxu1 %v1149_v23  ;;  %v1087_v34 = vadd.f32 %v10956_v28, %v806_v26 }
 0x20e   : > { %v10958_v31 = vpop.f32.mrf.mxu0 }
 0x20f   : > { %v10959_v32 = vadd.f32 %v10958_v31, %v10957_v24  ;;  %v13521_v31 = vld [vmem:[%s14430_s13 + $0xe0] sm:$0xff] }
 0x210   : > { %v10960_v33 = vpop.f32.mrf.mxu0 }
 0x211   : > { %v1090_v35 = vadd.f32 %v10959_v32, %v807_v30  ;;  %v816_v32 = vmul.f32 %v13521_v31, %v14515_v27 }
 0x212   : > { %v10961_v36 = vpop.f32.mrf.mxu0 }
 0x213   : > { %v1150_v37 = vpack.c.bf16 %v1090_v35, %v1087_v34  ;;  %v10962_v41 = vadd.f32 %v10961_v36, %v10960_v33  ;;  %v13522_v34 = vld [vmem:[%s14430_s13 + $0xe8] sm:$0xff] }
 0x214   : > { %v10963_v38 = vpop.f32.mrf.mxu0  ;;  %v817_v35 = vmul.f32 %v13522_v34, %v14515_v27 }
 0x215   : > { %12241 = vmatmul.mubr.bf16.gmra.mxu1 %v1150_v37  ;;  %v1095_v48 = vadd.f32 %v10962_v41, %v808_v40 }
 0x216   : > { %v10964_v45 = vpop.f32.mrf.mxu0 }
 0x217   : > { %v10965_v46 = vadd.f32 %v10964_v45, %v10963_v38  ;;  %v818_v45 = vmul.f32 %v13523_v44, %v14515_v27 }
 0x218   : > { %v10966_v47 = vpop.f32.mrf.mxu0 }
 0x219   : > { %v1098_v49 = vadd.f32 %v10965_v46, %v809_v43  ;;  %v13524_v46 = vld [vmem:[%s14430_s13 + $0xf8] sm:$0xff] }
 0x21a   : > { %v10967_v51 = vpop.f32.mrf.mxu0 }
 0x21b   : > { %v1151_v52 = vpack.c.bf16 %v1098_v49, %v1095_v48  ;;  %v10968_v56 = vadd.f32 %v10967_v51, %v10966_v47  ;;  %v819_v47 = vmul.f32 %v13524_v46, %v14515_v27 }
 0x21c   : > { %v10969_v53 = vpop.f32.mrf.mxu0 }
 0x21d   : > { %12244 = vmatprep.mubr.bf16.mxu1 %v1151_v52  ;;  %v1103_v63 = vadd.f32 %v10968_v56, %v810_v55  ;;  %v14584_v56 = vld [vmem:[%s17585_s26] ss:$0 sm:$0xff] }
 0x21e   : > { %v10970_v60 = vpop.f32.mrf.mxu0 }
 0x21f   : > { %v10971_v61 = vadd.f32 %v10970_v60, %v10969_v53 }
 0x220   : > { %v10972_v62 = vpop.f32.mrf.mxu0 }
 0x221   : > { %v1106_v0 = vadd.f32 %v10971_v61, %v811_v58 }
 0x222   : > { %v10973_v1 = vpop.f32.mrf.mxu0 }
 0x223   : > { %v1152_v2 = vpack.c.bf16 %v1106_v0, %v1103_v63  ;;  %v10974_v6 = vadd.f32 %v10973_v1, %v10972_v62 }
 0x224   : > { %v10975_v3 = vpop.f32.mrf.mxu0 }
 0x225   : > { %12245 = vmatmul.mubr.bf16.gmra.mxu1 %v1152_v2  ;;  %v1111_v12 = vadd.f32 %v10974_v6, %v812_v5 }
 0x226   : > { %v10976_v9 = vpop.f32.mrf.mxu0 }
 0x227   : > { %v10977_v10 = vadd.f32 %v10976_v9, %v10975_v3 }
 0x228   : > { %v10978_v11 = vpop.f32.mrf.mxu0 }
 0x229   : > { %v1114_v13 = vadd.f32 %v10977_v10, %v813_v8 }
 0x22a   : > { %v10979_v14 = vpop.f32.mrf.mxu0 }
 0x22b   : > { %v1153_v15 = vpack.c.bf16 %v1114_v13, %v1111_v12  ;;  %v10980_v19 = vadd.f32 %v10979_v14, %v10978_v11 }
 0x22c   : > { %v10981_v16 = vpop.f32.mrf.mxu0 }
 0x22d   : > { %12248 = vmatprep.mubr.bf16.mxu1 %v1153_v15  ;;  %v1119_v25 = vadd.f32 %v10980_v19, %v814_v18 }
 0x22e   : > { %v10982_v22 = vpop.f32.mrf.mxu0 }
 0x22f   : > { %v10983_v23 = vadd.f32 %v10982_v22, %v10981_v16 }
 0x230   : > { %v10984_v24 = vpop.f32.mrf.mxu0 }
 0x231   : > { %v1122_v26 = vadd.f32 %v10983_v23, %v815_v21 }
 0x232   : > { %v10985_v28 = vpop.f32.mrf.mxu0 }
 0x233   : > { %v1154_v29 = vpack.c.bf16 %v1122_v26, %v1119_v25  ;;  %v10986_v33 = vadd.f32 %v10985_v28, %v10984_v24 }
 0x234   : > { %v10987_v30 = vpop.f32.mrf.mxu0 }
 0x235   : > { %12249 = vmatmul.mubr.bf16.gmra.mxu1 %v1154_v29  ;;  %v1127_v39 = vadd.f32 %v10986_v33, %v816_v32 }
 0x236   : > { %v10988_v36 = vpop.f32.mrf.mxu0 }
 0x237   : > { %v10989_v37 = vadd.f32 %v10988_v36, %v10987_v30 }
 0x238   : > { %v10990_v38 = vpop.f32.mrf.mxu0 }
 0x239   : > { %v1130_v40 = vadd.f32 %v10989_v37, %v817_v35 }
 0x23a   : > { %v10991_v41 = vpop.f32.mrf.mxu0 }
 0x23b   : > { %v1155_v42 = vpack.c.bf16 %v1130_v40, %v1127_v39  ;;  %v10992_v48 = vadd.f32 %v10991_v41, %v10990_v38 }
 0x23c   : > { %v10993_v43 = vpop.f32.mrf.mxu0 }
 0x23d   : > { %12252 = vmatprep.mubr.bf16.mxu1 %v1155_v42  ;;  %v1135_v51 = vadd.f32 %v10992_v48, %v818_v45 }
 0x23e   : > { %v10994_v49 = vpop.f32.mrf.mxu0 }
 0x23f   : > { %v10995_v50 = vadd.f32 %v10994_v49, %v10993_v43 }
 0x241   : > { %v1138_v52 = vadd.f32 %v10995_v50, %v819_v47 }
 0x243   : > { %v1156_v53 = vpack.c.bf16 %v1138_v52, %v1135_v51 }
 0x245   : > { %12253 = vmatmul.mubr.bf16.gmra.mxu1 %v1156_v53 }
 0x295   : > { %v12226_v54 = vpop.f32.mrf.mxu1 }
 0x296   : > { %v1269_v59 = vadd.f32 %v12226_v54, %v14584_v56 }
 0x297   : > { %v1260_v55 = vpop.f32.mrf.mxu1 }
 0x298   : > { %v1261_v58 = vadd.f32 %v14584_v56, %v1260_v55  ;;  %v1389_v1 = vmax.f32 %v1269_v59, 0.0 }
 0x299   : > { %v12227_v57 = vpop.f32.mrf.mxu1 }
 0x29a   : > { %v1272_v27 = vadd.f32 %v12227_v57, %v14584_v56  ;;  %v1387_v63 = vmax.f32 %v1261_v58, 0.0 }
 0x29b   : > { %v1263_v60 = vpop.f32.mrf.mxu1 }
 0x29c   : > { %v1264_v61 = vadd.f32 %v14584_v56, %v1263_v60  ;;  %v1390_v62 = vmax.f32 %v1272_v27, 0.0 }
 0x29e   : > { %v1388_v0 = vmax.f32 %v1264_v61, 0.0  ;;  %v1420_v3 = vpack.c.bf16 %v1390_v62, %v1389_v1 }
 0x2a0   : > { %v1419_v2 = vpack.c.bf16 %v1388_v0, %v1387_v63 }
 0x2a2   : > { %12272 = vmatprep.mubr.bf16.mxu1 %v1419_v2 }
 0x2a3   : > { %12273 = vmatmul.mubr.bf16.vlgmr.msra.gmra.mxu1 %v1420_v3 }
 0x2a5   : > { %v12230_v4 = vpop.f32.mrf.mxu1 }
 0x2a6   : > { %v1285_v9 = vadd.f32 %v12230_v4, %v14584_v56 }
 0x2a7   : > { %v1276_v5 = vpop.f32.mrf.mxu1 }
 0x2a8   : > { %v1277_v7 = vadd.f32 %v14584_v56, %v1276_v5  ;;  %v1393_v15 = vmax.f32 %v1285_v9, 0.0 }
 0x2a9   : > { %v12231_v6 = vpop.f32.mrf.mxu1 }
 0x2aa   : > { %v1288_v8 = vadd.f32 %v12231_v6, %v14584_v56  ;;  %v1391_v13 = vmax.f32 %v1277_v7, 0.0 }
 0x2ab   : > { %v1279_v10 = vpop.f32.mrf.mxu1 }
 0x2ac   : > { %v1280_v11 = vadd.f32 %v14584_v56, %v1279_v10  ;;  %v1394_v12 = vmax.f32 %v1288_v8, 0.0 }
 0x2ae   : > { %v1392_v14 = vmax.f32 %v1280_v11, 0.0  ;;  %v1422_v17 = vpack.c.bf16 %v1394_v12, %v1393_v15 }
 0x2b0   : > { %v1421_v16 = vpack.c.bf16 %v1392_v14, %v1391_v13 }
 0x2b2   : > { %12276 = vmatprep.mubr.bf16.mxu1 %v1421_v16 }
 0x2b3   : > { %12277 = vmatmul.mubr.bf16.gmra.mxu1 %v1422_v17 }
 0x2b5   : > { %v12234_v18 = vpop.f32.mrf.mxu1 }
 0x2b6   : > { %v1301_v23 = vadd.f32 %v12234_v18, %v14584_v56 }
 0x2b7   : > { %v1292_v19 = vpop.f32.mrf.mxu1 }
 0x2b8   : > { %v1293_v21 = vadd.f32 %v14584_v56, %v1292_v19  ;;  %v1397_v30 = vmax.f32 %v1301_v23, 0.0 }
 0x2b9   : > { %v12235_v20 = vpop.f32.mrf.mxu1 }
 0x2ba   : > { %v1304_v22 = vadd.f32 %v12235_v20, %v14584_v56  ;;  %v1395_v28 = vmax.f32 %v1293_v21, 0.0 }
 0x2bb   : > { %v1295_v24 = vpop.f32.mrf.mxu1 }
 0x2bc   : > { %v1296_v25 = vadd.f32 %v14584_v56, %v1295_v24  ;;  %v1398_v26 = vmax.f32 %v1304_v22, 0.0 }
 0x2be   : > { %v1396_v29 = vmax.f32 %v1296_v25, 0.0  ;;  %v1424_v32 = vpack.c.bf16 %v1398_v26, %v1397_v30 }
 0x2c0   : > { %v1423_v31 = vpack.c.bf16 %v1396_v29, %v1395_v28 }
 0x2c2   : > { %12280 = vmatprep.mubr.bf16.mxu1 %v1423_v31 }
 0x2c3   : > { %12281 = vmatmul.mubr.bf16.gmra.mxu1 %v1424_v32 }
 0x2c5   : > { %v12238_v33 = vpop.f32.mrf.mxu1 }
 0x2c6   : > { %v1317_v38 = vadd.f32 %v12238_v33, %v14584_v56 }
 0x2c7   : > { %v1308_v34 = vpop.f32.mrf.mxu1 }
 0x2c8   : > { %v1309_v36 = vadd.f32 %v14584_v56, %v1308_v34  ;;  %v1401_v44 = vmax.f32 %v1317_v38, 0.0 }
 0x2c9   : > { %v12239_v35 = vpop.f32.mrf.mxu1 }
 0x2ca   : > { %v1320_v37 = vadd.f32 %v12239_v35, %v14584_v56  ;;  %v1399_v42 = vmax.f32 %v1309_v36, 0.0 }
 0x2cb   : > { %v1311_v39 = vpop.f32.mrf.mxu1 }
 0x2cc   : > { %v1312_v40 = vadd.f32 %v14584_v56, %v1311_v39  ;;  %v1402_v41 = vmax.f32 %v1320_v37, 0.0 }
 0x2ce   : > { %v1400_v43 = vmax.f32 %v1312_v40, 0.0  ;;  %v1426_v46 = vpack.c.bf16 %v1402_v41, %v1401_v44  ;;  %v14621_v40 = vld [vmem:[%s17586_s19] ss:$0 sm:$0xff] }
 0x2d0   : > { %v1425_v45 = vpack.c.bf16 %v1400_v43, %v1399_v42 }
 0x2d2   : > { %12284 = vmatprep.mubr.bf16.mxu1 %v1425_v45 }
 0x2d3   : > { %12285 = vmatmul.mubr.bf16.gmra.mxu1 %v1426_v46 }
 0x2d5   : > { %v12242_v47 = vpop.f32.mrf.mxu1 }
 0x2d6   : > { %v1333_v52 = vadd.f32 %v12242_v47, %v14584_v56 }
 0x2d7   : > { %v1324_v48 = vpop.f32.mrf.mxu1 }
 0x2d8   : > { %v1325_v50 = vadd.f32 %v14584_v56, %v1324_v48  ;;  %v1405_v27 = vmax.f32 %v1333_v52, 0.0 }
 0x2d9   : > { %v12243_v49 = vpop.f32.mrf.mxu1 }
 0x2da   : > { %v1336_v51 = vadd.f32 %v12243_v49, %v14584_v56  ;;  %v1403_v57 = vmax.f32 %v1325_v50, 0.0 }
 0x2db   : > { %v1327_v53 = vpop.f32.mrf.mxu1 }
 0x2dc   : > { %v1328_v54 = vadd.f32 %v14584_v56, %v1327_v53  ;;  %v1406_v55 = vmax.f32 %v1336_v51, 0.0 }
 0x2de   : > { %v1404_v58 = vmax.f32 %v1328_v54, 0.0  ;;  %v1428_v60 = vpack.c.bf16 %v1406_v55, %v1405_v27 }
 0x2e0   : > { %v1427_v59 = vpack.c.bf16 %v1404_v58, %v1403_v57 }
 0x2e2   : > { %12288 = vmatprep.mubr.bf16.mxu1 %v1427_v59 }
 0x2e3   : > { %12289 = vmatmul.mubr.bf16.gmra.mxu1 %v1428_v60 }
 0x2e5   : > { %v12246_v61 = vpop.f32.mrf.mxu1 }
 0x2e6   : > { %v1349_v2 = vadd.f32 %v12246_v61, %v14584_v56 }
 0x2e7   : > { %v1340_v62 = vpop.f32.mrf.mxu1 }
 0x2e8   : > { %v1341_v0 = vadd.f32 %v14584_v56, %v1340_v62  ;;  %v1409_v8 = vmax.f32 %v1349_v2, 0.0 }
 0x2e9   : > { %v12247_v63 = vpop.f32.mrf.mxu1 }
 0x2ea   : > { %v1352_v1 = vadd.f32 %v12247_v63, %v14584_v56  ;;  %v1407_v6 = vmax.f32 %v1341_v0, 0.0 }
 0x2eb   : > { %v1343_v3 = vpop.f32.mrf.mxu1 }
 0x2ec   : > { %v1344_v4 = vadd.f32 %v14584_v56, %v1343_v3  ;;  %v1410_v5 = vmax.f32 %v1352_v1, 0.0 }
 0x2ee   : > { %v1408_v7 = vmax.f32 %v1344_v4, 0.0  ;;  %v1430_v10 = vpack.c.bf16 %v1410_v5, %v1409_v8 }
 0x2f0   : > { %v1429_v9 = vpack.c.bf16 %v1408_v7, %v1407_v6 }
 0x2f2   : > { %12292 = vmatprep.mubr.bf16.mxu1 %v1429_v9 }
 0x2f3   : > { %12293 = vmatmul.mubr.bf16.gmra.mxu1 %v1430_v10 }
 0x2f5   : > { %v12250_v11 = vpop.f32.mrf.mxu1 }
 0x2f6   : > { %v1365_v16 = vadd.f32 %v12250_v11, %v14584_v56 }
 0x2f7   : > { %v1356_v12 = vpop.f32.mrf.mxu1 }
 0x2f8   : > { %v1357_v14 = vadd.f32 %v14584_v56, %v1356_v12  ;;  %v1413_v22 = vmax.f32 %v1365_v16, 0.0 }
 0x2f9   : > { %v12251_v13 = vpop.f32.mrf.mxu1 }
 0x2fa   : > { %v1368_v15 = vadd.f32 %v12251_v13, %v14584_v56  ;;  %v1411_v20 = vmax.f32 %v1357_v14, 0.0 }
 0x2fb   : > { %v1359_v17 = vpop.f32.mrf.mxu1 }
 0x2fc   : > { %v1360_v18 = vadd.f32 %v14584_v56, %v1359_v17  ;;  %v1414_v19 = vmax.f32 %v1368_v15, 0.0 }
 0x2fe   : > { %v1412_v21 = vmax.f32 %v1360_v18, 0.0  ;;  %v1432_v24 = vpack.c.bf16 %v1414_v19, %v1413_v22 }
 0x300   : > { %v1431_v23 = vpack.c.bf16 %v1412_v21, %v1411_v20 }
 0x302   : > { %12296 = vmatprep.mubr.bf16.mxu1 %v1431_v23 }
 0x303   : > { %12297 = vmatmul.mubr.bf16.gmra.mxu1 %v1432_v24 }
 0x305   : > { %v12254_v25 = vpop.f32.mrf.mxu1 }
 0x306   : > { %v1381_v31 = vadd.f32 %v12254_v25, %v14584_v56 }
 0x307   : > { %v1372_v26 = vpop.f32.mrf.mxu1 }
 0x308   : > { %v1373_v29 = vadd.f32 %v14584_v56, %v1372_v26  ;;  %v1417_v37 = vmax.f32 %v1381_v31, 0.0 }
 0x309   : > { %v12255_v28 = vpop.f32.mrf.mxu1 }
 0x30a   : > { %v1384_v30 = vadd.f32 %v12255_v28, %v14584_v56  ;;  %v1415_v35 = vmax.f32 %v1373_v29, 0.0 }
 0x30b   : > { %v1375_v32 = vpop.f32.mrf.mxu1 }
 0x30c   : > { %v1376_v33 = vadd.f32 %v14584_v56, %v1375_v32  ;;  %v1418_v34 = vmax.f32 %v1384_v30, 0.0 }
 0x30e   : > { %v1416_v36 = vmax.f32 %v1376_v33, 0.0  ;;  %v1434_v39 = vpack.c.bf16 %v1418_v34, %v1417_v37 }
 0x310   : > { %v1433_v38 = vpack.c.bf16 %v1416_v36, %v1415_v35 }
 0x312   : > { %12300 = vmatprep.mubr.bf16.mxu1 %v1433_v38 }
 0x313   : > { %12301 = vmatmul.mubr.bf16.gmra.mxu1 %v1434_v39 }
 0x363   : > { %v12274_v41 = vpop.f32.mrf.mxu1 }
 0x364   : > { %v1547_v42 = vadd.f32 %v12274_v41, %v14621_v40 }
 0x365   : > { %v1538_v43 = vpop.f32.mrf.mxu1 }
 0x366   : > { %v14624_v44 = vmax.f32 %v1547_v42, 0.0  ;;  %v1539_v56 = vadd.f32 %v14621_v40, %v1538_v43 }
 0x367   : > { %v12275_v45 = vpop.f32.mrf.mxu1 }
 0x368   : > { %v10694_v46 = vpack.c.bf16 %v14624_v44, %v14624_v44  ;;  %v14629_v47 = vmax.f32 %v1539_v56, 0.0  ;;  %v1550_v48 = vadd.f32 %v12275_v45, %v14621_v40 }
 0x369   : > { %v1541_v49 = vpop.f32.mrf.mxu1 }
 0x36a   : > { %1827 = vst [vmem:[#allocation2 + $0x30] sm:$0xf] %v10694_v46  ;;  %v10692_v50 = vpack.c.bf16 %v14629_v47, %v14629_v47  ;;  %v14634_v51 = vmax.f32 %v1550_v48, 0.0  ;;  %v1542_v52 = vadd.f32 %v14621_v40, %v1541_v49 }
 0x36c   : > { %1825 = vst [vmem:[#allocation2] sm:$0xf] %v10692_v50  ;;  %v1698_v53 = vpack.c.bf16 %v14634_v51, %v14624_v44  ;;  %v10695_v54 = vpack.c.bf16 %v14634_v51, %v14634_v51  ;;  %v14641_v55 = vmax.f32 %v1542_v52, 0.0 }
 0x36e   : > { %1828 = vst [vmem:[#allocation2 + $0x48] sm:$0xf] %v10695_v54  ;;  %v1697_v57 = vpack.c.bf16 %v14641_v55, %v14629_v47  ;;  %v10693_v58 = vpack.c.bf16 %v14641_v55, %v14641_v55 }
 0x370   : > { %1826 = vst [vmem:[#allocation2 + $0x18] sm:$0xf] %v10693_v58 }
 0x373   : > { %v12278_v27 = vpop.f32.mrf.mxu1 }
 0x374   : > { %v1563_v59 = vadd.f32 %v12278_v27, %v14621_v40 }
 0x375   : > { %v1554_v60 = vpop.f32.mrf.mxu1 }
 0x376   : > { %v14648_v61 = vmax.f32 %v1563_v59, 0.0  ;;  %v1555_v62 = vadd.f32 %v14621_v40, %v1554_v60 }
 0x377   : > { %v12279_v63 = vpop.f32.mrf.mxu1 }
 0x378   : > { %v10698_v0 = vpack.c.bf16 %v14648_v61, %v14648_v61  ;;  %v14653_v1 = vmax.f32 %v1555_v62, 0.0  ;;  %v1566_v2 = vadd.f32 %v12279_v63, %v14621_v40 }
 0x379   : > { %v1557_v3 = vpop.f32.mrf.mxu1 }
 0x37a   : > { %1831 = vst [vmem:[#allocation2 + $0x90] sm:$0xf] %v10698_v0  ;;  %v10696_v4 = vpack.c.bf16 %v14653_v1, %v14653_v1  ;;  %v14658_v5 = vmax.f32 %v1566_v2, 0.0  ;;  %v1558_v6 = vadd.f32 %v14621_v40, %v1557_v3 }
 0x37c   : > { %1829 = vst [vmem:[#allocation2 + $0x60] sm:$0xf] %v10696_v4  ;;  %v1700_v7 = vpack.c.bf16 %v14658_v5, %v14648_v61  ;;  %v10699_v8 = vpack.c.bf16 %v14658_v5, %v14658_v5  ;;  %v14665_v9 = vmax.f32 %v1558_v6, 0.0 }
 0x37e   : > { %1832 = vst [vmem:[#allocation2 + $0xa8] sm:$0xf] %v10699_v8  ;;  %v1699_v10 = vpack.c.bf16 %v14665_v9, %v14653_v1  ;;  %v10697_v11 = vpack.c.bf16 %v14665_v9, %v14665_v9 }
 0x380   : > { %1830 = vst [vmem:[#allocation2 + $0x78] sm:$0xf] %v10697_v11 }
 0x383   : > { %v12282_v12 = vpop.f32.mrf.mxu1 }
 0x384   : > { %v1579_v13 = vadd.f32 %v12282_v12, %v14621_v40 }
 0x385   : > { %v1570_v14 = vpop.f32.mrf.mxu1 }
 0x386   : > { %v14672_v15 = vmax.f32 %v1579_v13, 0.0  ;;  %v1571_v16 = vadd.f32 %v14621_v40, %v1570_v14 }
 0x387   : > { %v12283_v17 = vpop.f32.mrf.mxu1 }
 0x388   : > { %v10702_v18 = vpack.c.bf16 %v14672_v15, %v14672_v15  ;;  %v14677_v19 = vmax.f32 %v1571_v16, 0.0  ;;  %v1582_v20 = vadd.f32 %v12283_v17, %v14621_v40 }
 0x389   : > { %v1573_v21 = vpop.f32.mrf.mxu1 }
 0x38a   : > { %1835 = vst [vmem:[#allocation2 + $0xf0] sm:$0xf] %v10702_v18  ;;  %v10700_v22 = vpack.c.bf16 %v14677_v19, %v14677_v19  ;;  %v14682_v23 = vmax.f32 %v1582_v20, 0.0  ;;  %v1574_v24 = vadd.f32 %v14621_v40, %v1573_v21 }
 0x38c   : > { %1833 = vst [vmem:[#allocation2 + $0xc0] sm:$0xf] %v10700_v22  ;;  %v1702_v25 = vpack.c.bf16 %v14682_v23, %v14672_v15  ;;  %v10703_v26 = vpack.c.bf16 %v14682_v23, %v14682_v23  ;;  %v14689_v28 = vmax.f32 %v1574_v24, 0.0 }
 0x38e   : > { %1836 = vst [vmem:[#allocation2 + $0x108] sm:$0xf] %v10703_v26  ;;  %v1701_v29 = vpack.c.bf16 %v14689_v28, %v14677_v19  ;;  %v10701_v30 = vpack.c.bf16 %v14689_v28, %v14689_v28 }
 0x390   : > { %1834 = vst [vmem:[#allocation2 + $0xd8] sm:$0xf] %v10701_v30 }
 0x393   : > { %v12286_v31 = vpop.f32.mrf.mxu1 }
 0x394   : > { %v1595_v32 = vadd.f32 %v12286_v31, %v14621_v40 }
 0x395   : > { %v1586_v33 = vpop.f32.mrf.mxu1 }
 0x396   : > { %v14696_v34 = vmax.f32 %v1595_v32, 0.0  ;;  %v1587_v35 = vadd.f32 %v14621_v40, %v1586_v33 }
 0x397   : > { %v12287_v36 = vpop.f32.mrf.mxu1 }
 0x398   : > { %v10706_v37 = vpack.c.bf16 %v14696_v34, %v14696_v34  ;;  %v14701_v38 = vmax.f32 %v1587_v35, 0.0  ;;  %v1598_v39 = vadd.f32 %v12287_v36, %v14621_v40 }
 0x399   : > { %v1589_v41 = vpop.f32.mrf.mxu1 }
 0x39a   : > { %1839 = vst [vmem:[#allocation2 + $0x150] sm:$0xf] %v10706_v37  ;;  %v10704_v42 = vpack.c.bf16 %v14701_v38, %v14701_v38  ;;  %v14706_v43 = vmax.f32 %v1598_v39, 0.0  ;;  %v1590_v56 = vadd.f32 %v14621_v40, %v1589_v41 }
 0x39c   : > { %1837 = vst [vmem:[#allocation2 + $0x120] sm:$0xf] %v10704_v42  ;;  %v1704_v45 = vpack.c.bf16 %v14706_v43, %v14696_v34  ;;  %v10707_v46 = vpack.c.bf16 %v14706_v43, %v14706_v43  ;;  %v14713_v48 = vmax.f32 %v1590_v56, 0.0 }
 0x39e   : > { %1840 = vst [vmem:[#allocation2 + $0x168] sm:$0xf] %v10707_v46  ;;  %v1703_v49 = vpack.c.bf16 %v14713_v48, %v14701_v38  ;;  %v10705_v50 = vpack.c.bf16 %v14713_v48, %v14713_v48 }
 0x3a0   : > { %1838 = vst [vmem:[#allocation2 + $0x138] sm:$0xf] %v10705_v50 }
 0x3a3   : > { %v12290_v52 = vpop.f32.mrf.mxu1 }
 0x3a4   : > { %v1611_v54 = vadd.f32 %v12290_v52, %v14621_v40 }
 0x3a5   : > { %v1602_v58 = vpop.f32.mrf.mxu1 }
 0x3a6   : > { %v14720_v27 = vmax.f32 %v1611_v54, 0.0  ;;  %v1603_v59 = vadd.f32 %v14621_v40, %v1602_v58 }
 0x3a7   : > { %v12291_v60 = vpop.f32.mrf.mxu1 }
 0x3a8   : > { %v10710_v62 = vpack.c.bf16 %v14720_v27, %v14720_v27  ;;  %v14725_v63 = vmax.f32 %v1603_v59, 0.0  ;;  %v1614_v0 = vadd.f32 %v12291_v60, %v14621_v40 }
 0x3a9   : > { %v1605_v2 = vpop.f32.mrf.mxu1 }
 0x3aa   : > { %1843 = vst [vmem:[#allocation2 + $0x1b0] sm:$0xf] %v10710_v62  ;;  %v10708_v3 = vpack.c.bf16 %v14725_v63, %v14725_v63  ;;  %v14730_v4 = vmax.f32 %v1614_v0, 0.0  ;;  %v1606_v6 = vadd.f32 %v14621_v40, %v1605_v2 }
 0x3ac   : > { %1841 = vst [vmem:[#allocation2 + $0x180] sm:$0xf] %v10708_v3  ;;  %v10711_v8 = vpack.c.bf16 %v14730_v4, %v14730_v4  ;;  %v14735_v11 = vmax.f32 %v1606_v6, 0.0  ;;  %v1706_v12 = vpack.c.bf16 %v14730_v4, %v14720_v27 }
 0x3ae   : > { %1844 = vst [vmem:[#allocation2 + $0x1c8] sm:$0xf] %v10711_v8  ;;  %v10709_v13 = vpack.c.bf16 %v14735_v11, %v14735_v11  ;;  %v1705_v14 = vpack.c.bf16 %v14735_v11, %v14725_v63 }
 0x3b0   : > { %1842 = vst [vmem:[#allocation2 + $0x198] sm:$0xf] %v10709_v13 }
 0x3b3   : > { %v12294_v16 = vpop.f32.mrf.mxu1 }
 0x3b4   : > { %v1627_v17 = vadd.f32 %v12294_v16, %v14621_v40 }
 0x3b5   : > { %v1618_v18 = vpop.f32.mrf.mxu1 }
 0x3b6   : > { %v14744_v20 = vmax.f32 %v1627_v17, 0.0  ;;  %v1619_v21 = vadd.f32 %v14621_v40, %v1618_v18 }
 0x3b7   : > { %v12295_v22 = vpop.f32.mrf.mxu1 }
 0x3b8   : > { %v10714_v24 = vpack.c.bf16 %v14744_v20, %v14744_v20  ;;  %v14749_v26 = vmax.f32 %v1619_v21, 0.0  ;;  %v1630_v30 = vadd.f32 %v12295_v22, %v14621_v40 }
 0x3b9   : > { %v1621_v31 = vpop.f32.mrf.mxu1 }
 0x3ba   : > { %1847 = vst [vmem:[#allocation2 + $0x210] sm:$0xf] %v10714_v24  ;;  %v10712_v32 = vpack.c.bf16 %v14749_v26, %v14749_v26  ;;  %v14754_v33 = vmax.f32 %v1630_v30, 0.0  ;;  %v1622_v35 = vadd.f32 %v14621_v40, %v1621_v31 }
 0x3bc   : > { %1845 = vst [vmem:[#allocation2 + $0x1e0] sm:$0xf] %v10712_v32  ;;  %v10715_v36 = vpack.c.bf16 %v14754_v33, %v14754_v33  ;;  %v14759_v37 = vmax.f32 %v1622_v35, 0.0 }
 0x3be   : > { %1848 = vst [vmem:[#allocation2 + $0x228] sm:$0xf] %v10715_v36  ;;  %v10713_v39 = vpack.c.bf16 %v14759_v37, %v14759_v37 }
 0x3c0   : > { %1846 = vst [vmem:[#allocation2 + $0x1f8] sm:$0xf] %v10713_v39 }
 0x3c3   : > { %v12298_v41 = vpop.f32.mrf.mxu1 }
 0x3c4   : > { %v1643_v42 = vadd.f32 %v12298_v41, %v14621_v40 }
 0x3c5   : > { %v1634_v56 = vpop.f32.mrf.mxu1 }
 0x3c6   : > { %v14764_v46 = vmax.f32 %v1643_v42, 0.0  ;;  %v1635_v50 = vadd.f32 %v14621_v40, %v1634_v56 }
 0x3c7   : > { %v12299_v52 = vpop.f32.mrf.mxu1 }
 0x3c8   : > { %v10718_v54 = vpack.c.bf16 %v14764_v46, %v14764_v46  ;;  %v14769_v58 = vmax.f32 %v1635_v50, 0.0  ;;  %v1646_v59 = vadd.f32 %v12299_v52, %v14621_v40 }
 0x3c9   : > { %v1637_v60 = vpop.f32.mrf.mxu1 }
 0x3ca   : > { %1851 = vst [vmem:[#allocation2 + $0x270] sm:$0xf] %v10718_v54  ;;  %v10716_v62 = vpack.c.bf16 %v14769_v58, %v14769_v58  ;;  %v14774_v0 = vmax.f32 %v1646_v59, 0.0  ;;  %v1638_v2 = vadd.f32 %v14621_v40, %v1637_v60  ;;  %v13529_v59 = vld [vmem:[%s14422_s5 + $0x20] ss:$8 sps:$4 sm:$0xff]  }
 0x3cb   : > { %v13531_v60 = vld [vmem:[%s14422_s5 + $0x30] ss:$8 sps:$4 sm:$0xff]  }
 0x3cc   : > { %1849 = vst [vmem:[#allocation2 + $0x240] sm:$0xf] %v10716_v62  ;;  %v10719_v3 = vpack.c.bf16 %v14774_v0, %v14774_v0  ;;  %v14779_v6 = vmax.f32 %v1638_v2, 0.0  ;;  %v13532_v62 = vld [vmem:[%s14422_s5 + $0x44] ss:$8 sps:$4 sm:$0xff]  }
 0x3cd   : > { %v13533_v2 = vld [vmem:[%s14422_s5 + $0x40] ss:$8 sps:$4 sm:$0xff]  }
 0x3ce   : > { %1852 = vst [vmem:[#allocation2 + $0x288] sm:$0xf] %v10719_v3  ;;  %v10717_v8 = vpack.c.bf16 %v14779_v6, %v14779_v6  ;;  %v1709_v54 = vpack.c.bf16 %v14779_v6, %v14769_v58  ;;  %v13534_v3 = vld [vmem:[%s14422_s5 + $0x54] ss:$8 sps:$4 sm:$0xff]  }
 0x3d0   : > { %1850 = vst [vmem:[#allocation2 + $0x258] sm:$0xf] %v10717_v8  ;;  %v13535_v8 = vld [vmem:[%s14422_s5 + $0x50] ss:$8 sps:$4 sm:$0xff]  }
 0x3d3   : > { %v12302_v13 = vpop.f32.mrf.mxu1 }
 0x3d4   : > { %v1659_v16 = vadd.f32 %v12302_v13, %v14621_v40  ;;  %v13536_v13 = vld [vmem:[%s14422_s5 + $0x64] ss:$8 sps:$4 sm:$0xff]  }
 0x3d5   : > { %v1650_v17 = vpop.f32.mrf.mxu1 }
 0x3d6   : > { %v14784_v18 = vmax.f32 %v1659_v16, 0.0  ;;  %v1651_v21 = vadd.f32 %v14621_v40, %v1650_v17  ;;  %v13537_v16 = vld [vmem:[%s14422_s5 + $0x60] ss:$8 sps:$4 sm:$0xff]   ;;  %v13538_v17 = vld [vmem:[%s14422_s5 + $0x74] ss:$8 sps:$4 sm:$0xff]  }
 0x3d7   : > { %v12303_v22 = vpop.f32.mrf.mxu1 }
 0x3d8   : > { %v10722_v24 = vpack.c.bf16 %v14784_v18, %v14784_v18  ;;  %v14789_v30 = vmax.f32 %v1651_v21, 0.0  ;;  %v1662_v31 = vadd.f32 %v12303_v22, %v14621_v40  ;;  %v13539_v21 = vld [vmem:[%s14422_s5 + $0x70] ss:$8 sps:$4 sm:$0xff]   ;;  %v13540_v22 = vld [vmem:[%s14422_s5 + $0x84] ss:$8 sps:$4 sm:$0xff]  }
 0x3d9   : > { %v1653_v32 = vpop.f32.mrf.mxu1 }
 0x3da   : > { %1855 = vst [vmem:[#allocation2 + $0x2d0] sm:$0xf] %v10722_v24  ;;  %v10720_v35 = vpack.c.bf16 %v14789_v30, %v14789_v30  ;;  %v14794_v36 = vmax.f32 %v1662_v31, 0.0  ;;  %v1654_v39 = vadd.f32 %v14621_v40, %v1653_v32  ;;  %v1710_v40 = vpack.c.bf16 %v14774_v0, %v14764_v46  ;;  %v12985_v24 = vld [vmem:[#allocation11 + $0x60] sm:$0xff]   ;;  %v13542_v32 = vld [vmem:[%s14422_s5 + $0x94] ss:$8 sps:$4 sm:$0xff]  }
 0x3db   : > { %v13541_v31 = vld [vmem:[%s14422_s5 + $0x80] ss:$8 sps:$4 sm:$0xff]  }
 0x3dc   : > { %1853 = vst [vmem:[#allocation2 + $0x2a0] sm:$0xf] %v10720_v35  ;;  %v10723_v41 = vpack.c.bf16 %v14794_v36, %v14794_v36  ;;  %v14799_v42 = vmax.f32 %v1654_v39, 0.0  ;;  %v1712_v56 = vpack.c.bf16 %v14794_v36, %v14784_v18  ;;  %v12986_v35 = vld [vmem:[#allocation11 + $0x58] sm:$0xff]   ;;  %v12987_v39 = vld [vmem:[#allocation11 + $0x50] sm:$0xff]  }
 0x3de   : > { %1856 = vst [vmem:[#allocation2 + $0x2e8] sm:$0xf] %v10723_v41  ;;  %v10721_v50 = vpack.c.bf16 %v14799_v42, %v14799_v42  ;;  %11044 = vmatprep.subr.bf16.mxu0 %v1712_v56  ;;  %v1711_v52 = vpack.c.bf16 %v14799_v42, %v14789_v30  ;;  %v13543_v41 = vld [vmem:[%s14422_s5 + $0x90] ss:$8 sps:$4 sm:$0xff]   ;;  %v13544_v56 = vld [vmem:[%s14422_s5 + $0xa4] ss:$8 sps:$4 sm:$0xff]  }
 0x3df   : > { %11045 = vmatpush3.bf16.msra.mxu0 %v1704_v45  ;;  %v1708_v45 = vpack.c.bf16 %v14754_v33, %v14744_v20 }
 0x3e0   : > { %1854 = vst [vmem:[#allocation2 + $0x2b8] sm:$0xf] %v10721_v50  ;;  %11046 = vmatprep.subr.bf16.mxu0 %v1711_v52  ;;  %v12988_v50 = vld [vmem:[#allocation11 + $0x48] sm:$0xff]   ;;  %v12989_v52 = vld [vmem:[#allocation11 + $0x40] sm:$0xff]  }
 0x3e3   : > { %11047 = vmatpush3.bf16.msra.mxu0 %v1703_v49  ;;  %v1707_v49 = vpack.c.bf16 %v14759_v37, %v14749_v26 }
 0x3e4   : > { %11048 = vmatprep.subr.bf16.mxu0 %v1710_v40  ;;  %v13545_v40 = vld [vmem:[%s14422_s5 + $0xa0] ss:$8 sps:$4 sm:$0xff]  }
 0x3e7   : > { %11049 = vmatpush3.bf16.msra.mxu0 %v1702_v25  ;;  %v12982_v25 = vld [vmem:[#allocation11 + $0x78] sm:$0xff]  }
 0x3e8   : > { %11050 = vmatprep.subr.bf16.mxu0 %v1709_v54  ;;  %12304 = vmatprep.subr.bf16.mxu1 %v12982_v25  ;;  %v13546_v54 = vld [vmem:[%s14422_s5 + $0xb4] ss:$8 sps:$4 sm:$0xff]  }
 0x3e9   : > { %12305 = vmatpush3.bf16.msra.mxu1 %v12982_v25  ;;  %v13549_v25 = vld [vmem:[%s14422_s5 + $0xc0] ss:$8 sps:$4 sm:$0xff]  }
 0x3eb   : > { %11051 = vmatpush3.bf16.msra.mxu0 %v1701_v29  ;;  %v12983_v29 = vld [vmem:[#allocation11 + $0x70] sm:$0xff]  }
 0x3ec   : > { %11052 = vmatprep.subr.bf16.mxu0 %v1708_v45  ;;  %12306 = vmatprep.subr.bf16.mxu1 %v12983_v29  ;;  %v13547_v45 = vld [vmem:[%s14422_s5 + $0xb0] ss:$8 sps:$4 sm:$0xff]  }
 0x3ed   : > { %12307 = vmatpush3.bf16.msra.mxu1 %v12983_v29  ;;  %v13550_v29 = vld [vmem:[%s14422_s5 + $0xd4] ss:$8 sps:$4 sm:$0xff]  }
 0x3ef   : > { %11053 = vmatpush3.bf16.msra.mxu0 %v1700_v7  ;;  %v12984_v7 = vld [vmem:[#allocation11 + $0x68] sm:$0xff]  }
 0x3f0   : > { %11054 = vmatprep.subr.bf16.mxu0 %v1707_v49  ;;  %12308 = vmatprep.subr.bf16.mxu1 %v12984_v7  ;;  %v13548_v49 = vld [vmem:[%s14422_s5 + $0xc4] ss:$8 sps:$4 sm:$0xff]  }
 0x3f1   : > { %12309 = vmatpush3.bf16.msra.mxu1 %v12984_v7  ;;  %v13551_v7 = vld [vmem:[%s14422_s5 + $0xd0] ss:$8 sps:$4 sm:$0xff]  }
 0x3f2   : > { %12310 = vmatprep.subr.bf16.mxu1 %v12985_v24 }
 0x3f3   : > { %11055 = vmatpush3.bf16.msra.mxu0 %v1699_v10  ;;  %v13525_v10 = vld [vmem:[%s14422_s5] ss:$8 sps:$4 sm:$0xff]  }
 0x3f4   : > { %11056 = vmatprep.subr.bf16.mxu0 %v1706_v12  ;;  %v13527_v12 = vld [vmem:[%s14422_s5 + $0x10] ss:$8 sps:$4 sm:$0xff]  }
 0x3f5   : > { %12311 = vmatpush3.bf16.msra.mxu1 %v12985_v24 }
 0x3f6   : > { %12312 = vmatprep.subr.bf16.mxu1 %v12986_v35 }
 0x3f7   : > { %11057 = vmatpush3.bf16.msra.mxu0 %v1698_v53  ;;  %v13526_v53 = vld [vmem:[%s14422_s5 + $0x14] ss:$8 sps:$4 sm:$0xff]  }
 0x3f8   : > { %11058 = vmatprep.subr.bf16.mxu0 %v1705_v14  ;;  %v13528_v14 = vld [vmem:[%s14422_s5 + $0x24] ss:$8 sps:$4 sm:$0xff]  }
 0x3f9   : > { %12313 = vmatpush3.bf16.msra.mxu1 %v12986_v35 }
 0x3fa   : > { %12314 = vmatprep.subr.bf16.mxu1 %v12987_v39 }
 0x3fb   : > { %11059 = vmatpush3.bf16.msra.mxu0 %v1697_v57  ;;  %v13530_v57 = vld [vmem:[%s14422_s5 + $0x34] ss:$8 sps:$4 sm:$0xff]  }
 0x3fd   : > { %12315 = vmatpush3.bf16.msra.mxu1 %v12987_v39 }
 0x3fe   : > { %1925 = vmatmul.mubr.bf16.vlgmr.msra.gmra.mxu0 %v13525_v10  ;;  %12316 = vmatprep.subr.bf16.mxu1 %v12988_v50  ;;  %v13552_v10 = vld [vmem:[%s14422_s5 + $0xe4] ss:$8 sps:$4 sm:$0xff]  }
 0x3ff   : > { %1932 = vmatprep.mubr.bf16.mxu0 %v13526_v53  ;;  %v13553_v53 = vld [vmem:[%s14422_s5 + $0xe0] ss:$8 sps:$4 sm:$0xff]  }
 0x401   : > { %12317 = vmatpush3.bf16.msra.mxu1 %v12988_v50 }
 0x402   : > { %12318 = vmatprep.subr.bf16.mxu1 %v12989_v52 }
 0x405   : > { %12319 = vmatpush3.bf16.msra.mxu1 %v12989_v52 }
 0x406   : > { %1933 = vmatmul.mubr.bf16.gmra.mxu0 %v13527_v12  ;;  %v13554_v12 = vld [vmem:[%s14422_s5 + $0xf4] ss:$8 sps:$4 sm:$0xff]  }
 0x407   : > { %1940 = vmatprep.mubr.bf16.mxu0 %v13528_v14  ;;  %v13555_v14 = vld [vmem:[%s14422_s5 + $0xf0] ss:$8 sps:$4 sm:$0xff]  }
 0x40e   : > { %1941 = vmatmul.mubr.bf16.gmra.mxu0 %v13529_v59  ;;  %v13556_v59 = vld [vmem:[%s14422_s5 + $0x4] ss:$8 sps:$4 sm:$0xff]  }
 0x40f   : > { %1948 = vmatprep.mubr.bf16.mxu0 %v13530_v57 }
 0x416   : > { %1949 = vmatmul.mubr.bf16.gmra.mxu0 %v13531_v60 }
 0x417   : > { %1956 = vmatprep.mubr.bf16.mxu0 %v13532_v62 }
 0x41e   : > { %1957 = vmatmul.mubr.bf16.gmra.mxu0 %v13533_v2 }
 0x41f   : > { %1964 = vmatprep.mubr.bf16.mxu0 %v13534_v3  ;;  %v12990_v3 = vld [vmem:[#allocation13 + $0x78] sm:$0xff]  }
 0x420   : > { %12352 = vmatprep.subr.bf16.mxu1 %v12990_v3 }
 0x426   : > { %1965 = vmatmul.mubr.bf16.gmra.mxu0 %v13535_v8  ;;  %v14877_v8 = vstv %s1858_s14  ;;  %s10288_s14 = sld [smem:[#allocation4 + $0x4]] }
 0x427   : > { %1972 = vmatprep.mubr.bf16.mxu0 %v13536_v13  ;;  %v1863_v50 = vmul.f32 %v14877_v8, %v14634_v51  ;;  %v1865_v51 = vmul.f32 %v14877_v8, %v14665_v9  ;;  %v1866_v9 = vmul.f32 %v14877_v8, %v14648_v61  ;;  %v1869_v61 = vmul.f32 %v14877_v8, %v14689_v28 }
 0x42c   : > { %s4600_s0 = sadd.f32 1.0, %s10288_s14 }
 0x42e   : > { %1973 = vmatmul.mubr.bf16.gmra.mxu0 %v13537_v16  ;;  %v1860_v16 = vmul.f32 %v14877_v8, %v14629_v47  ;;  %v1862_v47 = vmul.f32 %v14877_v8, %v14624_v44  ;;  %v12992_v44 = vld [vmem:[#allocation13 + $0x68] sm:$0xff]  }
 0x42f   : > { %1980 = vmatprep.mubr.bf16.mxu0 %v13538_v17  ;;  %v1861_v17 = vmul.f32 %v14877_v8, %v14641_v55 }
 0x436   : > { %1981 = vmatmul.mubr.bf16.gmra.mxu0 %v13539_v21 }
 0x437   : > { %1988 = vmatprep.mubr.bf16.mxu0 %v13540_v22 }
 0x43e   : > { %1989 = vmatmul.mubr.bf16.gmra.mxu0 %v13541_v31 }
 0x43f   : > { %1996 = vmatprep.mubr.bf16.mxu0 %v13542_v32 }
 0x446   : > { %1997 = vmatmul.mubr.bf16.gmra.mxu0 %v13543_v41 }
 0x447   : > { %2004 = vmatprep.mubr.bf16.mxu0 %v13544_v56 }
 0x44e   : > { %2005 = vmatmul.mubr.bf16.gmra.mxu0 %v13545_v40 }
 0x44f   : > { %2012 = vmatprep.mubr.bf16.mxu0 %v13546_v54 }
 0x456   : > { %2013 = vmatmul.mubr.bf16.gmra.mxu0 %v13547_v45 }
 0x457   : > { %2020 = vmatprep.mubr.bf16.mxu0 %v13548_v49 }
 0x45e   : > { %2021 = vmatmul.mubr.bf16.gmra.mxu0 %v13549_v25  ;;  %v12991_v25 = vld [vmem:[#allocation13 + $0x70] sm:$0xff]  }
 0x45f   : > { %2028 = vmatprep.mubr.bf16.mxu0 %v13550_v29 }
 0x466   : > { %2029 = vmatmul.mubr.bf16.gmra.mxu0 %v13551_v7 }
 0x467   : > { %2036 = vmatprep.mubr.bf16.mxu0 %v13552_v10 }
 0x46e   : > { %2037 = vmatmul.mubr.bf16.gmra.mxu0 %v13553_v53  ;;  %v1864_v53 = vmul.f32 %v14877_v8, %v14653_v1  ;;  %v1867_v1 = vmul.f32 %v14877_v8, %v14658_v5  ;;  %v1868_v5 = vmul.f32 %v14877_v8, %v14677_v19 }
 0x46f   : > { %2044 = vmatprep.mubr.bf16.mxu0 %v13554_v12 }
 0x476   : > { %2045 = vmatmul.mubr.bf16.gmra.mxu0 %v13555_v14 }
 0x477   : > { %2838 = vmatprep.mubr.bf16.mxu0 %v13556_v59 }
 0x4be   : > { %v11060_v57 = vpop.f32.mrf.mxu0 }
 0x4c0   : > { %v11061_v60 = vpop.f32.mrf.mxu0 }
 0x4c1   : > { %v11062_v2 = vadd.f32 %v11061_v60, %v11060_v57 }
 0x4c2   : > { %v11063_v62 = vpop.f32.mrf.mxu0 }
 0x4c3   : > { %v1927_v24 = vadd.f32 %v11062_v2, %v1860_v16  ;;  %v12993_v2 = vld [vmem:[#allocation13 + $0x60] sm:$0xff]  }
 0x4c4   : > { %v11064_v13 = vpop.f32.mrf.mxu0 }
 0x4c5   : > { %v11065_v21 = vadd.f32 %v11064_v13, %v11063_v62 }
 0x4c6   : > { %v11066_v22 = vpop.f32.mrf.mxu0 }
 0x4c7   : > { %v1930_v31 = vadd.f32 %v11065_v21, %v1861_v17  ;;  %v12994_v21 = vld [vmem:[#allocation13 + $0x58] sm:$0xff]  }
 0x4c8   : > { %v11067_v32 = vpop.f32.mrf.mxu0 }
 0x4c9   : > { %v2053_v35 = vpack.c.bf16 %v1930_v31, %v1927_v24  ;;  %v11068_v41 = vadd.f32 %v11067_v32, %v11066_v22 }
 0x4ca   : > { %v11069_v39 = vpop.f32.mrf.mxu0 }
 0x4cb   : > { %12320 = vmatprep.mubr.bf16.mxu1 %v2053_v35  ;;  %v1935_v55 = vadd.f32 %v11068_v41, %v1862_v47 }
 0x4cc   : > { %v11070_v56 = vpop.f32.mrf.mxu0 }
 0x4cd   : > { %v11071_v52 = vadd.f32 %v11070_v56, %v11069_v39 }
 0x4ce   : > { %v11072_v40 = vpop.f32.mrf.mxu0 }
 0x4cf   : > { %v1938_v54 = vadd.f32 %v11071_v52, %v1863_v50 }
 0x4d0   : > { %v11073_v45 = vpop.f32.mrf.mxu0 }
 0x4d1   : > { %v2054_v49 = vpack.c.bf16 %v1938_v54, %v1935_v55  ;;  %v11074_v7 = vadd.f32 %v11073_v45, %v11072_v40 }
 0x4d2   : > { %v11075_v29 = vpop.f32.mrf.mxu0 }
 0x4d3   : > { %12321 = vmatmul.mubr.bf16.vlgmr.msra.gmra.mxu1 %v2054_v49  ;;  %v1943_v59 = vadd.f32 %v11074_v7, %v1864_v53  ;;  %v1870_v7 = vmul.f32 %v14877_v8, %v14672_v15 }
 0x4d4   : > { %v11076_v10 = vpop.f32.mrf.mxu0  ;;  %12353 = vmatpush3.bf16.msra.mxu1 %v12990_v3 }
 0x4d5   : > { %v11077_v12 = vadd.f32 %v11076_v10, %v11075_v29  ;;  %12354 = vmatprep.subr.bf16.mxu1 %v12991_v25  ;;  %v1871_v29 = vmul.f32 %v14877_v8, %v14682_v23 }
 0x4d6   : > { %v11078_v14 = vpop.f32.mrf.mxu0 }
 0x4d7   : > { %v1946_v57 = vadd.f32 %v11077_v12, %v1865_v51 }
 0x4d8   : > { %v11079_v60 = vpop.f32.mrf.mxu0  ;;  %12355 = vmatpush3.bf16.msra.mxu1 %v12991_v25 }
 0x4d9   : > { %v2055_v62 = vpack.c.bf16 %v1946_v57, %v1943_v59  ;;  %12356 = vmatprep.subr.bf16.mxu1 %v12992_v44  ;;  %v11080_v16 = vadd.f32 %v11079_v60, %v11078_v14  ;;  %v1872_v57 = vmul.f32 %v14877_v8, %v14701_v38  ;;  %v1873_v60 = vmul.f32 %v14877_v8, %v14713_v48 }
 0x4da   : > { %v11081_v13 = vpop.f32.mrf.mxu0 }
 0x4db   : > { %12324 = vmatprep.mubr.bf16.mxu1 %v2055_v62  ;;  %v1951_v24 = vadd.f32 %v11080_v16, %v1866_v9 }
 0x4dc   : > { %v11082_v3 = vpop.f32.mrf.mxu0  ;;  %12357 = vmatpush3.bf16.msra.mxu1 %v12992_v44 }
 0x4dd   : > { %v11083_v17 = vadd.f32 %v11082_v3, %v11081_v13  ;;  %12358 = vmatprep.subr.bf16.mxu1 %v12993_v2 }
 0x4de   : > { %v11084_v22 = vpop.f32.mrf.mxu0 }
 0x4df   : > { %v1954_v31 = vadd.f32 %v11083_v17, %v1867_v1  ;;  %v1875_v17 = vmul.f32 %v14877_v8, %v14706_v43 }
 0x4e0   : > { %v11085_v32 = vpop.f32.mrf.mxu0  ;;  %12359 = vmatpush3.bf16.msra.mxu1 %v12993_v2 }
 0x4e1   : > { %v2056_v35 = vpack.c.bf16 %v1954_v31, %v1951_v24  ;;  %12360 = vmatprep.subr.bf16.mxu1 %v12994_v21  ;;  %v11086_v41 = vadd.f32 %v11085_v32, %v11084_v22 }
 0x4e2   : > { %v11087_v39 = vpop.f32.mrf.mxu0 }
 0x4e3   : > { %12325 = vmatmul.mubr.bf16.gmra.mxu1 %v2056_v35  ;;  %v1959_v52 = vadd.f32 %v11086_v41, %v1868_v5  ;;  %v1877_v5 = vmul.f32 %v14877_v8, %v14735_v11 }
 0x4e4   : > { %v11088_v56 = vpop.f32.mrf.mxu0  ;;  %12361 = vmatpush3.bf16.msra.mxu1 %v12994_v21  ;;  %v1874_v21 = vmul.f32 %v14877_v8, %v14696_v34 }
 0x4e5   : > { %v11089_v50 = vadd.f32 %v11088_v56, %v11087_v39  ;;  %v1876_v56 = vmul.f32 %v14877_v8, %v14725_v63 }
 0x4e6   : > { %v11090_v47 = vpop.f32.mrf.mxu0 }
 0x4e7   : > { %v1962_v40 = vadd.f32 %v11089_v50, %v1869_v61 }
 0x4e8   : > { %v11091_v55 = vpop.f32.mrf.mxu0 }
 0x4e9   : > { %v2057_v54 = vpack.c.bf16 %v1962_v40, %v1959_v52  ;;  %v11092_v49 = vadd.f32 %v11091_v55, %v11090_v47 }
 0x4ea   : > { %v11093_v45 = vpop.f32.mrf.mxu0 }
 0x4eb   : > { %12328 = vmatprep.mubr.bf16.mxu1 %v2057_v54  ;;  %v1967_v53 = vadd.f32 %v11092_v49, %v1870_v7  ;;  %v1878_v49 = vmul.f32 %v14877_v8, %v14720_v27 }
 0x4ec   : > { %v11094_v25 = vpop.f32.mrf.mxu0 }
 0x4ed   : > { %v11095_v19 = vadd.f32 %v11094_v25, %v11093_v45  ;;  %v1879_v45 = vmul.f32 %v14877_v8, %v14730_v4  ;;  %v1881_v4 = vmul.f32 %v14877_v8, %v14759_v37  ;;  %v1882_v37 = vmul.f32 %v14877_v8, %v14744_v20 }
 0x4ee   : > { %v11096_v10 = vpop.f32.mrf.mxu0 }
 0x4ef   : > { %v1970_v28 = vadd.f32 %v11095_v19, %v1871_v29 }
 0x4f0   : > { %v11097_v51 = vpop.f32.mrf.mxu0 }
 0x4f1   : > { %v2058_v12 = vpack.c.bf16 %v1970_v28, %v1967_v53  ;;  %v11098_v14 = vadd.f32 %v11097_v51, %v11096_v10  ;;  %v12995_v28 = vld [vmem:[#allocation13 + $0x50] sm:$0xff]  }
 0x4f2   : > { %v11099_v44 = vpop.f32.mrf.mxu0  ;;  %12362 = vmatprep.subr.bf16.mxu1 %v12995_v28 }
 0x4f3   : > { %12329 = vmatmul.mubr.bf16.gmra.mxu1 %v2058_v12  ;;  %v1975_v2 = vadd.f32 %v11098_v14, %v1872_v57  ;;  %v1880_v12 = vmul.f32 %v14877_v8, %v14749_v26  ;;  %v12996_v57 = vld [vmem:[#allocation13 + $0x48] sm:$0xff]   ;;  %v1883_v26 = vmul.f32 %v14877_v8, %v14754_v33  ;;  %v1885_v33 = vmul.f32 %v14877_v8, %v14779_v6 }
 0x4f4   : > { %v11100_v59 = vpop.f32.mrf.mxu0  ;;  %12363 = vmatpush3.bf16.msra.mxu1 %v12995_v28  ;;  %v1891_v28 = vmul.f32 %v14877_v8, %v14794_v36 }
 0x4f5   : > { %v11101_v23 = vadd.f32 %v11100_v59, %v11099_v44  ;;  %12364 = vmatprep.subr.bf16.mxu1 %v12996_v57 }
 0x4f6   : > { %v11102_v62 = vpop.f32.mrf.mxu0 }
 0x4f7   : > { %v1978_v15 = vadd.f32 %v11101_v23, %v1873_v60 }
 0x4f8   : > { %v11103_v13 = vpop.f32.mrf.mxu0  ;;  %12365 = vmatpush3.bf16.msra.mxu1 %v12996_v57 }
 0x4f9   : > { %v2059_v16 = vpack.c.bf16 %v1978_v15, %v1975_v2  ;;  %v11104_v1 = vadd.f32 %v11103_v13, %v11102_v62  ;;  %v12997_v15 = vld [vmem:[#allocation13 + $0x40] sm:$0xff]  }
 0x4fa   : > { %v11105_v3 = vpop.f32.mrf.mxu0  ;;  %12366 = vmatprep.subr.bf16.mxu1 %v12997_v15 }
 0x4fb   : > { %12332 = vmatprep.mubr.bf16.mxu1 %v2059_v16  ;;  %v1983_v24 = vadd.f32 %v11104_v1, %v1874_v21 }
 0x4fc   : > { %v11106_v9 = vpop.f32.mrf.mxu0  ;;  %12367 = vmatpush3.bf16.msra.mxu1 %v12997_v15 }
 0x4fd   : > { %v11107_v38 = vadd.f32 %v11106_v9, %v11105_v3 }
 0x4fe   : > { %v11108_v22 = vpop.f32.mrf.mxu0 }
 0x4ff   : > { %v1986_v48 = vadd.f32 %v11107_v38, %v1875_v17 }
 0x500   : > { %v11109_v31 = vpop.f32.mrf.mxu0 }
 0x501   : > { %v2060_v32 = vpack.c.bf16 %v1986_v48, %v1983_v24  ;;  %v11110_v39 = vadd.f32 %v11109_v31, %v11108_v22  ;;  %v1884_v48 = vmul.f32 %v14877_v8, %v14769_v58 }
 0x502   : > { %v11111_v35 = vpop.f32.mrf.mxu0 }
 0x503   : > { %12333 = vmatmul.mubr.bf16.gmra.mxu1 %v2060_v32  ;;  %v1991_v50 = vadd.f32 %v11110_v39, %v1876_v56 }
 0x504   : > { %v11112_v41 = vpop.f32.mrf.mxu0 }
 0x505   : > { %v11113_v43 = vadd.f32 %v11112_v41, %v11111_v35 }
 0x506   : > { %v11114_v61 = vpop.f32.mrf.mxu0 }
 0x507   : > { %v1994_v34 = vadd.f32 %v11113_v43, %v1877_v5 }
 0x508   : > { %v11115_v47 = vpop.f32.mrf.mxu0 }
 0x509   : > { %v2061_v52 = vpack.c.bf16 %v1994_v34, %v1991_v50  ;;  %v11116_v55 = vadd.f32 %v11115_v47, %v11114_v61  ;;  %v1887_v61 = vmul.f32 %v14877_v8, %v14774_v0  ;;  %v1886_v50 = vmul.f32 %v14877_v8, %v14764_v46 }
 0x50a   : > { %v11117_v40 = vpop.f32.mrf.mxu0 }
 0x50b   : > { %12336 = vmatprep.mubr.bf16.mxu1 %v2061_v52  ;;  %v1999_v29 = vadd.f32 %v11116_v55, %v1878_v49  ;;  %v1888_v49 = vmul.f32 %v14877_v8, %v14789_v30 }
 0x50c   : > { %v11118_v54 = vpop.f32.mrf.mxu0 }
 0x50d   : > { %v11119_v63 = vadd.f32 %v11118_v54, %v11117_v40 }
 0x50e   : > { %v11120_v25 = vpop.f32.mrf.mxu0 }
 0x50f   : > { %v2002_v11 = vadd.f32 %v11119_v63, %v1879_v45  ;;  %v1889_v63 = vmul.f32 %v14877_v8, %v14799_v42 }
 0x510   : > { %v11121_v7 = vpop.f32.mrf.mxu0 }
 0x511   : > { %v2062_v19 = vpack.c.bf16 %v2002_v11, %v1999_v29  ;;  %v11122_v53 = vadd.f32 %v11121_v7, %v11120_v25 }
 0x512   : > { %v11123_v10 = vpop.f32.mrf.mxu0 }
 0x513   : > { %12337 = vmatmul.mubr.bf16.gmra.mxu1 %v2062_v19  ;;  %v2007_v14 = vadd.f32 %v11122_v53, %v1880_v12 }
 0x514   : > { %v11124_v51 = vpop.f32.mrf.mxu0 }
 0x515   : > { %v11125_v44 = vadd.f32 %v11124_v51, %v11123_v10  ;;  %v1890_v51 = vmul.f32 %v14877_v8, %v14784_v18 }
 0x516   : > { %v11126_v27 = vpop.f32.mrf.mxu0 }
 0x517   : > { %v2010_v59 = vadd.f32 %v11125_v44, %v1881_v4 }
 0x518   : > { %v11127_v60 = vpop.f32.mrf.mxu0 }
 0x519   : > { %v2063_v23 = vpack.c.bf16 %v2010_v59, %v2007_v14  ;;  %v11128_v2 = vadd.f32 %v11127_v60, %v11126_v27  ;;  %v14946_v14 = vld [vmem:[%s17585_s26 + $0x1] ss:$0 sm:$0xff] }
 0x51a   : > { %v11129_v62 = vpop.f32.mrf.mxu0 }
 0x51b   : > { %12340 = vmatprep.mubr.bf16.mxu1 %v2063_v23  ;;  %v2015_v1 = vadd.f32 %v11128_v2, %v1882_v37 }
 0x51c   : > { %v11130_v13 = vpop.f32.mrf.mxu0 }
 0x51d   : > { %v11131_v16 = vadd.f32 %v11130_v13, %v11129_v62 }
 0x51e   : > { %v11132_v3 = vpop.f32.mrf.mxu0 }
 0x51f   : > { %v2018_v9 = vadd.f32 %v11131_v16, %v1883_v26 }
 0x520   : > { %v11133_v17 = vpop.f32.mrf.mxu0 }
 0x521   : > { %v2064_v21 = vpack.c.bf16 %v2018_v9, %v2015_v1  ;;  %v11134_v22 = vadd.f32 %v11133_v17, %v11132_v3 }
 0x522   : > { %v11135_v38 = vpop.f32.mrf.mxu0 }
 0x523   : > { %12341 = vmatmul.mubr.bf16.gmra.mxu1 %v2064_v21  ;;  %v2023_v32 = vadd.f32 %v11134_v22, %v1884_v48 }
 0x524   : > { %v11136_v24 = vpop.f32.mrf.mxu0 }
 0x525   : > { %v11137_v31 = vadd.f32 %v11136_v24, %v11135_v38 }
 0x526   : > { %v11138_v20 = vpop.f32.mrf.mxu0 }
 0x527   : > { %v2026_v35 = vadd.f32 %v11137_v31, %v1885_v33 }
 0x528   : > { %v11139_v39 = vpop.f32.mrf.mxu0 }
 0x529   : > { %v2065_v41 = vpack.c.bf16 %v2026_v35, %v2023_v32  ;;  %v11140_v5 = vadd.f32 %v11139_v39, %v11138_v20 }
 0x52a   : > { %v11141_v56 = vpop.f32.mrf.mxu0 }
 0x52b   : > { %12344 = vmatprep.mubr.bf16.mxu1 %v2065_v41  ;;  %v2031_v47 = vadd.f32 %v11140_v5, %v1886_v50 }
 0x52c   : > { %v11142_v43 = vpop.f32.mrf.mxu0 }
 0x52d   : > { %v11143_v58 = vadd.f32 %v11142_v43, %v11141_v56 }
 0x52e   : > { %v11144_v34 = vpop.f32.mrf.mxu0 }
 0x52f   : > { %v2034_v6 = vadd.f32 %v11143_v58, %v1887_v61 }
 0x530   : > { %v11145_v52 = vpop.f32.mrf.mxu0 }
 0x531   : > { %v2066_v40 = vpack.c.bf16 %v2034_v6, %v2031_v47  ;;  %v11146_v54 = vadd.f32 %v11145_v52, %v11144_v34 }
 0x532   : > { %v11147_v55 = vpop.f32.mrf.mxu0 }
 0x533   : > { %12345 = vmatmul.mubr.bf16.gmra.mxu1 %v2066_v40  ;;  %v2039_v29 = vadd.f32 %v11146_v54, %v1888_v49 }
 0x534   : > { %v11148_v45 = vpop.f32.mrf.mxu0 }
 0x535   : > { %v11149_v0 = vadd.f32 %v11148_v45, %v11147_v55 }
 0x536   : > { %v11150_v25 = vpop.f32.mrf.mxu0 }
 0x537   : > { %v2042_v46 = vadd.f32 %v11149_v0, %v1889_v63 }
 0x538   : > { %v11151_v11 = vpop.f32.mrf.mxu0 }
 0x539   : > { %v2067_v7 = vpack.c.bf16 %v2042_v46, %v2039_v29  ;;  %v11152_v10 = vadd.f32 %v11151_v11, %v11150_v25 }
 0x53a   : > { %v11153_v19 = vpop.f32.mrf.mxu0 }
 0x53b   : > { %12348 = vmatprep.mubr.bf16.mxu1 %v2067_v7  ;;  %v2047_v12 = vadd.f32 %v11152_v10, %v1890_v51 }
 0x53c   : > { %v11154_v53 = vpop.f32.mrf.mxu0 }
 0x53d   : > { %v11155_v30 = vadd.f32 %v11154_v53, %v11153_v19 }
 0x53f   : > { %v2050_v4 = vadd.f32 %v11155_v30, %v1891_v28 }
 0x541   : > { %v2068_v42 = vpack.c.bf16 %v2050_v4, %v2047_v12 }
 0x543   : > { %12349 = vmatmul.mubr.bf16.gmra.mxu1 %v2068_v42 }
 0x593   : > { %v12322_v44 = vpop.f32.mrf.mxu1 }
 0x594   : > { %v2182_v60 = vadd.f32 %v12322_v44, %v14946_v14 }
 0x595   : > { %v2173_v27 = vpop.f32.mrf.mxu1 }
 0x596   : > { %v2174_v57 = vadd.f32 %v14946_v14, %v2173_v27  ;;  %v2302_v15 = vmax.f32 %v2182_v60, 0.0 }
 0x597   : > { %v12323_v59 = vpop.f32.mrf.mxu1 }
 0x598   : > { %v2185_v36 = vadd.f32 %v12323_v59, %v14946_v14  ;;  %v2300_v62 = vmax.f32 %v2174_v57, 0.0 }
 0x599   : > { %v2176_v18 = vpop.f32.mrf.mxu1 }
 0x59a   : > { %v2177_v8 = vadd.f32 %v14946_v14, %v2176_v18  ;;  %v2303_v23 = vmax.f32 %v2185_v36, 0.0 }
 0x59c   : > { %v2301_v2 = vmax.f32 %v2177_v8, 0.0  ;;  %v2333_v26 = vpack.c.bf16 %v2303_v23, %v2302_v15 }
 0x59e   : > { %v2332_v13 = vpack.c.bf16 %v2301_v2, %v2300_v62 }
 0x5a0   : > { %12368 = vmatprep.mubr.bf16.mxu1 %v2332_v13 }
 0x5a1   : > { %12369 = vmatmul.mubr.bf16.vlgmr.msra.gmra.mxu1 %v2333_v26 }
 0x5a3   : > { %v12326_v37 = vpop.f32.mrf.mxu1 }
 0x5a4   : > { %v2198_v17 = vadd.f32 %v12326_v37, %v14946_v14 }
 0x5a5   : > { %v2189_v16 = vpop.f32.mrf.mxu1 }
 0x5a6   : > { %v2190_v1 = vadd.f32 %v14946_v14, %v2189_v16  ;;  %v2306_v33 = vmax.f32 %v2198_v17, 0.0 }
 0x5a7   : > { %v12327_v3 = vpop.f32.mrf.mxu1 }
 0x5a8   : > { %v2201_v9 = vadd.f32 %v12327_v3, %v14946_v14  ;;  %v2304_v24 = vmax.f32 %v2190_v1, 0.0 }
 0x5a9   : > { %v2192_v21 = vpop.f32.mrf.mxu1 }
 0x5aa   : > { %v2193_v38 = vadd.f32 %v14946_v14, %v2192_v21  ;;  %v2307_v22 = vmax.f32 %v2201_v9, 0.0 }
 0x5ac   : > { %v2305_v48 = vmax.f32 %v2193_v38, 0.0  ;;  %v2335_v20 = vpack.c.bf16 %v2307_v22, %v2306_v33 }
 0x5ae   : > { %v2334_v31 = vpack.c.bf16 %v2305_v48, %v2304_v24 }
 0x5b0   : > { %12372 = vmatprep.mubr.bf16.mxu1 %v2334_v31 }
 0x5b1   : > { %12373 = vmatmul.mubr.bf16.gmra.mxu1 %v2335_v20 }
 0x5b3   : > { %v12330_v32 = vpop.f32.mrf.mxu1 }
 0x5b4   : > { %v2214_v5 = vadd.f32 %v12330_v32, %v14946_v14 }
 0x5b5   : > { %v2205_v35 = vpop.f32.mrf.mxu1 }
 0x5b6   : > { %v2206_v41 = vadd.f32 %v14946_v14, %v2205_v35  ;;  %v2310_v47 = vmax.f32 %v2214_v5, 0.0 }
 0x5b7   : > { %v12331_v39 = vpop.f32.mrf.mxu1 }
 0x5b8   : > { %v2217_v56 = vadd.f32 %v12331_v39, %v14946_v14  ;;  %v2308_v58 = vmax.f32 %v2206_v41, 0.0 }
 0x5b9   : > { %v2208_v43 = vpop.f32.mrf.mxu1 }
 0x5ba   : > { %v2209_v61 = vadd.f32 %v14946_v14, %v2208_v43  ;;  %v2311_v50 = vmax.f32 %v2217_v56, 0.0 }
 0x5bc   : > { %v2309_v34 = vmax.f32 %v2209_v61, 0.0  ;;  %v2337_v52 = vpack.c.bf16 %v2311_v50, %v2310_v47 }
 0x5be   : > { %v2336_v6 = vpack.c.bf16 %v2309_v34, %v2308_v58 }
 0x5c0   : > { %12376 = vmatprep.mubr.bf16.mxu1 %v2336_v6 }
 0x5c1   : > { %12377 = vmatmul.mubr.bf16.gmra.mxu1 %v2337_v52 }
 0x5c3   : > { %v12334_v40 = vpop.f32.mrf.mxu1 }
 0x5c4   : > { %v2230_v63 = vadd.f32 %v12334_v40, %v14946_v14 }
 0x5c5   : > { %v2221_v55 = vpop.f32.mrf.mxu1 }
 0x5c6   : > { %v2222_v45 = vadd.f32 %v14946_v14, %v2221_v55  ;;  %v2314_v7 = vmax.f32 %v2230_v63, 0.0 }
 0x5c7   : > { %v12335_v54 = vpop.f32.mrf.mxu1 }
 0x5c8   : > { %v2233_v49 = vadd.f32 %v12335_v54, %v14946_v14  ;;  %v2312_v46 = vmax.f32 %v2222_v45, 0.0 }
 0x5c9   : > { %v2224_v0 = vpop.f32.mrf.mxu1 }
 0x5ca   : > { %v2225_v25 = vadd.f32 %v14946_v14, %v2224_v0  ;;  %v2315_v29 = vmax.f32 %v2233_v49, 0.0 }
 0x5cc   : > { %v2313_v11 = vmax.f32 %v2225_v25, 0.0  ;;  %v2339_v10 = vpack.c.bf16 %v2315_v29, %v2314_v7  ;;  %v14983_v25 = vld [vmem:[%s17586_s19 + $0x1] ss:$0 sm:$0xff] }
 0x5ce   : > { %v2338_v19 = vpack.c.bf16 %v2313_v11, %v2312_v46 }
 0x5d0   : > { %12380 = vmatprep.mubr.bf16.mxu1 %v2338_v19 }
 0x5d1   : > { %12381 = vmatmul.mubr.bf16.gmra.mxu1 %v2339_v10 }
 0x5d3   : > { %v12338_v53 = vpop.f32.mrf.mxu1 }
 0x5d4   : > { %v2246_v4 = vadd.f32 %v12338_v53, %v14946_v14 }
 0x5d5   : > { %v2237_v28 = vpop.f32.mrf.mxu1 }
 0x5d6   : > { %v2238_v30 = vadd.f32 %v14946_v14, %v2237_v28  ;;  %v2318_v36 = vmax.f32 %v2246_v4, 0.0 }
 0x5d7   : > { %v12339_v51 = vpop.f32.mrf.mxu1 }
 0x5d8   : > { %v2249_v12 = vadd.f32 %v12339_v51, %v14946_v14  ;;  %v2316_v59 = vmax.f32 %v2238_v30, 0.0 }
 0x5d9   : > { %v2240_v42 = vpop.f32.mrf.mxu1 }
 0x5da   : > { %v2241_v44 = vadd.f32 %v14946_v14, %v2240_v42  ;;  %v2319_v27 = vmax.f32 %v2249_v12, 0.0 }
 0x5dc   : > { %v2317_v57 = vmax.f32 %v2241_v44, 0.0  ;;  %v2341_v18 = vpack.c.bf16 %v2319_v27, %v2318_v36 }
 0x5de   : > { %v2340_v60 = vpack.c.bf16 %v2317_v57, %v2316_v59 }
 0x5e0   : > { %12384 = vmatprep.mubr.bf16.mxu1 %v2340_v60 }
 0x5e1   : > { %12385 = vmatmul.mubr.bf16.gmra.mxu1 %v2341_v18 }
 0x5e3   : > { %v12342_v8 = vpop.f32.mrf.mxu1 }
 0x5e4   : > { %v2262_v13 = vadd.f32 %v12342_v8, %v14946_v14 }
 0x5e5   : > { %v2253_v23 = vpop.f32.mrf.mxu1 }
 0x5e6   : > { %v2254_v2 = vadd.f32 %v14946_v14, %v2253_v23  ;;  %v2322_v9 = vmax.f32 %v2262_v13, 0.0 }
 0x5e7   : > { %v12343_v62 = vpop.f32.mrf.mxu1 }
 0x5e8   : > { %v2265_v15 = vadd.f32 %v12343_v62, %v14946_v14  ;;  %v2320_v3 = vmax.f32 %v2254_v2, 0.0 }
 0x5e9   : > { %v2256_v26 = vpop.f32.mrf.mxu1 }
 0x5ea   : > { %v2257_v37 = vadd.f32 %v14946_v14, %v2256_v26  ;;  %v2323_v16 = vmax.f32 %v2265_v15, 0.0 }
 0x5ec   : > { %v2321_v1 = vmax.f32 %v2257_v37, 0.0  ;;  %v2343_v21 = vpack.c.bf16 %v2323_v16, %v2322_v9 }
 0x5ee   : > { %v2342_v17 = vpack.c.bf16 %v2321_v1, %v2320_v3 }
 0x5f0   : > { %12388 = vmatprep.mubr.bf16.mxu1 %v2342_v17 }
 0x5f1   : > { %12389 = vmatmul.mubr.bf16.gmra.mxu1 %v2343_v21 }
 0x5f3   : > { %v12346_v38 = vpop.f32.mrf.mxu1 }
 0x5f4   : > { %v2278_v31 = vadd.f32 %v12346_v38, %v14946_v14 }
 0x5f5   : > { %v2269_v22 = vpop.f32.mrf.mxu1 }
 0x5f6   : > { %v2270_v48 = vadd.f32 %v14946_v14, %v2269_v22  ;;  %v2326_v56 = vmax.f32 %v2278_v31, 0.0 }
 0x5f7   : > { %v12347_v24 = vpop.f32.mrf.mxu1 }
 0x5f8   : > { %v2281_v33 = vadd.f32 %v12347_v24, %v14946_v14  ;;  %v2324_v39 = vmax.f32 %v2270_v48, 0.0 }
 0x5f9   : > { %v2272_v20 = vpop.f32.mrf.mxu1 }
 0x5fa   : > { %v2273_v32 = vadd.f32 %v14946_v14, %v2272_v20  ;;  %v2327_v35 = vmax.f32 %v2281_v33, 0.0 }
 0x5fc   : > { %v2325_v41 = vmax.f32 %v2273_v32, 0.0  ;;  %v2345_v43 = vpack.c.bf16 %v2327_v35, %v2326_v56 }
 0x5fe   : > { %v2344_v5 = vpack.c.bf16 %v2325_v41, %v2324_v39 }
 0x600   : > { %12392 = vmatprep.mubr.bf16.mxu1 %v2344_v5 }
 0x601   : > { %12393 = vmatmul.mubr.bf16.gmra.mxu1 %v2345_v43 }
 0x603   : > { %v12350_v61 = vpop.f32.mrf.mxu1 }
 0x604   : > { %v2294_v6 = vadd.f32 %v12350_v61, %v14946_v14 }
 0x605   : > { %v2285_v50 = vpop.f32.mrf.mxu1 }
 0x606   : > { %v2286_v34 = vadd.f32 %v14946_v14, %v2285_v50  ;;  %v2330_v49 = vmax.f32 %v2294_v6, 0.0 }
 0x607   : > { %v12351_v58 = vpop.f32.mrf.mxu1 }
 0x608   : > { %v2297_v47 = vadd.f32 %v12351_v58, %v14946_v14  ;;  %v2328_v54 = vmax.f32 %v2286_v34, 0.0 }
 0x609   : > { %v2288_v52 = vpop.f32.mrf.mxu1 }
 0x60a   : > { %v2289_v40 = vadd.f32 %v14946_v14, %v2288_v52  ;;  %v2331_v55 = vmax.f32 %v2297_v47, 0.0 }
 0x60c   : > { %v2329_v45 = vmax.f32 %v2289_v40, 0.0  ;;  %v2347_v0 = vpack.c.bf16 %v2331_v55, %v2330_v49 }
 0x60e   : > { %v2346_v63 = vpack.c.bf16 %v2329_v45, %v2328_v54 }
 0x610   : > { %12396 = vmatprep.mubr.bf16.mxu1 %v2346_v63 }
 0x611   : > { %12397 = vmatmul.mubr.bf16.gmra.mxu1 %v2347_v0 }
 0x661   : > { %v12370_v29 = vpop.f32.mrf.mxu1 }
 0x662   : > { %v2461_v46 = vadd.f32 %v12370_v29, %v14983_v25 }
 0x663   : > { %v2452_v11 = vpop.f32.mrf.mxu1 }
 0x664   : > { %v14986_v7 = vmax.f32 %v2461_v46, 0.0  ;;  %v2453_v14 = vadd.f32 %v14983_v25, %v2452_v11 }
 0x665   : > { %v12371_v19 = vpop.f32.mrf.mxu1 }
 0x666   : > { %v10726_v10 = vpack.c.bf16 %v14986_v7, %v14986_v7  ;;  %v14991_v53 = vmax.f32 %v2453_v14, 0.0  ;;  %v2464_v28 = vadd.f32 %v12371_v19, %v14983_v25 }
 0x667   : > { %v2455_v51 = vpop.f32.mrf.mxu1 }
 0x668   : > { %2741 = vst [vmem:[#allocation2 + $0x34] sm:$0xf] %v10726_v10  ;;  %v10724_v30 = vpack.c.bf16 %v14991_v53, %v14991_v53  ;;  %v14996_v12 = vmax.f32 %v2464_v28, 0.0  ;;  %v2456_v4 = vadd.f32 %v14983_v25, %v2455_v51 }
 0x66a   : > { %2739 = vst [vmem:[#allocation2 + $0x4] sm:$0xf] %v10724_v30  ;;  %v2612_v42 = vpack.c.bf16 %v14996_v12, %v14986_v7  ;;  %v10727_v44 = vpack.c.bf16 %v14996_v12, %v14996_v12  ;;  %v15003_v27 = vmax.f32 %v2456_v4, 0.0 }
 0x66c   : > { %2742 = vst [vmem:[#allocation2 + $0x4c] sm:$0xf] %v10727_v44  ;;  %v2611_v59 = vpack.c.bf16 %v15003_v27, %v14991_v53  ;;  %v10725_v57 = vpack.c.bf16 %v15003_v27, %v15003_v27 }
 0x66e   : > { %2740 = vst [vmem:[#allocation2 + $0x1c] sm:$0xf] %v10725_v57 }
 0x671   : > { %v12374_v36 = vpop.f32.mrf.mxu1 }
 0x672   : > { %v2477_v60 = vadd.f32 %v12374_v36, %v14983_v25 }
 0x673   : > { %v2468_v18 = vpop.f32.mrf.mxu1 }
 0x674   : > { %v15010_v8 = vmax.f32 %v2477_v60, 0.0  ;;  %v2469_v23 = vadd.f32 %v14983_v25, %v2468_v18 }
 0x675   : > { %v12375_v62 = vpop.f32.mrf.mxu1 }
 0x676   : > { %v10730_v2 = vpack.c.bf16 %v15010_v8, %v15010_v8  ;;  %v15015_v15 = vmax.f32 %v2469_v23, 0.0  ;;  %v2480_v13 = vadd.f32 %v12375_v62, %v14983_v25 }
 0x677   : > { %v2471_v26 = vpop.f32.mrf.mxu1 }
 0x678   : > { %2745 = vst [vmem:[#allocation2 + $0x94] sm:$0xf] %v10730_v2  ;;  %v10728_v37 = vpack.c.bf16 %v15015_v15, %v15015_v15  ;;  %v15020_v16 = vmax.f32 %v2480_v13, 0.0  ;;  %v2472_v3 = vadd.f32 %v14983_v25, %v2471_v26 }
 0x67a   : > { %2743 = vst [vmem:[#allocation2 + $0x64] sm:$0xf] %v10728_v37  ;;  %v2614_v1 = vpack.c.bf16 %v15020_v16, %v15010_v8  ;;  %v10731_v9 = vpack.c.bf16 %v15020_v16, %v15020_v16  ;;  %v15027_v17 = vmax.f32 %v2472_v3, 0.0 }
 0x67c   : > { %2746 = vst [vmem:[#allocation2 + $0xac] sm:$0xf] %v10731_v9  ;;  %v2613_v21 = vpack.c.bf16 %v15027_v17, %v15015_v15  ;;  %v10729_v38 = vpack.c.bf16 %v15027_v17, %v15027_v17 }
 0x67e   : > { %2744 = vst [vmem:[#allocation2 + $0x7c] sm:$0xf] %v10729_v38 }
 0x681   : > { %v12378_v22 = vpop.f32.mrf.mxu1 }
 0x682   : > { %v2493_v24 = vadd.f32 %v12378_v22, %v14983_v25 }
 0x683   : > { %v2484_v48 = vpop.f32.mrf.mxu1 }
 0x684   : > { %v15034_v33 = vmax.f32 %v2493_v24, 0.0  ;;  %v2485_v31 = vadd.f32 %v14983_v25, %v2484_v48 }
 0x685   : > { %v12379_v20 = vpop.f32.mrf.mxu1 }
 0x686   : > { %v10734_v32 = vpack.c.bf16 %v15034_v33, %v15034_v33  ;;  %v15039_v35 = vmax.f32 %v2485_v31, 0.0  ;;  %v2496_v39 = vadd.f32 %v12379_v20, %v14983_v25 }
 0x687   : > { %v2487_v41 = vpop.f32.mrf.mxu1 }
 0x688   : > { %2749 = vst [vmem:[#allocation2 + $0xf4] sm:$0xf] %v10734_v32  ;;  %v10732_v56 = vpack.c.bf16 %v15039_v35, %v15039_v35  ;;  %v15044_v5 = vmax.f32 %v2496_v39, 0.0  ;;  %v2488_v43 = vadd.f32 %v14983_v25, %v2487_v41 }
 0x68a   : > { %2747 = vst [vmem:[#allocation2 + $0xc4] sm:$0xf] %v10732_v56  ;;  %v2616_v61 = vpack.c.bf16 %v15044_v5, %v15034_v33  ;;  %v10735_v50 = vpack.c.bf16 %v15044_v5, %v15044_v5  ;;  %v15051_v58 = vmax.f32 %v2488_v43, 0.0 }
 0x68c   : > { %2750 = vst [vmem:[#allocation2 + $0x10c] sm:$0xf] %v10735_v50  ;;  %v2615_v34 = vpack.c.bf16 %v15051_v58, %v15039_v35  ;;  %v10733_v47 = vpack.c.bf16 %v15051_v58, %v15051_v58 }
 0x68e   : > { %2748 = vst [vmem:[#allocation2 + $0xdc] sm:$0xf] %v10733_v47 }
 0x691   : > { %v12382_v6 = vpop.f32.mrf.mxu1 }
 0x692   : > { %v2509_v52 = vadd.f32 %v12382_v6, %v14983_v25 }
 0x693   : > { %v2500_v40 = vpop.f32.mrf.mxu1 }
 0x694   : > { %v15058_v55 = vmax.f32 %v2509_v52, 0.0  ;;  %v2501_v54 = vadd.f32 %v14983_v25, %v2500_v40 }
 0x695   : > { %v12383_v45 = vpop.f32.mrf.mxu1 }
 0x696   : > { %v10738_v49 = vpack.c.bf16 %v15058_v55, %v15058_v55  ;;  %v15063_v63 = vmax.f32 %v2501_v54, 0.0  ;;  %v2512_v0 = vadd.f32 %v12383_v45, %v14983_v25 }
 0x697   : > { %v2503_v29 = vpop.f32.mrf.mxu1 }
 0x698   : > { %2753 = vst [vmem:[#allocation2 + $0x154] sm:$0xf] %v10738_v49  ;;  %v10736_v46 = vpack.c.bf16 %v15063_v63, %v15063_v63  ;;  %v15068_v11 = vmax.f32 %v2512_v0, 0.0  ;;  %v2504_v14 = vadd.f32 %v14983_v25, %v2503_v29 }
 0x69a   : > { %2751 = vst [vmem:[#allocation2 + $0x124] sm:$0xf] %v10736_v46  ;;  %v2618_v19 = vpack.c.bf16 %v15068_v11, %v15058_v55  ;;  %v10739_v10 = vpack.c.bf16 %v15068_v11, %v15068_v11  ;;  %v15075_v28 = vmax.f32 %v2504_v14, 0.0 }
 0x69c   : > { %2754 = vst [vmem:[#allocation2 + $0x16c] sm:$0xf] %v10739_v10  ;;  %v2617_v51 = vpack.c.bf16 %v15075_v28, %v15063_v63  ;;  %v10737_v30 = vpack.c.bf16 %v15075_v28, %v15075_v28 }
 0x69e   : > { %2752 = vst [vmem:[#allocation2 + $0x13c] sm:$0xf] %v10737_v30 }
 0x6a1   : > { %v12386_v4 = vpop.f32.mrf.mxu1 }
 0x6a2   : > { %v2525_v44 = vadd.f32 %v12386_v4, %v14983_v25 }
 0x6a3   : > { %v2516_v57 = vpop.f32.mrf.mxu1 }
 0x6a4   : > { %v15082_v36 = vmax.f32 %v2525_v44, 0.0  ;;  %v2517_v60 = vadd.f32 %v14983_v25, %v2516_v57 }
 0x6a5   : > { %v12387_v18 = vpop.f32.mrf.mxu1 }
 0x6a6   : > { %v10742_v23 = vpack.c.bf16 %v15082_v36, %v15082_v36  ;;  %v15087_v62 = vmax.f32 %v2517_v60, 0.0  ;;  %v2528_v2 = vadd.f32 %v12387_v18, %v14983_v25 }
 0x6a7   : > { %v2519_v13 = vpop.f32.mrf.mxu1 }
 0x6a8   : > { %2757 = vst [vmem:[#allocation2 + $0x1b4] sm:$0xf] %v10742_v23  ;;  %v10740_v26 = vpack.c.bf16 %v15087_v62, %v15087_v62  ;;  %v15092_v37 = vmax.f32 %v2528_v2, 0.0  ;;  %v2520_v3 = vadd.f32 %v14983_v25, %v2519_v13 }
 0x6aa   : > { %2755 = vst [vmem:[#allocation2 + $0x184] sm:$0xf] %v10740_v26  ;;  %v10743_v9 = vpack.c.bf16 %v15092_v37, %v15092_v37  ;;  %v15097_v38 = vmax.f32 %v2520_v3, 0.0  ;;  %v2620_v22 = vpack.c.bf16 %v15092_v37, %v15082_v36 }
 0x6ac   : > { %2758 = vst [vmem:[#allocation2 + $0x1cc] sm:$0xf] %v10743_v9  ;;  %v10741_v24 = vpack.c.bf16 %v15097_v38, %v15097_v38  ;;  %v2619_v48 = vpack.c.bf16 %v15097_v38, %v15087_v62 }
 0x6ae   : > { %2756 = vst [vmem:[#allocation2 + $0x19c] sm:$0xf] %v10741_v24 }
 0x6b1   : > { %v12390_v31 = vpop.f32.mrf.mxu1 }
 0x6b2   : > { %v2541_v20 = vadd.f32 %v12390_v31, %v14983_v25 }
 0x6b3   : > { %v2532_v32 = vpop.f32.mrf.mxu1 }
 0x6b4   : > { %v15106_v39 = vmax.f32 %v2541_v20, 0.0  ;;  %v2533_v41 = vadd.f32 %v14983_v25, %v2532_v32 }
 0x6b5   : > { %v12391_v56 = vpop.f32.mrf.mxu1 }
 0x6b6   : > { %v10746_v43 = vpack.c.bf16 %v15106_v39, %v15106_v39  ;;  %v15111_v50 = vmax.f32 %v2533_v41, 0.0  ;;  %v2544_v47 = vadd.f32 %v12391_v56, %v14983_v25 }
 0x6b7   : > { %v2535_v6 = vpop.f32.mrf.mxu1 }
 0x6b8   : > { %2761 = vst [vmem:[#allocation2 + $0x214] sm:$0xf] %v10746_v43  ;;  %v10744_v52 = vpack.c.bf16 %v15111_v50, %v15111_v50  ;;  %v15116_v40 = vmax.f32 %v2544_v47, 0.0  ;;  %v2536_v54 = vadd.f32 %v14983_v25, %v2535_v6 }
 0x6ba   : > { %2759 = vst [vmem:[#allocation2 + $0x1e4] sm:$0xf] %v10744_v52  ;;  %v10747_v45 = vpack.c.bf16 %v15116_v40, %v15116_v40  ;;  %v15121_v49 = vmax.f32 %v2536_v54, 0.0 }
 0x6bc   : > { %2762 = vst [vmem:[#allocation2 + $0x22c] sm:$0xf] %v10747_v45  ;;  %v10745_v0 = vpack.c.bf16 %v15121_v49, %v15121_v49 }
 0x6be   : > { %2760 = vst [vmem:[#allocation2 + $0x1fc] sm:$0xf] %v10745_v0 }
 0x6c1   : > { %v12394_v29 = vpop.f32.mrf.mxu1 }
 0x6c2   : > { %v2557_v46 = vadd.f32 %v12394_v29, %v14983_v25 }
 0x6c3   : > { %v2548_v14 = vpop.f32.mrf.mxu1 }
 0x6c4   : > { %v15126_v10 = vmax.f32 %v2557_v46, 0.0  ;;  %v2549_v30 = vadd.f32 %v14983_v25, %v2548_v14 }
 0x6c5   : > { %v12395_v4 = vpop.f32.mrf.mxu1 }
 0x6c6   : > { %v10750_v44 = vpack.c.bf16 %v15126_v10, %v15126_v10  ;;  %v15131_v57 = vmax.f32 %v2549_v30, 0.0  ;;  %v2560_v60 = vadd.f32 %v12395_v4, %v14983_v25 }
 0x6c7   : > { %v2551_v18 = vpop.f32.mrf.mxu1 }
 0x6c8   : > { %2765 = vst [vmem:[#allocation2 + $0x274] sm:$0xf] %v10750_v44  ;;  %v10748_v23 = vpack.c.bf16 %v15131_v57, %v15131_v57  ;;  %v15136_v2 = vmax.f32 %v2560_v60, 0.0  ;;  %v2552_v13 = vadd.f32 %v14983_v25, %v2551_v18  ;;  %v13561_v60 = vld [vmem:[%s14422_s5 + $0x20] ss:$8 sps:$4 sm:$0xff]  }
 0x6c9   : > { %v13563_v18 = vld [vmem:[%s14422_s5 + $0x30] ss:$8 sps:$4 sm:$0xff]  }
 0x6ca   : > { %2763 = vst [vmem:[#allocation2 + $0x244] sm:$0xf] %v10748_v23  ;;  %v10751_v26 = vpack.c.bf16 %v15136_v2, %v15136_v2  ;;  %v15141_v3 = vmax.f32 %v2552_v13, 0.0  ;;  %v13564_v23 = vld [vmem:[%s14422_s5 + $0x44] ss:$8 sps:$4 sm:$0xff]  }
 0x6cb   : > { %v13565_v13 = vld [vmem:[%s14422_s5 + $0x40] ss:$8 sps:$4 sm:$0xff]  }
 0x6cc   : > { %2766 = vst [vmem:[#allocation2 + $0x28c] sm:$0xf] %v10751_v26  ;;  %v10749_v9 = vpack.c.bf16 %v15141_v3, %v15141_v3  ;;  %v2623_v44 = vpack.c.bf16 %v15141_v3, %v15131_v57  ;;  %v13566_v26 = vld [vmem:[%s14422_s5 + $0x54] ss:$8 sps:$4 sm:$0xff]  }
 0x6ce   : > { %2764 = vst [vmem:[#allocation2 + $0x25c] sm:$0xf] %v10749_v9  ;;  %v13567_v9 = vld [vmem:[%s14422_s5 + $0x50] ss:$8 sps:$4 sm:$0xff]  }
 0x6d1   : > { %v12398_v24 = vpop.f32.mrf.mxu1 }
 0x6d2   : > { %v2573_v31 = vadd.f32 %v12398_v24, %v14983_v25  ;;  %v13568_v24 = vld [vmem:[%s14422_s5 + $0x64] ss:$8 sps:$4 sm:$0xff]  }
 0x6d3   : > { %v2564_v20 = vpop.f32.mrf.mxu1 }
 0x6d4   : > { %v15146_v32 = vmax.f32 %v2573_v31, 0.0  ;;  %v2565_v41 = vadd.f32 %v14983_v25, %v2564_v20  ;;  %v13569_v31 = vld [vmem:[%s14422_s5 + $0x60] ss:$8 sps:$4 sm:$0xff]   ;;  %v13570_v20 = vld [vmem:[%s14422_s5 + $0x74] ss:$8 sps:$4 sm:$0xff]  }
 0x6d5   : > { %v12399_v56 = vpop.f32.mrf.mxu1 }
 0x6d6   : > { %v10754_v43 = vpack.c.bf16 %v15146_v32, %v15146_v32  ;;  %v15151_v47 = vmax.f32 %v2565_v41, 0.0  ;;  %v2576_v6 = vadd.f32 %v12399_v56, %v14983_v25  ;;  %v13571_v41 = vld [vmem:[%s14422_s5 + $0x70] ss:$8 sps:$4 sm:$0xff]   ;;  %v13572_v56 = vld [vmem:[%s14422_s5 + $0x84] ss:$8 sps:$4 sm:$0xff]  }
 0x6d7   : > { %v2567_v52 = vpop.f32.mrf.mxu1 }
 0x6d8   : > { %2769 = vst [vmem:[#allocation2 + $0x2d4] sm:$0xf] %v10754_v43  ;;  %v10752_v54 = vpack.c.bf16 %v15151_v47, %v15151_v47  ;;  %v15156_v45 = vmax.f32 %v2576_v6, 0.0  ;;  %v2568_v0 = vadd.f32 %v14983_v25, %v2567_v52  ;;  %v2624_v25 = vpack.c.bf16 %v15136_v2, %v15126_v10  ;;  %v13001_v43 = vld [vmem:[#allocation11 + $0xa0] sm:$0xff]   ;;  %v13574_v52 = vld [vmem:[%s14422_s5 + $0x94] ss:$8 sps:$4 sm:$0xff]  }
 0x6d9   : > { %v13573_v6 = vld [vmem:[%s14422_s5 + $0x80] ss:$8 sps:$4 sm:$0xff]  }
 0x6da   : > { %2767 = vst [vmem:[#allocation2 + $0x2a4] sm:$0xf] %v10752_v54  ;;  %v10755_v29 = vpack.c.bf16 %v15156_v45, %v15156_v45  ;;  %v15161_v46 = vmax.f32 %v2568_v0, 0.0  ;;  %v2626_v14 = vpack.c.bf16 %v15156_v45, %v15146_v32  ;;  %v13002_v54 = vld [vmem:[#allocation11 + $0x98] sm:$0xff]   ;;  %v13003_v0 = vld [vmem:[#allocation11 + $0x90] sm:$0xff]  }
 0x6dc   : > { %2770 = vst [vmem:[#allocation2 + $0x2ec] sm:$0xf] %v10755_v29  ;;  %v10753_v30 = vpack.c.bf16 %v15161_v46, %v15161_v46  ;;  %11204 = vmatprep.subr.bf16.mxu0 %v2626_v14  ;;  %v2625_v4 = vpack.c.bf16 %v15161_v46, %v15151_v47  ;;  %v13575_v29 = vld [vmem:[%s14422_s5 + $0x90] ss:$8 sps:$4 sm:$0xff]   ;;  %v13576_v14 = vld [vmem:[%s14422_s5 + $0xa4] ss:$8 sps:$4 sm:$0xff]  }
 0x6dd   : > { %11205 = vmatpush3.bf16.msra.mxu0 %v2618_v19  ;;  %v2622_v19 = vpack.c.bf16 %v15116_v40, %v15106_v39 }
 0x6de   : > { %2768 = vst [vmem:[#allocation2 + $0x2bc] sm:$0xf] %v10753_v30  ;;  %11206 = vmatprep.subr.bf16.mxu0 %v2625_v4  ;;  %v13004_v30 = vld [vmem:[#allocation11 + $0x88] sm:$0xff]   ;;  %v13005_v4 = vld [vmem:[#allocation11 + $0x80] sm:$0xff]  }
 0x6e1   : > { %11207 = vmatpush3.bf16.msra.mxu0 %v2617_v51  ;;  %v2621_v51 = vpack.c.bf16 %v15121_v49, %v15111_v50 }
 0x6e2   : > { %11208 = vmatprep.subr.bf16.mxu0 %v2624_v25  ;;  %v13577_v25 = vld [vmem:[%s14422_s5 + $0xa0] ss:$8 sps:$4 sm:$0xff]  }
 0x6e5   : > { %11209 = vmatpush3.bf16.msra.mxu0 %v2616_v61  ;;  %v12998_v61 = vld [vmem:[#allocation11 + $0xb8] sm:$0xff]  }
 0x6e6   : > { %11210 = vmatprep.subr.bf16.mxu0 %v2623_v44  ;;  %12400 = vmatprep.subr.bf16.mxu1 %v12998_v61  ;;  %v13578_v44 = vld [vmem:[%s14422_s5 + $0xb4] ss:$8 sps:$4 sm:$0xff]  }
 0x6e7   : > { %12401 = vmatpush3.bf16.msra.mxu1 %v12998_v61  ;;  %v13581_v61 = vld [vmem:[%s14422_s5 + $0xc0] ss:$8 sps:$4 sm:$0xff]  }
 0x6e9   : > { %11211 = vmatpush3.bf16.msra.mxu0 %v2615_v34  ;;  %v12999_v34 = vld [vmem:[#allocation11 + $0xb0] sm:$0xff]  }
 0x6ea   : > { %11212 = vmatprep.subr.bf16.mxu0 %v2622_v19  ;;  %12402 = vmatprep.subr.bf16.mxu1 %v12999_v34  ;;  %v13579_v19 = vld [vmem:[%s14422_s5 + $0xb0] ss:$8 sps:$4 sm:$0xff]  }
 0x6eb   : > { %12403 = vmatpush3.bf16.msra.mxu1 %v12999_v34  ;;  %v13582_v34 = vld [vmem:[%s14422_s5 + $0xd4] ss:$8 sps:$4 sm:$0xff]  }
 0x6ed   : > { %11213 = vmatpush3.bf16.msra.mxu0 %v2614_v1  ;;  %v13000_v1 = vld [vmem:[#allocation11 + $0xa8] sm:$0xff]  }
 0x6ee   : > { %11214 = vmatprep.subr.bf16.mxu0 %v2621_v51  ;;  %12404 = vmatprep.subr.bf16.mxu1 %v13000_v1  ;;  %v13580_v51 = vld [vmem:[%s14422_s5 + $0xc4] ss:$8 sps:$4 sm:$0xff]  }
 0x6ef   : > { %12405 = vmatpush3.bf16.msra.mxu1 %v13000_v1  ;;  %v13583_v1 = vld [vmem:[%s14422_s5 + $0xd0] ss:$8 sps:$4 sm:$0xff]  }
 0x6f0   : > { %12406 = vmatprep.subr.bf16.mxu1 %v13001_v43 }
 0x6f1   : > { %11215 = vmatpush3.bf16.msra.mxu0 %v2613_v21  ;;  %v13557_v21 = vld [vmem:[%s14422_s5] ss:$8 sps:$4 sm:$0xff]  }
 0x6f2   : > { %11216 = vmatprep.subr.bf16.mxu0 %v2620_v22  ;;  %v13559_v22 = vld [vmem:[%s14422_s5 + $0x10] ss:$8 sps:$4 sm:$0xff]  }
 0x6f3   : > { %12407 = vmatpush3.bf16.msra.mxu1 %v13001_v43 }
 0x6f4   : > { %12408 = vmatprep.subr.bf16.mxu1 %v13002_v54 }
 0x6f5   : > { %11217 = vmatpush3.bf16.msra.mxu0 %v2612_v42  ;;  %v13558_v42 = vld [vmem:[%s14422_s5 + $0x14] ss:$8 sps:$4 sm:$0xff]  }
 0x6f6   : > { %11218 = vmatprep.subr.bf16.mxu0 %v2619_v48  ;;  %v13560_v48 = vld [vmem:[%s14422_s5 + $0x24] ss:$8 sps:$4 sm:$0xff]  }
 0x6f7   : > { %12409 = vmatpush3.bf16.msra.mxu1 %v13002_v54 }
 0x6f8   : > { %12410 = vmatprep.subr.bf16.mxu1 %v13003_v0 }
 0x6f9   : > { %11219 = vmatpush3.bf16.msra.mxu0 %v2611_v59  ;;  %v13562_v59 = vld [vmem:[%s14422_s5 + $0x34] ss:$8 sps:$4 sm:$0xff]  }
 0x6fb   : > { %12411 = vmatpush3.bf16.msra.mxu1 %v13003_v0 }
 0x6fc   : > { %2839 = vmatmul.mubr.bf16.vlgmr.msra.gmra.mxu0 %v13557_v21  ;;  %12412 = vmatprep.subr.bf16.mxu1 %v13004_v30  ;;  %v13584_v21 = vld [vmem:[%s14422_s5 + $0xe4] ss:$8 sps:$4 sm:$0xff]  }
 0x6fd   : > { %2846 = vmatprep.mubr.bf16.mxu0 %v13558_v42  ;;  %v13585_v42 = vld [vmem:[%s14422_s5 + $0xe0] ss:$8 sps:$4 sm:$0xff]  }
 0x6ff   : > { %12413 = vmatpush3.bf16.msra.mxu1 %v13004_v30 }
 0x700   : > { %12414 = vmatprep.subr.bf16.mxu1 %v13005_v4 }
 0x703   : > { %12415 = vmatpush3.bf16.msra.mxu1 %v13005_v4 }
 0x704   : > { %2847 = vmatmul.mubr.bf16.gmra.mxu0 %v13559_v22  ;;  %v13586_v22 = vld [vmem:[%s14422_s5 + $0xf4] ss:$8 sps:$4 sm:$0xff]  }
 0x705   : > { %2854 = vmatprep.mubr.bf16.mxu0 %v13560_v48  ;;  %v13587_v48 = vld [vmem:[%s14422_s5 + $0xf0] ss:$8 sps:$4 sm:$0xff]  }
 0x70c   : > { %2855 = vmatmul.mubr.bf16.gmra.mxu0 %v13561_v60  ;;  %v13588_v60 = vld [vmem:[%s14422_s5 + $0x4] ss:$8 sps:$4 sm:$0xff]  }
 0x70d   : > { %2862 = vmatprep.mubr.bf16.mxu0 %v13562_v59 }
 0x714   : > { %2863 = vmatmul.mubr.bf16.gmra.mxu0 %v13563_v18 }
 0x715   : > { %2870 = vmatprep.mubr.bf16.mxu0 %v13564_v23 }
 0x71c   : > { %2871 = vmatmul.mubr.bf16.gmra.mxu0 %v13565_v13 }
 0x71d   : > { %2878 = vmatprep.mubr.bf16.mxu0 %v13566_v26  ;;  %v13006_v26 = vld [vmem:[#allocation13 + $0xb8] sm:$0xff]  }
 0x71e   : > { %12448 = vmatprep.subr.bf16.mxu1 %v13006_v26 }
 0x724   : > { %2879 = vmatmul.mubr.bf16.gmra.mxu0 %v13567_v9  ;;  %v15239_v9 = vstv %s2772_s6 }
 0x725   : > { %2886 = vmatprep.mubr.bf16.mxu0 %v13568_v24  ;;  %v2777_v30 = vmul.f32 %v15239_v9, %v14996_v12  ;;  %v2779_v12 = vmul.f32 %v15239_v9, %v15027_v17  ;;  %v2780_v17 = vmul.f32 %v15239_v9, %v15010_v8  ;;  %v2783_v8 = vmul.f32 %v15239_v9, %v15051_v58 }
 0x72c   : > { %2887 = vmatmul.mubr.bf16.gmra.mxu0 %v13569_v31  ;;  %v2774_v31 = vmul.f32 %v15239_v9, %v14991_v53  ;;  %v2776_v53 = vmul.f32 %v15239_v9, %v14986_v7  ;;  %v13008_v7 = vld [vmem:[#allocation13 + $0xa8] sm:$0xff]  }
 0x72d   : > { %2894 = vmatprep.mubr.bf16.mxu0 %v13570_v20  ;;  %v2775_v20 = vmul.f32 %v15239_v9, %v15003_v27 }
 0x734   : > { %2895 = vmatmul.mubr.bf16.gmra.mxu0 %v13571_v41 }
 0x735   : > { %2902 = vmatprep.mubr.bf16.mxu0 %v13572_v56 }
 0x73c   : > { %2903 = vmatmul.mubr.bf16.gmra.mxu0 %v13573_v6 }
 0x73d   : > { %2910 = vmatprep.mubr.bf16.mxu0 %v13574_v52 }
 0x744   : > { %2911 = vmatmul.mubr.bf16.gmra.mxu0 %v13575_v29 }
 0x745   : > { %2918 = vmatprep.mubr.bf16.mxu0 %v13576_v14 }
 0x74c   : > { %2919 = vmatmul.mubr.bf16.gmra.mxu0 %v13577_v25 }
 0x74d   : > { %2926 = vmatprep.mubr.bf16.mxu0 %v13578_v44 }
 0x754   : > { %2927 = vmatmul.mubr.bf16.gmra.mxu0 %v13579_v19 }
 0x755   : > { %2934 = vmatprep.mubr.bf16.mxu0 %v13580_v51 }
 0x75c   : > { %2935 = vmatmul.mubr.bf16.gmra.mxu0 %v13581_v61  ;;  %v13007_v61 = vld [vmem:[#allocation13 + $0xb0] sm:$0xff]  }
 0x75d   : > { %2942 = vmatprep.mubr.bf16.mxu0 %v13582_v34 }
 0x764   : > { %2943 = vmatmul.mubr.bf16.gmra.mxu0 %v13583_v1 }
 0x765   : > { %2950 = vmatprep.mubr.bf16.mxu0 %v13584_v21 }
 0x76c   : > { %2951 = vmatmul.mubr.bf16.gmra.mxu0 %v13585_v42  ;;  %v2778_v42 = vmul.f32 %v15239_v9, %v15015_v15  ;;  %v2781_v15 = vmul.f32 %v15239_v9, %v15020_v16  ;;  %v2782_v16 = vmul.f32 %v15239_v9, %v15039_v35 }
 0x76d   : > { %2958 = vmatprep.mubr.bf16.mxu0 %v13586_v22 }
 0x774   : > { %2959 = vmatmul.mubr.bf16.gmra.mxu0 %v13587_v48 }
 0x775   : > { %3752 = vmatprep.mubr.bf16.mxu0 %v13588_v60 }
 0x7bc   : > { %v11220_v59 = vpop.f32.mrf.mxu0 }
 0x7be   : > { %v11221_v18 = vpop.f32.mrf.mxu0 }
 0x7bf   : > { %v11222_v13 = vadd.f32 %v11221_v18, %v11220_v59 }
 0x7c0   : > { %v11223_v23 = vpop.f32.mrf.mxu0 }
 0x7c1   : > { %v2841_v43 = vadd.f32 %v11222_v13, %v2774_v31  ;;  %v13009_v13 = vld [vmem:[#allocation13 + $0xa0] sm:$0xff]  }
 0x7c2   : > { %v11224_v24 = vpop.f32.mrf.mxu0 }
 0x7c3   : > { %v11225_v41 = vadd.f32 %v11224_v24, %v11223_v23 }
 0x7c4   : > { %v11226_v56 = vpop.f32.mrf.mxu0 }
 0x7c5   : > { %v2844_v6 = vadd.f32 %v11225_v41, %v2775_v20  ;;  %v13010_v41 = vld [vmem:[#allocation13 + $0x98] sm:$0xff]  }
 0x7c6   : > { %v11227_v52 = vpop.f32.mrf.mxu0 }
 0x7c7   : > { %v2967_v54 = vpack.c.bf16 %v2844_v6, %v2841_v43  ;;  %v11228_v29 = vadd.f32 %v11227_v52, %v11226_v56 }
 0x7c8   : > { %v11229_v0 = vpop.f32.mrf.mxu0 }
 0x7c9   : > { %12416 = vmatprep.mubr.bf16.mxu1 %v2967_v54  ;;  %v2849_v27 = vadd.f32 %v11228_v29, %v2776_v53 }
 0x7ca   : > { %v11230_v14 = vpop.f32.mrf.mxu0 }
 0x7cb   : > { %v11231_v4 = vadd.f32 %v11230_v14, %v11229_v0 }
 0x7cc   : > { %v11232_v25 = vpop.f32.mrf.mxu0 }
 0x7cd   : > { %v2852_v44 = vadd.f32 %v11231_v4, %v2777_v30 }
 0x7ce   : > { %v11233_v19 = vpop.f32.mrf.mxu0 }
 0x7cf   : > { %v2968_v51 = vpack.c.bf16 %v2852_v44, %v2849_v27  ;;  %v11234_v1 = vadd.f32 %v11233_v19, %v11232_v25 }
 0x7d0   : > { %v11235_v34 = vpop.f32.mrf.mxu0 }
 0x7d1   : > { %12417 = vmatmul.mubr.bf16.vlgmr.msra.gmra.mxu1 %v2968_v51  ;;  %v2857_v60 = vadd.f32 %v11234_v1, %v2778_v42  ;;  %v2784_v1 = vmul.f32 %v15239_v9, %v15034_v33 }
 0x7d2   : > { %v11236_v21 = vpop.f32.mrf.mxu0  ;;  %12449 = vmatpush3.bf16.msra.mxu1 %v13006_v26 }
 0x7d3   : > { %v11237_v22 = vadd.f32 %v11236_v21, %v11235_v34  ;;  %12450 = vmatprep.subr.bf16.mxu1 %v13007_v61  ;;  %v2785_v34 = vmul.f32 %v15239_v9, %v15044_v5 }
 0x7d4   : > { %v11238_v48 = vpop.f32.mrf.mxu0 }
 0x7d5   : > { %v2860_v59 = vadd.f32 %v11237_v22, %v2779_v12 }
 0x7d6   : > { %v11239_v18 = vpop.f32.mrf.mxu0  ;;  %12451 = vmatpush3.bf16.msra.mxu1 %v13007_v61 }
 0x7d7   : > { %v2969_v23 = vpack.c.bf16 %v2860_v59, %v2857_v60  ;;  %12452 = vmatprep.subr.bf16.mxu1 %v13008_v7  ;;  %v11240_v31 = vadd.f32 %v11239_v18, %v11238_v48  ;;  %v2786_v59 = vmul.f32 %v15239_v9, %v15063_v63  ;;  %v2787_v18 = vmul.f32 %v15239_v9, %v15075_v28 }
 0x7d8   : > { %v11241_v24 = vpop.f32.mrf.mxu0 }
 0x7d9   : > { %12420 = vmatprep.mubr.bf16.mxu1 %v2969_v23  ;;  %v2865_v43 = vadd.f32 %v11240_v31, %v2780_v17 }
 0x7da   : > { %v11242_v26 = vpop.f32.mrf.mxu0  ;;  %12453 = vmatpush3.bf16.msra.mxu1 %v13008_v7 }
 0x7db   : > { %v11243_v20 = vadd.f32 %v11242_v26, %v11241_v24  ;;  %12454 = vmatprep.subr.bf16.mxu1 %v13009_v13 }
 0x7dc   : > { %v11244_v56 = vpop.f32.mrf.mxu0 }
 0x7dd   : > { %v2868_v6 = vadd.f32 %v11243_v20, %v2781_v15  ;;  %v2789_v20 = vmul.f32 %v15239_v9, %v15068_v11 }
 0x7de   : > { %v11245_v52 = vpop.f32.mrf.mxu0  ;;  %12455 = vmatpush3.bf16.msra.mxu1 %v13009_v13 }
 0x7df   : > { %v2970_v54 = vpack.c.bf16 %v2868_v6, %v2865_v43  ;;  %12456 = vmatprep.subr.bf16.mxu1 %v13010_v41  ;;  %v11246_v29 = vadd.f32 %v11245_v52, %v11244_v56 }
 0x7e0   : > { %v11247_v0 = vpop.f32.mrf.mxu0 }
 0x7e1   : > { %12421 = vmatmul.mubr.bf16.gmra.mxu1 %v2970_v54  ;;  %v2873_v4 = vadd.f32 %v11246_v29, %v2782_v16  ;;  %v2791_v16 = vmul.f32 %v15239_v9, %v15097_v38 }
 0x7e2   : > { %v11248_v14 = vpop.f32.mrf.mxu0  ;;  %12457 = vmatpush3.bf16.msra.mxu1 %v13010_v41  ;;  %v2788_v41 = vmul.f32 %v15239_v9, %v15058_v55 }
 0x7e3   : > { %v11249_v30 = vadd.f32 %v11248_v14, %v11247_v0  ;;  %v2790_v14 = vmul.f32 %v15239_v9, %v15087_v62 }
 0x7e4   : > { %v11250_v53 = vpop.f32.mrf.mxu0 }
 0x7e5   : > { %v2876_v25 = vadd.f32 %v11249_v30, %v2783_v8 }
 0x7e6   : > { %v11251_v27 = vpop.f32.mrf.mxu0 }
 0x7e7   : > { %v2971_v44 = vpack.c.bf16 %v2876_v25, %v2873_v4  ;;  %v11252_v51 = vadd.f32 %v11251_v27, %v11250_v53 }
 0x7e8   : > { %v11253_v19 = vpop.f32.mrf.mxu0 }
 0x7e9   : > { %12424 = vmatprep.mubr.bf16.mxu1 %v2971_v44  ;;  %v2881_v42 = vadd.f32 %v11252_v51, %v2784_v1  ;;  %v2792_v51 = vmul.f32 %v15239_v9, %v15082_v36 }
 0x7ea   : > { %v11254_v61 = vpop.f32.mrf.mxu0 }
 0x7eb   : > { %v11255_v35 = vadd.f32 %v11254_v61, %v11253_v19  ;;  %v2793_v19 = vmul.f32 %v15239_v9, %v15092_v37  ;;  %v2795_v37 = vmul.f32 %v15239_v9, %v15121_v49  ;;  %v2796_v49 = vmul.f32 %v15239_v9, %v15106_v39 }
 0x7ec   : > { %v11256_v21 = vpop.f32.mrf.mxu0 }
 0x7ed   : > { %v2884_v58 = vadd.f32 %v11255_v35, %v2785_v34 }
 0x7ee   : > { %v11257_v12 = vpop.f32.mrf.mxu0 }
 0x7ef   : > { %v2972_v22 = vpack.c.bf16 %v2884_v58, %v2881_v42  ;;  %v11258_v48 = vadd.f32 %v11257_v12, %v11256_v21  ;;  %v13011_v58 = vld [vmem:[#allocation13 + $0x90] sm:$0xff]  }
 0x7f0   : > { %v11259_v7 = vpop.f32.mrf.mxu0  ;;  %12458 = vmatprep.subr.bf16.mxu1 %v13011_v58 }
 0x7f1   : > { %12425 = vmatmul.mubr.bf16.gmra.mxu1 %v2972_v22  ;;  %v2889_v13 = vadd.f32 %v11258_v48, %v2786_v59  ;;  %v2794_v22 = vmul.f32 %v15239_v9, %v15111_v50  ;;  %v13012_v59 = vld [vmem:[#allocation13 + $0x88] sm:$0xff]   ;;  %v2797_v50 = vmul.f32 %v15239_v9, %v15116_v40  ;;  %v2799_v40 = vmul.f32 %v15239_v9, %v15141_v3 }
 0x7f2   : > { %v11260_v60 = vpop.f32.mrf.mxu0  ;;  %12459 = vmatpush3.bf16.msra.mxu1 %v13011_v58  ;;  %v2805_v58 = vmul.f32 %v15239_v9, %v15156_v45 }
 0x7f3   : > { %v11261_v5 = vadd.f32 %v11260_v60, %v11259_v7  ;;  %12460 = vmatprep.subr.bf16.mxu1 %v13012_v59 }
 0x7f4   : > { %v11262_v23 = vpop.f32.mrf.mxu0 }
 0x7f5   : > { %v2892_v33 = vadd.f32 %v11261_v5, %v2787_v18 }
 0x7f6   : > { %v11263_v24 = vpop.f32.mrf.mxu0  ;;  %12461 = vmatpush3.bf16.msra.mxu1 %v13012_v59 }
 0x7f7   : > { %v2973_v31 = vpack.c.bf16 %v2892_v33, %v2889_v13  ;;  %v11264_v15 = vadd.f32 %v11263_v24, %v11262_v23  ;;  %v13013_v33 = vld [vmem:[#allocation13 + $0x80] sm:$0xff]  }
 0x7f8   : > { %v11265_v26 = vpop.f32.mrf.mxu0  ;;  %12462 = vmatprep.subr.bf16.mxu1 %v13013_v33 }
 0x7f9   : > { %12428 = vmatprep.mubr.bf16.mxu1 %v2973_v31  ;;  %v2897_v43 = vadd.f32 %v11264_v15, %v2788_v41 }
 0x7fa   : > { %v11266_v17 = vpop.f32.mrf.mxu0  ;;  %12463 = vmatpush3.bf16.msra.mxu1 %v13013_v33 }
 0x7fb   : > { %v11267_v63 = vadd.f32 %v11266_v17, %v11265_v26 }
 0x7fc   : > { %v11268_v56 = vpop.f32.mrf.mxu0 }
 0x7fd   : > { %v2900_v28 = vadd.f32 %v11267_v63, %v2789_v20 }
 0x7fe   : > { %v11269_v6 = vpop.f32.mrf.mxu0 }
 0x7ff   : > { %v2974_v52 = vpack.c.bf16 %v2900_v28, %v2897_v43  ;;  %v11270_v0 = vadd.f32 %v11269_v6, %v11268_v56  ;;  %v2798_v28 = vmul.f32 %v15239_v9, %v15131_v57 }
 0x800   : > { %v11271_v54 = vpop.f32.mrf.mxu0 }
 0x801   : > { %12429 = vmatmul.mubr.bf16.gmra.mxu1 %v2974_v52  ;;  %v2905_v30 = vadd.f32 %v11270_v0, %v2790_v14 }
 0x802   : > { %v11272_v29 = vpop.f32.mrf.mxu0 }
 0x803   : > { %v11273_v11 = vadd.f32 %v11272_v29, %v11271_v54 }
 0x804   : > { %v11274_v8 = vpop.f32.mrf.mxu0 }
 0x805   : > { %v2908_v55 = vadd.f32 %v11273_v11, %v2791_v16 }
 0x806   : > { %v11275_v53 = vpop.f32.mrf.mxu0 }
 0x807   : > { %v2975_v4 = vpack.c.bf16 %v2908_v55, %v2905_v30  ;;  %v11276_v27 = vadd.f32 %v11275_v53, %v11274_v8  ;;  %v2801_v8 = vmul.f32 %v15239_v9, %v15136_v2  ;;  %v2800_v30 = vmul.f32 %v15239_v9, %v15126_v10 }
 0x808   : > { %v11277_v25 = vpop.f32.mrf.mxu0 }
 0x809   : > { %12432 = vmatprep.mubr.bf16.mxu1 %v2975_v4  ;;  %v2913_v34 = vadd.f32 %v11276_v27, %v2792_v51  ;;  %v2802_v51 = vmul.f32 %v15239_v9, %v15151_v47 }
 0x80a   : > { %v11278_v44 = vpop.f32.mrf.mxu0 }
 0x80b   : > { %v11279_v62 = vadd.f32 %v11278_v44, %v11277_v25 }
 0x80c   : > { %v11280_v61 = vpop.f32.mrf.mxu0 }
 0x80d   : > { %v2916_v38 = vadd.f32 %v11279_v62, %v2793_v19  ;;  %v2803_v62 = vmul.f32 %v15239_v9, %v15161_v46 }
 0x80e   : > { %v11281_v1 = vpop.f32.mrf.mxu0 }
 0x80f   : > { %v2976_v35 = vpack.c.bf16 %v2916_v38, %v2913_v34  ;;  %v11282_v42 = vadd.f32 %v11281_v1, %v11280_v61 }
 0x810   : > { %v11283_v21 = vpop.f32.mrf.mxu0 }
 0x811   : > { %12433 = vmatmul.mubr.bf16.gmra.mxu1 %v2976_v35  ;;  %v2921_v48 = vadd.f32 %v11282_v42, %v2794_v22 }
 0x812   : > { %v11284_v12 = vpop.f32.mrf.mxu0 }
 0x813   : > { %v11285_v7 = vadd.f32 %v11284_v12, %v11283_v21  ;;  %v2804_v12 = vmul.f32 %v15239_v9, %v15146_v32 }
 0x814   : > { %v11286_v36 = vpop.f32.mrf.mxu0 }
 0x815   : > { %v2924_v60 = vadd.f32 %v11285_v7, %v2795_v37 }
 0x816   : > { %v11287_v18 = vpop.f32.mrf.mxu0 }
 0x817   : > { %v2977_v5 = vpack.c.bf16 %v2924_v60, %v2921_v48  ;;  %v11288_v13 = vadd.f32 %v11287_v18, %v11286_v36  ;;  %v15308_v48 = vld [vmem:[%s17585_s26 + $0x2] ss:$0 sm:$0xff] }
 0x818   : > { %v11289_v23 = vpop.f32.mrf.mxu0 }
 0x819   : > { %12436 = vmatprep.mubr.bf16.mxu1 %v2977_v5  ;;  %v2929_v15 = vadd.f32 %v11288_v13, %v2796_v49 }
 0x81a   : > { %v11290_v24 = vpop.f32.mrf.mxu0 }
 0x81b   : > { %v11291_v31 = vadd.f32 %v11290_v24, %v11289_v23 }
 0x81c   : > { %v11292_v26 = vpop.f32.mrf.mxu0 }
 0x81d   : > { %v2932_v17 = vadd.f32 %v11291_v31, %v2797_v50 }
 0x81e   : > { %v11293_v20 = vpop.f32.mrf.mxu0 }
 0x81f   : > { %v2978_v41 = vpack.c.bf16 %v2932_v17, %v2929_v15  ;;  %v11294_v56 = vadd.f32 %v11293_v20, %v11292_v26 }
 0x820   : > { %v11295_v63 = vpop.f32.mrf.mxu0 }
 0x821   : > { %12437 = vmatmul.mubr.bf16.gmra.mxu1 %v2978_v41  ;;  %v2937_v52 = vadd.f32 %v11294_v56, %v2798_v28 }
 0x822   : > { %v11296_v43 = vpop.f32.mrf.mxu0 }
 0x823   : > { %v11297_v6 = vadd.f32 %v11296_v43, %v11295_v63 }
 0x824   : > { %v11298_v39 = vpop.f32.mrf.mxu0 }
 0x825   : > { %v2940_v54 = vadd.f32 %v11297_v6, %v2799_v40 }
 0x826   : > { %v11299_v0 = vpop.f32.mrf.mxu0 }
 0x827   : > { %v2979_v29 = vpack.c.bf16 %v2940_v54, %v2937_v52  ;;  %v11300_v16 = vadd.f32 %v11299_v0, %v11298_v39 }
 0x828   : > { %v11301_v14 = vpop.f32.mrf.mxu0 }
 0x829   : > { %12440 = vmatprep.mubr.bf16.mxu1 %v2979_v29  ;;  %v2945_v53 = vadd.f32 %v11300_v16, %v2800_v30 }
 0x82a   : > { %v11302_v11 = vpop.f32.mrf.mxu0 }
 0x82b   : > { %v11303_v57 = vadd.f32 %v11302_v11, %v11301_v14 }
 0x82c   : > { %v11304_v55 = vpop.f32.mrf.mxu0 }
 0x82d   : > { %v2948_v3 = vadd.f32 %v11303_v57, %v2801_v8 }
 0x82e   : > { %v11305_v4 = vpop.f32.mrf.mxu0 }
 0x82f   : > { %v2980_v25 = vpack.c.bf16 %v2948_v3, %v2945_v53  ;;  %v11306_v44 = vadd.f32 %v11305_v4, %v11304_v55 }
 0x830   : > { %v11307_v27 = vpop.f32.mrf.mxu0 }
 0x831   : > { %12441 = vmatmul.mubr.bf16.gmra.mxu1 %v2980_v25  ;;  %v2953_v34 = vadd.f32 %v11306_v44, %v2802_v51 }
 0x832   : > { %v11308_v19 = vpop.f32.mrf.mxu0 }
 0x833   : > { %v11309_v2 = vadd.f32 %v11308_v19, %v11307_v27 }
 0x834   : > { %v11310_v61 = vpop.f32.mrf.mxu0 }
 0x835   : > { %v2956_v10 = vadd.f32 %v11309_v2, %v2803_v62 }
 0x836   : > { %v11311_v38 = vpop.f32.mrf.mxu0 }
 0x837   : > { %v2981_v1 = vpack.c.bf16 %v2956_v10, %v2953_v34  ;;  %v11312_v21 = vadd.f32 %v11311_v38, %v11310_v61 }
 0x838   : > { %v11313_v35 = vpop.f32.mrf.mxu0 }
 0x839   : > { %12444 = vmatprep.mubr.bf16.mxu1 %v2981_v1  ;;  %v2961_v22 = vadd.f32 %v11312_v21, %v2804_v12 }
 0x83a   : > { %v11314_v42 = vpop.f32.mrf.mxu0 }
 0x83b   : > { %v11315_v47 = vadd.f32 %v11314_v42, %v11313_v35 }
 0x83d   : > { %v2964_v37 = vadd.f32 %v11315_v47, %v2805_v58 }
 0x83f   : > { %v2982_v46 = vpack.c.bf16 %v2964_v37, %v2961_v22 }
 0x841   : > { %12445 = vmatmul.mubr.bf16.gmra.mxu1 %v2982_v46 }
 0x891   : > { %v12418_v7 = vpop.f32.mrf.mxu1 }
 0x892   : > { %v3096_v18 = vadd.f32 %v12418_v7, %v15308_v48 }
 0x893   : > { %v3087_v36 = vpop.f32.mrf.mxu1 }
 0x894   : > { %v3088_v59 = vadd.f32 %v15308_v48, %v3087_v36  ;;  %v3216_v33 = vmax.f32 %v3096_v18, 0.0 }
 0x895   : > { %v12419_v60 = vpop.f32.mrf.mxu1 }
 0x896   : > { %v3099_v45 = vadd.f32 %v12419_v60, %v15308_v48  ;;  %v3214_v23 = vmax.f32 %v3088_v59, 0.0 }
 0x897   : > { %v3090_v32 = vpop.f32.mrf.mxu1 }
 0x898   : > { %v3091_v9 = vadd.f32 %v15308_v48, %v3090_v32  ;;  %v3217_v5 = vmax.f32 %v3099_v45, 0.0 }
 0x89a   : > { %v3215_v13 = vmax.f32 %v3091_v9, 0.0  ;;  %v3247_v50 = vpack.c.bf16 %v3217_v5, %v3216_v33 }
 0x89c   : > { %v3246_v24 = vpack.c.bf16 %v3215_v13, %v3214_v23 }
 0x89e   : > { %12464 = vmatprep.mubr.bf16.mxu1 %v3246_v24 }
 0x89f   : > { %12465 = vmatmul.mubr.bf16.vlgmr.msra.gmra.mxu1 %v3247_v50 }
 0x8a1   : > { %v12422_v49 = vpop.f32.mrf.mxu1 }
 0x8a2   : > { %v3112_v20 = vadd.f32 %v12422_v49, %v15308_v48 }
 0x8a3   : > { %v3103_v31 = vpop.f32.mrf.mxu1 }
 0x8a4   : > { %v3104_v15 = vadd.f32 %v15308_v48, %v3103_v31  ;;  %v3220_v40 = vmax.f32 %v3112_v20, 0.0 }
 0x8a5   : > { %v12423_v26 = vpop.f32.mrf.mxu1 }
 0x8a6   : > { %v3115_v17 = vadd.f32 %v12423_v26, %v15308_v48  ;;  %v3218_v43 = vmax.f32 %v3104_v15, 0.0 }
 0x8a7   : > { %v3106_v41 = vpop.f32.mrf.mxu1 }
 0x8a8   : > { %v3107_v63 = vadd.f32 %v15308_v48, %v3106_v41  ;;  %v3221_v56 = vmax.f32 %v3115_v17, 0.0 }
 0x8aa   : > { %v3219_v28 = vmax.f32 %v3107_v63, 0.0  ;;  %v3249_v39 = vpack.c.bf16 %v3221_v56, %v3220_v40 }
 0x8ac   : > { %v3248_v6 = vpack.c.bf16 %v3219_v28, %v3218_v43 }
 0x8ae   : > { %12468 = vmatprep.mubr.bf16.mxu1 %v3248_v6 }
 0x8af   : > { %12469 = vmatmul.mubr.bf16.gmra.mxu1 %v3249_v39 }
 0x8b1   : > { %v12426_v52 = vpop.f32.mrf.mxu1 }
 0x8b2   : > { %v3128_v16 = vadd.f32 %v12426_v52, %v15308_v48 }
 0x8b3   : > { %v3119_v54 = vpop.f32.mrf.mxu1 }
 0x8b4   : > { %v3120_v29 = vadd.f32 %v15308_v48, %v3119_v54  ;;  %v3224_v53 = vmax.f32 %v3128_v16, 0.0 }
 0x8b5   : > { %v12427_v0 = vpop.f32.mrf.mxu1 }
 0x8b6   : > { %v3131_v14 = vadd.f32 %v12427_v0, %v15308_v48  ;;  %v3222_v57 = vmax.f32 %v3120_v29, 0.0 }
 0x8b7   : > { %v3122_v11 = vpop.f32.mrf.mxu1 }
 0x8b8   : > { %v3123_v8 = vadd.f32 %v15308_v48, %v3122_v11  ;;  %v3225_v30 = vmax.f32 %v3131_v14, 0.0 }
 0x8ba   : > { %v3223_v55 = vmax.f32 %v3123_v8, 0.0  ;;  %v3251_v4 = vpack.c.bf16 %v3225_v30, %v3224_v53 }
 0x8bc   : > { %v3250_v3 = vpack.c.bf16 %v3223_v55, %v3222_v57 }
 0x8be   : > { %12472 = vmatprep.mubr.bf16.mxu1 %v3250_v3 }
 0x8bf   : > { %12473 = vmatmul.mubr.bf16.gmra.mxu1 %v3251_v4 }
 0x8c1   : > { %v12430_v25 = vpop.f32.mrf.mxu1 }
 0x8c2   : > { %v3144_v62 = vadd.f32 %v12430_v25, %v15308_v48 }
 0x8c3   : > { %v3135_v27 = vpop.f32.mrf.mxu1 }
 0x8c4   : > { %v3136_v19 = vadd.f32 %v15308_v48, %v3135_v27  ;;  %v3228_v1 = vmax.f32 %v3144_v62, 0.0 }
 0x8c5   : > { %v12431_v44 = vpop.f32.mrf.mxu1 }
 0x8c6   : > { %v3147_v51 = vadd.f32 %v12431_v44, %v15308_v48  ;;  %v3226_v10 = vmax.f32 %v3136_v19, 0.0 }
 0x8c7   : > { %v3138_v2 = vpop.f32.mrf.mxu1 }
 0x8c8   : > { %v3139_v61 = vadd.f32 %v15308_v48, %v3138_v2  ;;  %v3229_v34 = vmax.f32 %v3147_v51, 0.0 }
 0x8ca   : > { %v3227_v38 = vmax.f32 %v3139_v61, 0.0  ;;  %v3253_v21 = vpack.c.bf16 %v3229_v34, %v3228_v1  ;;  %v15345_v61 = vld [vmem:[%s17586_s19 + $0x2] ss:$0 sm:$0xff] }
 0x8cc   : > { %v3252_v35 = vpack.c.bf16 %v3227_v38, %v3226_v10 }
 0x8ce   : > { %12476 = vmatprep.mubr.bf16.mxu1 %v3252_v35 }
 0x8cf   : > { %12477 = vmatmul.mubr.bf16.gmra.mxu1 %v3253_v21 }
 0x8d1   : > { %v12434_v42 = vpop.f32.mrf.mxu1 }
 0x8d2   : > { %v3160_v37 = vadd.f32 %v12434_v42, %v15308_v48 }
 0x8d3   : > { %v3151_v58 = vpop.f32.mrf.mxu1 }
 0x8d4   : > { %v3152_v47 = vadd.f32 %v15308_v48, %v3151_v58  ;;  %v3232_v45 = vmax.f32 %v3160_v37, 0.0 }
 0x8d5   : > { %v12435_v12 = vpop.f32.mrf.mxu1 }
 0x8d6   : > { %v3163_v22 = vadd.f32 %v12435_v12, %v15308_v48  ;;  %v3230_v60 = vmax.f32 %v3152_v47, 0.0 }
 0x8d7   : > { %v3154_v46 = vpop.f32.mrf.mxu1 }
 0x8d8   : > { %v3155_v7 = vadd.f32 %v15308_v48, %v3154_v46  ;;  %v3233_v36 = vmax.f32 %v3163_v22, 0.0 }
 0x8da   : > { %v3231_v59 = vmax.f32 %v3155_v7, 0.0  ;;  %v3255_v32 = vpack.c.bf16 %v3233_v36, %v3232_v45 }
 0x8dc   : > { %v3254_v18 = vpack.c.bf16 %v3231_v59, %v3230_v60 }
 0x8de   : > { %12480 = vmatprep.mubr.bf16.mxu1 %v3254_v18 }
 0x8df   : > { %12481 = vmatmul.mubr.bf16.gmra.mxu1 %v3255_v32 }
 0x8e1   : > { %v12438_v9 = vpop.f32.mrf.mxu1 }
 0x8e2   : > { %v3176_v24 = vadd.f32 %v12438_v9, %v15308_v48 }
 0x8e3   : > { %v3167_v5 = vpop.f32.mrf.mxu1 }
 0x8e4   : > { %v3168_v13 = vadd.f32 %v15308_v48, %v3167_v5  ;;  %v3236_v17 = vmax.f32 %v3176_v24, 0.0 }
 0x8e5   : > { %v12439_v23 = vpop.f32.mrf.mxu1 }
 0x8e6   : > { %v3179_v33 = vadd.f32 %v12439_v23, %v15308_v48  ;;  %v3234_v26 = vmax.f32 %v3168_v13, 0.0 }
 0x8e7   : > { %v3170_v50 = vpop.f32.mrf.mxu1 }
 0x8e8   : > { %v3171_v49 = vadd.f32 %v15308_v48, %v3170_v50  ;;  %v3237_v31 = vmax.f32 %v3179_v33, 0.0 }
 0x8ea   : > { %v3235_v15 = vmax.f32 %v3171_v49, 0.0  ;;  %v3257_v41 = vpack.c.bf16 %v3237_v31, %v3236_v17 }
 0x8ec   : > { %v3256_v20 = vpack.c.bf16 %v3235_v15, %v3234_v26 }
 0x8ee   : > { %12484 = vmatprep.mubr.bf16.mxu1 %v3256_v20 }
 0x8ef   : > { %12485 = vmatmul.mubr.bf16.gmra.mxu1 %v3257_v41 }
 0x8f1   : > { %v12442_v63 = vpop.f32.mrf.mxu1 }
 0x8f2   : > { %v3192_v6 = vadd.f32 %v12442_v63, %v15308_v48 }
 0x8f3   : > { %v3183_v56 = vpop.f32.mrf.mxu1 }
 0x8f4   : > { %v3184_v28 = vadd.f32 %v15308_v48, %v3183_v56  ;;  %v3240_v14 = vmax.f32 %v3192_v6, 0.0 }
 0x8f5   : > { %v12443_v43 = vpop.f32.mrf.mxu1 }
 0x8f6   : > { %v3195_v40 = vadd.f32 %v12443_v43, %v15308_v48  ;;  %v3238_v0 = vmax.f32 %v3184_v28, 0.0 }
 0x8f7   : > { %v3186_v39 = vpop.f32.mrf.mxu1 }
 0x8f8   : > { %v3187_v52 = vadd.f32 %v15308_v48, %v3186_v39  ;;  %v3241_v54 = vmax.f32 %v3195_v40, 0.0 }
 0x8fa   : > { %v3239_v29 = vmax.f32 %v3187_v52, 0.0  ;;  %v3259_v11 = vpack.c.bf16 %v3241_v54, %v3240_v14 }
 0x8fc   : > { %v3258_v16 = vpack.c.bf16 %v3239_v29, %v3238_v0 }
 0x8fe   : > { %12488 = vmatprep.mubr.bf16.mxu1 %v3258_v16 }
 0x8ff   : > { %12489 = vmatmul.mubr.bf16.gmra.mxu1 %v3259_v11 }
 0x901   : > { %v12446_v8 = vpop.f32.mrf.mxu1 }
 0x902   : > { %v3208_v3 = vadd.f32 %v12446_v8, %v15308_v48 }
 0x903   : > { %v3199_v30 = vpop.f32.mrf.mxu1 }
 0x904   : > { %v3200_v55 = vadd.f32 %v15308_v48, %v3199_v30  ;;  %v3244_v51 = vmax.f32 %v3208_v3, 0.0 }
 0x905   : > { %v12447_v57 = vpop.f32.mrf.mxu1 }
 0x906   : > { %v3211_v53 = vadd.f32 %v12447_v57, %v15308_v48  ;;  %v3242_v44 = vmax.f32 %v3200_v55, 0.0 }
 0x907   : > { %v3202_v4 = vpop.f32.mrf.mxu1 }
 0x908   : > { %v3203_v25 = vadd.f32 %v15308_v48, %v3202_v4  ;;  %v3245_v27 = vmax.f32 %v3211_v53, 0.0 }
 0x90a   : > { %v3243_v19 = vmax.f32 %v3203_v25, 0.0  ;;  %v3261_v2 = vpack.c.bf16 %v3245_v27, %v3244_v51 }
 0x90c   : > { %v3260_v62 = vpack.c.bf16 %v3243_v19, %v3242_v44 }
 0x90e   : > { %12492 = vmatprep.mubr.bf16.mxu1 %v3260_v62 }
 0x90f   : > { %12493 = vmatmul.mubr.bf16.gmra.mxu1 %v3261_v2 }
 0x95f   : > { %v12466_v34 = vpop.f32.mrf.mxu1 }
 0x960   : > { %v3375_v10 = vadd.f32 %v12466_v34, %v15345_v61 }
 0x961   : > { %v3366_v38 = vpop.f32.mrf.mxu1 }
 0x962   : > { %v15348_v1 = vmax.f32 %v3375_v10, 0.0  ;;  %v3367_v48 = vadd.f32 %v15345_v61, %v3366_v38 }
 0x963   : > { %v12467_v35 = vpop.f32.mrf.mxu1 }
 0x964   : > { %v10758_v21 = vpack.c.bf16 %v15348_v1, %v15348_v1  ;;  %v15353_v42 = vmax.f32 %v3367_v48, 0.0  ;;  %v3378_v58 = vadd.f32 %v12467_v35, %v15345_v61 }
 0x965   : > { %v3369_v12 = vpop.f32.mrf.mxu1 }
 0x966   : > { %3655 = vst [vmem:[#allocation2 + $0x38] sm:$0xf] %v10758_v21  ;;  %v10756_v47 = vpack.c.bf16 %v15353_v42, %v15353_v42  ;;  %v15358_v22 = vmax.f32 %v3378_v58, 0.0  ;;  %v3370_v37 = vadd.f32 %v15345_v61, %v3369_v12 }
 0x968   : > { %3653 = vst [vmem:[#allocation2 + $0x8] sm:$0xf] %v10756_v47  ;;  %v3526_v46 = vpack.c.bf16 %v15358_v22, %v15348_v1  ;;  %v10759_v7 = vpack.c.bf16 %v15358_v22, %v15358_v22  ;;  %v15365_v36 = vmax.f32 %v3370_v37, 0.0 }
 0x96a   : > { %3656 = vst [vmem:[#allocation2 + $0x50] sm:$0xf] %v10759_v7  ;;  %v3525_v60 = vpack.c.bf16 %v15365_v36, %v15353_v42  ;;  %v10757_v59 = vpack.c.bf16 %v15365_v36, %v15365_v36 }
 0x96c   : > { %3654 = vst [vmem:[#allocation2 + $0x20] sm:$0xf] %v10757_v59 }
 0x96f   : > { %v12470_v45 = vpop.f32.mrf.mxu1 }
 0x970   : > { %v3391_v18 = vadd.f32 %v12470_v45, %v15345_v61 }
 0x971   : > { %v3382_v32 = vpop.f32.mrf.mxu1 }
 0x972   : > { %v15372_v9 = vmax.f32 %v3391_v18, 0.0  ;;  %v3383_v5 = vadd.f32 %v15345_v61, %v3382_v32 }
 0x973   : > { %v12471_v23 = vpop.f32.mrf.mxu1 }
 0x974   : > { %v10762_v13 = vpack.c.bf16 %v15372_v9, %v15372_v9  ;;  %v15377_v33 = vmax.f32 %v3383_v5, 0.0  ;;  %v3394_v24 = vadd.f32 %v12471_v23, %v15345_v61 }
 0x975   : > { %v3385_v50 = vpop.f32.mrf.mxu1 }
 0x976   : > { %3659 = vst [vmem:[#allocation2 + $0x98] sm:$0xf] %v10762_v13  ;;  %v10760_v49 = vpack.c.bf16 %v15377_v33, %v15377_v33  ;;  %v15382_v31 = vmax.f32 %v3394_v24, 0.0  ;;  %v3386_v26 = vadd.f32 %v15345_v61, %v3385_v50 }
 0x978   : > { %3657 = vst [vmem:[#allocation2 + $0x68] sm:$0xf] %v10760_v49  ;;  %v3528_v15 = vpack.c.bf16 %v15382_v31, %v15372_v9  ;;  %v10763_v17 = vpack.c.bf16 %v15382_v31, %v15382_v31  ;;  %v15389_v20 = vmax.f32 %v3386_v26, 0.0 }
 0x97a   : > { %3660 = vst [vmem:[#allocation2 + $0xb0] sm:$0xf] %v10763_v17  ;;  %v3527_v41 = vpack.c.bf16 %v15389_v20, %v15377_v33  ;;  %v10761_v63 = vpack.c.bf16 %v15389_v20, %v15389_v20 }
 0x97c   : > { %3658 = vst [vmem:[#allocation2 + $0x80] sm:$0xf] %v10761_v63 }
 0x97f   : > { %v12474_v56 = vpop.f32.mrf.mxu1 }
 0x980   : > { %v3407_v43 = vadd.f32 %v12474_v56, %v15345_v61 }
 0x981   : > { %v3398_v28 = vpop.f32.mrf.mxu1 }
 0x982   : > { %v15396_v40 = vmax.f32 %v3407_v43, 0.0  ;;  %v3399_v6 = vadd.f32 %v15345_v61, %v3398_v28 }
 0x983   : > { %v12475_v39 = vpop.f32.mrf.mxu1 }
 0x984   : > { %v10766_v52 = vpack.c.bf16 %v15396_v40, %v15396_v40  ;;  %v15401_v54 = vmax.f32 %v3399_v6, 0.0  ;;  %v3410_v0 = vadd.f32 %v12475_v39, %v15345_v61 }
 0x985   : > { %v3401_v29 = vpop.f32.mrf.mxu1 }
 0x986   : > { %3663 = vst [vmem:[#allocation2 + $0xf8] sm:$0xf] %v10766_v52  ;;  %v10764_v14 = vpack.c.bf16 %v15401_v54, %v15401_v54  ;;  %v15406_v16 = vmax.f32 %v3410_v0, 0.0  ;;  %v3402_v11 = vadd.f32 %v15345_v61, %v3401_v29 }
 0x988   : > { %3661 = vst [vmem:[#allocation2 + $0xc8] sm:$0xf] %v10764_v14  ;;  %v3530_v8 = vpack.c.bf16 %v15406_v16, %v15396_v40  ;;  %v10767_v30 = vpack.c.bf16 %v15406_v16, %v15406_v16  ;;  %v15413_v57 = vmax.f32 %v3402_v11, 0.0 }
 0x98a   : > { %3664 = vst [vmem:[#allocation2 + $0x110] sm:$0xf] %v10767_v30  ;;  %v3529_v55 = vpack.c.bf16 %v15413_v57, %v15401_v54  ;;  %v10765_v53 = vpack.c.bf16 %v15413_v57, %v15413_v57 }
 0x98c   : > { %3662 = vst [vmem:[#allocation2 + $0xe0] sm:$0xf] %v10765_v53 }
 0x98f   : > { %v12478_v3 = vpop.f32.mrf.mxu1 }
 0x990   : > { %v3423_v4 = vadd.f32 %v12478_v3, %v15345_v61 }
 0x991   : > { %v3414_v25 = vpop.f32.mrf.mxu1 }
 0x992   : > { %v15420_v27 = vmax.f32 %v3423_v4, 0.0  ;;  %v3415_v44 = vadd.f32 %v15345_v61, %v3414_v25 }
 0x993   : > { %v12479_v19 = vpop.f32.mrf.mxu1 }
 0x994   : > { %v10770_v51 = vpack.c.bf16 %v15420_v27, %v15420_v27  ;;  %v15425_v62 = vmax.f32 %v3415_v44, 0.0  ;;  %v3426_v2 = vadd.f32 %v12479_v19, %v15345_v61 }
 0x995   : > { %v3417_v34 = vpop.f32.mrf.mxu1 }
 0x996   : > { %3667 = vst [vmem:[#allocation2 + $0x158] sm:$0xf] %v10770_v51  ;;  %v10768_v10 = vpack.c.bf16 %v15425_v62, %v15425_v62  ;;  %v15430_v38 = vmax.f32 %v3426_v2, 0.0  ;;  %v3418_v48 = vadd.f32 %v15345_v61, %v3417_v34 }
 0x998   : > { %3665 = vst [vmem:[#allocation2 + $0x128] sm:$0xf] %v10768_v10  ;;  %v3532_v35 = vpack.c.bf16 %v15430_v38, %v15420_v27  ;;  %v10771_v21 = vpack.c.bf16 %v15430_v38, %v15430_v38  ;;  %v15437_v58 = vmax.f32 %v3418_v48, 0.0 }
 0x99a   : > { %3668 = vst [vmem:[#allocation2 + $0x170] sm:$0xf] %v10771_v21  ;;  %v3531_v12 = vpack.c.bf16 %v15437_v58, %v15425_v62  ;;  %v10769_v47 = vpack.c.bf16 %v15437_v58, %v15437_v58 }
 0x99c   : > { %3666 = vst [vmem:[#allocation2 + $0x140] sm:$0xf] %v10769_v47 }
 0x99f   : > { %v12482_v37 = vpop.f32.mrf.mxu1 }
 0x9a0   : > { %v3439_v7 = vadd.f32 %v12482_v37, %v15345_v61 }
 0x9a1   : > { %v3430_v59 = vpop.f32.mrf.mxu1 }
 0x9a2   : > { %v15444_v45 = vmax.f32 %v3439_v7, 0.0  ;;  %v3431_v18 = vadd.f32 %v15345_v61, %v3430_v59 }
 0x9a3   : > { %v12483_v32 = vpop.f32.mrf.mxu1 }
 0x9a4   : > { %v10774_v5 = vpack.c.bf16 %v15444_v45, %v15444_v45  ;;  %v15449_v23 = vmax.f32 %v3431_v18, 0.0  ;;  %v3442_v13 = vadd.f32 %v12483_v32, %v15345_v61 }
 0x9a5   : > { %v3433_v24 = vpop.f32.mrf.mxu1 }
 0x9a6   : > { %3671 = vst [vmem:[#allocation2 + $0x1b8] sm:$0xf] %v10774_v5  ;;  %v10772_v50 = vpack.c.bf16 %v15449_v23, %v15449_v23  ;;  %v15454_v49 = vmax.f32 %v3442_v13, 0.0  ;;  %v3434_v26 = vadd.f32 %v15345_v61, %v3433_v24 }
 0x9a8   : > { %3669 = vst [vmem:[#allocation2 + $0x188] sm:$0xf] %v10772_v50  ;;  %v10775_v17 = vpack.c.bf16 %v15454_v49, %v15454_v49  ;;  %v15459_v63 = vmax.f32 %v3434_v26, 0.0  ;;  %v3534_v56 = vpack.c.bf16 %v15454_v49, %v15444_v45 }
 0x9aa   : > { %3672 = vst [vmem:[#allocation2 + $0x1d0] sm:$0xf] %v10775_v17  ;;  %v10773_v43 = vpack.c.bf16 %v15459_v63, %v15459_v63  ;;  %v3533_v28 = vpack.c.bf16 %v15459_v63, %v15449_v23 }
 0x9ac   : > { %3670 = vst [vmem:[#allocation2 + $0x1a0] sm:$0xf] %v10773_v43 }
 0x9af   : > { %v12486_v6 = vpop.f32.mrf.mxu1 }
 0x9b0   : > { %v3455_v39 = vadd.f32 %v12486_v6, %v15345_v61 }
 0x9b1   : > { %v3446_v52 = vpop.f32.mrf.mxu1 }
 0x9b2   : > { %v15468_v0 = vmax.f32 %v3455_v39, 0.0  ;;  %v3447_v29 = vadd.f32 %v15345_v61, %v3446_v52 }
 0x9b3   : > { %v12487_v14 = vpop.f32.mrf.mxu1 }
 0x9b4   : > { %v10778_v11 = vpack.c.bf16 %v15468_v0, %v15468_v0  ;;  %v15473_v30 = vmax.f32 %v3447_v29, 0.0  ;;  %v3458_v53 = vadd.f32 %v12487_v14, %v15345_v61 }
 0x9b5   : > { %v3449_v3 = vpop.f32.mrf.mxu1 }
 0x9b6   : > { %3675 = vst [vmem:[#allocation2 + $0x218] sm:$0xf] %v10778_v11  ;;  %v10776_v4 = vpack.c.bf16 %v15473_v30, %v15473_v30  ;;  %v15478_v25 = vmax.f32 %v3458_v53, 0.0  ;;  %v3450_v44 = vadd.f32 %v15345_v61, %v3449_v3 }
 0x9b8   : > { %3673 = vst [vmem:[#allocation2 + $0x1e8] sm:$0xf] %v10776_v4  ;;  %v10779_v19 = vpack.c.bf16 %v15478_v25, %v15478_v25  ;;  %v15483_v51 = vmax.f32 %v3450_v44, 0.0 }
 0x9ba   : > { %3676 = vst [vmem:[#allocation2 + $0x230] sm:$0xf] %v10779_v19  ;;  %v10777_v2 = vpack.c.bf16 %v15483_v51, %v15483_v51 }
 0x9bc   : > { %3674 = vst [vmem:[#allocation2 + $0x200] sm:$0xf] %v10777_v2 }
 0x9bf   : > { %v12490_v34 = vpop.f32.mrf.mxu1 }
 0x9c0   : > { %v3471_v10 = vadd.f32 %v12490_v34, %v15345_v61 }
 0x9c1   : > { %v3462_v48 = vpop.f32.mrf.mxu1 }
 0x9c2   : > { %v15488_v21 = vmax.f32 %v3471_v10, 0.0  ;;  %v3463_v47 = vadd.f32 %v15345_v61, %v3462_v48 }
 0x9c3   : > { %v12491_v37 = vpop.f32.mrf.mxu1 }
 0x9c4   : > { %v10782_v7 = vpack.c.bf16 %v15488_v21, %v15488_v21  ;;  %v15493_v59 = vmax.f32 %v3463_v47, 0.0  ;;  %v3474_v18 = vadd.f32 %v12491_v37, %v15345_v61 }
 0x9c5   : > { %v3465_v32 = vpop.f32.mrf.mxu1 }
 0x9c6   : > { %3679 = vst [vmem:[#allocation2 + $0x278] sm:$0xf] %v10782_v7  ;;  %v10780_v5 = vpack.c.bf16 %v15493_v59, %v15493_v59  ;;  %v15498_v13 = vmax.f32 %v3474_v18, 0.0  ;;  %v3466_v24 = vadd.f32 %v15345_v61, %v3465_v32  ;;  %v13593_v18 = vld [vmem:[%s14422_s5 + $0x20] ss:$8 sps:$4 sm:$0xff]  }
 0x9c7   : > { %v13595_v32 = vld [vmem:[%s14422_s5 + $0x30] ss:$8 sps:$4 sm:$0xff]  }
 0x9c8   : > { %3677 = vst [vmem:[#allocation2 + $0x248] sm:$0xf] %v10780_v5  ;;  %v10783_v50 = vpack.c.bf16 %v15498_v13, %v15498_v13  ;;  %v15503_v26 = vmax.f32 %v3466_v24, 0.0  ;;  %v13596_v5 = vld [vmem:[%s14422_s5 + $0x44] ss:$8 sps:$4 sm:$0xff]  }
 0x9c9   : > { %v13597_v24 = vld [vmem:[%s14422_s5 + $0x40] ss:$8 sps:$4 sm:$0xff]  }
 0x9ca   : > { %3680 = vst [vmem:[#allocation2 + $0x290] sm:$0xf] %v10783_v50  ;;  %v10781_v17 = vpack.c.bf16 %v15503_v26, %v15503_v26  ;;  %v3537_v7 = vpack.c.bf16 %v15503_v26, %v15493_v59  ;;  %v13598_v50 = vld [vmem:[%s14422_s5 + $0x54] ss:$8 sps:$4 sm:$0xff]  }
 0x9cc   : > { %3678 = vst [vmem:[#allocation2 + $0x260] sm:$0xf] %v10781_v17  ;;  %v13599_v17 = vld [vmem:[%s14422_s5 + $0x50] ss:$8 sps:$4 sm:$0xff]  }
 0x9cf   : > { %v12494_v43 = vpop.f32.mrf.mxu1 }
 0x9d0   : > { %v3487_v6 = vadd.f32 %v12494_v43, %v15345_v61  ;;  %v13600_v43 = vld [vmem:[%s14422_s5 + $0x64] ss:$8 sps:$4 sm:$0xff]  }
 0x9d1   : > { %v3478_v39 = vpop.f32.mrf.mxu1 }
 0x9d2   : > { %v15508_v52 = vmax.f32 %v3487_v6, 0.0  ;;  %v3479_v29 = vadd.f32 %v15345_v61, %v3478_v39  ;;  %v13601_v6 = vld [vmem:[%s14422_s5 + $0x60] ss:$8 sps:$4 sm:$0xff]   ;;  %v13602_v39 = vld [vmem:[%s14422_s5 + $0x74] ss:$8 sps:$4 sm:$0xff]  }
 0x9d3   : > { %v12495_v14 = vpop.f32.mrf.mxu1 }
 0x9d4   : > { %v10786_v11 = vpack.c.bf16 %v15508_v52, %v15508_v52  ;;  %v15513_v53 = vmax.f32 %v3479_v29, 0.0  ;;  %v3490_v3 = vadd.f32 %v12495_v14, %v15345_v61  ;;  %v13603_v29 = vld [vmem:[%s14422_s5 + $0x70] ss:$8 sps:$4 sm:$0xff]   ;;  %v13604_v14 = vld [vmem:[%s14422_s5 + $0x84] ss:$8 sps:$4 sm:$0xff]  }
 0x9d5   : > { %v3481_v4 = vpop.f32.mrf.mxu1 }
 0x9d6   : > { %3683 = vst [vmem:[#allocation2 + $0x2d8] sm:$0xf] %v10786_v11  ;;  %v10784_v44 = vpack.c.bf16 %v15513_v53, %v15513_v53  ;;  %v15518_v19 = vmax.f32 %v3490_v3, 0.0  ;;  %v3482_v2 = vadd.f32 %v15345_v61, %v3481_v4  ;;  %v3538_v61 = vpack.c.bf16 %v15498_v13, %v15488_v21  ;;  %v13017_v11 = vld [vmem:[#allocation11 + $0xe0] sm:$0xff]   ;;  %v13606_v4 = vld [vmem:[%s14422_s5 + $0x94] ss:$8 sps:$4 sm:$0xff]  }
 0x9d7   : > { %v13605_v3 = vld [vmem:[%s14422_s5 + $0x80] ss:$8 sps:$4 sm:$0xff]  }
 0x9d8   : > { %3681 = vst [vmem:[#allocation2 + $0x2a8] sm:$0xf] %v10784_v44  ;;  %v10787_v34 = vpack.c.bf16 %v15518_v19, %v15518_v19  ;;  %v15523_v10 = vmax.f32 %v3482_v2, 0.0  ;;  %v3540_v48 = vpack.c.bf16 %v15518_v19, %v15508_v52  ;;  %v13018_v44 = vld [vmem:[#allocation11 + $0xd8] sm:$0xff]   ;;  %v13019_v2 = vld [vmem:[#allocation11 + $0xd0] sm:$0xff]  }
 0x9da   : > { %3684 = vst [vmem:[#allocation2 + $0x2f0] sm:$0xf] %v10787_v34  ;;  %v10785_v47 = vpack.c.bf16 %v15523_v10, %v15523_v10  ;;  %11364 = vmatprep.subr.bf16.mxu0 %v3540_v48  ;;  %v3539_v37 = vpack.c.bf16 %v15523_v10, %v15513_v53  ;;  %v13607_v34 = vld [vmem:[%s14422_s5 + $0x90] ss:$8 sps:$4 sm:$0xff]   ;;  %v13608_v48 = vld [vmem:[%s14422_s5 + $0xa4] ss:$8 sps:$4 sm:$0xff]  }
 0x9db   : > { %11365 = vmatpush3.bf16.msra.mxu0 %v3532_v35  ;;  %v3536_v35 = vpack.c.bf16 %v15478_v25, %v15468_v0 }
 0x9dc   : > { %3682 = vst [vmem:[#allocation2 + $0x2c0] sm:$0xf] %v10785_v47  ;;  %11366 = vmatprep.subr.bf16.mxu0 %v3539_v37  ;;  %v13020_v47 = vld [vmem:[#allocation11 + $0xc8] sm:$0xff]   ;;  %v13021_v37 = vld [vmem:[#allocation11 + $0xc0] sm:$0xff]  }
 0x9df   : > { %11367 = vmatpush3.bf16.msra.mxu0 %v3531_v12  ;;  %v3535_v12 = vpack.c.bf16 %v15483_v51, %v15473_v30 }
 0x9e0   : > { %11368 = vmatprep.subr.bf16.mxu0 %v3538_v61  ;;  %v13609_v61 = vld [vmem:[%s14422_s5 + $0xa0] ss:$8 sps:$4 sm:$0xff]  }
 0x9e3   : > { %11369 = vmatpush3.bf16.msra.mxu0 %v3530_v8  ;;  %v13014_v8 = vld [vmem:[#allocation11 + $0xf8] sm:$0xff]  }
 0x9e4   : > { %11370 = vmatprep.subr.bf16.mxu0 %v3537_v7  ;;  %12496 = vmatprep.subr.bf16.mxu1 %v13014_v8  ;;  %v13610_v7 = vld [vmem:[%s14422_s5 + $0xb4] ss:$8 sps:$4 sm:$0xff]  }
 0x9e5   : > { %12497 = vmatpush3.bf16.msra.mxu1 %v13014_v8  ;;  %v13613_v8 = vld [vmem:[%s14422_s5 + $0xc0] ss:$8 sps:$4 sm:$0xff]  }
 0x9e7   : > { %11371 = vmatpush3.bf16.msra.mxu0 %v3529_v55  ;;  %v13015_v55 = vld [vmem:[#allocation11 + $0xf0] sm:$0xff]  }
 0x9e8   : > { %11372 = vmatprep.subr.bf16.mxu0 %v3536_v35  ;;  %12498 = vmatprep.subr.bf16.mxu1 %v13015_v55  ;;  %v13611_v35 = vld [vmem:[%s14422_s5 + $0xb0] ss:$8 sps:$4 sm:$0xff]  }
 0x9e9   : > { %12499 = vmatpush3.bf16.msra.mxu1 %v13015_v55  ;;  %v13614_v55 = vld [vmem:[%s14422_s5 + $0xd4] ss:$8 sps:$4 sm:$0xff]  }
 0x9eb   : > { %11373 = vmatpush3.bf16.msra.mxu0 %v3528_v15  ;;  %v13016_v15 = vld [vmem:[#allocation11 + $0xe8] sm:$0xff]  }
 0x9ec   : > { %11374 = vmatprep.subr.bf16.mxu0 %v3535_v12  ;;  %12500 = vmatprep.subr.bf16.mxu1 %v13016_v15  ;;  %v13612_v12 = vld [vmem:[%s14422_s5 + $0xc4] ss:$8 sps:$4 sm:$0xff]  }
 0x9ed   : > { %12501 = vmatpush3.bf16.msra.mxu1 %v13016_v15  ;;  %v13615_v15 = vld [vmem:[%s14422_s5 + $0xd0] ss:$8 sps:$4 sm:$0xff]  }
 0x9ee   : > { %12502 = vmatprep.subr.bf16.mxu1 %v13017_v11 }
 0x9ef   : > { %11375 = vmatpush3.bf16.msra.mxu0 %v3527_v41  ;;  %v13589_v41 = vld [vmem:[%s14422_s5] ss:$8 sps:$4 sm:$0xff]  }
 0x9f0   : > { %11376 = vmatprep.subr.bf16.mxu0 %v3534_v56  ;;  %v13591_v56 = vld [vmem:[%s14422_s5 + $0x10] ss:$8 sps:$4 sm:$0xff]  }
 0x9f1   : > { %12503 = vmatpush3.bf16.msra.mxu1 %v13017_v11 }
 0x9f2   : > { %12504 = vmatprep.subr.bf16.mxu1 %v13018_v44 }
 0x9f3   : > { %11377 = vmatpush3.bf16.msra.mxu0 %v3526_v46  ;;  %v13590_v46 = vld [vmem:[%s14422_s5 + $0x14] ss:$8 sps:$4 sm:$0xff]  }
 0x9f4   : > { %11378 = vmatprep.subr.bf16.mxu0 %v3533_v28  ;;  %v13592_v28 = vld [vmem:[%s14422_s5 + $0x24] ss:$8 sps:$4 sm:$0xff]  }
 0x9f5   : > { %12505 = vmatpush3.bf16.msra.mxu1 %v13018_v44 }
 0x9f6   : > { %12506 = vmatprep.subr.bf16.mxu1 %v13019_v2 }
 0x9f7   : > { %11379 = vmatpush3.bf16.msra.mxu0 %v3525_v60  ;;  %v13594_v60 = vld [vmem:[%s14422_s5 + $0x34] ss:$8 sps:$4 sm:$0xff]  }
 0x9f9   : > { %12507 = vmatpush3.bf16.msra.mxu1 %v13019_v2 }
 0x9fa   : > { %3753 = vmatmul.mubr.bf16.vlgmr.msra.gmra.mxu0 %v13589_v41  ;;  %12508 = vmatprep.subr.bf16.mxu1 %v13020_v47  ;;  %v13616_v41 = vld [vmem:[%s14422_s5 + $0xe4] ss:$8 sps:$4 sm:$0xff]  }
 0x9fb   : > { %3760 = vmatprep.mubr.bf16.mxu0 %v13590_v46  ;;  %v13617_v46 = vld [vmem:[%s14422_s5 + $0xe0] ss:$8 sps:$4 sm:$0xff]  }
 0x9fd   : > { %12509 = vmatpush3.bf16.msra.mxu1 %v13020_v47 }
 0x9fe   : > { %12510 = vmatprep.subr.bf16.mxu1 %v13021_v37 }
 0xa01   : > { %12511 = vmatpush3.bf16.msra.mxu1 %v13021_v37 }
 0xa02   : > { %3761 = vmatmul.mubr.bf16.gmra.mxu0 %v13591_v56  ;;  %v13618_v56 = vld [vmem:[%s14422_s5 + $0xf4] ss:$8 sps:$4 sm:$0xff]  }
 0xa03   : > { %3768 = vmatprep.mubr.bf16.mxu0 %v13592_v28  ;;  %v13619_v28 = vld [vmem:[%s14422_s5 + $0xf0] ss:$8 sps:$4 sm:$0xff]  }
 0xa0a   : > { %3769 = vmatmul.mubr.bf16.gmra.mxu0 %v13593_v18  ;;  %v13620_v18 = vld [vmem:[%s14422_s5 + $0x4] ss:$8 sps:$4 sm:$0xff]  }
 0xa0b   : > { %3776 = vmatprep.mubr.bf16.mxu0 %v13594_v60 }
 0xa12   : > { %3777 = vmatmul.mubr.bf16.gmra.mxu0 %v13595_v32 }
 0xa13   : > { %3784 = vmatprep.mubr.bf16.mxu0 %v13596_v5 }
 0xa1a   : > { %3785 = vmatmul.mubr.bf16.gmra.mxu0 %v13597_v24 }
 0xa1b   : > { %3792 = vmatprep.mubr.bf16.mxu0 %v13598_v50  ;;  %v13022_v50 = vld [vmem:[#allocation13 + $0xf8] sm:$0xff]  }
 0xa1c   : > { %12544 = vmatprep.subr.bf16.mxu1 %v13022_v50 }
 0xa22   : > { %3793 = vmatmul.mubr.bf16.gmra.mxu0 %v13599_v17  ;;  %v15601_v17 = vstv %s3686_s23 }
 0xa23   : > { %3800 = vmatprep.mubr.bf16.mxu0 %v13600_v43  ;;  %v3691_v47 = vmul.f32 %v15601_v17, %v15358_v22  ;;  %v3693_v22 = vmul.f32 %v15601_v17, %v15389_v20  ;;  %v3694_v20 = vmul.f32 %v15601_v17, %v15372_v9  ;;  %v3697_v9 = vmul.f32 %v15601_v17, %v15413_v57 }
 0xa2a   : > { %3801 = vmatmul.mubr.bf16.gmra.mxu0 %v13601_v6  ;;  %v3688_v6 = vmul.f32 %v15601_v17, %v15353_v42  ;;  %v3690_v42 = vmul.f32 %v15601_v17, %v15348_v1  ;;  %v13024_v1 = vld [vmem:[#allocation13 + $0xe8] sm:$0xff]  }
 0xa2b   : > { %3808 = vmatprep.mubr.bf16.mxu0 %v13602_v39  ;;  %v3689_v39 = vmul.f32 %v15601_v17, %v15365_v36 }
 0xa32   : > { %3809 = vmatmul.mubr.bf16.gmra.mxu0 %v13603_v29 }
 0xa33   : > { %3816 = vmatprep.mubr.bf16.mxu0 %v13604_v14 }
 0xa3a   : > { %3817 = vmatmul.mubr.bf16.gmra.mxu0 %v13605_v3 }
 0xa3b   : > { %3824 = vmatprep.mubr.bf16.mxu0 %v13606_v4 }
 0xa42   : > { %3825 = vmatmul.mubr.bf16.gmra.mxu0 %v13607_v34 }
 0xa43   : > { %3832 = vmatprep.mubr.bf16.mxu0 %v13608_v48 }
 0xa4a   : > { %3833 = vmatmul.mubr.bf16.gmra.mxu0 %v13609_v61 }
 0xa4b   : > { %3840 = vmatprep.mubr.bf16.mxu0 %v13610_v7 }
 0xa52   : > { %3841 = vmatmul.mubr.bf16.gmra.mxu0 %v13611_v35 }
 0xa53   : > { %3848 = vmatprep.mubr.bf16.mxu0 %v13612_v12 }
 0xa5a   : > { %3849 = vmatmul.mubr.bf16.gmra.mxu0 %v13613_v8  ;;  %v13023_v8 = vld [vmem:[#allocation13 + $0xf0] sm:$0xff]  }
 0xa5b   : > { %3856 = vmatprep.mubr.bf16.mxu0 %v13614_v55 }
 0xa62   : > { %3857 = vmatmul.mubr.bf16.gmra.mxu0 %v13615_v15 }
 0xa63   : > { %3864 = vmatprep.mubr.bf16.mxu0 %v13616_v41 }
 0xa6a   : > { %3865 = vmatmul.mubr.bf16.gmra.mxu0 %v13617_v46  ;;  %v3692_v46 = vmul.f32 %v15601_v17, %v15377_v33  ;;  %v3695_v33 = vmul.f32 %v15601_v17, %v15382_v31  ;;  %v3696_v31 = vmul.f32 %v15601_v17, %v15401_v54 }
 0xa6b   : > { %3872 = vmatprep.mubr.bf16.mxu0 %v13618_v56 }
 0xa72   : > { %3873 = vmatmul.mubr.bf16.gmra.mxu0 %v13619_v28 }
 0xa73   : > { %4666 = vmatprep.mubr.bf16.mxu0 %v13620_v18 }
 0xaba   : > { %v11380_v60 = vpop.f32.mrf.mxu0 }
 0xabc   : > { %v11381_v32 = vpop.f32.mrf.mxu0 }
 0xabd   : > { %v11382_v24 = vadd.f32 %v11381_v32, %v11380_v60 }
 0xabe   : > { %v11383_v5 = vpop.f32.mrf.mxu0 }
 0xabf   : > { %v3755_v11 = vadd.f32 %v11382_v24, %v3688_v6  ;;  %v13025_v24 = vld [vmem:[#allocation13 + $0xe0] sm:$0xff]  }
 0xac0   : > { %v11384_v43 = vpop.f32.mrf.mxu0 }
 0xac1   : > { %v11385_v29 = vadd.f32 %v11384_v43, %v11383_v5 }
 0xac2   : > { %v11386_v14 = vpop.f32.mrf.mxu0 }
 0xac3   : > { %v3758_v3 = vadd.f32 %v11385_v29, %v3689_v39  ;;  %v13026_v29 = vld [vmem:[#allocation13 + $0xd8] sm:$0xff]  }
 0xac4   : > { %v11387_v4 = vpop.f32.mrf.mxu0 }
 0xac5   : > { %v3881_v44 = vpack.c.bf16 %v3758_v3, %v3755_v11  ;;  %v11388_v34 = vadd.f32 %v11387_v4, %v11386_v14 }
 0xac6   : > { %v11389_v2 = vpop.f32.mrf.mxu0 }
 0xac7   : > { %12512 = vmatprep.mubr.bf16.mxu1 %v3881_v44  ;;  %v3763_v36 = vadd.f32 %v11388_v34, %v3690_v42 }
 0xac8   : > { %v11390_v48 = vpop.f32.mrf.mxu0 }
 0xac9   : > { %v11391_v37 = vadd.f32 %v11390_v48, %v11389_v2 }
 0xaca   : > { %v11392_v61 = vpop.f32.mrf.mxu0 }
 0xacb   : > { %v3766_v7 = vadd.f32 %v11391_v37, %v3691_v47 }
 0xacc   : > { %v11393_v35 = vpop.f32.mrf.mxu0 }
 0xacd   : > { %v3882_v12 = vpack.c.bf16 %v3766_v7, %v3763_v36  ;;  %v11394_v15 = vadd.f32 %v11393_v35, %v11392_v61 }
 0xace   : > { %v11395_v55 = vpop.f32.mrf.mxu0 }
 0xacf   : > { %12513 = vmatmul.mubr.bf16.vlgmr.msra.gmra.mxu1 %v3882_v12  ;;  %v3771_v18 = vadd.f32 %v11394_v15, %v3692_v46  ;;  %v3698_v15 = vmul.f32 %v15601_v17, %v15396_v40 }
 0xad0   : > { %v11396_v41 = vpop.f32.mrf.mxu0  ;;  %12545 = vmatpush3.bf16.msra.mxu1 %v13022_v50 }
 0xad1   : > { %v11397_v56 = vadd.f32 %v11396_v41, %v11395_v55  ;;  %12546 = vmatprep.subr.bf16.mxu1 %v13023_v8  ;;  %v3699_v55 = vmul.f32 %v15601_v17, %v15406_v16 }
 0xad2   : > { %v11398_v28 = vpop.f32.mrf.mxu0 }
 0xad3   : > { %v3774_v60 = vadd.f32 %v11397_v56, %v3693_v22 }
 0xad4   : > { %v11399_v32 = vpop.f32.mrf.mxu0  ;;  %12547 = vmatpush3.bf16.msra.mxu1 %v13023_v8 }
 0xad5   : > { %v3883_v5 = vpack.c.bf16 %v3774_v60, %v3771_v18  ;;  %12548 = vmatprep.subr.bf16.mxu1 %v13024_v1  ;;  %v11400_v6 = vadd.f32 %v11399_v32, %v11398_v28  ;;  %v3700_v60 = vmul.f32 %v15601_v17, %v15425_v62  ;;  %v3701_v32 = vmul.f32 %v15601_v17, %v15437_v58 }
 0xad6   : > { %v11401_v43 = vpop.f32.mrf.mxu0 }
 0xad7   : > { %12516 = vmatprep.mubr.bf16.mxu1 %v3883_v5  ;;  %v3779_v11 = vadd.f32 %v11400_v6, %v3694_v20 }
 0xad8   : > { %v11402_v50 = vpop.f32.mrf.mxu0  ;;  %12549 = vmatpush3.bf16.msra.mxu1 %v13024_v1 }
 0xad9   : > { %v11403_v39 = vadd.f32 %v11402_v50, %v11401_v43  ;;  %12550 = vmatprep.subr.bf16.mxu1 %v13025_v24 }
 0xada   : > { %v11404_v14 = vpop.f32.mrf.mxu0 }
 0xadb   : > { %v3782_v3 = vadd.f32 %v11403_v39, %v3695_v33  ;;  %v3703_v39 = vmul.f32 %v15601_v17, %v15430_v38 }
 0xadc   : > { %v11405_v4 = vpop.f32.mrf.mxu0  ;;  %12551 = vmatpush3.bf16.msra.mxu1 %v13025_v24 }
 0xadd   : > { %v3884_v44 = vpack.c.bf16 %v3782_v3, %v3779_v11  ;;  %12552 = vmatprep.subr.bf16.mxu1 %v13026_v29  ;;  %v11406_v34 = vadd.f32 %v11405_v4, %v11404_v14 }
 0xade   : > { %v11407_v2 = vpop.f32.mrf.mxu0 }
 0xadf   : > { %12517 = vmatmul.mubr.bf16.gmra.mxu1 %v3884_v44  ;;  %v3787_v37 = vadd.f32 %v11406_v34, %v3696_v31  ;;  %v3705_v31 = vmul.f32 %v15601_v17, %v15459_v63 }
 0xae0   : > { %v11408_v48 = vpop.f32.mrf.mxu0  ;;  %12553 = vmatpush3.bf16.msra.mxu1 %v13026_v29  ;;  %v3702_v29 = vmul.f32 %v15601_v17, %v15420_v27 }
 0xae1   : > { %v11409_v47 = vadd.f32 %v11408_v48, %v11407_v2  ;;  %v3704_v48 = vmul.f32 %v15601_v17, %v15449_v23 }
 0xae2   : > { %v11410_v42 = vpop.f32.mrf.mxu0 }
 0xae3   : > { %v3790_v61 = vadd.f32 %v11409_v47, %v3697_v9 }
 0xae4   : > { %v11411_v36 = vpop.f32.mrf.mxu0 }
 0xae5   : > { %v3885_v7 = vpack.c.bf16 %v3790_v61, %v3787_v37  ;;  %v11412_v12 = vadd.f32 %v11411_v36, %v11410_v42 }
 0xae6   : > { %v11413_v35 = vpop.f32.mrf.mxu0 }
 0xae7   : > { %12520 = vmatprep.mubr.bf16.mxu1 %v3885_v7  ;;  %v3795_v46 = vadd.f32 %v11412_v12, %v3698_v15  ;;  %v3706_v12 = vmul.f32 %v15601_v17, %v15444_v45 }
 0xae8   : > { %v11414_v8 = vpop.f32.mrf.mxu0 }
 0xae9   : > { %v11415_v54 = vadd.f32 %v11414_v8, %v11413_v35  ;;  %v3707_v35 = vmul.f32 %v15601_v17, %v15454_v49  ;;  %v3709_v49 = vmul.f32 %v15601_v17, %v15483_v51  ;;  %v3710_v51 = vmul.f32 %v15601_v17, %v15468_v0 }
 0xaea   : > { %v11416_v41 = vpop.f32.mrf.mxu0 }
 0xaeb   : > { %v3798_v57 = vadd.f32 %v11415_v54, %v3699_v55 }
 0xaec   : > { %v11417_v22 = vpop.f32.mrf.mxu0 }
 0xaed   : > { %v3886_v56 = vpack.c.bf16 %v3798_v57, %v3795_v46  ;;  %v11418_v28 = vadd.f32 %v11417_v22, %v11416_v41  ;;  %v13027_v57 = vld [vmem:[#allocation13 + $0xd0] sm:$0xff]  }
 0xaee   : > { %v11419_v1 = vpop.f32.mrf.mxu0  ;;  %12554 = vmatprep.subr.bf16.mxu1 %v13027_v57 }
 0xaef   : > { %12521 = vmatmul.mubr.bf16.gmra.mxu1 %v3886_v56  ;;  %v3803_v24 = vadd.f32 %v11418_v28, %v3700_v60  ;;  %v3708_v56 = vmul.f32 %v15601_v17, %v15473_v30  ;;  %v13028_v60 = vld [vmem:[#allocation13 + $0xc8] sm:$0xff]   ;;  %v3711_v30 = vmul.f32 %v15601_v17, %v15478_v25  ;;  %v3713_v25 = vmul.f32 %v15601_v17, %v15503_v26 }
 0xaf0   : > { %v11420_v18 = vpop.f32.mrf.mxu0  ;;  %12555 = vmatpush3.bf16.msra.mxu1 %v13027_v57  ;;  %v3719_v57 = vmul.f32 %v15601_v17, %v15518_v19 }
 0xaf1   : > { %v11421_v16 = vadd.f32 %v11420_v18, %v11419_v1  ;;  %12556 = vmatprep.subr.bf16.mxu1 %v13028_v60 }
 0xaf2   : > { %v11422_v5 = vpop.f32.mrf.mxu0 }
 0xaf3   : > { %v3806_v40 = vadd.f32 %v11421_v16, %v3701_v32 }
 0xaf4   : > { %v11423_v43 = vpop.f32.mrf.mxu0  ;;  %12557 = vmatpush3.bf16.msra.mxu1 %v13028_v60 }
 0xaf5   : > { %v3887_v6 = vpack.c.bf16 %v3806_v40, %v3803_v24  ;;  %v11424_v33 = vadd.f32 %v11423_v43, %v11422_v5  ;;  %v13029_v40 = vld [vmem:[#allocation13 + $0xc0] sm:$0xff]  }
 0xaf6   : > { %v11425_v50 = vpop.f32.mrf.mxu0  ;;  %12558 = vmatprep.subr.bf16.mxu1 %v13029_v40 }
 0xaf7   : > { %12524 = vmatprep.mubr.bf16.mxu1 %v3887_v6  ;;  %v3811_v11 = vadd.f32 %v11424_v33, %v3702_v29 }
 0xaf8   : > { %v11426_v20 = vpop.f32.mrf.mxu0  ;;  %12559 = vmatpush3.bf16.msra.mxu1 %v13029_v40 }
 0xaf9   : > { %v11427_v62 = vadd.f32 %v11426_v20, %v11425_v50 }
 0xafa   : > { %v11428_v14 = vpop.f32.mrf.mxu0 }
 0xafb   : > { %v3814_v58 = vadd.f32 %v11427_v62, %v3703_v39 }
 0xafc   : > { %v11429_v3 = vpop.f32.mrf.mxu0 }
 0xafd   : > { %v3888_v4 = vpack.c.bf16 %v3814_v58, %v3811_v11  ;;  %v11430_v2 = vadd.f32 %v11429_v3, %v11428_v14  ;;  %v3712_v58 = vmul.f32 %v15601_v17, %v15493_v59 }
 0xafe   : > { %v11431_v44 = vpop.f32.mrf.mxu0 }
 0xaff   : > { %12525 = vmatmul.mubr.bf16.gmra.mxu1 %v3888_v4  ;;  %v3819_v47 = vadd.f32 %v11430_v2, %v3704_v48 }
 0xb00   : > { %v11432_v34 = vpop.f32.mrf.mxu0 }
 0xb01   : > { %v11433_v38 = vadd.f32 %v11432_v34, %v11431_v44 }
 0xb02   : > { %v11434_v9 = vpop.f32.mrf.mxu0 }
 0xb03   : > { %v3822_v27 = vadd.f32 %v11433_v38, %v3705_v31 }
 0xb04   : > { %v11435_v42 = vpop.f32.mrf.mxu0 }
 0xb05   : > { %v3889_v37 = vpack.c.bf16 %v3822_v27, %v3819_v47  ;;  %v11436_v36 = vadd.f32 %v11435_v42, %v11434_v9  ;;  %v3715_v9 = vmul.f32 %v15601_v17, %v15498_v13  ;;  %v3714_v47 = vmul.f32 %v15601_v17, %v15488_v21 }
 0xb06   : > { %v11437_v61 = vpop.f32.mrf.mxu0 }
 0xb07   : > { %12528 = vmatprep.mubr.bf16.mxu1 %v3889_v37  ;;  %v3827_v55 = vadd.f32 %v11436_v36, %v3706_v12  ;;  %v3716_v12 = vmul.f32 %v15601_v17, %v15513_v53 }
 0xb08   : > { %v11438_v7 = vpop.f32.mrf.mxu0 }
 0xb09   : > { %v11439_v23 = vadd.f32 %v11438_v7, %v11437_v61 }
 0xb0a   : > { %v11440_v8 = vpop.f32.mrf.mxu0 }
 0xb0b   : > { %v3830_v63 = vadd.f32 %v11439_v23, %v3707_v35  ;;  %v3717_v23 = vmul.f32 %v15601_v17, %v15523_v10 }
 0xb0c   : > { %v11441_v15 = vpop.f32.mrf.mxu0 }
 0xb0d   : > { %v3890_v54 = vpack.c.bf16 %v3830_v63, %v3827_v55  ;;  %v11442_v46 = vadd.f32 %v11441_v15, %v11440_v8 }
 0xb0e   : > { %v11443_v41 = vpop.f32.mrf.mxu0 }
 0xb0f   : > { %12529 = vmatmul.mubr.bf16.gmra.mxu1 %v3890_v54  ;;  %v3835_v28 = vadd.f32 %v11442_v46, %v3708_v56 }
 0xb10   : > { %v11444_v22 = vpop.f32.mrf.mxu0 }
 0xb11   : > { %v11445_v1 = vadd.f32 %v11444_v22, %v11443_v41  ;;  %v3718_v22 = vmul.f32 %v15601_v17, %v15508_v52 }
 0xb12   : > { %v11446_v45 = vpop.f32.mrf.mxu0 }
 0xb13   : > { %v3838_v18 = vadd.f32 %v11445_v1, %v3709_v49 }
 0xb14   : > { %v11447_v32 = vpop.f32.mrf.mxu0 }
 0xb15   : > { %v3891_v16 = vpack.c.bf16 %v3838_v18, %v3835_v28  ;;  %v11448_v24 = vadd.f32 %v11447_v32, %v11446_v45  ;;  %v15670_v28 = vld [vmem:[%s17585_s26 + $0x3] ss:$0 sm:$0xff] }
 0xb16   : > { %v11449_v5 = vpop.f32.mrf.mxu0 }
 0xb17   : > { %12532 = vmatprep.mubr.bf16.mxu1 %v3891_v16  ;;  %v3843_v33 = vadd.f32 %v11448_v24, %v3710_v51 }
 0xb18   : > { %v11450_v43 = vpop.f32.mrf.mxu0 }
 0xb19   : > { %v11451_v6 = vadd.f32 %v11450_v43, %v11449_v5 }
 0xb1a   : > { %v11452_v50 = vpop.f32.mrf.mxu0 }
 0xb1b   : > { %v3846_v20 = vadd.f32 %v11451_v6, %v3711_v30 }
 0xb1c   : > { %v11453_v39 = vpop.f32.mrf.mxu0 }
 0xb1d   : > { %v3892_v29 = vpack.c.bf16 %v3846_v20, %v3843_v33  ;;  %v11454_v14 = vadd.f32 %v11453_v39, %v11452_v50 }
 0xb1e   : > { %v11455_v62 = vpop.f32.mrf.mxu0 }
 0xb1f   : > { %12533 = vmatmul.mubr.bf16.gmra.mxu1 %v3892_v29  ;;  %v3851_v4 = vadd.f32 %v11454_v14, %v3712_v58 }
 0xb20   : > { %v11456_v11 = vpop.f32.mrf.mxu0 }
 0xb21   : > { %v11457_v3 = vadd.f32 %v11456_v11, %v11455_v62 }
 0xb22   : > { %v11458_v0 = vpop.f32.mrf.mxu0 }
 0xb23   : > { %v3854_v44 = vadd.f32 %v11457_v3, %v3713_v25 }
 0xb24   : > { %v11459_v2 = vpop.f32.mrf.mxu0 }
 0xb25   : > { %v3893_v34 = vpack.c.bf16 %v3854_v44, %v3851_v4  ;;  %v11460_v31 = vadd.f32 %v11459_v2, %v11458_v0 }
 0xb26   : > { %v11461_v48 = vpop.f32.mrf.mxu0 }
 0xb27   : > { %12536 = vmatprep.mubr.bf16.mxu1 %v3893_v34  ;;  %v3859_v42 = vadd.f32 %v11460_v31, %v3714_v47 }
 0xb28   : > { %v11462_v38 = vpop.f32.mrf.mxu0 }
 0xb29   : > { %v11463_v59 = vadd.f32 %v11462_v38, %v11461_v48 }
 0xb2a   : > { %v11464_v27 = vpop.f32.mrf.mxu0 }
 0xb2b   : > { %v3862_v26 = vadd.f32 %v11463_v59, %v3715_v9 }
 0xb2c   : > { %v11465_v37 = vpop.f32.mrf.mxu0 }
 0xb2d   : > { %v3894_v61 = vpack.c.bf16 %v3862_v26, %v3859_v42  ;;  %v11466_v7 = vadd.f32 %v11465_v37, %v11464_v27 }
 0xb2e   : > { %v11467_v36 = vpop.f32.mrf.mxu0 }
 0xb2f   : > { %12537 = vmatmul.mubr.bf16.gmra.mxu1 %v3894_v61  ;;  %v3867_v55 = vadd.f32 %v11466_v7, %v3716_v12 }
 0xb30   : > { %v11468_v35 = vpop.f32.mrf.mxu0 }
 0xb31   : > { %v11469_v13 = vadd.f32 %v11468_v35, %v11467_v36 }
 0xb32   : > { %v11470_v8 = vpop.f32.mrf.mxu0 }
 0xb33   : > { %v3870_v21 = vadd.f32 %v11469_v13, %v3717_v23 }
 0xb34   : > { %v11471_v63 = vpop.f32.mrf.mxu0 }
 0xb35   : > { %v3895_v15 = vpack.c.bf16 %v3870_v21, %v3867_v55  ;;  %v11472_v41 = vadd.f32 %v11471_v63, %v11470_v8 }
 0xb36   : > { %v11473_v54 = vpop.f32.mrf.mxu0 }
 0xb37   : > { %12540 = vmatprep.mubr.bf16.mxu1 %v3895_v15  ;;  %v3875_v56 = vadd.f32 %v11472_v41, %v3718_v22 }
 0xb38   : > { %v11474_v46 = vpop.f32.mrf.mxu0 }
 0xb39   : > { %v11475_v53 = vadd.f32 %v11474_v46, %v11473_v54 }
 0xb3b   : > { %v3878_v49 = vadd.f32 %v11475_v53, %v3719_v57 }
 0xb3d   : > { %v3896_v10 = vpack.c.bf16 %v3878_v49, %v3875_v56 }
 0xb3f   : > { %12541 = vmatmul.mubr.bf16.gmra.mxu1 %v3896_v10 }
 0xb8f   : > { %v12514_v1 = vpop.f32.mrf.mxu1 }
 0xb90   : > { %v4010_v32 = vadd.f32 %v12514_v1, %v15670_v28 }
 0xb91   : > { %v4001_v45 = vpop.f32.mrf.mxu1 }
 0xb92   : > { %v4002_v60 = vadd.f32 %v15670_v28, %v4001_v45  ;;  %v4130_v40 = vmax.f32 %v4010_v32, 0.0 }
 0xb93   : > { %v12515_v18 = vpop.f32.mrf.mxu1 }
 0xb94   : > { %v4013_v19 = vadd.f32 %v12515_v18, %v15670_v28  ;;  %v4128_v5 = vmax.f32 %v4002_v60, 0.0 }
 0xb95   : > { %v4004_v52 = vpop.f32.mrf.mxu1 }
 0xb96   : > { %v4005_v17 = vadd.f32 %v15670_v28, %v4004_v52  ;;  %v4131_v16 = vmax.f32 %v4013_v19, 0.0 }
 0xb98   : > { %v4129_v24 = vmax.f32 %v4005_v17, 0.0  ;;  %v4161_v30 = vpack.c.bf16 %v4131_v16, %v4130_v40 }
 0xb9a   : > { %v4160_v43 = vpack.c.bf16 %v4129_v24, %v4128_v5 }
 0xb9c   : > { %12560 = vmatprep.mubr.bf16.mxu1 %v4160_v43 }
 0xb9d   : > { %12561 = vmatmul.mubr.bf16.vlgmr.msra.gmra.mxu1 %v4161_v30 }
 0xb9f   : > { %v12518_v51 = vpop.f32.mrf.mxu1 }
 0xba0   : > { %v4026_v39 = vadd.f32 %v12518_v51, %v15670_v28 }
 0xba1   : > { %v4017_v6 = vpop.f32.mrf.mxu1 }
 0xba2   : > { %v4018_v33 = vadd.f32 %v15670_v28, %v4017_v6  ;;  %v4134_v25 = vmax.f32 %v4026_v39, 0.0 }
 0xba3   : > { %v12519_v50 = vpop.f32.mrf.mxu1 }
 0xba4   : > { %v4029_v20 = vadd.f32 %v12519_v50, %v15670_v28  ;;  %v4132_v11 = vmax.f32 %v4018_v33, 0.0 }
 0xba5   : > { %v4020_v29 = vpop.f32.mrf.mxu1 }
 0xba6   : > { %v4021_v62 = vadd.f32 %v15670_v28, %v4020_v29  ;;  %v4135_v14 = vmax.f32 %v4029_v20, 0.0 }
 0xba8   : > { %v4133_v58 = vmax.f32 %v4021_v62, 0.0  ;;  %v4163_v0 = vpack.c.bf16 %v4135_v14, %v4134_v25 }
 0xbaa   : > { %v4162_v3 = vpack.c.bf16 %v4133_v58, %v4132_v11 }
 0xbac   : > { %12564 = vmatprep.mubr.bf16.mxu1 %v4162_v3 }
 0xbad   : > { %12565 = vmatmul.mubr.bf16.gmra.mxu1 %v4163_v0 }
 0xbaf   : > { %v12522_v4 = vpop.f32.mrf.mxu1 }
 0xbb0   : > { %v4042_v31 = vadd.f32 %v12522_v4, %v15670_v28 }
 0xbb1   : > { %v4033_v44 = vpop.f32.mrf.mxu1 }
 0xbb2   : > { %v4034_v34 = vadd.f32 %v15670_v28, %v4033_v44  ;;  %v4138_v42 = vmax.f32 %v4042_v31, 0.0 }
 0xbb3   : > { %v12523_v2 = vpop.f32.mrf.mxu1 }
 0xbb4   : > { %v4045_v48 = vadd.f32 %v12523_v2, %v15670_v28  ;;  %v4136_v59 = vmax.f32 %v4034_v34, 0.0 }
 0xbb5   : > { %v4036_v38 = vpop.f32.mrf.mxu1 }
 0xbb6   : > { %v4037_v9 = vadd.f32 %v15670_v28, %v4036_v38  ;;  %v4139_v47 = vmax.f32 %v4045_v48, 0.0 }
 0xbb8   : > { %v4137_v27 = vmax.f32 %v4037_v9, 0.0  ;;  %v4165_v37 = vpack.c.bf16 %v4139_v47, %v4138_v42 }
 0xbba   : > { %v4164_v26 = vpack.c.bf16 %v4137_v27, %v4136_v59 }
 0xbbc   : > { %12568 = vmatprep.mubr.bf16.mxu1 %v4164_v26 }
 0xbbd   : > { %12569 = vmatmul.mubr.bf16.gmra.mxu1 %v4165_v37 }
 0xbbf   : > { %v12526_v61 = vpop.f32.mrf.mxu1 }
 0xbc0   : > { %v4058_v23 = vadd.f32 %v12526_v61, %v15670_v28 }
 0xbc1   : > { %v4049_v36 = vpop.f32.mrf.mxu1 }
 0xbc2   : > { %v4050_v35 = vadd.f32 %v15670_v28, %v4049_v36  ;;  %v4142_v15 = vmax.f32 %v4058_v23, 0.0 }
 0xbc3   : > { %v12527_v7 = vpop.f32.mrf.mxu1 }
 0xbc4   : > { %v4061_v12 = vadd.f32 %v12527_v7, %v15670_v28  ;;  %v4140_v21 = vmax.f32 %v4050_v35, 0.0 }
 0xbc5   : > { %v4052_v13 = vpop.f32.mrf.mxu1 }
 0xbc6   : > { %v4053_v8 = vadd.f32 %v15670_v28, %v4052_v13  ;;  %v4143_v55 = vmax.f32 %v4061_v12, 0.0 }
 0xbc8   : > { %v4141_v63 = vmax.f32 %v4053_v8, 0.0  ;;  %v4167_v41 = vpack.c.bf16 %v4143_v55, %v4142_v15  ;;  %v15707_v8 = vld [vmem:[%s17586_s19 + $0x3] ss:$0 sm:$0xff] }
 0xbca   : > { %v4166_v54 = vpack.c.bf16 %v4141_v63, %v4140_v21 }
 0xbcc   : > { %12572 = vmatprep.mubr.bf16.mxu1 %v4166_v54 }
 0xbcd   : > { %12573 = vmatmul.mubr.bf16.gmra.mxu1 %v4167_v41 }
 0xbcf   : > { %v12530_v46 = vpop.f32.mrf.mxu1 }
 0xbd0   : > { %v4074_v49 = vadd.f32 %v12530_v46, %v15670_v28 }
 0xbd1   : > { %v4065_v57 = vpop.f32.mrf.mxu1 }
 0xbd2   : > { %v4066_v53 = vadd.f32 %v15670_v28, %v4065_v57  ;;  %v4146_v19 = vmax.f32 %v4074_v49, 0.0 }
 0xbd3   : > { %v12531_v22 = vpop.f32.mrf.mxu1 }
 0xbd4   : > { %v4077_v56 = vadd.f32 %v12531_v22, %v15670_v28  ;;  %v4144_v18 = vmax.f32 %v4066_v53, 0.0 }
 0xbd5   : > { %v4068_v10 = vpop.f32.mrf.mxu1 }
 0xbd6   : > { %v4069_v1 = vadd.f32 %v15670_v28, %v4068_v10  ;;  %v4147_v45 = vmax.f32 %v4077_v56, 0.0 }
 0xbd8   : > { %v4145_v60 = vmax.f32 %v4069_v1, 0.0  ;;  %v4169_v52 = vpack.c.bf16 %v4147_v45, %v4146_v19 }
 0xbda   : > { %v4168_v32 = vpack.c.bf16 %v4145_v60, %v4144_v18 }
 0xbdc   : > { %12576 = vmatprep.mubr.bf16.mxu1 %v4168_v32 }
 0xbdd   : > { %12577 = vmatmul.mubr.bf16.gmra.mxu1 %v4169_v52 }
 0xbdf   : > { %v12534_v17 = vpop.f32.mrf.mxu1 }
 0xbe0   : > { %v4090_v43 = vadd.f32 %v12534_v17, %v15670_v28 }
 0xbe1   : > { %v4081_v16 = vpop.f32.mrf.mxu1 }
 0xbe2   : > { %v4082_v24 = vadd.f32 %v15670_v28, %v4081_v16  ;;  %v4150_v20 = vmax.f32 %v4090_v43, 0.0 }
 0xbe3   : > { %v12535_v5 = vpop.f32.mrf.mxu1 }
 0xbe4   : > { %v4093_v40 = vadd.f32 %v12535_v5, %v15670_v28  ;;  %v4148_v50 = vmax.f32 %v4082_v24, 0.0 }
 0xbe5   : > { %v4084_v30 = vpop.f32.mrf.mxu1 }
 0xbe6   : > { %v4085_v51 = vadd.f32 %v15670_v28, %v4084_v30  ;;  %v4151_v6 = vmax.f32 %v4093_v40, 0.0 }
 0xbe8   : > { %v4149_v33 = vmax.f32 %v4085_v51, 0.0  ;;  %v4171_v29 = vpack.c.bf16 %v4151_v6, %v4150_v20 }
 0xbea   : > { %v4170_v39 = vpack.c.bf16 %v4149_v33, %v4148_v50 }
 0xbec   : > { %12580 = vmatprep.mubr.bf16.mxu1 %v4170_v39 }
 0xbed   : > { %12581 = vmatmul.mubr.bf16.gmra.mxu1 %v4171_v29 }
 0xbef   : > { %v12538_v62 = vpop.f32.mrf.mxu1 }
 0xbf0   : > { %v4106_v3 = vadd.f32 %v12538_v62, %v15670_v28 }
 0xbf1   : > { %v4097_v14 = vpop.f32.mrf.mxu1 }
 0xbf2   : > { %v4098_v58 = vadd.f32 %v15670_v28, %v4097_v14  ;;  %v4154_v48 = vmax.f32 %v4106_v3, 0.0 }
 0xbf3   : > { %v12539_v11 = vpop.f32.mrf.mxu1 }
 0xbf4   : > { %v4109_v25 = vadd.f32 %v12539_v11, %v15670_v28  ;;  %v4152_v2 = vmax.f32 %v4098_v58, 0.0 }
 0xbf5   : > { %v4100_v0 = vpop.f32.mrf.mxu1 }
 0xbf6   : > { %v4101_v4 = vadd.f32 %v15670_v28, %v4100_v0  ;;  %v4155_v44 = vmax.f32 %v4109_v25, 0.0 }
 0xbf8   : > { %v4153_v34 = vmax.f32 %v4101_v4, 0.0  ;;  %v4173_v38 = vpack.c.bf16 %v4155_v44, %v4154_v48 }
 0xbfa   : > { %v4172_v31 = vpack.c.bf16 %v4153_v34, %v4152_v2 }
 0xbfc   : > { %12584 = vmatprep.mubr.bf16.mxu1 %v4172_v31 }
 0xbfd   : > { %12585 = vmatmul.mubr.bf16.gmra.mxu1 %v4173_v38 }
 0xbff   : > { %v12542_v9 = vpop.f32.mrf.mxu1 }
 0xc00   : > { %v4122_v26 = vadd.f32 %v12542_v9, %v15670_v28 }
 0xc01   : > { %v4113_v47 = vpop.f32.mrf.mxu1 }
 0xc02   : > { %v4114_v27 = vadd.f32 %v15670_v28, %v4113_v47  ;;  %v4158_v12 = vmax.f32 %v4122_v26, 0.0 }
 0xc03   : > { %v12543_v59 = vpop.f32.mrf.mxu1 }
 0xc04   : > { %v4125_v42 = vadd.f32 %v12543_v59, %v15670_v28  ;;  %v4156_v7 = vmax.f32 %v4114_v27, 0.0 }
 0xc05   : > { %v4116_v37 = vpop.f32.mrf.mxu1 }
 0xc06   : > { %v4117_v61 = vadd.f32 %v15670_v28, %v4116_v37  ;;  %v4159_v36 = vmax.f32 %v4125_v42, 0.0 }
 0xc08   : > { %v4157_v35 = vmax.f32 %v4117_v61, 0.0  ;;  %v4175_v13 = vpack.c.bf16 %v4159_v36, %v4158_v12 }
 0xc0a   : > { %v4174_v23 = vpack.c.bf16 %v4157_v35, %v4156_v7 }
 0xc0c   : > { %12588 = vmatprep.mubr.bf16.mxu1 %v4174_v23 }
 0xc0d   : > { %12589 = vmatmul.mubr.bf16.gmra.mxu1 %v4175_v13 }
 0xc5d   : > { %v12562_v55 = vpop.f32.mrf.mxu1 }
 0xc5e   : > { %v4289_v21 = vadd.f32 %v12562_v55, %v15707_v8 }
 0xc5f   : > { %v4280_v63 = vpop.f32.mrf.mxu1 }
 0xc60   : > { %v15710_v15 = vmax.f32 %v4289_v21, 0.0  ;;  %v4281_v28 = vadd.f32 %v15707_v8, %v4280_v63 }
 0xc61   : > { %v12563_v54 = vpop.f32.mrf.mxu1 }
 0xc62   : > { %v10790_v41 = vpack.c.bf16 %v15710_v15, %v15710_v15  ;;  %v15715_v46 = vmax.f32 %v4281_v28, 0.0  ;;  %v4292_v57 = vadd.f32 %v12563_v54, %v15707_v8 }
 0xc63   : > { %v4283_v22 = vpop.f32.mrf.mxu1 }
 0xc64   : > { %4569 = vst [vmem:[#allocation2 + $0x3c] sm:$0xf] %v10790_v41  ;;  %v10788_v53 = vpack.c.bf16 %v15715_v46, %v15715_v46  ;;  %v15720_v56 = vmax.f32 %v4292_v57, 0.0  ;;  %v4284_v49 = vadd.f32 %v15707_v8, %v4283_v22 }
 0xc66   : > { %4567 = vst [vmem:[#allocation2 + $0xc] sm:$0xf] %v10788_v53  ;;  %v4440_v10 = vpack.c.bf16 %v15720_v56, %v15710_v15  ;;  %v10791_v1 = vpack.c.bf16 %v15720_v56, %v15720_v56  ;;  %v15727_v45 = vmax.f32 %v4284_v49, 0.0 }
 0xc68   : > { %4570 = vst [vmem:[#allocation2 + $0x54] sm:$0xf] %v10791_v1  ;;  %v4439_v18 = vpack.c.bf16 %v15727_v45, %v15715_v46  ;;  %v10789_v60 = vpack.c.bf16 %v15727_v45, %v15727_v45 }
 0xc6a   : > { %4568 = vst [vmem:[#allocation2 + $0x24] sm:$0xf] %v10789_v60 }
 0xc6d   : > { %v12566_v19 = vpop.f32.mrf.mxu1 }
 0xc6e   : > { %v4305_v32 = vadd.f32 %v12566_v19, %v15707_v8 }
 0xc6f   : > { %v4296_v52 = vpop.f32.mrf.mxu1 }
 0xc70   : > { %v15734_v17 = vmax.f32 %v4305_v32, 0.0  ;;  %v4297_v16 = vadd.f32 %v15707_v8, %v4296_v52 }
 0xc71   : > { %v12567_v5 = vpop.f32.mrf.mxu1 }
 0xc72   : > { %v10794_v24 = vpack.c.bf16 %v15734_v17, %v15734_v17  ;;  %v15739_v40 = vmax.f32 %v4297_v16, 0.0  ;;  %v4308_v43 = vadd.f32 %v12567_v5, %v15707_v8 }
 0xc73   : > { %v4299_v30 = vpop.f32.mrf.mxu1 }
 0xc74   : > { %4573 = vst [vmem:[#allocation2 + $0x9c] sm:$0xf] %v10794_v24  ;;  %v10792_v51 = vpack.c.bf16 %v15739_v40, %v15739_v40  ;;  %v15744_v6 = vmax.f32 %v4308_v43, 0.0  ;;  %v4300_v50 = vadd.f32 %v15707_v8, %v4299_v30 }
 0xc76   : > { %4571 = vst [vmem:[#allocation2 + $0x6c] sm:$0xf] %v10792_v51  ;;  %v4442_v33 = vpack.c.bf16 %v15744_v6, %v15734_v17  ;;  %v10795_v20 = vpack.c.bf16 %v15744_v6, %v15744_v6  ;;  %v15751_v39 = vmax.f32 %v4300_v50, 0.0 }
 0xc78   : > { %4574 = vst [vmem:[#allocation2 + $0xb4] sm:$0xf] %v10795_v20  ;;  %v4441_v29 = vpack.c.bf16 %v15751_v39, %v15739_v40  ;;  %v10793_v62 = vpack.c.bf16 %v15751_v39, %v15751_v39 }
 0xc7a   : > { %4572 = vst [vmem:[#allocation2 + $0x84] sm:$0xf] %v10793_v62 }
 0xc7d   : > { %v12570_v14 = vpop.f32.mrf.mxu1 }
 0xc7e   : > { %v4321_v11 = vadd.f32 %v12570_v14, %v15707_v8 }
 0xc7f   : > { %v4312_v58 = vpop.f32.mrf.mxu1 }
 0xc80   : > { %v15758_v25 = vmax.f32 %v4321_v11, 0.0  ;;  %v4313_v3 = vadd.f32 %v15707_v8, %v4312_v58 }
 0xc81   : > { %v12571_v0 = vpop.f32.mrf.mxu1 }
 0xc82   : > { %v10798_v4 = vpack.c.bf16 %v15758_v25, %v15758_v25  ;;  %v15763_v44 = vmax.f32 %v4313_v3, 0.0  ;;  %v4324_v2 = vadd.f32 %v12571_v0, %v15707_v8 }
 0xc83   : > { %v4315_v34 = vpop.f32.mrf.mxu1 }
 0xc84   : > { %4577 = vst [vmem:[#allocation2 + $0xfc] sm:$0xf] %v10798_v4  ;;  %v10796_v48 = vpack.c.bf16 %v15763_v44, %v15763_v44  ;;  %v15768_v31 = vmax.f32 %v4324_v2, 0.0  ;;  %v4316_v38 = vadd.f32 %v15707_v8, %v4315_v34 }
 0xc86   : > { %4575 = vst [vmem:[#allocation2 + $0xcc] sm:$0xf] %v10796_v48  ;;  %v4444_v9 = vpack.c.bf16 %v15768_v31, %v15758_v25  ;;  %v10799_v47 = vpack.c.bf16 %v15768_v31, %v15768_v31  ;;  %v15775_v59 = vmax.f32 %v4316_v38, 0.0 }
 0xc88   : > { %4578 = vst [vmem:[#allocation2 + $0x114] sm:$0xf] %v10799_v47  ;;  %v4443_v27 = vpack.c.bf16 %v15775_v59, %v15763_v44  ;;  %v10797_v42 = vpack.c.bf16 %v15775_v59, %v15775_v59 }
 0xc8a   : > { %4576 = vst [vmem:[#allocation2 + $0xe4] sm:$0xf] %v10797_v42 }
 0xc8d   : > { %v12574_v26 = vpop.f32.mrf.mxu1 }
 0xc8e   : > { %v4337_v37 = vadd.f32 %v12574_v26, %v15707_v8 }
 0xc8f   : > { %v4328_v61 = vpop.f32.mrf.mxu1 }
 0xc90   : > { %v15782_v36 = vmax.f32 %v4337_v37, 0.0  ;;  %v4329_v7 = vadd.f32 %v15707_v8, %v4328_v61 }
 0xc91   : > { %v12575_v35 = vpop.f32.mrf.mxu1 }
 0xc92   : > { %v10802_v12 = vpack.c.bf16 %v15782_v36, %v15782_v36  ;;  %v15787_v23 = vmax.f32 %v4329_v7, 0.0  ;;  %v4340_v13 = vadd.f32 %v12575_v35, %v15707_v8 }
 0xc93   : > { %v4331_v55 = vpop.f32.mrf.mxu1 }
 0xc94   : > { %4581 = vst [vmem:[#allocation2 + $0x15c] sm:$0xf] %v10802_v12  ;;  %v10800_v21 = vpack.c.bf16 %v15787_v23, %v15787_v23  ;;  %v15792_v63 = vmax.f32 %v4340_v13, 0.0  ;;  %v4332_v28 = vadd.f32 %v15707_v8, %v4331_v55 }
 0xc96   : > { %4579 = vst [vmem:[#allocation2 + $0x12c] sm:$0xf] %v10800_v21  ;;  %v4446_v54 = vpack.c.bf16 %v15792_v63, %v15782_v36  ;;  %v10803_v41 = vpack.c.bf16 %v15792_v63, %v15792_v63  ;;  %v15799_v57 = vmax.f32 %v4332_v28, 0.0 }
 0xc98   : > { %4582 = vst [vmem:[#allocation2 + $0x174] sm:$0xf] %v10803_v41  ;;  %v4445_v22 = vpack.c.bf16 %v15799_v57, %v15787_v23  ;;  %v10801_v53 = vpack.c.bf16 %v15799_v57, %v15799_v57 }
 0xc9a   : > { %4580 = vst [vmem:[#allocation2 + $0x144] sm:$0xf] %v10801_v53 }
 0xc9d   : > { %v12578_v49 = vpop.f32.mrf.mxu1 }
 0xc9e   : > { %v4353_v1 = vadd.f32 %v12578_v49, %v15707_v8 }
 0xc9f   : > { %v4344_v60 = vpop.f32.mrf.mxu1 }
 0xca0   : > { %v15806_v19 = vmax.f32 %v4353_v1, 0.0  ;;  %v4345_v32 = vadd.f32 %v15707_v8, %v4344_v60 }
 0xca1   : > { %v12579_v52 = vpop.f32.mrf.mxu1 }
 0xca2   : > { %v10806_v16 = vpack.c.bf16 %v15806_v19, %v15806_v19  ;;  %v15811_v5 = vmax.f32 %v4345_v32, 0.0  ;;  %v4356_v24 = vadd.f32 %v12579_v52, %v15707_v8 }
 0xca3   : > { %v4347_v43 = vpop.f32.mrf.mxu1 }
 0xca4   : > { %4585 = vst [vmem:[#allocation2 + $0x1bc] sm:$0xf] %v10806_v16  ;;  %v10804_v30 = vpack.c.bf16 %v15811_v5, %v15811_v5  ;;  %v15816_v51 = vmax.f32 %v4356_v24, 0.0  ;;  %v4348_v50 = vadd.f32 %v15707_v8, %v4347_v43 }
 0xca6   : > { %4583 = vst [vmem:[#allocation2 + $0x18c] sm:$0xf] %v10804_v30  ;;  %v10807_v20 = vpack.c.bf16 %v15816_v51, %v15816_v51  ;;  %v15821_v62 = vmax.f32 %v4348_v50, 0.0  ;;  %v4448_v14 = vpack.c.bf16 %v15816_v51, %v15806_v19 }
 0xca8   : > { %4586 = vst [vmem:[#allocation2 + $0x1d4] sm:$0xf] %v10807_v20  ;;  %v10805_v11 = vpack.c.bf16 %v15821_v62, %v15821_v62  ;;  %v4447_v58 = vpack.c.bf16 %v15821_v62, %v15811_v5 }
 0xcaa   : > { %4584 = vst [vmem:[#allocation2 + $0x1a4] sm:$0xf] %v10805_v11 }
 0xcad   : > { %v12582_v3 = vpop.f32.mrf.mxu1 }
 0xcae   : > { %v4369_v0 = vadd.f32 %v12582_v3, %v15707_v8 }
 0xcaf   : > { %v4360_v4 = vpop.f32.mrf.mxu1 }
 0xcb0   : > { %v15830_v2 = vmax.f32 %v4369_v0, 0.0  ;;  %v4361_v34 = vadd.f32 %v15707_v8, %v4360_v4 }
 0xcb1   : > { %v12583_v48 = vpop.f32.mrf.mxu1 }
 0xcb2   : > { %v10810_v38 = vpack.c.bf16 %v15830_v2, %v15830_v2  ;;  %v15835_v47 = vmax.f32 %v4361_v34, 0.0  ;;  %v4372_v42 = vadd.f32 %v12583_v48, %v15707_v8 }
 0xcb3   : > { %v4363_v26 = vpop.f32.mrf.mxu1 }
 0xcb4   : > { %4589 = vst [vmem:[#allocation2 + $0x21c] sm:$0xf] %v10810_v38  ;;  %v10808_v37 = vpack.c.bf16 %v15835_v47, %v15835_v47  ;;  %v15840_v61 = vmax.f32 %v4372_v42, 0.0  ;;  %v4364_v7 = vadd.f32 %v15707_v8, %v4363_v26 }
 0xcb6   : > { %4587 = vst [vmem:[#allocation2 + $0x1ec] sm:$0xf] %v10808_v37  ;;  %v10811_v35 = vpack.c.bf16 %v15840_v61, %v15840_v61  ;;  %v15845_v12 = vmax.f32 %v4364_v7, 0.0 }
 0xcb8   : > { %4590 = vst [vmem:[#allocation2 + $0x234] sm:$0xf] %v10811_v35  ;;  %v10809_v13 = vpack.c.bf16 %v15845_v12, %v15845_v12 }
 0xcba   : > { %4588 = vst [vmem:[#allocation2 + $0x204] sm:$0xf] %v10809_v13 }
 0xcbd   : > { %v12586_v55 = vpop.f32.mrf.mxu1 }
 0xcbe   : > { %v4385_v21 = vadd.f32 %v12586_v55, %v15707_v8 }
 0xcbf   : > { %v4376_v28 = vpop.f32.mrf.mxu1 }
 0xcc0   : > { %v15850_v41 = vmax.f32 %v4385_v21, 0.0  ;;  %v4377_v53 = vadd.f32 %v15707_v8, %v4376_v28 }
 0xcc1   : > { %v12587_v49 = vpop.f32.mrf.mxu1 }
 0xcc2   : > { %v10814_v1 = vpack.c.bf16 %v15850_v41, %v15850_v41  ;;  %v15855_v60 = vmax.f32 %v4377_v53, 0.0  ;;  %v4388_v32 = vadd.f32 %v12587_v49, %v15707_v8 }
 0xcc3   : > { %v4379_v52 = vpop.f32.mrf.mxu1 }
 0xcc4   : > { %4593 = vst [vmem:[#allocation2 + $0x27c] sm:$0xf] %v10814_v1  ;;  %v10812_v16 = vpack.c.bf16 %v15855_v60, %v15855_v60  ;;  %v15860_v24 = vmax.f32 %v4388_v32, 0.0  ;;  %v4380_v43 = vadd.f32 %v15707_v8, %v4379_v52  ;;  %v13625_v32 = vld [vmem:[%s14422_s5 + $0x20] ss:$8 sps:$4 sm:$0xff]  }
 0xcc5   : > { %v13627_v52 = vld [vmem:[%s14422_s5 + $0x30] ss:$8 sps:$4 sm:$0xff]  }
 0xcc6   : > { %4591 = vst [vmem:[#allocation2 + $0x24c] sm:$0xf] %v10812_v16  ;;  %v10815_v30 = vpack.c.bf16 %v15860_v24, %v15860_v24  ;;  %v15865_v50 = vmax.f32 %v4380_v43, 0.0  ;;  %v13628_v16 = vld [vmem:[%s14422_s5 + $0x44] ss:$8 sps:$4 sm:$0xff]  }
 0xcc7   : > { %v13629_v43 = vld [vmem:[%s14422_s5 + $0x40] ss:$8 sps:$4 sm:$0xff]  }
 0xcc8   : > { %4594 = vst [vmem:[#allocation2 + $0x294] sm:$0xf] %v10815_v30  ;;  %v10813_v20 = vpack.c.bf16 %v15865_v50, %v15865_v50  ;;  %v4451_v1 = vpack.c.bf16 %v15865_v50, %v15855_v60  ;;  %v13630_v30 = vld [vmem:[%s14422_s5 + $0x54] ss:$8 sps:$4 sm:$0xff]  }
 0xcca   : > { %4592 = vst [vmem:[#allocation2 + $0x264] sm:$0xf] %v10813_v20  ;;  %v13631_v20 = vld [vmem:[%s14422_s5 + $0x50] ss:$8 sps:$4 sm:$0xff]  }
 0xccd   : > { %v12590_v11 = vpop.f32.mrf.mxu1 }
 0xcce   : > { %v4401_v3 = vadd.f32 %v12590_v11, %v15707_v8  ;;  %v13632_v11 = vld [vmem:[%s14422_s5 + $0x64] ss:$8 sps:$4 sm:$0xff]  }
 0xccf   : > { %v4392_v0 = vpop.f32.mrf.mxu1 }
 0xcd0   : > { %v15870_v4 = vmax.f32 %v4401_v3, 0.0  ;;  %v4393_v34 = vadd.f32 %v15707_v8, %v4392_v0  ;;  %v13633_v3 = vld [vmem:[%s14422_s5 + $0x60] ss:$8 sps:$4 sm:$0xff]   ;;  %v13634_v0 = vld [vmem:[%s14422_s5 + $0x74] ss:$8 sps:$4 sm:$0xff]  }
 0xcd1   : > { %v12591_v48 = vpop.f32.mrf.mxu1 }
 0xcd2   : > { %v10818_v38 = vpack.c.bf16 %v15870_v4, %v15870_v4  ;;  %v15875_v42 = vmax.f32 %v4393_v34, 0.0  ;;  %v4404_v26 = vadd.f32 %v12591_v48, %v15707_v8  ;;  %v13635_v34 = vld [vmem:[%s14422_s5 + $0x70] ss:$8 sps:$4 sm:$0xff]   ;;  %v13636_v48 = vld [vmem:[%s14422_s5 + $0x84] ss:$8 sps:$4 sm:$0xff]  }
 0xcd3   : > { %v4395_v37 = vpop.f32.mrf.mxu1 }
 0xcd4   : > { %4597 = vst [vmem:[#allocation2 + $0x2dc] sm:$0xf] %v10818_v38  ;;  %v10816_v7 = vpack.c.bf16 %v15875_v42, %v15875_v42  ;;  %v15880_v35 = vmax.f32 %v4404_v26, 0.0  ;;  %v4396_v13 = vadd.f32 %v15707_v8, %v4395_v37  ;;  %v4452_v8 = vpack.c.bf16 %v15860_v24, %v15850_v41  ;;  %v13033_v38 = vld [vmem:[#allocation11 + $0x120] sm:$0xff]   ;;  %v13638_v37 = vld [vmem:[%s14422_s5 + $0x94] ss:$8 sps:$4 sm:$0xff]  }
 0xcd5   : > { %v13637_v26 = vld [vmem:[%s14422_s5 + $0x80] ss:$8 sps:$4 sm:$0xff]  }
 0xcd6   : > { %4595 = vst [vmem:[#allocation2 + $0x2ac] sm:$0xf] %v10816_v7  ;;  %v10819_v55 = vpack.c.bf16 %v15880_v35, %v15880_v35  ;;  %v15885_v21 = vmax.f32 %v4396_v13, 0.0  ;;  %v4454_v28 = vpack.c.bf16 %v15880_v35, %v15870_v4  ;;  %v13034_v7 = vld [vmem:[#allocation11 + $0x118] sm:$0xff]   ;;  %v13035_v13 = vld [vmem:[#allocation11 + $0x110] sm:$0xff]  }
 0xcd8   : > { %4598 = vst [vmem:[#allocation2 + $0x2f4] sm:$0xf] %v10819_v55  ;;  %v10817_v53 = vpack.c.bf16 %v15885_v21, %v15885_v21  ;;  %11524 = vmatprep.subr.bf16.mxu0 %v4454_v28  ;;  %v4453_v49 = vpack.c.bf16 %v15885_v21, %v15875_v42  ;;  %v13639_v55 = vld [vmem:[%s14422_s5 + $0x90] ss:$8 sps:$4 sm:$0xff]   ;;  %v13640_v28 = vld [vmem:[%s14422_s5 + $0xa4] ss:$8 sps:$4 sm:$0xff]  }
 0xcd9   : > { %11525 = vmatpush3.bf16.msra.mxu0 %v4446_v54  ;;  %v4450_v54 = vpack.c.bf16 %v15840_v61, %v15830_v2 }
 0xcda   : > { %4596 = vst [vmem:[#allocation2 + $0x2c4] sm:$0xf] %v10817_v53  ;;  %11526 = vmatprep.subr.bf16.mxu0 %v4453_v49  ;;  %v13036_v53 = vld [vmem:[#allocation11 + $0x108] sm:$0xff]   ;;  %v13037_v49 = vld [vmem:[#allocation11 + $0x100] sm:$0xff]  }
 0xcdd   : > { %11527 = vmatpush3.bf16.msra.mxu0 %v4445_v22  ;;  %v4449_v22 = vpack.c.bf16 %v15845_v12, %v15835_v47 }
 0xcde   : > { %11528 = vmatprep.subr.bf16.mxu0 %v4452_v8  ;;  %v13641_v8 = vld [vmem:[%s14422_s5 + $0xa0] ss:$8 sps:$4 sm:$0xff]  }
 0xce1   : > { %11529 = vmatpush3.bf16.msra.mxu0 %v4444_v9  ;;  %v13030_v9 = vld [vmem:[#allocation11 + $0x138] sm:$0xff]  }
 0xce2   : > { %11530 = vmatprep.subr.bf16.mxu0 %v4451_v1  ;;  %12592 = vmatprep.subr.bf16.mxu1 %v13030_v9  ;;  %v13642_v1 = vld [vmem:[%s14422_s5 + $0xb4] ss:$8 sps:$4 sm:$0xff]  }
 0xce3   : > { %12593 = vmatpush3.bf16.msra.mxu1 %v13030_v9  ;;  %v13645_v9 = vld [vmem:[%s14422_s5 + $0xc0] ss:$8 sps:$4 sm:$0xff]  }
 0xce5   : > { %11531 = vmatpush3.bf16.msra.mxu0 %v4443_v27  ;;  %v13031_v27 = vld [vmem:[#allocation11 + $0x130] sm:$0xff]  }
 0xce6   : > { %11532 = vmatprep.subr.bf16.mxu0 %v4450_v54  ;;  %12594 = vmatprep.subr.bf16.mxu1 %v13031_v27  ;;  %v13643_v54 = vld [vmem:[%s14422_s5 + $0xb0] ss:$8 sps:$4 sm:$0xff]  }
 0xce7   : > { %12595 = vmatpush3.bf16.msra.mxu1 %v13031_v27  ;;  %v13646_v27 = vld [vmem:[%s14422_s5 + $0xd4] ss:$8 sps:$4 sm:$0xff]  }
 0xce9   : > { %11533 = vmatpush3.bf16.msra.mxu0 %v4442_v33  ;;  %v13032_v33 = vld [vmem:[#allocation11 + $0x128] sm:$0xff]  }
 0xcea   : > { %11534 = vmatprep.subr.bf16.mxu0 %v4449_v22  ;;  %12596 = vmatprep.subr.bf16.mxu1 %v13032_v33  ;;  %v13644_v22 = vld [vmem:[%s14422_s5 + $0xc4] ss:$8 sps:$4 sm:$0xff]  }
 0xceb   : > { %12597 = vmatpush3.bf16.msra.mxu1 %v13032_v33  ;;  %v13647_v33 = vld [vmem:[%s14422_s5 + $0xd0] ss:$8 sps:$4 sm:$0xff]  }
 0xcec   : > { %12598 = vmatprep.subr.bf16.mxu1 %v13033_v38 }
 0xced   : > { %11535 = vmatpush3.bf16.msra.mxu0 %v4441_v29  ;;  %v13621_v29 = vld [vmem:[%s14422_s5] ss:$8 sps:$4 sm:$0xff]  }
 0xcee   : > { %11536 = vmatprep.subr.bf16.mxu0 %v4448_v14  ;;  %v13623_v14 = vld [vmem:[%s14422_s5 + $0x10] ss:$8 sps:$4 sm:$0xff]  }
 0xcef   : > { %12599 = vmatpush3.bf16.msra.mxu1 %v13033_v38 }
 0xcf0   : > { %12600 = vmatprep.subr.bf16.mxu1 %v13034_v7 }
 0xcf1   : > { %11537 = vmatpush3.bf16.msra.mxu0 %v4440_v10  ;;  %v13622_v10 = vld [vmem:[%s14422_s5 + $0x14] ss:$8 sps:$4 sm:$0xff]  }
 0xcf2   : > { %11538 = vmatprep.subr.bf16.mxu0 %v4447_v58  ;;  %v13624_v58 = vld [vmem:[%s14422_s5 + $0x24] ss:$8 sps:$4 sm:$0xff]  }
 0xcf3   : > { %12601 = vmatpush3.bf16.msra.mxu1 %v13034_v7 }
 0xcf4   : > { %12602 = vmatprep.subr.bf16.mxu1 %v13035_v13 }
 0xcf5   : > { %11539 = vmatpush3.bf16.msra.mxu0 %v4439_v18  ;;  %v13626_v18 = vld [vmem:[%s14422_s5 + $0x34] ss:$8 sps:$4 sm:$0xff]  }
 0xcf7   : > { %12603 = vmatpush3.bf16.msra.mxu1 %v13035_v13 }
 0xcf8   : > { %4667 = vmatmul.mubr.bf16.vlgmr.msra.gmra.mxu0 %v13621_v29  ;;  %12604 = vmatprep.subr.bf16.mxu1 %v13036_v53  ;;  %v13648_v29 = vld [vmem:[%s14422_s5 + $0xe4] ss:$8 sps:$4 sm:$0xff]  }
 0xcf9   : > { %4674 = vmatprep.mubr.bf16.mxu0 %v13622_v10  ;;  %v13649_v10 = vld [vmem:[%s14422_s5 + $0xe0] ss:$8 sps:$4 sm:$0xff]  }
 0xcfb   : > { %12605 = vmatpush3.bf16.msra.mxu1 %v13036_v53 }
 0xcfc   : > { %12606 = vmatprep.subr.bf16.mxu1 %v13037_v49 }
 0xcff   : > { %12607 = vmatpush3.bf16.msra.mxu1 %v13037_v49 }
 0xd00   : > { %4675 = vmatmul.mubr.bf16.gmra.mxu0 %v13623_v14  ;;  %v13650_v14 = vld [vmem:[%s14422_s5 + $0xf4] ss:$8 sps:$4 sm:$0xff]  }
 0xd01   : > { %4682 = vmatprep.mubr.bf16.mxu0 %v13624_v58  ;;  %v13651_v58 = vld [vmem:[%s14422_s5 + $0xf0] ss:$8 sps:$4 sm:$0xff]  }
 0xd08   : > { %4683 = vmatmul.mubr.bf16.gmra.mxu0 %v13625_v32  ;;  %v13652_v32 = vld [vmem:[%s14422_s5 + $0x4] ss:$8 sps:$4 sm:$0xff]  }
 0xd09   : > { %4690 = vmatprep.mubr.bf16.mxu0 %v13626_v18 }
 0xd10   : > { %4691 = vmatmul.mubr.bf16.gmra.mxu0 %v13627_v52 }
 0xd11   : > { %4698 = vmatprep.mubr.bf16.mxu0 %v13628_v16 }
 0xd18   : > { %4699 = vmatmul.mubr.bf16.gmra.mxu0 %v13629_v43 }
 0xd19   : > { %4706 = vmatprep.mubr.bf16.mxu0 %v13630_v30  ;;  %v13038_v30 = vld [vmem:[#allocation13 + $0x138] sm:$0xff]  }
 0xd1a   : > { %12640 = vmatprep.subr.bf16.mxu1 %v13038_v30 }
 0xd20   : > { %4707 = vmatmul.mubr.bf16.gmra.mxu0 %v13631_v20  ;;  %v15963_v20 = vstv %s4600_s0  ;;  %s17708_s0 = sld [smem:[#allocation80_spill]] }
 0xd21   : > { %4714 = vmatprep.mubr.bf16.mxu0 %v13632_v11  ;;  %v4605_v53 = vmul.f32 %v15963_v20, %v15720_v56  ;;  %v4607_v56 = vmul.f32 %v15963_v20, %v15751_v39  ;;  %v4608_v39 = vmul.f32 %v15963_v20, %v15734_v17  ;;  %v4611_v17 = vmul.f32 %v15963_v20, %v15775_v59 }
 0xd28   : > { %4715 = vmatmul.mubr.bf16.gmra.mxu0 %v13633_v3  ;;  %v4602_v3 = vmul.f32 %v15963_v20, %v15715_v46  ;;  %v4604_v46 = vmul.f32 %v15963_v20, %v15710_v15  ;;  %v13040_v15 = vld [vmem:[#allocation13 + $0x128] sm:$0xff]  }
 0xd29   : > { %4722 = vmatprep.mubr.bf16.mxu0 %v13634_v0  ;;  %v4603_v0 = vmul.f32 %v15963_v20, %v15727_v45 }
 0xd30   : > { %4723 = vmatmul.mubr.bf16.gmra.mxu0 %v13635_v34 }
 0xd31   : > { %4730 = vmatprep.mubr.bf16.mxu0 %v13636_v48 }
 0xd38   : > { %4731 = vmatmul.mubr.bf16.gmra.mxu0 %v13637_v26 }
 0xd39   : > { %4738 = vmatprep.mubr.bf16.mxu0 %v13638_v37 }
 0xd40   : > { %4739 = vmatmul.mubr.bf16.gmra.mxu0 %v13639_v55 }
 0xd41   : > { %4746 = vmatprep.mubr.bf16.mxu0 %v13640_v28 }
 0xd48   : > { %4747 = vmatmul.mubr.bf16.gmra.mxu0 %v13641_v8 }
 0xd49   : > { %4754 = vmatprep.mubr.bf16.mxu0 %v13642_v1 }
 0xd50   : > { %4755 = vmatmul.mubr.bf16.gmra.mxu0 %v13643_v54 }
 0xd51   : > { %4762 = vmatprep.mubr.bf16.mxu0 %v13644_v22 }
 0xd58   : > { %4763 = vmatmul.mubr.bf16.gmra.mxu0 %v13645_v9  ;;  %v13039_v9 = vld [vmem:[#allocation13 + $0x130] sm:$0xff]  }
 0xd59   : > { %4770 = vmatprep.mubr.bf16.mxu0 %v13646_v27 }
 0xd60   : > { %4771 = vmatmul.mubr.bf16.gmra.mxu0 %v13647_v33 }
 0xd61   : > { %4778 = vmatprep.mubr.bf16.mxu0 %v13648_v29 }
 0xd68   : > { %4779 = vmatmul.mubr.bf16.gmra.mxu0 %v13649_v10  ;;  %v4606_v10 = vmul.f32 %v15963_v20, %v15739_v40  ;;  %v4609_v40 = vmul.f32 %v15963_v20, %v15744_v6  ;;  %v4610_v6 = vmul.f32 %v15963_v20, %v15763_v44 }
 0xd69   : > { %4786 = vmatprep.mubr.bf16.mxu0 %v13650_v14 }
 0xd70   : > { %4787 = vmatmul.mubr.bf16.gmra.mxu0 %v13651_v58 }
 0xd71   : > { %5580 = vmatprep.mubr.bf16.mxu0 %v13652_v32 }
 0xdb8   : > { %v11540_v18 = vpop.f32.mrf.mxu0 }
 0xdba   : > { %v11541_v52 = vpop.f32.mrf.mxu0 }
 0xdbb   : > { %v11542_v43 = vadd.f32 %v11541_v52, %v11540_v18 }
 0xdbc   : > { %v11543_v16 = vpop.f32.mrf.mxu0 }
 0xdbd   : > { %v4669_v38 = vadd.f32 %v11542_v43, %v4602_v3  ;;  %v13041_v43 = vld [vmem:[#allocation13 + $0x120] sm:$0xff]  }
 0xdbe   : > { %v11544_v11 = vpop.f32.mrf.mxu0 }
 0xdbf   : > { %v11545_v34 = vadd.f32 %v11544_v11, %v11543_v16 }
 0xdc0   : > { %v11546_v48 = vpop.f32.mrf.mxu0 }
 0xdc1   : > { %v4672_v26 = vadd.f32 %v11545_v34, %v4603_v0  ;;  %v13042_v34 = vld [vmem:[#allocation13 + $0x118] sm:$0xff]  }
 0xdc2   : > { %v11547_v37 = vpop.f32.mrf.mxu0 }
 0xdc3   : > { %v4795_v7 = vpack.c.bf16 %v4672_v26, %v4669_v38  ;;  %v11548_v55 = vadd.f32 %v11547_v37, %v11546_v48 }
 0xdc4   : > { %v11549_v13 = vpop.f32.mrf.mxu0 }
 0xdc5   : > { %12608 = vmatprep.mubr.bf16.mxu1 %v4795_v7  ;;  %v4677_v45 = vadd.f32 %v11548_v55, %v4604_v46 }
 0xdc6   : > { %v11550_v28 = vpop.f32.mrf.mxu0 }
 0xdc7   : > { %v11551_v49 = vadd.f32 %v11550_v28, %v11549_v13 }
 0xdc8   : > { %v11552_v8 = vpop.f32.mrf.mxu0 }
 0xdc9   : > { %v4680_v1 = vadd.f32 %v11551_v49, %v4605_v53 }
 0xdca   : > { %v11553_v54 = vpop.f32.mrf.mxu0 }
 0xdcb   : > { %v4796_v22 = vpack.c.bf16 %v4680_v1, %v4677_v45  ;;  %v11554_v33 = vadd.f32 %v11553_v54, %v11552_v8 }
 0xdcc   : > { %v11555_v27 = vpop.f32.mrf.mxu0 }
 0xdcd   : > { %12609 = vmatmul.mubr.bf16.vlgmr.msra.gmra.mxu1 %v4796_v22  ;;  %v4685_v32 = vadd.f32 %v11554_v33, %v4606_v10  ;;  %v4612_v33 = vmul.f32 %v15963_v20, %v15758_v25 }
 0xdce   : > { %v11556_v29 = vpop.f32.mrf.mxu0  ;;  %12641 = vmatpush3.bf16.msra.mxu1 %v13038_v30 }
 0xdcf   : > { %v11557_v14 = vadd.f32 %v11556_v29, %v11555_v27  ;;  %12642 = vmatprep.subr.bf16.mxu1 %v13039_v9  ;;  %v4613_v27 = vmul.f32 %v15963_v20, %v15768_v31 }
 0xdd0   : > { %v11558_v58 = vpop.f32.mrf.mxu0 }
 0xdd1   : > { %v4688_v18 = vadd.f32 %v11557_v14, %v4607_v56 }
 0xdd2   : > { %v11559_v52 = vpop.f32.mrf.mxu0  ;;  %12643 = vmatpush3.bf16.msra.mxu1 %v13039_v9 }
 0xdd3   : > { %v4797_v16 = vpack.c.bf16 %v4688_v18, %v4685_v32  ;;  %12644 = vmatprep.subr.bf16.mxu1 %v13040_v15  ;;  %v11560_v3 = vadd.f32 %v11559_v52, %v11558_v58  ;;  %v4614_v18 = vmul.f32 %v15963_v20, %v15787_v23  ;;  %v4615_v52 = vmul.f32 %v15963_v20, %v15799_v57 }
 0xdd4   : > { %v11561_v11 = vpop.f32.mrf.mxu0 }
 0xdd5   : > { %12612 = vmatprep.mubr.bf16.mxu1 %v4797_v16  ;;  %v4693_v38 = vadd.f32 %v11560_v3, %v4608_v39 }
 0xdd6   : > { %v11562_v30 = vpop.f32.mrf.mxu0  ;;  %12645 = vmatpush3.bf16.msra.mxu1 %v13040_v15 }
 0xdd7   : > { %v11563_v0 = vadd.f32 %v11562_v30, %v11561_v11  ;;  %12646 = vmatprep.subr.bf16.mxu1 %v13041_v43 }
 0xdd8   : > { %v11564_v48 = vpop.f32.mrf.mxu0 }
 0xdd9   : > { %v4696_v26 = vadd.f32 %v11563_v0, %v4609_v40  ;;  %v4617_v0 = vmul.f32 %v15963_v20, %v15792_v63 }
 0xdda   : > { %v11565_v37 = vpop.f32.mrf.mxu0  ;;  %12647 = vmatpush3.bf16.msra.mxu1 %v13041_v43 }
 0xddb   : > { %v4798_v7 = vpack.c.bf16 %v4696_v26, %v4693_v38  ;;  %12648 = vmatprep.subr.bf16.mxu1 %v13042_v34  ;;  %v11566_v55 = vadd.f32 %v11565_v37, %v11564_v48 }
 0xddc   : > { %v11567_v13 = vpop.f32.mrf.mxu0 }
 0xddd   : > { %12613 = vmatmul.mubr.bf16.gmra.mxu1 %v4798_v7  ;;  %v4701_v49 = vadd.f32 %v11566_v55, %v4610_v6  ;;  %v4619_v6 = vmul.f32 %v15963_v20, %v15821_v62 }
 0xdde   : > { %v11568_v28 = vpop.f32.mrf.mxu0  ;;  %12649 = vmatpush3.bf16.msra.mxu1 %v13042_v34  ;;  %v4616_v34 = vmul.f32 %v15963_v20, %v15782_v36 }
 0xddf   : > { %v11569_v53 = vadd.f32 %v11568_v28, %v11567_v13  ;;  %v4618_v28 = vmul.f32 %v15963_v20, %v15811_v5 }
 0xde0   : > { %v11570_v46 = vpop.f32.mrf.mxu0 }
 0xde1   : > { %v4704_v8 = vadd.f32 %v11569_v53, %v4611_v17 }
 0xde2   : > { %v11571_v45 = vpop.f32.mrf.mxu0 }
 0xde3   : > { %v4799_v1 = vpack.c.bf16 %v4704_v8, %v4701_v49  ;;  %v11572_v22 = vadd.f32 %v11571_v45, %v11570_v46 }
 0xde4   : > { %v11573_v54 = vpop.f32.mrf.mxu0 }
 0xde5   : > { %12616 = vmatprep.mubr.bf16.mxu1 %v4799_v1  ;;  %v4709_v10 = vadd.f32 %v11572_v22, %v4612_v33  ;;  %v4620_v22 = vmul.f32 %v15963_v20, %v15806_v19 }
 0xde6   : > { %v11574_v9 = vpop.f32.mrf.mxu0 }
 0xde7   : > { %v11575_v44 = vadd.f32 %v11574_v9, %v11573_v54  ;;  %v4621_v54 = vmul.f32 %v15963_v20, %v15816_v51  ;;  %v4623_v51 = vmul.f32 %v15963_v20, %v15845_v12  ;;  %v4624_v12 = vmul.f32 %v15963_v20, %v15830_v2 }
 0xde8   : > { %v11576_v29 = vpop.f32.mrf.mxu0 }
 0xde9   : > { %v4712_v59 = vadd.f32 %v11575_v44, %v4613_v27 }
 0xdea   : > { %v11577_v56 = vpop.f32.mrf.mxu0 }
 0xdeb   : > { %v4800_v14 = vpack.c.bf16 %v4712_v59, %v4709_v10  ;;  %v11578_v58 = vadd.f32 %v11577_v56, %v11576_v29  ;;  %v13043_v59 = vld [vmem:[#allocation13 + $0x110] sm:$0xff]  }
 0xdec   : > { %v11579_v15 = vpop.f32.mrf.mxu0  ;;  %12650 = vmatprep.subr.bf16.mxu1 %v13043_v59 }
 0xded   : > { %12617 = vmatmul.mubr.bf16.gmra.mxu1 %v4800_v14  ;;  %v4717_v43 = vadd.f32 %v11578_v58, %v4614_v18  ;;  %v4622_v14 = vmul.f32 %v15963_v20, %v15835_v47  ;;  %v13044_v18 = vld [vmem:[#allocation13 + $0x108] sm:$0xff]   ;;  %v4625_v47 = vmul.f32 %v15963_v20, %v15840_v61  ;;  %v4627_v61 = vmul.f32 %v15963_v20, %v15865_v50 }
 0xdee   : > { %v11580_v32 = vpop.f32.mrf.mxu0  ;;  %12651 = vmatpush3.bf16.msra.mxu1 %v13043_v59  ;;  %v4633_v59 = vmul.f32 %v15963_v20, %v15880_v35 }
 0xdef   : > { %v11581_v31 = vadd.f32 %v11580_v32, %v11579_v15  ;;  %12652 = vmatprep.subr.bf16.mxu1 %v13044_v18 }
 0xdf0   : > { %v11582_v16 = vpop.f32.mrf.mxu0 }
 0xdf1   : > { %v4720_v25 = vadd.f32 %v11581_v31, %v4615_v52 }
 0xdf2   : > { %v11583_v11 = vpop.f32.mrf.mxu0  ;;  %12653 = vmatpush3.bf16.msra.mxu1 %v13044_v18 }
 0xdf3   : > { %v4801_v3 = vpack.c.bf16 %v4720_v25, %v4717_v43  ;;  %v11584_v40 = vadd.f32 %v11583_v11, %v11582_v16  ;;  %v13045_v25 = vld [vmem:[#allocation13 + $0x100] sm:$0xff]  }
 0xdf4   : > { %v11585_v30 = vpop.f32.mrf.mxu0  ;;  %12654 = vmatprep.subr.bf16.mxu1 %v13045_v25 }
 0xdf5   : > { %12620 = vmatprep.mubr.bf16.mxu1 %v4801_v3  ;;  %v4725_v38 = vadd.f32 %v11584_v40, %v4616_v34 }
 0xdf6   : > { %v11586_v39 = vpop.f32.mrf.mxu0  ;;  %12655 = vmatpush3.bf16.msra.mxu1 %v13045_v25 }
 0xdf7   : > { %v11587_v23 = vadd.f32 %v11586_v39, %v11585_v30 }
 0xdf8   : > { %v11588_v48 = vpop.f32.mrf.mxu0 }
 0xdf9   : > { %v4728_v57 = vadd.f32 %v11587_v23, %v4617_v0 }
 0xdfa   : > { %v11589_v26 = vpop.f32.mrf.mxu0 }
 0xdfb   : > { %v4802_v37 = vpack.c.bf16 %v4728_v57, %v4725_v38  ;;  %v11590_v13 = vadd.f32 %v11589_v26, %v11588_v48  ;;  %v4626_v57 = vmul.f32 %v15963_v20, %v15855_v60 }
 0xdfc   : > { %v11591_v7 = vpop.f32.mrf.mxu0 }
 0xdfd   : > { %12621 = vmatmul.mubr.bf16.gmra.mxu1 %v4802_v37  ;;  %v4733_v53 = vadd.f32 %v11590_v13, %v4618_v28 }
 0xdfe   : > { %v11592_v55 = vpop.f32.mrf.mxu0 }
 0xdff   : > { %v11593_v63 = vadd.f32 %v11592_v55, %v11591_v7 }
 0xe00   : > { %v11594_v17 = vpop.f32.mrf.mxu0 }
 0xe01   : > { %v4736_v36 = vadd.f32 %v11593_v63, %v4619_v6 }
 0xe02   : > { %v11595_v46 = vpop.f32.mrf.mxu0 }
 0xe03   : > { %v4803_v49 = vpack.c.bf16 %v4736_v36, %v4733_v53  ;;  %v11596_v45 = vadd.f32 %v11595_v46, %v11594_v17  ;;  %v4629_v17 = vmul.f32 %v15963_v20, %v15860_v24  ;;  %v4628_v53 = vmul.f32 %v15963_v20, %v15850_v41 }
 0xe04   : > { %v11597_v8 = vpop.f32.mrf.mxu0 }
 0xe05   : > { %12624 = vmatprep.mubr.bf16.mxu1 %v4803_v49  ;;  %v4741_v27 = vadd.f32 %v11596_v45, %v4620_v22  ;;  %v4630_v22 = vmul.f32 %v15963_v20, %v15875_v42 }
 0xe06   : > { %v11598_v1 = vpop.f32.mrf.mxu0 }
 0xe07   : > { %v11599_v5 = vadd.f32 %v11598_v1, %v11597_v8 }
 0xe08   : > { %v11600_v9 = vpop.f32.mrf.mxu0 }
 0xe09   : > { %v4744_v62 = vadd.f32 %v11599_v5, %v4621_v54  ;;  %v4631_v5 = vmul.f32 %v15963_v20, %v15885_v21 }
 0xe0a   : > { %v11601_v33 = vpop.f32.mrf.mxu0 }
 0xe0b   : > { %v4804_v44 = vpack.c.bf16 %v4744_v62, %v4741_v27  ;;  %v11602_v10 = vadd.f32 %v11601_v33, %v11600_v9 }
 0xe0c   : > { %v11603_v29 = vpop.f32.mrf.mxu0 }
 0xe0d   : > { %12625 = vmatmul.mubr.bf16.gmra.mxu1 %v4804_v44  ;;  %v4749_v58 = vadd.f32 %v11602_v10, %v4622_v14 }
 0xe0e   : > { %v11604_v56 = vpop.f32.mrf.mxu0 }
 0xe0f   : > { %v11605_v15 = vadd.f32 %v11604_v56, %v11603_v29  ;;  %v4632_v56 = vmul.f32 %v15963_v20, %v15870_v4 }
 0xe10   : > { %v11606_v19 = vpop.f32.mrf.mxu0 }
 0xe11   : > { %v4752_v32 = vadd.f32 %v11605_v15, %v4623_v51 }
 0xe12   : > { %v11607_v52 = vpop.f32.mrf.mxu0 }
 0xe13   : > { %v4805_v31 = vpack.c.bf16 %v4752_v32, %v4749_v58  ;;  %v11608_v43 = vadd.f32 %v11607_v52, %v11606_v19  ;;  %v16032_v58 = vld [vmem:[%s17585_s26 + $0x4] ss:$0 sm:$0xff] }
 0xe14   : > { %v11609_v16 = vpop.f32.mrf.mxu0 }
 0xe15   : > { %12628 = vmatprep.mubr.bf16.mxu1 %v4805_v31  ;;  %v4757_v40 = vadd.f32 %v11608_v43, %v4624_v12 }
 0xe16   : > { %v11610_v11 = vpop.f32.mrf.mxu0 }
 0xe17   : > { %v11611_v3 = vadd.f32 %v11610_v11, %v11609_v16 }
 0xe18   : > { %v11612_v30 = vpop.f32.mrf.mxu0 }
 0xe19   : > { %v4760_v39 = vadd.f32 %v11611_v3, %v4625_v47 }
 0xe1a   : > { %v11613_v0 = vpop.f32.mrf.mxu0 }
 0xe1b   : > { %v4806_v34 = vpack.c.bf16 %v4760_v39, %v4757_v40  ;;  %v11614_v48 = vadd.f32 %v11613_v0, %v11612_v30 }
 0xe1c   : > { %v11615_v23 = vpop.f32.mrf.mxu0 }
 0xe1d   : > { %12629 = vmatmul.mubr.bf16.gmra.mxu1 %v4806_v34  ;;  %v4765_v37 = vadd.f32 %v11614_v48, %v4626_v57 }
 0xe1e   : > { %v11616_v38 = vpop.f32.mrf.mxu0 }
 0xe1f   : > { %v11617_v26 = vadd.f32 %v11616_v38, %v11615_v23 }
 0xe20   : > { %v11618_v2 = vpop.f32.mrf.mxu0 }
 0xe21   : > { %v4768_v7 = vadd.f32 %v11617_v26, %v4627_v61 }
 0xe22   : > { %v11619_v13 = vpop.f32.mrf.mxu0 }
 0xe23   : > { %v4807_v55 = vpack.c.bf16 %v4768_v7, %v4765_v37  ;;  %v11620_v6 = vadd.f32 %v11619_v13, %v11618_v2 }
 0xe24   : > { %v11621_v28 = vpop.f32.mrf.mxu0 }
 0xe25   : > { %12632 = vmatprep.mubr.bf16.mxu1 %v4807_v55  ;;  %v4773_v46 = vadd.f32 %v11620_v6, %v4628_v53 }
 0xe26   : > { %v11622_v63 = vpop.f32.mrf.mxu0 }
 0xe27   : > { %v11623_v60 = vadd.f32 %v11622_v63, %v11621_v28 }
 0xe28   : > { %v11624_v36 = vpop.f32.mrf.mxu0 }
 0xe29   : > { %v4776_v50 = vadd.f32 %v11623_v60, %v4629_v17 }
 0xe2a   : > { %v11625_v49 = vpop.f32.mrf.mxu0 }
 0xe2b   : > { %v4808_v8 = vpack.c.bf16 %v4776_v50, %v4773_v46  ;;  %v11626_v1 = vadd.f32 %v11625_v49, %v11624_v36 }
 0xe2c   : > { %v11627_v45 = vpop.f32.mrf.mxu0 }
 0xe2d   : > { %12633 = vmatmul.mubr.bf16.gmra.mxu1 %v4808_v8  ;;  %v4781_v27 = vadd.f32 %v11626_v1, %v4630_v22 }
 0xe2e   : > { %v11628_v54 = vpop.f32.mrf.mxu0 }
 0xe2f   : > { %v11629_v24 = vadd.f32 %v11628_v54, %v11627_v45 }
 0xe30   : > { %v11630_v9 = vpop.f32.mrf.mxu0 }
 0xe31   : > { %v4784_v41 = vadd.f32 %v11629_v24, %v4631_v5 }
 0xe32   : > { %v11631_v62 = vpop.f32.mrf.mxu0 }
 0xe33   : > { %v4809_v33 = vpack.c.bf16 %v4784_v41, %v4781_v27  ;;  %v11632_v29 = vadd.f32 %v11631_v62, %v11630_v9 }
 0xe34   : > { %v11633_v44 = vpop.f32.mrf.mxu0 }
 0xe35   : > { %12636 = vmatprep.mubr.bf16.mxu1 %v4809_v33  ;;  %v4789_v14 = vadd.f32 %v11632_v29, %v4632_v56 }
 0xe36   : > { %v11634_v10 = vpop.f32.mrf.mxu0 }
 0xe37   : > { %v11635_v42 = vadd.f32 %v11634_v10, %v11633_v44 }
 0xe39   : > { %v4792_v51 = vadd.f32 %v11635_v42, %v4633_v59 }
 0xe3b   : > { %v4810_v21 = vpack.c.bf16 %v4792_v51, %v4789_v14 }
 0xe3d   : > { %12637 = vmatmul.mubr.bf16.gmra.mxu1 %v4810_v21 }
 0xe8d   : > { %v12610_v15 = vpop.f32.mrf.mxu1 }
 0xe8e   : > { %v4924_v52 = vadd.f32 %v12610_v15, %v16032_v58 }
 0xe8f   : > { %v4915_v19 = vpop.f32.mrf.mxu1 }
 0xe90   : > { %v4916_v18 = vadd.f32 %v16032_v58, %v4915_v19  ;;  %v5044_v25 = vmax.f32 %v4924_v52, 0.0 }
 0xe91   : > { %v12611_v32 = vpop.f32.mrf.mxu1 }
 0xe92   : > { %v4927_v35 = vadd.f32 %v12611_v32, %v16032_v58  ;;  %v5042_v16 = vmax.f32 %v4916_v18, 0.0 }
 0xe93   : > { %v4918_v4 = vpop.f32.mrf.mxu1 }
 0xe94   : > { %v4919_v20 = vadd.f32 %v16032_v58, %v4918_v4  ;;  %v5045_v31 = vmax.f32 %v4927_v35, 0.0 }
 0xe96   : > { %v5043_v43 = vmax.f32 %v4919_v20, 0.0  ;;  %v5075_v47 = vpack.c.bf16 %v5045_v31, %v5044_v25 }
 0xe98   : > { %v5074_v11 = vpack.c.bf16 %v5043_v43, %v5042_v16 }
 0xe9a   : > { %12656 = vmatprep.mubr.bf16.mxu1 %v5074_v11 }
 0xe9b   : > { %12657 = vmatmul.mubr.bf16.vlgmr.msra.gmra.mxu1 %v5075_v47 }
 0xe9d   : > { %v12614_v12 = vpop.f32.mrf.mxu1 }
 0xe9e   : > { %v4940_v0 = vadd.f32 %v12614_v12, %v16032_v58 }
 0xe9f   : > { %v4931_v3 = vpop.f32.mrf.mxu1 }
 0xea0   : > { %v4932_v40 = vadd.f32 %v16032_v58, %v4931_v3  ;;  %v5048_v61 = vmax.f32 %v4940_v0, 0.0 }
 0xea1   : > { %v12615_v30 = vpop.f32.mrf.mxu1 }
 0xea2   : > { %v4943_v39 = vadd.f32 %v12615_v30, %v16032_v58  ;;  %v5046_v38 = vmax.f32 %v4932_v40, 0.0 }
 0xea3   : > { %v4934_v34 = vpop.f32.mrf.mxu1 }
 0xea4   : > { %v4935_v23 = vadd.f32 %v16032_v58, %v4934_v34  ;;  %v5049_v48 = vmax.f32 %v4943_v39, 0.0 }
 0xea6   : > { %v5047_v57 = vmax.f32 %v4935_v23, 0.0  ;;  %v5077_v2 = vpack.c.bf16 %v5049_v48, %v5048_v61 }
 0xea8   : > { %v5076_v26 = vpack.c.bf16 %v5047_v57, %v5046_v38 }
 0xeaa   : > { %12660 = vmatprep.mubr.bf16.mxu1 %v5076_v26 }
 0xeab   : > { %12661 = vmatmul.mubr.bf16.gmra.mxu1 %v5077_v2 }
 0xead   : > { %v12618_v37 = vpop.f32.mrf.mxu1 }
 0xeae   : > { %v4956_v6 = vadd.f32 %v12618_v37, %v16032_v58 }
 0xeaf   : > { %v4947_v7 = vpop.f32.mrf.mxu1 }
 0xeb0   : > { %v4948_v55 = vadd.f32 %v16032_v58, %v4947_v7  ;;  %v5052_v46 = vmax.f32 %v4956_v6, 0.0 }
 0xeb1   : > { %v12619_v13 = vpop.f32.mrf.mxu1 }
 0xeb2   : > { %v4959_v28 = vadd.f32 %v12619_v13, %v16032_v58  ;;  %v5050_v60 = vmax.f32 %v4948_v55, 0.0 }
 0xeb3   : > { %v4950_v63 = vpop.f32.mrf.mxu1 }
 0xeb4   : > { %v4951_v17 = vadd.f32 %v16032_v58, %v4950_v63  ;;  %v5053_v53 = vmax.f32 %v4959_v28, 0.0 }
 0xeb6   : > { %v5051_v36 = vmax.f32 %v4951_v17, 0.0  ;;  %v5079_v49 = vpack.c.bf16 %v5053_v53, %v5052_v46 }
 0xeb8   : > { %v5078_v50 = vpack.c.bf16 %v5051_v36, %v5050_v60 }
 0xeba   : > { %12664 = vmatprep.mubr.bf16.mxu1 %v5078_v50 }
 0xebb   : > { %12665 = vmatmul.mubr.bf16.gmra.mxu1 %v5079_v49 }
 0xebd   : > { %v12622_v8 = vpop.f32.mrf.mxu1 }
 0xebe   : > { %v4972_v5 = vadd.f32 %v12622_v8, %v16032_v58 }
 0xebf   : > { %v4963_v45 = vpop.f32.mrf.mxu1 }
 0xec0   : > { %v4964_v54 = vadd.f32 %v16032_v58, %v4963_v45  ;;  %v5056_v33 = vmax.f32 %v4972_v5, 0.0 }
 0xec1   : > { %v12623_v1 = vpop.f32.mrf.mxu1 }
 0xec2   : > { %v4975_v22 = vadd.f32 %v12623_v1, %v16032_v58  ;;  %v5054_v41 = vmax.f32 %v4964_v54, 0.0 }
 0xec3   : > { %v4966_v24 = vpop.f32.mrf.mxu1 }
 0xec4   : > { %v4967_v9 = vadd.f32 %v16032_v58, %v4966_v24  ;;  %v5057_v27 = vmax.f32 %v4975_v22, 0.0 }
 0xec6   : > { %v5055_v62 = vmax.f32 %v4967_v9, 0.0  ;;  %v5081_v29 = vpack.c.bf16 %v5057_v27, %v5056_v33  ;;  %v16069_v9 = vld [vmem:[%s17586_s19 + $0x4] ss:$0 sm:$0xff] }
 0xec8   : > { %v5080_v44 = vpack.c.bf16 %v5055_v62, %v5054_v41 }
 0xeca   : > { %12668 = vmatprep.mubr.bf16.mxu1 %v5080_v44 }
 0xecb   : > { %12669 = vmatmul.mubr.bf16.gmra.mxu1 %v5081_v29 }
 0xecd   : > { %v12626_v10 = vpop.f32.mrf.mxu1 }
 0xece   : > { %v4988_v51 = vadd.f32 %v12626_v10, %v16032_v58 }
 0xecf   : > { %v4979_v59 = vpop.f32.mrf.mxu1 }
 0xed0   : > { %v4980_v42 = vadd.f32 %v16032_v58, %v4979_v59  ;;  %v5060_v35 = vmax.f32 %v4988_v51, 0.0 }
 0xed1   : > { %v12627_v56 = vpop.f32.mrf.mxu1 }
 0xed2   : > { %v4991_v14 = vadd.f32 %v12627_v56, %v16032_v58  ;;  %v5058_v32 = vmax.f32 %v4980_v42, 0.0 }
 0xed3   : > { %v4982_v21 = vpop.f32.mrf.mxu1 }
 0xed4   : > { %v4983_v15 = vadd.f32 %v16032_v58, %v4982_v21  ;;  %v5061_v19 = vmax.f32 %v4991_v14, 0.0 }
 0xed6   : > { %v5059_v18 = vmax.f32 %v4983_v15, 0.0  ;;  %v5083_v4 = vpack.c.bf16 %v5061_v19, %v5060_v35 }
 0xed8   : > { %v5082_v52 = vpack.c.bf16 %v5059_v18, %v5058_v32 }
 0xeda   : > { %12672 = vmatprep.mubr.bf16.mxu1 %v5082_v52 }
 0xedb   : > { %12673 = vmatmul.mubr.bf16.gmra.mxu1 %v5083_v4 }
 0xedd   : > { %v12630_v20 = vpop.f32.mrf.mxu1 }
 0xede   : > { %v5004_v11 = vadd.f32 %v12630_v20, %v16032_v58 }
 0xedf   : > { %v4995_v31 = vpop.f32.mrf.mxu1 }
 0xee0   : > { %v4996_v43 = vadd.f32 %v16032_v58, %v4995_v31  ;;  %v5064_v39 = vmax.f32 %v5004_v11, 0.0 }
 0xee1   : > { %v12631_v16 = vpop.f32.mrf.mxu1 }
 0xee2   : > { %v5007_v25 = vadd.f32 %v12631_v16, %v16032_v58  ;;  %v5062_v30 = vmax.f32 %v4996_v43, 0.0 }
 0xee3   : > { %v4998_v47 = vpop.f32.mrf.mxu1 }
 0xee4   : > { %v4999_v12 = vadd.f32 %v16032_v58, %v4998_v47  ;;  %v5065_v3 = vmax.f32 %v5007_v25, 0.0 }
 0xee6   : > { %v5063_v40 = vmax.f32 %v4999_v12, 0.0  ;;  %v5085_v34 = vpack.c.bf16 %v5065_v3, %v5064_v39 }
 0xee8   : > { %v5084_v0 = vpack.c.bf16 %v5063_v40, %v5062_v30 }
 0xeea   : > { %12676 = vmatprep.mubr.bf16.mxu1 %v5084_v0 }
 0xeeb   : > { %12677 = vmatmul.mubr.bf16.gmra.mxu1 %v5085_v34 }
 0xeed   : > { %v12634_v23 = vpop.f32.mrf.mxu1 }
 0xeee   : > { %v5020_v26 = vadd.f32 %v12634_v23, %v16032_v58 }
 0xeef   : > { %v5011_v48 = vpop.f32.mrf.mxu1 }
 0xef0   : > { %v5012_v57 = vadd.f32 %v16032_v58, %v5011_v48  ;;  %v5068_v28 = vmax.f32 %v5020_v26, 0.0 }
 0xef1   : > { %v12635_v38 = vpop.f32.mrf.mxu1 }
 0xef2   : > { %v5023_v61 = vadd.f32 %v12635_v38, %v16032_v58  ;;  %v5066_v13 = vmax.f32 %v5012_v57, 0.0 }
 0xef3   : > { %v5014_v2 = vpop.f32.mrf.mxu1 }
 0xef4   : > { %v5015_v37 = vadd.f32 %v16032_v58, %v5014_v2  ;;  %v5069_v7 = vmax.f32 %v5023_v61, 0.0 }
 0xef6   : > { %v5067_v55 = vmax.f32 %v5015_v37, 0.0  ;;  %v5087_v63 = vpack.c.bf16 %v5069_v7, %v5068_v28 }
 0xef8   : > { %v5086_v6 = vpack.c.bf16 %v5067_v55, %v5066_v13 }
 0xefa   : > { %12680 = vmatprep.mubr.bf16.mxu1 %v5086_v6 }
 0xefb   : > { %12681 = vmatmul.mubr.bf16.gmra.mxu1 %v5087_v63 }
 0xefd   : > { %v12638_v17 = vpop.f32.mrf.mxu1 }
 0xefe   : > { %v5036_v50 = vadd.f32 %v12638_v17, %v16032_v58 }
 0xeff   : > { %v5027_v53 = vpop.f32.mrf.mxu1 }
 0xf00   : > { %v5028_v36 = vadd.f32 %v16032_v58, %v5027_v53  ;;  %v5072_v22 = vmax.f32 %v5036_v50, 0.0 }
 0xf01   : > { %v12639_v60 = vpop.f32.mrf.mxu1 }
 0xf02   : > { %v5039_v46 = vadd.f32 %v12639_v60, %v16032_v58  ;;  %v5070_v1 = vmax.f32 %v5028_v36, 0.0 }
 0xf03   : > { %v5030_v49 = vpop.f32.mrf.mxu1 }
 0xf04   : > { %v5031_v8 = vadd.f32 %v16032_v58, %v5030_v49  ;;  %v5073_v45 = vmax.f32 %v5039_v46, 0.0 }
 0xf06   : > { %v5071_v54 = vmax.f32 %v5031_v8, 0.0  ;;  %v5089_v24 = vpack.c.bf16 %v5073_v45, %v5072_v22 }
 0xf08   : > { %v5088_v5 = vpack.c.bf16 %v5071_v54, %v5070_v1 }
 0xf0a   : > { %12684 = vmatprep.mubr.bf16.mxu1 %v5088_v5 }
 0xf0b   : > { %12685 = vmatmul.mubr.bf16.gmra.mxu1 %v5089_v24 }
 0xf5b   : > { %v12658_v27 = vpop.f32.mrf.mxu1 }
 0xf5c   : > { %v5203_v41 = vadd.f32 %v12658_v27, %v16069_v9 }
 0xf5d   : > { %v5194_v62 = vpop.f32.mrf.mxu1 }
 0xf5e   : > { %v16072_v33 = vmax.f32 %v5203_v41, 0.0  ;;  %v5195_v58 = vadd.f32 %v16069_v9, %v5194_v62 }
 0xf5f   : > { %v12659_v44 = vpop.f32.mrf.mxu1 }
 0xf60   : > { %v10822_v29 = vpack.c.bf16 %v16072_v33, %v16072_v33  ;;  %v16077_v10 = vmax.f32 %v5195_v58, 0.0  ;;  %v5206_v59 = vadd.f32 %v12659_v44, %v16069_v9 }
 0xf61   : > { %v5197_v56 = vpop.f32.mrf.mxu1 }
 0xf62   : > { %5483 = vst [vmem:[#allocation2 + $0x40] sm:$0xf] %v10822_v29  ;;  %v10820_v42 = vpack.c.bf16 %v16077_v10, %v16077_v10  ;;  %v16082_v14 = vmax.f32 %v5206_v59, 0.0  ;;  %v5198_v51 = vadd.f32 %v16069_v9, %v5197_v56 }
 0xf64   : > { %5481 = vst [vmem:[#allocation2 + $0x10] sm:$0xf] %v10820_v42  ;;  %v5354_v21 = vpack.c.bf16 %v16082_v14, %v16072_v33  ;;  %v10823_v15 = vpack.c.bf16 %v16082_v14, %v16082_v14  ;;  %v16089_v19 = vmax.f32 %v5198_v51, 0.0 }
 0xf66   : > { %5484 = vst [vmem:[#allocation2 + $0x58] sm:$0xf] %v10823_v15  ;;  %v5353_v32 = vpack.c.bf16 %v16089_v19, %v16077_v10  ;;  %v10821_v18 = vpack.c.bf16 %v16089_v19, %v16089_v19 }
 0xf68   : > { %5482 = vst [vmem:[#allocation2 + $0x28] sm:$0xf] %v10821_v18 }
 0xf6b   : > { %v12662_v35 = vpop.f32.mrf.mxu1 }
 0xf6c   : > { %v5219_v52 = vadd.f32 %v12662_v35, %v16069_v9 }
 0xf6d   : > { %v5210_v4 = vpop.f32.mrf.mxu1 }
 0xf6e   : > { %v16096_v20 = vmax.f32 %v5219_v52, 0.0  ;;  %v5211_v31 = vadd.f32 %v16069_v9, %v5210_v4 }
 0xf6f   : > { %v12663_v16 = vpop.f32.mrf.mxu1 }
 0xf70   : > { %v10826_v43 = vpack.c.bf16 %v16096_v20, %v16096_v20  ;;  %v16101_v25 = vmax.f32 %v5211_v31, 0.0  ;;  %v5222_v11 = vadd.f32 %v12663_v16, %v16069_v9 }
 0xf71   : > { %v5213_v47 = vpop.f32.mrf.mxu1 }
 0xf72   : > { %5487 = vst [vmem:[#allocation2 + $0xa0] sm:$0xf] %v10826_v43  ;;  %v10824_v12 = vpack.c.bf16 %v16101_v25, %v16101_v25  ;;  %v16106_v3 = vmax.f32 %v5222_v11, 0.0  ;;  %v5214_v30 = vadd.f32 %v16069_v9, %v5213_v47 }
 0xf74   : > { %5485 = vst [vmem:[#allocation2 + $0x70] sm:$0xf] %v10824_v12  ;;  %v5356_v40 = vpack.c.bf16 %v16106_v3, %v16096_v20  ;;  %v10827_v39 = vpack.c.bf16 %v16106_v3, %v16106_v3  ;;  %v16113_v0 = vmax.f32 %v5214_v30, 0.0 }
 0xf76   : > { %5488 = vst [vmem:[#allocation2 + $0xb8] sm:$0xf] %v10827_v39  ;;  %v5355_v34 = vpack.c.bf16 %v16113_v0, %v16101_v25  ;;  %v10825_v23 = vpack.c.bf16 %v16113_v0, %v16113_v0 }
 0xf78   : > { %5486 = vst [vmem:[#allocation2 + $0x88] sm:$0xf] %v10825_v23 }
 0xf7b   : > { %v12666_v48 = vpop.f32.mrf.mxu1 }
 0xf7c   : > { %v5235_v38 = vadd.f32 %v12666_v48, %v16069_v9 }
 0xf7d   : > { %v5226_v57 = vpop.f32.mrf.mxu1 }
 0xf7e   : > { %v16120_v61 = vmax.f32 %v5235_v38, 0.0  ;;  %v5227_v26 = vadd.f32 %v16069_v9, %v5226_v57 }
 0xf7f   : > { %v12667_v2 = vpop.f32.mrf.mxu1 }
 0xf80   : > { %v10830_v37 = vpack.c.bf16 %v16120_v61, %v16120_v61  ;;  %v16125_v7 = vmax.f32 %v5227_v26, 0.0  ;;  %v5238_v13 = vadd.f32 %v12667_v2, %v16069_v9 }
 0xf81   : > { %v5229_v55 = vpop.f32.mrf.mxu1 }
 0xf82   : > { %5491 = vst [vmem:[#allocation2 + $0x100] sm:$0xf] %v10830_v37  ;;  %v10828_v28 = vpack.c.bf16 %v16125_v7, %v16125_v7  ;;  %v16130_v6 = vmax.f32 %v5238_v13, 0.0  ;;  %v5230_v63 = vadd.f32 %v16069_v9, %v5229_v55 }
 0xf84   : > { %5489 = vst [vmem:[#allocation2 + $0xd0] sm:$0xf] %v10828_v28  ;;  %v5358_v17 = vpack.c.bf16 %v16130_v6, %v16120_v61  ;;  %v10831_v53 = vpack.c.bf16 %v16130_v6, %v16130_v6  ;;  %v16137_v60 = vmax.f32 %v5230_v63, 0.0 }
 0xf86   : > { %5492 = vst [vmem:[#allocation2 + $0x118] sm:$0xf] %v10831_v53  ;;  %v5357_v36 = vpack.c.bf16 %v16137_v60, %v16125_v7  ;;  %v10829_v46 = vpack.c.bf16 %v16137_v60, %v16137_v60 }
 0xf88   : > { %5490 = vst [vmem:[#allocation2 + $0xe8] sm:$0xf] %v10829_v46 }
 0xf8b   : > { %v12670_v50 = vpop.f32.mrf.mxu1 }
 0xf8c   : > { %v5251_v49 = vadd.f32 %v12670_v50, %v16069_v9 }
 0xf8d   : > { %v5242_v8 = vpop.f32.mrf.mxu1 }
 0xf8e   : > { %v16144_v45 = vmax.f32 %v5251_v49, 0.0  ;;  %v5243_v1 = vadd.f32 %v16069_v9, %v5242_v8 }
 0xf8f   : > { %v12671_v54 = vpop.f32.mrf.mxu1 }
 0xf90   : > { %v10834_v22 = vpack.c.bf16 %v16144_v45, %v16144_v45  ;;  %v16149_v5 = vmax.f32 %v5243_v1, 0.0  ;;  %v5254_v24 = vadd.f32 %v12671_v54, %v16069_v9 }
 0xf91   : > { %v5245_v27 = vpop.f32.mrf.mxu1 }
 0xf92   : > { %5495 = vst [vmem:[#allocation2 + $0x160] sm:$0xf] %v10834_v22  ;;  %v10832_v41 = vpack.c.bf16 %v16149_v5, %v16149_v5  ;;  %v16154_v62 = vmax.f32 %v5254_v24, 0.0  ;;  %v5246_v58 = vadd.f32 %v16069_v9, %v5245_v27 }
 0xf94   : > { %5493 = vst [vmem:[#allocation2 + $0x130] sm:$0xf] %v10832_v41  ;;  %v5360_v44 = vpack.c.bf16 %v16154_v62, %v16144_v45  ;;  %v10835_v29 = vpack.c.bf16 %v16154_v62, %v16154_v62  ;;  %v16161_v59 = vmax.f32 %v5246_v58, 0.0 }
 0xf96   : > { %5496 = vst [vmem:[#allocation2 + $0x178] sm:$0xf] %v10835_v29  ;;  %v5359_v56 = vpack.c.bf16 %v16161_v59, %v16149_v5  ;;  %v10833_v42 = vpack.c.bf16 %v16161_v59, %v16161_v59 }
 0xf98   : > { %5494 = vst [vmem:[#allocation2 + $0x148] sm:$0xf] %v10833_v42 }
 0xf9b   : > { %v12674_v51 = vpop.f32.mrf.mxu1 }
 0xf9c   : > { %v5267_v15 = vadd.f32 %v12674_v51, %v16069_v9 }
 0xf9d   : > { %v5258_v18 = vpop.f32.mrf.mxu1 }
 0xf9e   : > { %v16168_v35 = vmax.f32 %v5267_v15, 0.0  ;;  %v5259_v52 = vadd.f32 %v16069_v9, %v5258_v18 }
 0xf9f   : > { %v12675_v4 = vpop.f32.mrf.mxu1 }
 0xfa0   : > { %v10838_v31 = vpack.c.bf16 %v16168_v35, %v16168_v35  ;;  %v16173_v16 = vmax.f32 %v5259_v52, 0.0  ;;  %v5270_v43 = vadd.f32 %v12675_v4, %v16069_v9 }
 0xfa1   : > { %v5261_v11 = vpop.f32.mrf.mxu1 }
 0xfa2   : > { %5499 = vst [vmem:[#allocation2 + $0x1c0] sm:$0xf] %v10838_v31  ;;  %v10836_v47 = vpack.c.bf16 %v16173_v16, %v16173_v16  ;;  %v16178_v12 = vmax.f32 %v5270_v43, 0.0  ;;  %v5262_v30 = vadd.f32 %v16069_v9, %v5261_v11 }
 0xfa4   : > { %5497 = vst [vmem:[#allocation2 + $0x190] sm:$0xf] %v10836_v47  ;;  %v10839_v39 = vpack.c.bf16 %v16178_v12, %v16178_v12  ;;  %v16183_v23 = vmax.f32 %v5262_v30, 0.0  ;;  %v5362_v48 = vpack.c.bf16 %v16178_v12, %v16168_v35 }
 0xfa6   : > { %5500 = vst [vmem:[#allocation2 + $0x1d8] sm:$0xf] %v10839_v39  ;;  %v10837_v38 = vpack.c.bf16 %v16183_v23, %v16183_v23  ;;  %v5361_v57 = vpack.c.bf16 %v16183_v23, %v16173_v16 }
 0xfa8   : > { %5498 = vst [vmem:[#allocation2 + $0x1a8] sm:$0xf] %v10837_v38 }
 0xfab   : > { %v12678_v26 = vpop.f32.mrf.mxu1 }
 0xfac   : > { %v5283_v2 = vadd.f32 %v12678_v26, %v16069_v9 }
 0xfad   : > { %v5274_v37 = vpop.f32.mrf.mxu1 }
 0xfae   : > { %v16192_v13 = vmax.f32 %v5283_v2, 0.0  ;;  %v5275_v55 = vadd.f32 %v16069_v9, %v5274_v37 }
 0xfaf   : > { %v12679_v28 = vpop.f32.mrf.mxu1 }
 0xfb0   : > { %v10842_v63 = vpack.c.bf16 %v16192_v13, %v16192_v13  ;;  %v16197_v53 = vmax.f32 %v5275_v55, 0.0  ;;  %v5286_v46 = vadd.f32 %v12679_v28, %v16069_v9 }
 0xfb1   : > { %v5277_v50 = vpop.f32.mrf.mxu1 }
 0xfb2   : > { %5503 = vst [vmem:[#allocation2 + $0x220] sm:$0xf] %v10842_v63  ;;  %v10840_v49 = vpack.c.bf16 %v16197_v53, %v16197_v53  ;;  %v16202_v8 = vmax.f32 %v5286_v46, 0.0  ;;  %v5278_v1 = vadd.f32 %v16069_v9, %v5277_v50 }
 0xfb4   : > { %5501 = vst [vmem:[#allocation2 + $0x1f0] sm:$0xf] %v10840_v49  ;;  %v10843_v54 = vpack.c.bf16 %v16202_v8, %v16202_v8  ;;  %v16207_v22 = vmax.f32 %v5278_v1, 0.0 }
 0xfb6   : > { %5504 = vst [vmem:[#allocation2 + $0x238] sm:$0xf] %v10843_v54  ;;  %v10841_v24 = vpack.c.bf16 %v16207_v22, %v16207_v22 }
 0xfb8   : > { %5502 = vst [vmem:[#allocation2 + $0x208] sm:$0xf] %v10841_v24 }
 0xfbb   : > { %v12682_v27 = vpop.f32.mrf.mxu1 }
 0xfbc   : > { %v5299_v41 = vadd.f32 %v12682_v27, %v16069_v9 }
 0xfbd   : > { %v5290_v58 = vpop.f32.mrf.mxu1 }
 0xfbe   : > { %v16212_v29 = vmax.f32 %v5299_v41, 0.0  ;;  %v5291_v42 = vadd.f32 %v16069_v9, %v5290_v58 }
 0xfbf   : > { %v12683_v51 = vpop.f32.mrf.mxu1 }
 0xfc0   : > { %v10846_v15 = vpack.c.bf16 %v16212_v29, %v16212_v29  ;;  %v16217_v18 = vmax.f32 %v5291_v42, 0.0  ;;  %v5302_v52 = vadd.f32 %v12683_v51, %v16069_v9 }
 0xfc1   : > { %v5293_v4 = vpop.f32.mrf.mxu1 }
 0xfc2   : > { %5507 = vst [vmem:[#allocation2 + $0x280] sm:$0xf] %v10846_v15  ;;  %v10844_v31 = vpack.c.bf16 %v16217_v18, %v16217_v18  ;;  %v16222_v43 = vmax.f32 %v5302_v52, 0.0  ;;  %v5294_v11 = vadd.f32 %v16069_v9, %v5293_v4  ;;  %v13054_v52 = vld [vmem:[#allocation14 + $0x7c] ss:$12 sps:$4 sm:$0xff]  }
 0xfc3   : > { %v13057_v4 = vld [vmem:[#allocation14 + $0x64] ss:$12 sps:$4 sm:$0xff]  }
 0xfc4   : > { %5505 = vst [vmem:[#allocation2 + $0x250] sm:$0xf] %v10844_v31  ;;  %v10847_v47 = vpack.c.bf16 %v16222_v43, %v16222_v43  ;;  %v16227_v30 = vmax.f32 %v5294_v11, 0.0  ;;  %v13656_v31 = vld [vmem:[%s14422_s5 + $0x24] ss:$8 sps:$4 sm:$0xff]  }
 0xfc5   : > { %v13055_v11 = vld [vmem:[#allocation14 + $0x60] ss:$12 sps:$4 sm:$0xff]  }
 0xfc6   : > { %5508 = vst [vmem:[#allocation2 + $0x298] sm:$0xf] %v10847_v47  ;;  %v10845_v39 = vpack.c.bf16 %v16227_v30, %v16227_v30  ;;  %v5365_v15 = vpack.c.bf16 %v16227_v30, %v16217_v18  ;;  %v13060_v47 = vld [vmem:[#allocation14 + $0x4c] ss:$12 sps:$4 sm:$0xff]  }
 0xfc8   : > { %5506 = vst [vmem:[#allocation2 + $0x268] sm:$0xf] %v10845_v39  ;;  %v13058_v39 = vld [vmem:[#allocation14 + $0x48] ss:$12 sps:$4 sm:$0xff]  }
 0xfcb   : > { %v12686_v38 = vpop.f32.mrf.mxu1 }
 0xfcc   : > { %v5315_v26 = vadd.f32 %v12686_v38, %v16069_v9  ;;  %v13063_v38 = vld [vmem:[#allocation14 + $0x34] ss:$12 sps:$4 sm:$0xff]  }
 0xfcd   : > { %v5306_v2 = vpop.f32.mrf.mxu1 }
 0xfce   : > { %v16232_v37 = vmax.f32 %v5315_v26, 0.0  ;;  %v5307_v55 = vadd.f32 %v16069_v9, %v5306_v2  ;;  %v13657_v26 = vld [vmem:[%s14422_s5 + $0x20] ss:$8 sps:$4 sm:$0xff]   ;;  %v13658_v2 = vld [vmem:[%s14422_s5 + $0x34] ss:$8 sps:$4 sm:$0xff]  }
 0xfcf   : > { %v12687_v28 = vpop.f32.mrf.mxu1 }
 0xfd0   : > { %v10850_v63 = vpack.c.bf16 %v16232_v37, %v16232_v37  ;;  %v16237_v46 = vmax.f32 %v5307_v55, 0.0  ;;  %v5318_v50 = vadd.f32 %v12687_v28, %v16069_v9  ;;  %v13061_v55 = vld [vmem:[#allocation14 + $0x30] ss:$12 sps:$4 sm:$0xff]  }
 0xfd1   : > { %v5309_v49 = vpop.f32.mrf.mxu1  ;;  %v13066_v28 = vld [vmem:[#allocation14 + $0x1c] ss:$12 sps:$4 sm:$0xff]  }
 0xfd2   : > { %5511 = vst [vmem:[#allocation2 + $0x2e0] sm:$0xf] %v10850_v63  ;;  %v10848_v1 = vpack.c.bf16 %v16237_v46, %v16237_v46  ;;  %v16242_v54 = vmax.f32 %v5318_v50, 0.0  ;;  %v5310_v24 = vadd.f32 %v16069_v9, %v5309_v49  ;;  %v5366_v9 = vpack.c.bf16 %v16222_v43, %v16212_v29  ;;  %v13064_v63 = vld [vmem:[#allocation14 + $0x18] ss:$12 sps:$4 sm:$0xff]  }
 0xfd3   : > { %v13069_v50 = vld [vmem:[#allocation14 + $0x4] ss:$12 sps:$4 sm:$0xff]  }
 0xfd4   : > { %5509 = vst [vmem:[#allocation2 + $0x2b0] sm:$0xf] %v10848_v1  ;;  %v10851_v27 = vpack.c.bf16 %v16242_v54, %v16242_v54  ;;  %v16247_v41 = vmax.f32 %v5310_v24, 0.0  ;;  %v5368_v58 = vpack.c.bf16 %v16242_v54, %v16232_v37  ;;  %v13659_v49 = vld [vmem:[%s14422_s5 + $0x30] ss:$8 sps:$4 sm:$0xff]  }
 0xfd5   : > { %v13660_v1 = vld [vmem:[%s14422_s5 + $0x44] ss:$8 sps:$4 sm:$0xff]  }
 0xfd6   : > { %5512 = vst [vmem:[#allocation2 + $0x2f8] sm:$0xf] %v10851_v27  ;;  %v10849_v42 = vpack.c.bf16 %v16247_v41, %v16247_v41  ;;  %11684 = vmatprep.subr.bf16.mxu0 %v5368_v58  ;;  %v5367_v51 = vpack.c.bf16 %v16247_v41, %v16237_v46  ;;  %v13067_v24 = vld [vmem:[#allocation14] ss:$12 sps:$4 sm:$0xff]   ;;  %v13070_v58 = vld [vmem:[#allocation14 + $0x168] ss:$12 sps:$4 sm:$0xff]  }
 0xfd7   : > { %11685 = vmatpush3.bf16.msra.mxu0 %v5360_v44  ;;  %v5364_v44 = vpack.c.bf16 %v16202_v8, %v16192_v13  ;;  %v13072_v27 = vld [vmem:[#allocation14 + $0x16c] ss:$12 sps:$4 sm:$0xff]  }
 0xfd8   : > { %5510 = vst [vmem:[#allocation2 + $0x2c8] sm:$0xf] %v10849_v42  ;;  %11686 = vmatprep.subr.bf16.mxu0 %v5367_v51  ;;  %v13075_v42 = vld [vmem:[#allocation14 + $0x154] ss:$12 sps:$4 sm:$0xff]  }
 0xfd9   : > { %v13661_v51 = vld [vmem:[%s14422_s5 + $0x40] ss:$8 sps:$4 sm:$0xff]  }
 0xfdb   : > { %11687 = vmatpush3.bf16.msra.mxu0 %v5359_v56  ;;  %v5363_v56 = vpack.c.bf16 %v16207_v22, %v16197_v53 }
 0xfdc   : > { %11688 = vmatprep.subr.bf16.mxu0 %v5366_v9  ;;  %v13662_v9 = vld [vmem:[%s14422_s5 + $0x54] ss:$8 sps:$4 sm:$0xff]  }
 0xfdf   : > { %11689 = vmatpush3.bf16.msra.mxu0 %v5358_v17  ;;  %v13048_v17 = vld [vmem:[#allocation14 + $0xac] ss:$12 sps:$4 sm:$0xff]  }
 0xfe0   : > { %11690 = vmatprep.subr.bf16.mxu0 %v5365_v15  ;;  %v13073_v15 = vld [vmem:[#allocation14 + $0x150] ss:$12 sps:$4 sm:$0xff]  }
 0xfe3   : > { %11691 = vmatpush3.bf16.msra.mxu0 %v5357_v36  ;;  %v13653_v36 = vld [vmem:[%s14422_s5] ss:$8 sps:$4 sm:$0xff]  }
 0xfe4   : > { %11692 = vmatprep.subr.bf16.mxu0 %v5364_v44  ;;  %v13078_v44 = vld [vmem:[#allocation14 + $0x13c] ss:$12 sps:$4 sm:$0xff]  }
 0xfe7   : > { %11693 = vmatpush3.bf16.msra.mxu0 %v5356_v40  ;;  %v13046_v40 = vld [vmem:[#allocation14 + $0xa8] ss:$12 sps:$4 sm:$0xff]  }
 0xfe8   : > { %11694 = vmatprep.subr.bf16.mxu0 %v5363_v56  ;;  %v13076_v56 = vld [vmem:[#allocation14 + $0x138] ss:$12 sps:$4 sm:$0xff]  }
 0xfeb   : > { %11695 = vmatpush3.bf16.msra.mxu0 %v5355_v34  ;;  %v13051_v34 = vld [vmem:[#allocation14 + $0x94] ss:$12 sps:$4 sm:$0xff]  }
 0xfec   : > { %11696 = vmatprep.subr.bf16.mxu0 %v5362_v48  ;;  %v13654_v48 = vld [vmem:[%s14422_s5 + $0x14] ss:$8 sps:$4 sm:$0xff]  }
 0xfef   : > { %11697 = vmatpush3.bf16.msra.mxu0 %v5354_v21  ;;  %v13049_v21 = vld [vmem:[#allocation14 + $0x90] ss:$12 sps:$4 sm:$0xff]  }
 0xff0   : > { %11698 = vmatprep.subr.bf16.mxu0 %v5361_v57  ;;  %v13052_v57 = vld [vmem:[#allocation14 + $0x78] ss:$12 sps:$4 sm:$0xff]  }
 0xff3   : > { %11699 = vmatpush3.bf16.msra.mxu0 %v5353_v32  ;;  %v13655_v32 = vld [vmem:[%s14422_s5 + $0x10] ss:$8 sps:$4 sm:$0xff]  }
 0xff4   : > { %7980 = vmatprep.subr.bf16.mxu0 %v13048_v17  ;;  %v13081_v17 = vld [vmem:[#allocation14 + $0x124] ss:$12 sps:$4 sm:$0xff]  }
 0xff6   : > { %5581 = vmatmul.mubr.bf16.vlgmr.msra.gmra.mxu0 %v13653_v36  ;;  %v13079_v36 = vld [vmem:[#allocation14 + $0x120] ss:$12 sps:$4 sm:$0xff]  }
 0xff7   : > { %5588 = vmatprep.mubr.bf16.mxu0 %v13654_v48  ;;  %7981 = vmatpush1.bf16.msra.mxu0 %v13046_v40  ;;  %v13663_v40 = vld [vmem:[%s14422_s5 + $0x50] ss:$8 sps:$4 sm:$0xff]  }
 0xff8   : > { %7982 = vmatprep.subr.bf16.mxu0 %v13051_v34  ;;  %v13664_v34 = vld [vmem:[%s14422_s5 + $0x64] ss:$8 sps:$4 sm:$0xff]  }
 0xff9   : > { %v13084_v48 = vld [vmem:[#allocation14 + $0x10c] ss:$12 sps:$4 sm:$0xff]  }
 0xffb   : > { %7983 = vmatpush1.bf16.msra.mxu0 %v13049_v21  ;;  %v13082_v21 = vld [vmem:[#allocation14 + $0x108] ss:$12 sps:$4 sm:$0xff]  }
 0xffc   : > { %7984 = vmatprep.subr.bf16.mxu0 %v13054_v52  ;;  %v13087_v52 = vld [vmem:[#allocation14 + $0xf4] ss:$12 sps:$4 sm:$0xff]  }
 0xffe   : > { %5589 = vmatmul.mubr.bf16.gmra.mxu0 %v13655_v32  ;;  %v13085_v32 = vld [vmem:[#allocation14 + $0xf0] ss:$12 sps:$4 sm:$0xff]  }
 0xfff   : > { %5596 = vmatprep.mubr.bf16.mxu0 %v13656_v31  ;;  %7985 = vmatpush1.bf16.msra.mxu0 %v13052_v57  ;;  %v13665_v57 = vld [vmem:[%s14422_s5 + $0x60] ss:$8 sps:$4 sm:$0xff]   ;;  %v13118_v31 = vld [vmem:[#allocation11 + $0x178] sm:$0xff]  }
0x1000   : > { %7986 = vmatprep.subr.bf16.mxu0 %v13057_v4  ;;  %v13666_v4 = vld [vmem:[%s14422_s5 + $0x74] ss:$8 sps:$4 sm:$0xff]   ;;  %12688 = vmatprep.subr.bf16.mxu1 %v13118_v31 }
0x1001   : > { %12689 = vmatpush3.bf16.msra.mxu1 %v13118_v31  ;;  %v13097_v31 = vld [vmem:[#allocation2 + $0x30] ss:$24 sps:$4 sm:$0xff]  }
0x1003   : > { %7987 = vmatpush1.bf16.msra.mxu0 %v13055_v11  ;;  %v13090_v11 = vld [vmem:[#allocation14 + $0xdc] ss:$12 sps:$4 sm:$0xff]  }
0x1004   : > { %7988 = vmatprep.subr.bf16.mxu0 %v13060_v47  ;;  %v13088_v47 = vld [vmem:[#allocation14 + $0xd8] ss:$12 sps:$4 sm:$0xff]  }
0x1006   : > { %5597 = vmatmul.mubr.bf16.gmra.mxu0 %v13657_v26  ;;  %v13667_v26 = vld [vmem:[%s14422_s5 + $0x70] ss:$8 sps:$4 sm:$0xff]  }
0x1007   : > { %5604 = vmatprep.mubr.bf16.mxu0 %v13658_v2  ;;  %7989 = vmatpush1.bf16.msra.mxu0 %v13058_v39  ;;  %v13096_v39 = vld [vmem:[#allocation14 + $0xc4] ss:$12 sps:$4 sm:$0xff]  }
0x1008   : > { %7990 = vmatprep.subr.bf16.mxu0 %v13063_v38  ;;  %v13119_v38 = vld [vmem:[#allocation11 + $0x170] sm:$0xff]   ;;  %v13668_v2 = vld [vmem:[%s14422_s5 + $0x84] ss:$8 sps:$4 sm:$0xff]  }
0x1009   : > { %12690 = vmatprep.subr.bf16.mxu1 %v13119_v38 }
0x100a   : > { %12691 = vmatpush3.bf16.msra.mxu1 %v13119_v38  ;;  %v13103_v38 = vld [vmem:[#allocation2 + $0x90] ss:$24 sps:$4 sm:$0xff]  }
0x100b   : > { %7991 = vmatpush1.bf16.msra.mxu0 %v13061_v55  ;;  %v13094_v55 = vld [vmem:[#allocation14 + $0xc0] ss:$12 sps:$4 sm:$0xff]  }
0x100c   : > { %7992 = vmatprep.subr.bf16.mxu0 %v13066_v28  ;;  %v13123_v28 = vld [vmem:[#allocation11 + $0x168] sm:$0xff]  }
0x100d   : > { %12692 = vmatprep.subr.bf16.mxu1 %v13123_v28 }
0x100e   : > { %5605 = vmatmul.mubr.bf16.gmra.mxu0 %v13659_v49  ;;  %12693 = vmatpush3.bf16.msra.mxu1 %v13123_v28  ;;  %v13670_v49 = vld [vmem:[%s14422_s5 + $0x94] ss:$8 sps:$4 sm:$0xff]   ;;  %v13109_v28 = vld [vmem:[#allocation2 + $0xf0] ss:$24 sps:$4 sm:$0xff]  }
0x100f   : > { %5612 = vmatprep.mubr.bf16.mxu0 %v13660_v1  ;;  %7993 = vmatpush1.bf16.msra.mxu0 %v13064_v63  ;;  %v13124_v63 = vld [vmem:[#allocation11 + $0x160] sm:$0xff]   ;;  %v13128_v1 = vld [vmem:[#allocation11 + $0x158] sm:$0xff]  }
0x1010   : > { %7994 = vmatprep.subr.bf16.mxu0 %v13069_v50  ;;  %v13669_v50 = vld [vmem:[%s14422_s5 + $0x80] ss:$8 sps:$4 sm:$0xff]   ;;  %12694 = vmatprep.subr.bf16.mxu1 %v13124_v63 }
0x1012   : > { %12695 = vmatpush3.bf16.msra.mxu1 %v13124_v63  ;;  %v13114_v63 = vld [vmem:[#allocation2 + $0x124] ss:$24 sps:$4 sm:$0xff]  }
0x1013   : > { %7995 = vmatpush1.bf16.msra.mxu0 %v13067_v24  ;;  %12696 = vmatprep.subr.bf16.mxu1 %v13128_v1  ;;  %v13129_v24 = vld [vmem:[#allocation11 + $0x150] sm:$0xff]  }
0x1014   : > { %7996 = vmatprep.subr.bf16.mxu0 %v13072_v27  ;;  %v13671_v27 = vld [vmem:[%s14422_s5 + $0x90] ss:$8 sps:$4 sm:$0xff]  }
0x1016   : > { %5613 = vmatmul.mubr.bf16.gmra.mxu0 %v13661_v51  ;;  %12697 = vmatpush3.bf16.msra.mxu1 %v13128_v1  ;;  %v13134_v51 = vld [vmem:[#allocation11 + $0x140] sm:$0xff]  }
0x1017   : > { %5620 = vmatprep.mubr.bf16.mxu0 %v13662_v9  ;;  %7997 = vmatpush2.bf16.msra.mxu0 %v13070_v58  ;;  %v13672_v58 = vld [vmem:[%s14422_s5 + $0xa4] ss:$8 sps:$4 sm:$0xff]   ;;  %v13673_v9 = vld [vmem:[%s14422_s5 + $0xa0] ss:$8 sps:$4 sm:$0xff]  }
0x1018   : > { %7998 = vmatprep.subr.bf16.mxu0 %v13075_v42  ;;  %12698 = vmatprep.subr.bf16.mxu1 %v13129_v24  ;;  %v13133_v42 = vld [vmem:[#allocation11 + $0x148] sm:$0xff]  }
0x1019   : > { %v13115_v1 = vld [vmem:[#allocation2 + $0x150] ss:$24 sps:$4 sm:$0xff]  }
0x101a   : > { %12699 = vmatpush3.bf16.msra.mxu1 %v13129_v24  ;;  %v13122_v24 = vld [vmem:[#allocation2 + $0x184] ss:$24 sps:$4 sm:$0xff]  }
0x101b   : > { %7999 = vmatpush2.bf16.msra.mxu0 %v13073_v15  ;;  %12700 = vmatprep.subr.bf16.mxu1 %v13133_v42  ;;  %v13674_v15 = vld [vmem:[%s14422_s5 + $0xb4] ss:$8 sps:$4 sm:$0xff]  }
0x101c   : > { %8000 = vmatprep.subr.bf16.mxu0 %v13078_v44  ;;  %v13675_v44 = vld [vmem:[%s14422_s5 + $0xb0] ss:$8 sps:$4 sm:$0xff]  }
0x101e   : > { %5621 = vmatmul.mubr.bf16.gmra.mxu0 %v13663_v40  ;;  %12701 = vmatpush3.bf16.msra.mxu1 %v13133_v42  ;;  %v13678_v40 = vld [vmem:[%s14422_s5 + $0xd4] ss:$8 sps:$4 sm:$0xff]  }
0x101f   : > { %5628 = vmatprep.mubr.bf16.mxu0 %v13664_v34  ;;  %8001 = vmatpush2.bf16.msra.mxu0 %v13076_v56  ;;  %v13676_v56 = vld [vmem:[%s14422_s5 + $0xc4] ss:$8 sps:$4 sm:$0xff]   ;;  %v13679_v34 = vld [vmem:[%s14422_s5 + $0xd0] ss:$8 sps:$4 sm:$0xff]  }
0x1020   : > { %8002 = vmatprep.subr.bf16.mxu0 %v13081_v17  ;;  %12702 = vmatprep.subr.bf16.mxu1 %v13134_v51  ;;  %v13677_v17 = vld [vmem:[%s14422_s5 + $0xc0] ss:$8 sps:$4 sm:$0xff]  }
0x1022   : > { %12703 = vmatpush3.bf16.msra.mxu1 %v13134_v51 }
0x1023   : > { %8003 = vmatpush2.bf16.msra.mxu0 %v13079_v36  ;;  %v13680_v36 = vld [vmem:[%s14422_s5 + $0xe4] ss:$8 sps:$4 sm:$0xff]  }
0x1024   : > { %8004 = vmatprep.subr.bf16.mxu0 %v13084_v48  ;;  %v13681_v48 = vld [vmem:[%s14422_s5 + $0xe0] ss:$8 sps:$4 sm:$0xff]  }
0x1026   : > { %5629 = vmatmul.mubr.bf16.gmra.mxu0 %v13665_v57  ;;  %v13683_v57 = vld [vmem:[%s14422_s5 + $0xf0] ss:$8 sps:$4 sm:$0xff]  }
0x1027   : > { %5636 = vmatprep.mubr.bf16.mxu0 %v13666_v4  ;;  %8005 = vmatpush2.bf16.msra.mxu0 %v13082_v21  ;;  %v13682_v21 = vld [vmem:[%s14422_s5 + $0xf4] ss:$8 sps:$4 sm:$0xff]   ;;  %s10339_s5 = sld [smem:[#allocation4 + $0x5]] }
0x1028   : > { %8006 = vmatprep.subr.bf16.mxu0 %v13087_v52  ;;  %v13093_v52 = vld [vmem:[#allocation2 + $0x4] ss:$24 sps:$4 sm:$0xff]   ;;  %v13091_v4 = vld [vmem:[#allocation2] ss:$24 sps:$4 sm:$0xff]  }
0x102b   : > { %8007 = vmatpush2.bf16.msra.mxu0 %v13085_v32  ;;  %v13099_v32 = vld [vmem:[#allocation2 + $0x34] ss:$24 sps:$4 sm:$0xff]  }
0x102c   : > { %8008 = vmatprep.subr.bf16.mxu0 %v13090_v11  ;;  %v13102_v11 = vld [vmem:[#allocation2 + $0x64] ss:$24 sps:$4 sm:$0xff]  }
0x102d   : > { %s5514_s6 = sadd.f32 1.0, %s10339_s5 }
0x102e   : > { %5637 = vmatmul.mubr.bf16.gmra.mxu0 %v13667_v26  ;;  %v13108_v26 = vld [vmem:[#allocation2 + $0xc4] ss:$24 sps:$4 sm:$0xff]  }
0x102f   : > { %5644 = vmatprep.mubr.bf16.mxu0 %v13668_v2  ;;  %8009 = vmatpush2.bf16.msra.mxu0 %v13088_v47  ;;  %v13100_v47 = vld [vmem:[#allocation2 + $0x60] ss:$24 sps:$4 sm:$0xff]  }
0x1030   : > { %8010 = vmatprep.subr.bf16.mxu0 %v13096_v39  ;;  %v13105_v39 = vld [vmem:[#allocation2 + $0x94] ss:$24 sps:$4 sm:$0xff]   ;;  %v13106_v2 = vld [vmem:[#allocation2 + $0xc0] ss:$24 sps:$4 sm:$0xff]  }
0x1033   : > { %8011 = vmatpush2.bf16.msra.mxu0 %v13094_v55  ;;  %v13111_v55 = vld [vmem:[#allocation2 + $0xf4] ss:$24 sps:$4 sm:$0xff]  }
0x1036   : > { %5645 = vmatmul.mubr.bf16.gmra.mxu0 %v13669_v50  ;;  %v13112_v50 = vld [vmem:[#allocation2 + $0x120] ss:$24 sps:$4 sm:$0xff]  }
0x1037   : > { %5652 = vmatprep.mubr.bf16.mxu0 %v13670_v49  ;;  %v13117_v49 = vld [vmem:[#allocation2 + $0x154] ss:$24 sps:$4 sm:$0xff]  }
0x103e   : > { %5653 = vmatmul.mubr.bf16.gmra.mxu0 %v13671_v27  ;;  %v13120_v27 = vld [vmem:[#allocation2 + $0x180] ss:$24 sps:$4 sm:$0xff]  }
0x103f   : > { %5660 = vmatprep.mubr.bf16.mxu0 %v13672_v58  ;;  %v13127_v58 = vld [vmem:[#allocation2 + $0x1b4] ss:$24 sps:$4 sm:$0xff]  }
0x1046   : > { %5661 = vmatmul.mubr.bf16.gmra.mxu0 %v13673_v9 }
0x1047   : > { %5668 = vmatprep.mubr.bf16.mxu0 %v13674_v15 }
0x104e   : > { %5669 = vmatmul.mubr.bf16.gmra.mxu0 %v13675_v44  ;;  %v16324_v44 = vstv %s5514_s6 }
0x104f   : > { %5676 = vmatprep.mubr.bf16.mxu0 %v13676_v56  ;;  %v13125_v56 = vld [vmem:[#allocation2 + $0x1b0] ss:$24 sps:$4 sm:$0xff]  }
0x1056   : > { %5677 = vmatmul.mubr.bf16.gmra.mxu0 %v13677_v17 }
0x1057   : > { %5684 = vmatprep.mubr.bf16.mxu0 %v13678_v40  ;;  %v5516_v40 = vmul.f32 %v16324_v44, %v16077_v10  ;;  %v5519_v10 = vmul.f32 %v16324_v44, %v16082_v14  ;;  %v5520_v14 = vmul.f32 %v16324_v44, %v16101_v25  ;;  %v5523_v25 = vmul.f32 %v16324_v44, %v16106_v3 }
0x1058   : > { %v5524_v3 = vmul.f32 %v16324_v44, %v16125_v7  ;;  %v5527_v7 = vmul.f32 %v16324_v44, %v16130_v6  ;;  %v5528_v6 = vmul.f32 %v16324_v44, %v16149_v5  ;;  %v5530_v5 = vmul.f32 %v16324_v44, %v16144_v45 }
0x1059   : > { %v5533_v45 = vmul.f32 %v16324_v44, %v16183_v23  ;;  %v5534_v23 = vmul.f32 %v16324_v44, %v16168_v35  ;;  %v5537_v35 = vmul.f32 %v16324_v44, %v16207_v22  ;;  %v5538_v22 = vmul.f32 %v16324_v44, %v16192_v13 }
0x105e   : > { %5685 = vmatmul.mubr.bf16.gmra.mxu0 %v13679_v34  ;;  %v5517_v34 = vmul.f32 %v16324_v44, %v16089_v19  ;;  %v5518_v19 = vmul.f32 %v16324_v44, %v16072_v33  ;;  %v5521_v33 = vmul.f32 %v16324_v44, %v16113_v0  ;;  %v5522_v0 = vmul.f32 %v16324_v44, %v16096_v20 }
0x105f   : > { %5692 = vmatprep.mubr.bf16.mxu0 %v13680_v36  ;;  %v5525_v20 = vmul.f32 %v16324_v44, %v16137_v60  ;;  %v5526_v60 = vmul.f32 %v16324_v44, %v16120_v61  ;;  %v5529_v61 = vmul.f32 %v16324_v44, %v16161_v59 }
0x1066   : > { %5693 = vmatmul.mubr.bf16.gmra.mxu0 %v13681_v48  ;;  %v13132_v48 = vld [vmem:[#allocation2 + $0x1e4] ss:$24 sps:$4 sm:$0xff]  }
0x1067   : > { %5700 = vmatprep.mubr.bf16.mxu0 %v13682_v21 }
0x106e   : > { %5701 = vmatmul.mubr.bf16.gmra.mxu0 %v13683_v57 }
0x106f   : > { %8012 = vmatprep.mubr.bf16.mxu0 %v13093_v52 }
0x1076   : > { %8013 = vmatmul.mubr.bf16.vlgmr.msra.gmra.mxu0 %v13091_v4 }
0x1077   : > { %8022 = vmatprep.mubr.bf16.mxu0 %v13099_v32 }
0x107e   : > { %8023 = vmatmul.mubr.bf16.gmra.mxu0 %v13097_v31 }
0x107f   : > { %8032 = vmatprep.mubr.bf16.mxu0 %v13102_v11 }
0x1086   : > { %8033 = vmatmul.mubr.bf16.gmra.mxu0 %v13100_v47  ;;  %v13130_v47 = vld [vmem:[#allocation2 + $0x1e0] ss:$24 sps:$4 sm:$0xff]  }
0x1087   : > { %8042 = vmatprep.mubr.bf16.mxu0 %v13105_v39 }
0x108e   : > { %8043 = vmatmul.mubr.bf16.gmra.mxu0 %v13103_v38 }
0x108f   : > { %8052 = vmatprep.mubr.bf16.mxu0 %v13108_v26  ;;  %v13137_v26 = vld [vmem:[#allocation2 + $0x214] ss:$24 sps:$4 sm:$0xff]  }
0x1096   : > { %8053 = vmatmul.mubr.bf16.gmra.mxu0 %v13106_v2 }
0x1097   : > { %8062 = vmatprep.mubr.bf16.mxu0 %v13111_v55 }
0x109e   : > { %8063 = vmatmul.mubr.bf16.gmra.mxu0 %v13109_v28 }
0x109f   : > { %8072 = vmatprep.mubr.bf16.mxu0 %v13114_v63 }
0x10a6   : > { %8073 = vmatmul.mubr.bf16.gmra.mxu0 %v13112_v50 }
0x10a7   : > { %8082 = vmatprep.mubr.bf16.mxu0 %v13117_v49 }
0x10ae   : > { %8083 = vmatmul.mubr.bf16.gmra.mxu0 %v13115_v1 }
0x10af   : > { %8092 = vmatprep.mubr.bf16.mxu0 %v13122_v24  ;;  %v13135_v24 = vld [vmem:[#allocation2 + $0x210] ss:$24 sps:$4 sm:$0xff]  }
0x10b6   : > { %v11700_v42 = vpop.f32.mrf.mxu0  ;;  %8093 = vmatmul.mubr.bf16.gmra.mxu0 %v13120_v27 }
0x10b7   : > { %8102 = vmatprep.mubr.bf16.mxu0 %v13127_v58 }
0x10b8   : > { %v11701_v51 = vpop.f32.mrf.mxu0 }
0x10b9   : > { %v11702_v15 = vadd.f32 %v11701_v51, %v11700_v42  ;;  %v13140_v42 = vld [vmem:[#allocation2 + $0x244] ss:$24 sps:$4 sm:$0xff]  }
0x10ba   : > { %v11703_v9 = vpop.f32.mrf.mxu0 }
0x10bb   : > { %v5583_v52 = vadd.f32 %v11702_v15, %v5516_v40 }
0x10bc   : > { %v11704_v17 = vpop.f32.mrf.mxu0 }
0x10bd   : > { %v11705_v36 = vadd.f32 %v11704_v17, %v11703_v9 }
0x10be   : > { %v11706_v21 = vpop.f32.mrf.mxu0  ;;  %8103 = vmatmul.mubr.bf16.gmra.mxu0 %v13125_v56 }
0x10bf   : > { %v5586_v57 = vadd.f32 %v11705_v36, %v5517_v34  ;;  %8112 = vmatprep.mubr.bf16.mxu0 %v13132_v48  ;;  %v13138_v36 = vld [vmem:[#allocation2 + $0x240] ss:$24 sps:$4 sm:$0xff]  }
0x10c0   : > { %v11707_v4 = vpop.f32.mrf.mxu0 }
0x10c1   : > { %v5709_v32 = vpack.c.bf16 %v5586_v57, %v5583_v52  ;;  %v11708_v11 = vadd.f32 %v11707_v4, %v11706_v21  ;;  %v13143_v52 = vld [vmem:[#allocation2 + $0x274] ss:$24 sps:$4 sm:$0xff]  }
0x10c2   : > { %v11709_v31 = vpop.f32.mrf.mxu0 }
0x10c3   : > { %12704 = vmatprep.mubr.bf16.mxu1 %v5709_v32  ;;  %v5591_v55 = vadd.f32 %v11708_v11, %v5518_v19 }
0x10c4   : > { %v11710_v39 = vpop.f32.mrf.mxu0 }
0x10c5   : > { %v11711_v38 = vadd.f32 %v11710_v39, %v11709_v31 }
0x10c6   : > { %v11712_v2 = vpop.f32.mrf.mxu0  ;;  %8113 = vmatmul.mubr.bf16.gmra.mxu0 %v13130_v47 }
0x10c7   : > { %v5594_v28 = vadd.f32 %v11711_v38, %v5519_v10  ;;  %8122 = vmatprep.mubr.bf16.mxu0 %v13137_v26  ;;  %v13141_v10 = vld [vmem:[#allocation2 + $0x270] ss:$24 sps:$4 sm:$0xff]   ;;  %v13146_v26 = vld [vmem:[#allocation2 + $0x2a4] ss:$24 sps:$4 sm:$0xff]  }
0x10c8   : > { %v11713_v63 = vpop.f32.mrf.mxu0 }
0x10c9   : > { %v5710_v50 = vpack.c.bf16 %v5594_v28, %v5591_v55  ;;  %v11714_v1 = vadd.f32 %v11713_v63, %v11712_v2 }
0x10ca   : > { %v11715_v49 = vpop.f32.mrf.mxu0 }
0x10cb   : > { %12705 = vmatmul.mubr.bf16.vlgmr.msra.gmra.mxu1 %v5710_v50  ;;  %v5599_v9 = vadd.f32 %v11714_v1, %v5520_v14 }
0x10cc   : > { %v11716_v27 = vpop.f32.mrf.mxu0 }
0x10cd   : > { %v11717_v58 = vadd.f32 %v11716_v27, %v11715_v49 }
0x10ce   : > { %v11718_v51 = vpop.f32.mrf.mxu0  ;;  %8123 = vmatmul.mubr.bf16.gmra.mxu0 %v13135_v24  ;;  %v13144_v24 = vld [vmem:[#allocation2 + $0x2a0] ss:$24 sps:$4 sm:$0xff]  }
0x10cf   : > { %v5602_v15 = vadd.f32 %v11717_v58, %v5521_v33  ;;  %8132 = vmatprep.mubr.bf16.mxu0 %v13140_v42  ;;  %v13149_v33 = vld [vmem:[#allocation2 + $0x2d4] ss:$24 sps:$4 sm:$0xff]  }
0x10d0   : > { %v11719_v56 = vpop.f32.mrf.mxu0 }
0x10d1   : > { %v5711_v17 = vpack.c.bf16 %v5602_v15, %v5599_v9  ;;  %v11720_v34 = vadd.f32 %v11719_v56, %v11718_v51 }
0x10d2   : > { %v11721_v40 = vpop.f32.mrf.mxu0 }
0x10d3   : > { %12708 = vmatprep.mubr.bf16.mxu1 %v5711_v17  ;;  %v5607_v4 = vadd.f32 %v11720_v34, %v5522_v0 }
0x10d4   : > { %v11722_v48 = vpop.f32.mrf.mxu0 }
0x10d5   : > { %v11723_v21 = vadd.f32 %v11722_v48, %v11721_v40  ;;  %v13147_v40 = vld [vmem:[#allocation2 + $0x2d0] ss:$24 sps:$4 sm:$0xff]  }
0x10d6   : > { %v11724_v57 = vpop.f32.mrf.mxu0  ;;  %8133 = vmatmul.mubr.bf16.gmra.mxu0 %v13138_v36 }
0x10d7   : > { %v5610_v32 = vadd.f32 %v11723_v21, %v5523_v25  ;;  %8142 = vmatprep.mubr.bf16.mxu0 %v13143_v52 }
0x10d8   : > { %v11725_v31 = vpop.f32.mrf.mxu0 }
0x10d9   : > { %v5712_v11 = vpack.c.bf16 %v5610_v32, %v5607_v4  ;;  %v11726_v39 = vadd.f32 %v11725_v31, %v11724_v57  ;;  %v5531_v31 = vmul.f32 %v16324_v44, %v16154_v62  ;;  %v5532_v62 = vmul.f32 %v16324_v44, %v16173_v16 }
0x10da   : > { %v11727_v47 = vpop.f32.mrf.mxu0  ;;  %v5535_v16 = vmul.f32 %v16324_v44, %v16178_v12  ;;  %v5536_v12 = vmul.f32 %v16324_v44, %v16197_v53  ;;  %v5539_v53 = vmul.f32 %v16324_v44, %v16202_v8  ;;  %v5541_v8 = vmul.f32 %v16324_v44, %v16227_v30 }
0x10db   : > { %12709 = vmatmul.mubr.bf16.gmra.mxu1 %v5712_v11  ;;  %v5615_v55 = vadd.f32 %v11726_v39, %v5524_v3 }
0x10dc   : > { %v11728_v19 = vpop.f32.mrf.mxu0 }
0x10dd   : > { %v11729_v38 = vadd.f32 %v11728_v19, %v11727_v47 }
0x10de   : > { %v11730_v2 = vpop.f32.mrf.mxu0  ;;  %8143 = vmatmul.mubr.bf16.gmra.mxu0 %v13141_v10  ;;  %v13150_v10 = vld [vmem:[#allocation13 + $0x178] sm:$0xff]  }
0x10df   : > { %v5618_v28 = vadd.f32 %v11729_v38, %v5525_v20  ;;  %8152 = vmatprep.mubr.bf16.mxu0 %v13146_v26  ;;  %12736 = vmatprep.subr.bf16.mxu1 %v13150_v10  ;;  %v13151_v26 = vld [vmem:[#allocation13 + $0x170] sm:$0xff]  }
0x10e0   : > { %v11731_v63 = vpop.f32.mrf.mxu0  ;;  %12737 = vmatpush3.bf16.msra.mxu1 %v13150_v10 }
0x10e1   : > { %v5713_v50 = vpack.c.bf16 %v5618_v28, %v5615_v55  ;;  %v11732_v1 = vadd.f32 %v11731_v63, %v11730_v2  ;;  %12738 = vmatprep.subr.bf16.mxu1 %v13151_v26 }
0x10e2   : > { %v11733_v49 = vpop.f32.mrf.mxu0 }
0x10e3   : > { %12712 = vmatprep.mubr.bf16.mxu1 %v5713_v50  ;;  %v5623_v42 = vadd.f32 %v11732_v1, %v5526_v60  ;;  %v13153_v60 = vld [vmem:[#allocation13 + $0x160] sm:$0xff]  }
0x10e4   : > { %v11734_v27 = vpop.f32.mrf.mxu0  ;;  %12739 = vmatpush3.bf16.msra.mxu1 %v13151_v26 }
0x10e5   : > { %v11735_v14 = vadd.f32 %v11734_v27, %v11733_v49  ;;  %v13152_v49 = vld [vmem:[#allocation13 + $0x168] sm:$0xff]  }
0x10e6   : > { %v11736_v58 = vpop.f32.mrf.mxu0  ;;  %8153 = vmatmul.mubr.bf16.gmra.mxu0 %v13144_v24  ;;  %12740 = vmatprep.subr.bf16.mxu1 %v13152_v49 }
0x10e7   : > { %v5626_v51 = vadd.f32 %v11735_v14, %v5527_v7  ;;  %8162 = vmatprep.mubr.bf16.mxu0 %v13149_v33 }
0x10e8   : > { %v11737_v9 = vpop.f32.mrf.mxu0  ;;  %12741 = vmatpush3.bf16.msra.mxu1 %v13152_v49  ;;  %v5543_v49 = vmul.f32 %v16324_v44, %v16222_v43 }
0x10e9   : > { %v5714_v15 = vpack.c.bf16 %v5626_v51, %v5623_v42  ;;  %v11738_v17 = vadd.f32 %v11737_v9, %v11736_v58  ;;  %12742 = vmatprep.subr.bf16.mxu1 %v13153_v60  ;;  %v13154_v9 = vld [vmem:[#allocation13 + $0x158] sm:$0xff]  }
0x10ea   : > { %v11739_v56 = vpop.f32.mrf.mxu0 }
0x10eb   : > { %12713 = vmatmul.mubr.bf16.gmra.mxu1 %v5714_v15  ;;  %v5631_v25 = vadd.f32 %v11738_v17, %v5528_v6 }
0x10ec   : > { %v11740_v34 = vpop.f32.mrf.mxu0  ;;  %12743 = vmatpush3.bf16.msra.mxu1 %v13153_v60 }
0x10ed   : > { %v11741_v36 = vadd.f32 %v11740_v34, %v11739_v56  ;;  %12744 = vmatprep.subr.bf16.mxu1 %v13154_v9  ;;  %v13155_v34 = vld [vmem:[#allocation13 + $0x150] sm:$0xff]  }
0x10ee   : > { %v11742_v48 = vpop.f32.mrf.mxu0  ;;  %8163 = vmatmul.mubr.bf16.gmra.mxu0 %v13147_v40 }
0x10ef   : > { %v5634_v0 = vadd.f32 %v11741_v36, %v5529_v61 }
0x10f0   : > { %v11743_v21 = vpop.f32.mrf.mxu0  ;;  %12745 = vmatpush3.bf16.msra.mxu1 %v13154_v9 }
0x10f1   : > { %v5715_v52 = vpack.c.bf16 %v5634_v0, %v5631_v25  ;;  %v11744_v4 = vadd.f32 %v11743_v21, %v11742_v48  ;;  %12746 = vmatprep.subr.bf16.mxu1 %v13155_v34  ;;  %v13156_v0 = vld [vmem:[#allocation13 + $0x148] sm:$0xff]  }
0x10f2   : > { %v11745_v57 = vpop.f32.mrf.mxu0 }
0x10f3   : > { %12716 = vmatprep.mubr.bf16.mxu1 %v5715_v52  ;;  %v5639_v59 = vadd.f32 %v11744_v4, %v5530_v5 }
0x10f4   : > { %v11746_v32 = vpop.f32.mrf.mxu0  ;;  %12747 = vmatpush3.bf16.msra.mxu1 %v13155_v34  ;;  %v5547_v34 = vmul.f32 %v16324_v44, %v16242_v54 }
0x10f5   : > { %v11747_v11 = vadd.f32 %v11746_v32, %v11745_v57  ;;  %12748 = vmatprep.subr.bf16.mxu1 %v13156_v0  ;;  %v13157_v32 = vld [vmem:[#allocation13 + $0x140] sm:$0xff]  }
0x10f6   : > { %v11748_v47 = vpop.f32.mrf.mxu0 }
0x10f7   : > { %v5642_v39 = vadd.f32 %v11747_v11, %v5531_v31 }
0x10f8   : > { %v11749_v19 = vpop.f32.mrf.mxu0  ;;  %12749 = vmatpush3.bf16.msra.mxu1 %v13156_v0 }
0x10f9   : > { %v5716_v3 = vpack.c.bf16 %v5642_v39, %v5639_v59  ;;  %v11750_v38 = vadd.f32 %v11749_v19, %v11748_v47  ;;  %12750 = vmatprep.subr.bf16.mxu1 %v13157_v32 }
0x10fa   : > { %v11751_v20 = vpop.f32.mrf.mxu0 }
0x10fb   : > { %12717 = vmatmul.mubr.bf16.gmra.mxu1 %v5716_v3  ;;  %v5647_v63 = vadd.f32 %v11750_v38, %v5532_v62  ;;  %v5540_v38 = vmul.f32 %v16324_v44, %v16217_v18 }
0x10fc   : > { %v11752_v2 = vpop.f32.mrf.mxu0  ;;  %12751 = vmatpush3.bf16.msra.mxu1 %v13157_v32 }
0x10fd   : > { %v11753_v55 = vadd.f32 %v11752_v2, %v11751_v20 }
0x10fe   : > { %v11754_v28 = vpop.f32.mrf.mxu0 }
0x10ff   : > { %v5650_v50 = vadd.f32 %v11753_v55, %v5533_v45 }
0x1100   : > { %v11755_v1 = vpop.f32.mrf.mxu0 }
0x1101   : > { %v5717_v24 = vpack.c.bf16 %v5650_v50, %v5647_v63  ;;  %v11756_v7 = vadd.f32 %v11755_v1, %v11754_v28  ;;  %v5542_v1 = vmul.f32 %v16324_v44, %v16212_v29 }
0x1102   : > { %v11757_v27 = vpop.f32.mrf.mxu0 }
0x1103   : > { %12720 = vmatprep.mubr.bf16.mxu1 %v5717_v24  ;;  %v5655_v42 = vadd.f32 %v11756_v7, %v5534_v23 }
0x1104   : > { %v11758_v14 = vpop.f32.mrf.mxu0 }
0x1105   : > { %v11759_v33 = vadd.f32 %v11758_v14, %v11757_v27 }
0x1106   : > { %v11760_v58 = vpop.f32.mrf.mxu0 }
0x1107   : > { %v5658_v51 = vadd.f32 %v11759_v33, %v5535_v16  ;;  %v5544_v33 = vmul.f32 %v16324_v44, %v16237_v46 }
0x1108   : > { %v11761_v15 = vpop.f32.mrf.mxu0 }
0x1109   : > { %v5718_v56 = vpack.c.bf16 %v5658_v51, %v5655_v42  ;;  %v11762_v40 = vadd.f32 %v11761_v15, %v11760_v58  ;;  %v5545_v58 = vmul.f32 %v16324_v44, %v16247_v41 }
0x110a   : > { %v11763_v17 = vpop.f32.mrf.mxu0 }
0x110b   : > { %12721 = vmatmul.mubr.bf16.gmra.mxu1 %v5718_v56  ;;  %v5663_v48 = vadd.f32 %v11762_v40, %v5536_v12 }
0x110c   : > { %v11764_v6 = vpop.f32.mrf.mxu0 }
0x110d   : > { %v11765_v61 = vadd.f32 %v11764_v6, %v11763_v17  ;;  %v5546_v6 = vmul.f32 %v16324_v44, %v16232_v37 }
0x110e   : > { %v11766_v36 = vpop.f32.mrf.mxu0 }
0x110f   : > { %v5666_v25 = vadd.f32 %v11765_v61, %v5537_v35  ;;  %v13160_v61 = vld [vmem:[#allocation14 + $0x22c] ss:$12 sps:$4 sm:$0xff]  }
0x1110   : > { %v11767_v21 = vpop.f32.mrf.mxu0  ;;  %8173 = vmatprep.subr.bf16.mxu1 %v13160_v61  ;;  %v13232_v61 = vld [vmem:[#allocation14 + $0x37c] ss:$12 sps:$4 sm:$0xff]  }
0x1111   : > { %v5719_v52 = vpack.c.bf16 %v5666_v25, %v5663_v48  ;;  %v11768_v4 = vadd.f32 %v11767_v21, %v11766_v36  ;;  %v16393_v25 = vld [vmem:[%s17585_s26 + $0x5] ss:$0 sm:$0xff] }
0x1112   : > { %v11769_v57 = vpop.f32.mrf.mxu0 }
0x1113   : > { %12724 = vmatprep.mubr.bf16.mxu1 %v5719_v52  ;;  %v5671_v47 = vadd.f32 %v11768_v4, %v5538_v22  ;;  %v13158_v22 = vld [vmem:[#allocation14 + $0x228] ss:$12 sps:$4 sm:$0xff]  }
0x1114   : > { %v11770_v31 = vpop.f32.mrf.mxu0 }
0x1115   : > { %v11771_v5 = vadd.f32 %v11770_v31, %v11769_v57 }
0x1116   : > { %v11772_v11 = vpop.f32.mrf.mxu0 }
0x1117   : > { %v5674_v59 = vadd.f32 %v11771_v5, %v5539_v53 }
0x1118   : > { %v11773_v39 = vpop.f32.mrf.mxu0 }
0x1119   : > { %v5720_v10 = vpack.c.bf16 %v5674_v59, %v5671_v47  ;;  %v11774_v3 = vadd.f32 %v11773_v39, %v11772_v11  ;;  %v13163_v11 = vld [vmem:[#allocation14 + $0x214] ss:$12 sps:$4 sm:$0xff]   ;;  %v13161_v47 = vld [vmem:[#allocation14 + $0x210] ss:$12 sps:$4 sm:$0xff]  }
0x111a   : > { %v11775_v19 = vpop.f32.mrf.mxu0  ;;  %v13166_v39 = vld [vmem:[#allocation14 + $0x1fc] ss:$12 sps:$4 sm:$0xff]  }
0x111b   : > { %12725 = vmatmul.mubr.bf16.gmra.mxu1 %v5720_v10  ;;  %v5679_v2 = vadd.f32 %v11774_v3, %v5540_v38 }
0x111c   : > { %v11776_v20 = vpop.f32.mrf.mxu0 }
0x111d   : > { %v11777_v26 = vadd.f32 %v11776_v20, %v11775_v19  ;;  %v13164_v19 = vld [vmem:[#allocation14 + $0x1f8] ss:$12 sps:$4 sm:$0xff]  }
0x111e   : > { %v11778_v13 = vpop.f32.mrf.mxu0  ;;  %v13169_v20 = vld [vmem:[#allocation14 + $0x1e4] ss:$12 sps:$4 sm:$0xff]  }
0x111f   : > { %v5682_v62 = vadd.f32 %v11777_v26, %v5541_v8 }
0x1120   : > { %v11779_v45 = vpop.f32.mrf.mxu0 }
0x1121   : > { %v5721_v55 = vpack.c.bf16 %v5682_v62, %v5679_v2  ;;  %v11780_v63 = vadd.f32 %v11779_v45, %v11778_v13  ;;  %v13167_v62 = vld [vmem:[#allocation14 + $0x1e0] ss:$12 sps:$4 sm:$0xff]  }
0x1122   : > { %v11781_v28 = vpop.f32.mrf.mxu0 }
0x1123   : > { %12728 = vmatprep.mubr.bf16.mxu1 %v5721_v55  ;;  %v5687_v27 = vadd.f32 %v11780_v63, %v5542_v1  ;;  %v13172_v55 = vld [vmem:[#allocation14 + $0x1cc] ss:$12 sps:$4 sm:$0xff]   ;;  %v13170_v1 = vld [vmem:[#allocation14 + $0x1c8] ss:$12 sps:$4 sm:$0xff]  }
0x1124   : > { %v11782_v50 = vpop.f32.mrf.mxu0 }
0x1125   : > { %v11783_v18 = vadd.f32 %v11782_v50, %v11781_v28 }
0x1126   : > { %v11784_v24 = vpop.f32.mrf.mxu0 }
0x1127   : > { %v5690_v30 = vadd.f32 %v11783_v18, %v5543_v49 }
0x1128   : > { %v11785_v7 = vpop.f32.mrf.mxu0 }
0x1129   : > { %v5722_v60 = vpack.c.bf16 %v5690_v30, %v5687_v27  ;;  %v11786_v16 = vadd.f32 %v11785_v7, %v11784_v24  ;;  %v13175_v24 = vld [vmem:[#allocation14 + $0x1b4] ss:$12 sps:$4 sm:$0xff]   ;;  %v13173_v27 = vld [vmem:[#allocation14 + $0x1b0] ss:$12 sps:$4 sm:$0xff]  }
0x112a   : > { %v11787_v14 = vpop.f32.mrf.mxu0  ;;  %v13178_v7 = vld [vmem:[#allocation14 + $0x19c] ss:$12 sps:$4 sm:$0xff]  }
0x112b   : > { %12729 = vmatmul.mubr.bf16.gmra.mxu1 %v5722_v60  ;;  %v5695_v51 = vadd.f32 %v11786_v16, %v5544_v33  ;;  %v13223_v16 = vld [vmem:[#allocation14 + $0x3ac] ss:$12 sps:$4 sm:$0xff]   ;;  %v13181_v33 = vld [vmem:[#allocation14 + $0x184] ss:$12 sps:$4 sm:$0xff]  }
0x112c   : > { %v11788_v23 = vpop.f32.mrf.mxu0  ;;  %8366 = vmatprep.subr.bf16.mxu0 %v13223_v16  ;;  %v13257_v16 = vld [vmem:[#allocation14 + $0x468] ss:$12 sps:$4 sm:$0xff]  }
0x112d   : > { %v11789_v43 = vadd.f32 %v11788_v23, %v11787_v14  ;;  %v13176_v14 = vld [vmem:[#allocation14 + $0x198] ss:$12 sps:$4 sm:$0xff]  }
0x112e   : > { %v11790_v42 = vpop.f32.mrf.mxu0 }
0x112f   : > { %v5698_v29 = vadd.f32 %v11789_v43, %v5545_v58  ;;  %v13221_v58 = vld [vmem:[#allocation14 + $0x3a8] ss:$12 sps:$4 sm:$0xff]  }
0x1130   : > { %v11791_v9 = vpop.f32.mrf.mxu0  ;;  %8367 = vmatpush1.bf16.msra.mxu0 %v13221_v58 }
0x1131   : > { %v5723_v15 = vpack.c.bf16 %v5698_v29, %v5695_v51  ;;  %v11792_v17 = vadd.f32 %v11791_v9, %v11790_v42 }
0x1132   : > { %v11793_v56 = vpop.f32.mrf.mxu0 }
0x1133   : > { %12732 = vmatprep.mubr.bf16.mxu1 %v5723_v15  ;;  %v5703_v12 = vadd.f32 %v11792_v17, %v5546_v6  ;;  %v13179_v15 = vld [vmem:[#allocation14 + $0x180] ss:$12 sps:$4 sm:$0xff]  }
0x1134   : > { %v11794_v40 = vpop.f32.mrf.mxu0  ;;  %v13229_v17 = vld [vmem:[#allocation14 + $0x394] ss:$12 sps:$4 sm:$0xff]  }
0x1135   : > { %v11795_v46 = vadd.f32 %v11794_v40, %v11793_v56  ;;  %v13227_v56 = vld [vmem:[#allocation14 + $0x390] ss:$12 sps:$4 sm:$0xff]   ;;  %8368 = vmatprep.subr.bf16.mxu0 %v13229_v17 }
0x1136   : > { %8369 = vmatpush1.bf16.msra.mxu0 %v13227_v56 }
0x1137   : > { %v5706_v35 = vadd.f32 %v11795_v46, %v5547_v34  ;;  %v13184_v34 = vld [vmem:[#allocation14 + $0x2ec] ss:$12 sps:$4 sm:$0xff]   ;;  %8370 = vmatprep.subr.bf16.mxu0 %v13232_v61 }
0x1138   : > { %v13272_v61 = vld [vmem:[#allocation14 + $0x420] ss:$12 sps:$4 sm:$0xff]  }
0x1139   : > { %v5724_v41 = vpack.c.bf16 %v5706_v35, %v5703_v12 }
0x113b   : > { %12733 = vmatmul.mubr.bf16.gmra.mxu1 %v5724_v41  ;;  %v13182_v41 = vld [vmem:[#allocation14 + $0x2e8] ss:$12 sps:$4 sm:$0xff]  }
0x118b   : > { %v12706_v36 = vpop.f32.mrf.mxu1 }
0x118c   : > { %v5838_v37 = vadd.f32 %v12706_v36, %v16393_v25 }
0x118d   : > { %v5829_v48 = vpop.f32.mrf.mxu1 }
0x118e   : > { %v5830_v54 = vadd.f32 %v16393_v25, %v5829_v48  ;;  %v5958_v31 = vmax.f32 %v5838_v37, 0.0  ;;  %v13187_v48 = vld [vmem:[#allocation14 + $0x2d4] ss:$12 sps:$4 sm:$0xff]   ;;  %v13238_v37 = vld [vmem:[#allocation14 + $0x364] ss:$12 sps:$4 sm:$0xff]  }
0x118f   : > { %v12707_v0 = vpop.f32.mrf.mxu1 }
0x1190   : > { %v5841_v21 = vadd.f32 %v12707_v0, %v16393_v25  ;;  %v5956_v4 = vmax.f32 %v5830_v54, 0.0  ;;  %v13230_v0 = vld [vmem:[#allocation14 + $0x378] ss:$12 sps:$4 sm:$0xff]   ;;  %v13185_v54 = vld [vmem:[#allocation14 + $0x2d0] ss:$12 sps:$4 sm:$0xff]  }
0x1191   : > { %v5832_v44 = vpop.f32.mrf.mxu1  ;;  %8371 = vmatpush1.bf16.msra.mxu0 %v13230_v0 }
0x1192   : > { %v5833_v52 = vadd.f32 %v16393_v25, %v5832_v44  ;;  %v5959_v57 = vmax.f32 %v5841_v21, 0.0  ;;  %v13236_v21 = vld [vmem:[#allocation14 + $0x360] ss:$12 sps:$4 sm:$0xff]   ;;  %8372 = vmatprep.subr.bf16.mxu0 %v13238_v37 }
0x1194   : > { %v5957_v32 = vmax.f32 %v5833_v52, 0.0  ;;  %v5989_v5 = vpack.c.bf16 %v5959_v57, %v5958_v31  ;;  %v13190_v52 = vld [vmem:[#allocation14 + $0x2bc] ss:$12 sps:$4 sm:$0xff]  }
0x1195   : > { %8373 = vmatpush1.bf16.msra.mxu0 %v13236_v21 }
0x1196   : > { %v5988_v53 = vpack.c.bf16 %v5957_v32, %v5956_v4  ;;  %v13188_v4 = vld [vmem:[#allocation14 + $0x2b8] ss:$12 sps:$4 sm:$0xff]  }
0x1197   : > { %v13241_v32 = vld [vmem:[#allocation14 + $0x34c] ss:$12 sps:$4 sm:$0xff]  }
0x1198   : > { %12752 = vmatprep.mubr.bf16.mxu1 %v5988_v53  ;;  %v13193_v53 = vld [vmem:[#allocation14 + $0x2a4] ss:$12 sps:$4 sm:$0xff]   ;;  %8374 = vmatprep.subr.bf16.mxu0 %v13241_v32 }
0x1199   : > { %12753 = vmatmul.mubr.bf16.vlgmr.msra.gmra.mxu1 %v5989_v5 }
0x119a   : > { %8174 = vmatpush1.bf16.msra.mxu1 %v13158_v22  ;;  %v13239_v22 = vld [vmem:[#allocation14 + $0x348] ss:$12 sps:$4 sm:$0xff]  }
0x119b   : > { %v12710_v59 = vpop.f32.mrf.mxu1  ;;  %8175 = vmatprep.subr.bf16.mxu1 %v13163_v11  ;;  %8375 = vmatpush1.bf16.msra.mxu0 %v13239_v22 }
0x119c   : > { %v5854_v26 = vadd.f32 %v12710_v59, %v16393_v25 }
0x119d   : > { %v5845_v10 = vpop.f32.mrf.mxu1 }
0x119e   : > { %8176 = vmatpush1.bf16.msra.mxu1 %v13161_v47  ;;  %v5846_v38 = vadd.f32 %v16393_v25, %v5845_v10  ;;  %v5962_v50 = vmax.f32 %v5854_v26, 0.0  ;;  %v13191_v10 = vld [vmem:[#allocation14 + $0x2a0] ss:$12 sps:$4 sm:$0xff]  }
0x119f   : > { %v12711_v3 = vpop.f32.mrf.mxu1  ;;  %8177 = vmatprep.subr.bf16.mxu1 %v13166_v39 }
0x11a0   : > { %v5857_v8 = vadd.f32 %v12711_v3, %v16393_v25  ;;  %v5960_v28 = vmax.f32 %v5846_v38, 0.0  ;;  %v13247_v3 = vld [vmem:[#allocation14 + $0x334] ss:$12 sps:$4 sm:$0xff]   ;;  %v13196_v38 = vld [vmem:[#allocation14 + $0x28c] ss:$12 sps:$4 sm:$0xff]  }
0x11a1   : > { %v5848_v13 = vpop.f32.mrf.mxu1  ;;  %8376 = vmatprep.subr.bf16.mxu0 %v13247_v3  ;;  %v13290_v3 = vld [vmem:[#allocation14 + $0x3c0] ss:$12 sps:$4 sm:$0xff]  }
0x11a2   : > { %v5849_v2 = vadd.f32 %v16393_v25, %v5848_v13  ;;  %8178 = vmatpush1.bf16.msra.mxu1 %v13164_v19  ;;  %v5963_v45 = vmax.f32 %v5857_v8, 0.0  ;;  %v13245_v19 = vld [vmem:[#allocation14 + $0x330] ss:$12 sps:$4 sm:$0xff]  }
0x11a3   : > { %8179 = vmatprep.subr.bf16.mxu1 %v13169_v20  ;;  %8377 = vmatpush1.bf16.msra.mxu0 %v13245_v19 }
0x11a4   : > { %v5961_v63 = vmax.f32 %v5849_v2, 0.0  ;;  %v5991_v18 = vpack.c.bf16 %v5963_v45, %v5962_v50  ;;  %v13250_v45 = vld [vmem:[#allocation14 + $0x31c] ss:$12 sps:$4 sm:$0xff]  }
0x11a5   : > { %8378 = vmatprep.subr.bf16.mxu0 %v13250_v45  ;;  %v13197_v50 = vld [vmem:[#allocation14 + $0x270] ss:$12 sps:$4 sm:$0xff]  }
0x11a6   : > { %v5990_v49 = vpack.c.bf16 %v5961_v63, %v5960_v28  ;;  %8180 = vmatpush1.bf16.msra.mxu1 %v13167_v62  ;;  %v13194_v62 = vld [vmem:[#allocation14 + $0x288] ss:$12 sps:$4 sm:$0xff]   ;;  %v13248_v63 = vld [vmem:[#allocation14 + $0x318] ss:$12 sps:$4 sm:$0xff]  }
0x11a7   : > { %8181 = vmatprep.subr.bf16.mxu1 %v13172_v55  ;;  %v13199_v28 = vld [vmem:[#allocation14 + $0x274] ss:$12 sps:$4 sm:$0xff]   ;;  %8379 = vmatpush1.bf16.msra.mxu0 %v13248_v63 }
0x11a8   : > { %12756 = vmatprep.mubr.bf16.mxu1 %v5990_v49  ;;  %v13254_v49 = vld [vmem:[#allocation14 + $0x300] ss:$12 sps:$4 sm:$0xff]  }
0x11a9   : > { %12757 = vmatmul.mubr.bf16.gmra.mxu1 %v5991_v18 }
0x11aa   : > { %8182 = vmatpush1.bf16.msra.mxu1 %v13170_v1  ;;  %v13256_v1 = vld [vmem:[#allocation14 + $0x304] ss:$12 sps:$4 sm:$0xff]  }
0x11ab   : > { %v12714_v30 = vpop.f32.mrf.mxu1  ;;  %8183 = vmatprep.subr.bf16.mxu1 %v13175_v24  ;;  %v13202_v24 = vld [vmem:[#allocation14 + $0x25c] ss:$12 sps:$4 sm:$0xff]   ;;  %8380 = vmatprep.subr.bf16.mxu0 %v13256_v1 }
0x11ac   : > { %v5870_v51 = vadd.f32 %v12714_v30, %v16393_v25  ;;  %8381 = vmatpush1.bf16.msra.mxu0 %v13254_v49  ;;  %v13200_v30 = vld [vmem:[#allocation14 + $0x258] ss:$12 sps:$4 sm:$0xff]  }
0x11ad   : > { %v5861_v60 = vpop.f32.mrf.mxu1 }
0x11ae   : > { %8184 = vmatpush1.bf16.msra.mxu1 %v13173_v27  ;;  %v5862_v43 = vadd.f32 %v16393_v25, %v5861_v60  ;;  %v5966_v12 = vmax.f32 %v5870_v51, 0.0  ;;  %v13206_v51 = vld [vmem:[#allocation14 + $0x240] ss:$12 sps:$4 sm:$0xff]  }
0x11af   : > { %v12715_v23 = vpop.f32.mrf.mxu1  ;;  %8185 = vmatprep.subr.bf16.mxu1 %v13178_v7  ;;  %v13259_v7 = vld [vmem:[#allocation14 + $0x46c] ss:$12 sps:$4 sm:$0xff]  }
0x11b0   : > { %v5873_v42 = vadd.f32 %v12715_v23, %v16393_v25  ;;  %v5964_v6 = vmax.f32 %v5862_v43, 0.0  ;;  %8382 = vmatprep.subr.bf16.mxu0 %v13259_v7 }
0x11b1   : > { %v5864_v29 = vpop.f32.mrf.mxu1  ;;  %8383 = vmatpush2.bf16.msra.mxu0 %v13257_v16 }
0x11b2   : > { %v5865_v9 = vadd.f32 %v16393_v25, %v5864_v29  ;;  %8186 = vmatpush1.bf16.msra.mxu1 %v13176_v14  ;;  %v5967_v40 = vmax.f32 %v5873_v42, 0.0  ;;  %v13208_v14 = vld [vmem:[#allocation14 + $0x244] ss:$12 sps:$4 sm:$0xff]  }
0x11b3   : > { %8187 = vmatprep.subr.bf16.mxu1 %v13181_v33  ;;  %v13263_v29 = vld [vmem:[#allocation14 + $0x450] ss:$12 sps:$4 sm:$0xff]  }
0x11b4   : > { %v5965_v46 = vmax.f32 %v5865_v9, 0.0  ;;  %v5993_v36 = vpack.c.bf16 %v5967_v40, %v5966_v12  ;;  %v13265_v9 = vld [vmem:[#allocation14 + $0x454] ss:$12 sps:$4 sm:$0xff]   ;;  %v13266_v12 = vld [vmem:[#allocation14 + $0x438] ss:$12 sps:$4 sm:$0xff]  }
0x11b5   : > { %8384 = vmatprep.subr.bf16.mxu0 %v13265_v9  ;;  %v13303_v9 = vld [vmem:[#allocation14 + $0xb0] ss:$12 sps:$4 sm:$0xff]  }
0x11b6   : > { %v5992_v35 = vpack.c.bf16 %v5965_v46, %v5964_v6  ;;  %8188 = vmatpush1.bf16.msra.mxu1 %v13179_v15  ;;  %8385 = vmatpush2.bf16.msra.mxu0 %v13263_v29  ;;  %v13268_v6 = vld [vmem:[#allocation14 + $0x43c] ss:$12 sps:$4 sm:$0xff]  }
0x11b7   : > { %8189 = vmatprep.subr.bf16.mxu1 %v13184_v34  ;;  %8386 = vmatprep.subr.bf16.mxu0 %v13268_v6  ;;  %v13205_v29 = vld [vmem:[#allocation2 + $0xc] ss:$24 sps:$4 sm:$0xff]   ;;  %v13209_v6 = vld [vmem:[#allocation2 + $0x38] ss:$24 sps:$4 sm:$0xff]  }
0x11b8   : > { %12760 = vmatprep.mubr.bf16.mxu1 %v5992_v35  ;;  %v13274_v35 = vld [vmem:[#allocation14 + $0x424] ss:$12 sps:$4 sm:$0xff]  }
0x11b9   : > { %12761 = vmatmul.mubr.bf16.gmra.mxu1 %v5993_v36 }
0x11ba   : > { %8190 = vmatpush2.bf16.msra.mxu1 %v13182_v41  ;;  %8387 = vmatpush2.bf16.msra.mxu0 %v13266_v12  ;;  %v13214_v12 = vld [vmem:[#allocation2 + $0x6c] ss:$24 sps:$4 sm:$0xff]  }
0x11bb   : > { %v12718_v44 = vpop.f32.mrf.mxu1  ;;  %8191 = vmatprep.subr.bf16.mxu1 %v13187_v48  ;;  %8388 = vmatprep.subr.bf16.mxu0 %v13274_v35  ;;  %v13277_v48 = vld [vmem:[#allocation14 + $0x40c] ss:$12 sps:$4 sm:$0xff]   ;;  %v13312_v35 = vld [vmem:[#allocation14 + $0x68] ss:$12 sps:$4 sm:$0xff]  }
0x11bc   : > { %v5886_v47 = vadd.f32 %v12718_v44, %v16393_v25 }
0x11bd   : > { %v5877_v57 = vpop.f32.mrf.mxu1 }
0x11be   : > { %8192 = vmatpush2.bf16.msra.mxu1 %v13185_v54  ;;  %v5878_v5 = vadd.f32 %v16393_v25, %v5877_v57  ;;  %v5970_v13 = vmax.f32 %v5886_v47, 0.0  ;;  %8389 = vmatpush2.bf16.msra.mxu0 %v13272_v61  ;;  %v13275_v54 = vld [vmem:[#allocation14 + $0x408] ss:$12 sps:$4 sm:$0xff]   ;;  %v13323_v61 = vld [vmem:[#allocation14 + $0x50] ss:$12 sps:$4 sm:$0xff]  }
0x11bf   : > { %v12719_v31 = vpop.f32.mrf.mxu1  ;;  %8193 = vmatprep.subr.bf16.mxu1 %v13190_v52  ;;  %8390 = vmatprep.subr.bf16.mxu0 %v13277_v48  ;;  %v13286_v47 = vld [vmem:[#allocation14 + $0x3dc] ss:$12 sps:$4 sm:$0xff]   ;;  %v13324_v48 = vld [vmem:[#allocation14 + $0xf8] ss:$12 sps:$4 sm:$0xff]  }
0x11c0   : > { %v5889_v11 = vadd.f32 %v12719_v31, %v16393_v25  ;;  %v5968_v8 = vmax.f32 %v5878_v5, 0.0  ;;  %v13281_v31 = vld [vmem:[#allocation14 + $0x3f0] ss:$12 sps:$4 sm:$0xff]  }
0x11c1   : > { %v5880_v59 = vpop.f32.mrf.mxu1 }
0x11c2   : > { %v5881_v39 = vadd.f32 %v16393_v25, %v5880_v59  ;;  %8194 = vmatpush2.bf16.msra.mxu1 %v13188_v4  ;;  %v5971_v20 = vmax.f32 %v5889_v11, 0.0  ;;  %8391 = vmatpush2.bf16.msra.mxu0 %v13275_v54  ;;  %v13283_v4 = vld [vmem:[#allocation14 + $0x3f4] ss:$12 sps:$4 sm:$0xff]   ;;  %v13325_v54 = vld [vmem:[#allocation14 + $0x38] ss:$12 sps:$4 sm:$0xff]  }
0x11c3   : > { %8195 = vmatprep.subr.bf16.mxu1 %v13193_v53  ;;  %8392 = vmatprep.subr.bf16.mxu0 %v13283_v4  ;;  %v13329_v4 = vld [vmem:[#allocation14 + $0x8] ss:$12 sps:$4 sm:$0xff]  }
0x11c4   : > { %v5969_v26 = vmax.f32 %v5881_v39, 0.0  ;;  %v5995_v55 = vpack.c.bf16 %v5971_v20, %v5970_v13  ;;  %v13284_v39 = vld [vmem:[#allocation14 + $0x3d8] ss:$12 sps:$4 sm:$0xff]  }
0x11c6   : > { %v5994_v2 = vpack.c.bf16 %v5969_v26, %v5968_v8  ;;  %8196 = vmatpush2.bf16.msra.mxu1 %v13191_v10  ;;  %8393 = vmatpush2.bf16.msra.mxu0 %v13281_v31  ;;  %v13292_v10 = vld [vmem:[#allocation14 + $0x3c4] ss:$12 sps:$4 sm:$0xff]  }
0x11c7   : > { %8197 = vmatprep.subr.bf16.mxu1 %v13196_v38  ;;  %8394 = vmatprep.subr.bf16.mxu0 %v13286_v47  ;;  %v13296_v8 = vld [vmem:[#allocation14 + $0x170] ss:$12 sps:$4 sm:$0xff]  }
0x11c8   : > { %12764 = vmatprep.mubr.bf16.mxu1 %v5994_v2  ;;  %v13226_v31 = vld [vmem:[#allocation2 + $0xfc] ss:$24 sps:$4 sm:$0xff]  }
0x11c9   : > { %12765 = vmatmul.mubr.bf16.gmra.mxu1 %v5995_v55 }
0x11ca   : > { %8198 = vmatpush2.bf16.msra.mxu1 %v13194_v62  ;;  %8395 = vmatpush2.bf16.msra.mxu0 %v13284_v39  ;;  %v13233_v39 = vld [vmem:[#allocation2 + $0x128] ss:$24 sps:$4 sm:$0xff]  }
0x11cb   : > { %v12722_v18 = vpop.f32.mrf.mxu1  ;;  %8199 = vmatprep.subr.bf16.mxu1 %v13199_v28  ;;  %8396 = vmatprep.subr.bf16.mxu0 %v13292_v10  ;;  %v13244_v10 = vld [vmem:[#allocation2 + $0x15c] ss:$24 sps:$4 sm:$0xff]  }
0x11cc   : > { %v5902_v58 = vadd.f32 %v12722_v18, %v16393_v25 }
0x11cd   : > { %v5893_v27 = vpop.f32.mrf.mxu1 }
0x11ce   : > { %8200 = vmatpush2.bf16.msra.mxu1 %v13197_v50  ;;  %v5894_v23 = vadd.f32 %v16393_v25, %v5893_v27  ;;  %v5974_v40 = vmax.f32 %v5902_v58, 0.0  ;;  %8397 = vmatpush2.bf16.msra.mxu0 %v13290_v3 }
0x11cf   : > { %v12723_v60 = vpop.f32.mrf.mxu1  ;;  %8201 = vmatprep.subr.bf16.mxu1 %v13202_v24 }
0x11d0   : > { %v5905_v33 = vadd.f32 %v12723_v60, %v16393_v25  ;;  %v5972_v56 = vmax.f32 %v5894_v23, 0.0 }
0x11d1   : > { %v5896_v43 = vpop.f32.mrf.mxu1 }
0x11d2   : > { %v5897_v42 = vadd.f32 %v16393_v25, %v5896_v43  ;;  %8202 = vmatpush2.bf16.msra.mxu1 %v13200_v30  ;;  %v5975_v15 = vmax.f32 %v5905_v33, 0.0 }
0x11d3   : > { %8203 = vmatprep.subr.bf16.mxu1 %v13208_v14 }
0x11d4   : > { %v5973_v17 = vmax.f32 %v5897_v42, 0.0  ;;  %v5997_v46 = vpack.c.bf16 %v5975_v15, %v5974_v40  ;;  %v13203_v15 = vld [vmem:[#allocation2 + $0x8] ss:$24 sps:$4 sm:$0xff]  }
0x11d5   : > { %v13305_v40 = vld [vmem:[#allocation14 + $0x98] ss:$12 sps:$4 sm:$0xff]  }
0x11d6   : > { %v5996_v34 = vpack.c.bf16 %v5973_v17, %v5972_v56  ;;  %8204 = vmatpush2.bf16.msra.mxu1 %v13206_v51  ;;  %v13304_v56 = vld [vmem:[#allocation14 + $0x158] ss:$12 sps:$4 sm:$0xff]  }
0x11d7   : > { %11844 = vmatprep.subr.bf16.mxu1 %v13296_v8  ;;  %v13211_v17 = vld [vmem:[#allocation2 + $0x3c] ss:$24 sps:$4 sm:$0xff]  }
0x11d8   : > { %12768 = vmatprep.mubr.bf16.mxu1 %v5996_v34  ;;  %v13310_v34 = vld [vmem:[#allocation14 + $0x80] ss:$12 sps:$4 sm:$0xff]  }
0x11d9   : > { %12769 = vmatmul.mubr.bf16.gmra.mxu1 %v5997_v46  ;;  %v13311_v46 = vld [vmem:[#allocation14 + $0x128] ss:$12 sps:$4 sm:$0xff]  }
0x11db   : > { %v12726_v41 = vpop.f32.mrf.mxu1 }
0x11dc   : > { %v5918_v44 = vadd.f32 %v12726_v41, %v16393_v25  ;;  %v13316_v41 = vld [vmem:[#allocation14 + $0x110] ss:$12 sps:$4 sm:$0xff]  }
0x11dd   : > { %v5909_v36 = vpop.f32.mrf.mxu1 }
0x11de   : > { %v5910_v21 = vadd.f32 %v16393_v25, %v5909_v36  ;;  %v5978_v5 = vmax.f32 %v5918_v44, 0.0  ;;  %v13212_v36 = vld [vmem:[#allocation2 + $0x68] ss:$24 sps:$4 sm:$0xff]   ;;  %v13215_v44 = vld [vmem:[#allocation2 + $0x98] ss:$24 sps:$4 sm:$0xff]  }
0x11df   : > { %v12727_v0 = vpop.f32.mrf.mxu1 }
0x11e0   : > { %v5921_v37 = vadd.f32 %v12727_v0, %v16393_v25  ;;  %v5976_v53 = vmax.f32 %v5910_v21, 0.0  ;;  %v13217_v0 = vld [vmem:[#allocation2 + $0x9c] ss:$24 sps:$4 sm:$0xff]   ;;  %v13326_v21 = vld [vmem:[#allocation14 + $0xe0] ss:$12 sps:$4 sm:$0xff]  }
0x11e1   : > { %v5912_v52 = vpop.f32.mrf.mxu1 }
0x11e2   : > { %v5913_v57 = vadd.f32 %v16393_v25, %v5912_v52  ;;  %v5979_v32 = vmax.f32 %v5921_v37, 0.0  ;;  %v13327_v37 = vld [vmem:[#allocation14 + $0x20] ss:$12 sps:$4 sm:$0xff]   ;;  %v13328_v52 = vld [vmem:[#allocation14 + $0xc8] ss:$12 sps:$4 sm:$0xff]  }
0x11e4   : > { %v5977_v22 = vmax.f32 %v5913_v57, 0.0  ;;  %v5999_v59 = vpack.c.bf16 %v5979_v32, %v5978_v5  ;;  %v13220_v57 = vld [vmem:[#allocation2 + $0xcc] ss:$24 sps:$4 sm:$0xff]   ;;  %v13218_v32 = vld [vmem:[#allocation2 + $0xc8] ss:$24 sps:$4 sm:$0xff]  }
0x11e5   : > { %v13224_v5 = vld [vmem:[#allocation2 + $0xf8] ss:$24 sps:$4 sm:$0xff]  }
0x11e6   : > { %v5998_v11 = vpack.c.bf16 %v5977_v22, %v5976_v53  ;;  %v16427_v53 = vpop.f32.mrf.mxu0 }
0x11e8   : > { %12772 = vmatprep.mubr.bf16.mxu1 %v5998_v11  ;;  %v16429_v22 = vpop.f32.mrf.mxu0  ;;  %v13235_v11 = vld [vmem:[#allocation2 + $0x12c] ss:$24 sps:$4 sm:$0xff]  }
0x11e9   : > { %12773 = vmatmul.mubr.bf16.gmra.mxu1 %v5999_v59 }
0x11ea   : > { %v16431_v47 = vpop.f32.mrf.mxu0 }
0x11eb   : > { %v12730_v19 = vpop.f32.mrf.mxu1 }
0x11ec   : > { %v5934_v2 = vadd.f32 %v12730_v19, %v16393_v25  ;;  %v16433_v59 = vpop.f32.mrf.mxu0 }
0x11ed   : > { %v5925_v20 = vpop.f32.mrf.mxu1 }
0x11ee   : > { %v5926_v26 = vadd.f32 %v16393_v25, %v5925_v20  ;;  %v5982_v50 = vmax.f32 %v5934_v2, 0.0  ;;  %v16435_v19 = vpop.f32.mrf.mxu0  ;;  %v13242_v20 = vld [vmem:[#allocation2 + $0x158] ss:$24 sps:$4 sm:$0xff]   ;;  %v13251_v2 = vld [vmem:[#allocation2 + $0x188] ss:$24 sps:$4 sm:$0xff]  }
0x11ef   : > { %v12731_v38 = vpop.f32.mrf.mxu1 }
0x11f0   : > { %v5937_v13 = vadd.f32 %v12731_v38, %v16393_v25  ;;  %v5980_v28 = vmax.f32 %v5926_v26, 0.0  ;;  %v16437_v3 = vpop.f32.mrf.mxu0  ;;  %v13253_v38 = vld [vmem:[#allocation2 + $0x18c] ss:$24 sps:$4 sm:$0xff]  }
0x11f1   : > { %v5928_v62 = vpop.f32.mrf.mxu1 }
0x11f2   : > { %v5929_v45 = vadd.f32 %v16393_v25, %v5928_v62  ;;  %v5983_v55 = vmax.f32 %v5937_v13, 0.0  ;;  %v16439_v8 = vpop.f32.mrf.mxu0  ;;  %v13357_v13 = vld [vmem:[#allocation14 + $0x2f0] ss:$12 sps:$4 sm:$0xff]  }
0x11f3   : > { %v13262_v62 = vld [vmem:[#allocation2 + $0x1bc] ss:$24 sps:$4 sm:$0xff]   ;;  %11956 = vmatprep.subr.bf16.mxu0 %v13357_v13 }
0x11f4   : > { %v5981_v63 = vmax.f32 %v5929_v45, 0.0  ;;  %v6001_v1 = vpack.c.bf16 %v5983_v55, %v5982_v50  ;;  %v16441_v26 = vpop.f32.mrf.mxu0  ;;  %v13271_v50 = vld [vmem:[#allocation2 + $0x1ec] ss:$24 sps:$4 sm:$0xff]  }
0x11f6   : > { %v6000_v49 = vpack.c.bf16 %v5981_v63, %v5980_v28  ;;  %v16443_v45 = vpop.f32.mrf.mxu0  ;;  %v13260_v28 = vld [vmem:[#allocation2 + $0x1b8] ss:$24 sps:$4 sm:$0xff]   ;;  %v16450_v63 = vld [vmem:[%s17586_s19 + $0x5] ss:$0 sm:$0xff] }
0x11f8   : > { %12776 = vmatprep.mubr.bf16.mxu1 %v6000_v49  ;;  %v16445_v55 = vpop.f32.mrf.mxu0 }
0x11f9   : > { %12777 = vmatmul.mubr.bf16.gmra.mxu1 %v6001_v1 }
0x11fa   : > { %v16452_v1 = vpop.f32.mrf.mxu0 }
0x11fb   : > { %v12734_v18 = vpop.f32.mrf.mxu1 }
0x11fc   : > { %v5950_v60 = vadd.f32 %v12734_v18, %v16393_v25 }
0x11fd   : > { %v5941_v24 = vpop.f32.mrf.mxu1 }
0x11fe   : > { %v5942_v30 = vadd.f32 %v16393_v25, %v5941_v24  ;;  %v5986_v43 = vmax.f32 %v5950_v60, 0.0  ;;  %v16456_v60 = vpop.f32.mrf.mxu0 }
0x11ff   : > { %v12735_v27 = vpop.f32.mrf.mxu1  ;;  %17587 = vst [vmem:[#allocation26_spill] sm:$0xff] %v16456_v60 }
0x1200   : > { %v5953_v7 = vadd.f32 %v12735_v27, %v16393_v25  ;;  %v5984_v33 = vmax.f32 %v5942_v30, 0.0 }
0x1201   : > { %v5944_v14 = vpop.f32.mrf.mxu1 }
0x1202   : > { %v5945_v16 = vadd.f32 %v16393_v25, %v5944_v14  ;;  %v5987_v23 = vmax.f32 %v5953_v7, 0.0  ;;  %v13306_v25 = vld [vmem:[#allocation14 + $0x140] ss:$12 sps:$4 sm:$0xff]  }
0x1204   : > { %v5985_v58 = vmax.f32 %v5945_v16, 0.0  ;;  %v6003_v51 = vpack.c.bf16 %v5987_v23, %v5986_v43 }
0x1206   : > { %v6002_v42 = vpack.c.bf16 %v5985_v58, %v5984_v33  ;;  %v13269_v33 = vld [vmem:[#allocation2 + $0x1e8] ss:$24 sps:$4 sm:$0xff]  }
0x1208   : > { %12780 = vmatprep.mubr.bf16.mxu1 %v6002_v42 }
0x1209   : > { %12781 = vmatmul.mubr.bf16.gmra.mxu1 %v6003_v51 }
0x120a   : > { %8205 = vmatprep.mubr.bf16.mxu1 %v13205_v29  ;;  %v13280_v29 = vld [vmem:[#allocation2 + $0x21c] ss:$24 sps:$4 sm:$0xff]  }
0x1211   : > { %8206 = vmatmul.mubr.bf16.vlgmr.msra.gmra.mxu1 %v13203_v15 }
0x1212   : > { %8215 = vmatprep.mubr.bf16.mxu1 %v13211_v17  ;;  %11845 = vmatpush3.bf16.msra.mxu1 %v13303_v9  ;;  %v16460_v9 = vpop.f32.mrf.mxu0 }
0x1213   : > { %11846 = vmatprep.subr.bf16.mxu1 %v13304_v56 }
0x1216   : > { %11847 = vmatpush3.bf16.msra.mxu1 %v13305_v40  ;;  %v16462_v40 = vpop.f32.mrf.mxu0 }
0x1217   : > { %11848 = vmatprep.subr.bf16.mxu1 %v13306_v25  ;;  %v13278_v25 = vld [vmem:[#allocation2 + $0x218] ss:$24 sps:$4 sm:$0xff]  }
0x1219   : > { %8216 = vmatmul.mubr.bf16.gmra.mxu1 %v13209_v6 }
0x121a   : > { %8225 = vmatprep.mubr.bf16.mxu1 %v13214_v12  ;;  %11849 = vmatpush3.bf16.msra.mxu1 %v13310_v34  ;;  %v13289_v34 = vld [vmem:[#allocation2 + $0x24c] ss:$24 sps:$4 sm:$0xff]  }
0x121b   : > { %11850 = vmatprep.subr.bf16.mxu1 %v13311_v46  ;;  %v16464_v46 = vpop.f32.mrf.mxu0 }
0x121e   : > { %11851 = vmatpush3.bf16.msra.mxu1 %v13312_v35 }
0x121f   : > { %11852 = vmatprep.subr.bf16.mxu1 %v13316_v41 }
0x1221   : > { %8226 = vmatmul.mubr.bf16.gmra.mxu1 %v13212_v36 }
0x1222   : > { %8235 = vmatprep.mubr.bf16.mxu1 %v13217_v0  ;;  %11853 = vmatpush3.bf16.msra.mxu1 %v13323_v61 }
0x1223   : > { %11854 = vmatprep.subr.bf16.mxu1 %v13324_v48  ;;  %v16468_v48 = vld [vmem:[#allocation2 + $0x10] ss:$24 sps:$4 sm:$0xff]  }
0x1226   : > { %11855 = vmatpush3.bf16.msra.mxu1 %v13325_v54  ;;  %v16472_v54 = vpop.f32.mrf.mxu0 }
0x1227   : > { %11856 = vmatprep.subr.bf16.mxu1 %v13326_v21  ;;  %17588 = vst [vmem:[#allocation27_spill] sm:$0xff] %v16472_v54  ;;  %v13697_v54 = vld [vmem:[#allocation2 + $0x120] ss:$24 sps:$4 sm:$0xff]  }
0x1229   : > { %8236 = vmatmul.mubr.bf16.gmra.mxu1 %v13215_v44 }
0x122a   : > { %8245 = vmatprep.mubr.bf16.mxu1 %v13220_v57  ;;  %11857 = vmatpush3.bf16.msra.mxu1 %v13327_v37  ;;  %v13287_v37 = vld [vmem:[#allocation2 + $0x248] ss:$24 sps:$4 sm:$0xff]  }
0x122b   : > { %11858 = vmatprep.subr.bf16.mxu1 %v13328_v52  ;;  %v13361_v57 = vld [vmem:[#allocation14 + $0x230] ss:$12 sps:$4 sm:$0xff]  }
0x122e   : > { %11859 = vmatpush3.bf16.msra.mxu1 %v13329_v4 }
0x1231   : > { %8246 = vmatmul.mubr.bf16.gmra.mxu1 %v13218_v32 }
0x1232   : > { %8255 = vmatprep.mubr.bf16.mxu1 %v13226_v31  ;;  %v13362_v31 = vld [vmem:[#allocation14 + $0x2d8] ss:$12 sps:$4 sm:$0xff]  }
0x1239   : > { %8256 = vmatmul.mubr.bf16.gmra.mxu1 %v13224_v5  ;;  %v13382_v5 = vld [vmem:[#allocation14 + $0x470] ss:$12 sps:$4 sm:$0xff]  }
0x123a   : > { %8265 = vmatprep.mubr.bf16.mxu1 %v13235_v11  ;;  %12068 = vmatprep.subr.bf16.mxu1 %v13382_v5  ;;  %v13377_v5 = vld [vmem:[#allocation14 + $0x1b8] ss:$12 sps:$4 sm:$0xff]  }
0x1241   : > { %8266 = vmatmul.mubr.bf16.gmra.mxu1 %v13233_v39 }
0x1242   : > { %8275 = vmatprep.mubr.bf16.mxu1 %v13244_v10 }
0x1249   : > { %8276 = vmatmul.mubr.bf16.gmra.mxu1 %v13242_v20  ;;  %v13299_v20 = vld [vmem:[#allocation2 + $0x27c] ss:$24 sps:$4 sm:$0xff]  }
0x124a   : > { %8285 = vmatprep.mubr.bf16.mxu1 %v13253_v38  ;;  %v16481_v38 = vpop.f32.mrf.mxu0 }
0x1251   : > { %8286 = vmatmul.mubr.bf16.gmra.mxu1 %v13251_v2 }
0x1252   : > { %8295 = vmatprep.mubr.bf16.mxu1 %v13262_v62  ;;  %v13363_v62 = vld [vmem:[#allocation14 + $0x218] ss:$12 sps:$4 sm:$0xff]  }
0x1259   : > { %v12754_v49 = vpop.f32.mrf.mxu1  ;;  %8296 = vmatmul.mubr.bf16.gmra.mxu1 %v13260_v28  ;;  %v13364_v28 = vld [vmem:[#allocation14 + $0x2c0] ss:$12 sps:$4 sm:$0xff]  }
0x125a   : > { %v6117_v18 = vadd.f32 %v12754_v49, %v16450_v63  ;;  %8305 = vmatprep.mubr.bf16.mxu1 %v13271_v50  ;;  %v16483_v49 = vpop.f32.mrf.mxu0 }
0x125b   : > { %v6108_v24 = vpop.f32.mrf.mxu1 }
0x125c   : > { %v6237_v27 = vmax.f32 %v6117_v18, 0.0  ;;  %v6109_v30 = vadd.f32 %v16450_v63, %v6108_v24  ;;  %v16485_v18 = vld [vmem:[#allocation2 + $0x40] ss:$24 sps:$4 sm:$0xff]  }
0x125d   : > { %v12755_v7 = vpop.f32.mrf.mxu1  ;;  %v13365_v24 = vld [vmem:[#allocation14 + $0x200] ss:$12 sps:$4 sm:$0xff]  }
0x125e   : > { %v10854_v14 = vpack.c.bf16 %v6237_v27, %v6237_v27  ;;  %v6235_v16 = vmax.f32 %v6109_v30, 0.0  ;;  %v6120_v23 = vadd.f32 %v12755_v7, %v16450_v63  ;;  %v13297_v27 = vld [vmem:[#allocation2 + $0x278] ss:$24 sps:$4 sm:$0xff]   ;;  %v13309_v7 = vld [vmem:[#allocation2 + $0x2ac] ss:$24 sps:$4 sm:$0xff]  }
0x125f   : > { %v6111_v58 = vpop.f32.mrf.mxu1  ;;  %v13366_v30 = vld [vmem:[#allocation14 + $0x2a8] ss:$12 sps:$4 sm:$0xff]  }
0x1260   : > { %6397 = vst [vmem:[#allocation2 + $0x44] sm:$0xf] %v10854_v14  ;;  %v10852_v43 = vpack.c.bf16 %v6235_v16, %v6235_v16  ;;  %v6238_v42 = vmax.f32 %v6120_v23, 0.0  ;;  %v6112_v51 = vadd.f32 %v16450_v63, %v6111_v58  ;;  %v16488_v16 = vpop.f32.mrf.mxu0 }
0x1261   : > { %8306 = vmatmul.mubr.bf16.gmra.mxu1 %v13269_v33  ;;  %v13367_v33 = vld [vmem:[#allocation14 + $0x1e8] ss:$12 sps:$4 sm:$0xff]  }
0x1262   : > { %6395 = vst [vmem:[#allocation2 + $0x14] sm:$0xf] %v10852_v43  ;;  %v10855_v15 = vpack.c.bf16 %v6238_v42, %v6238_v42  ;;  %v6236_v56 = vmax.f32 %v6112_v51, 0.0  ;;  %8315 = vmatprep.mubr.bf16.mxu1 %v13280_v29  ;;  %v13371_v43 = vld [vmem:[#allocation14 + $0x290] ss:$12 sps:$4 sm:$0xff]  }
0x1264   : > { %6398 = vst [vmem:[#allocation2 + $0x5c] sm:$0xf] %v10855_v15  ;;  %v10853_v17 = vpack.c.bf16 %v6236_v56, %v6236_v56  ;;  %v16492_v15 = vld [vmem:[#allocation2 + $0x70] ss:$24 sps:$4 sm:$0xff]  }
0x1266   : > { %6396 = vst [vmem:[#allocation2 + $0x2c] sm:$0xf] %v10853_v17  ;;  %v16496_v17 = vpop.f32.mrf.mxu0 }
0x1267   : > { %17589 = vst [vmem:[#allocation28_spill] sm:$0xff] %v16496_v17 }
0x1269   : > { %v12758_v6 = vpop.f32.mrf.mxu1  ;;  %8316 = vmatmul.mubr.bf16.gmra.mxu1 %v13278_v25 }
0x126a   : > { %v6133_v12 = vadd.f32 %v12758_v6, %v16450_v63  ;;  %8325 = vmatprep.mubr.bf16.mxu1 %v13289_v34 }
0x126b   : > { %v6124_v35 = vpop.f32.mrf.mxu1  ;;  %v16476_v32 = vld [vmem:[#allocation2 + $0x44] ss:$24 sps:$4 sm:$0xff]  }
0x126c   : > { %v6241_v41 = vmax.f32 %v6133_v12, 0.0  ;;  %v6125_v61 = vadd.f32 %v16450_v63, %v6124_v35  ;;  %v13375_v12 = vld [vmem:[#allocation14 + $0x1d0] ss:$12 sps:$4 sm:$0xff]  }
0x126d   : > { %v12759_v36 = vpop.f32.mrf.mxu1  ;;  %v16470_v0 = vld [vmem:[#allocation2 + $0x14] ss:$24 sps:$4 sm:$0xff]   ;;  %v13307_v35 = vld [vmem:[#allocation2 + $0x2a8] ss:$24 sps:$4 sm:$0xff]  }
0x126e   : > { %v10858_v21 = vpack.c.bf16 %v6241_v41, %v6241_v41  ;;  %v6239_v44 = vmax.f32 %v6125_v61, 0.0  ;;  %v6136_v52 = vadd.f32 %v12759_v36, %v16450_v63  ;;  %8398 = vmatprep.mubr.bf16.mxu0 %v16470_v0  ;;  %v13376_v36 = vld [vmem:[#allocation14 + $0x278] ss:$12 sps:$4 sm:$0xff]  }
0x126f   : > { %v6127_v4 = vpop.f32.mrf.mxu1  ;;  %8399 = vmatmul.mubr.bf16.vlgmr.msra.gmra.mxu0 %v16468_v48 }
0x1270   : > { %6401 = vst [vmem:[#allocation2 + $0xa4] sm:$0xf] %v10858_v21  ;;  %v10856_v11 = vpack.c.bf16 %v6239_v44, %v6239_v44  ;;  %v6242_v39 = vmax.f32 %v6136_v52, 0.0  ;;  %v6128_v10 = vadd.f32 %v16450_v63, %v6127_v4  ;;  %8408 = vmatprep.mubr.bf16.mxu0 %v16476_v32  ;;  %11957 = vmatpush3.bf16.msra.mxu0 %v13361_v57  ;;  %v13319_v52 = vld [vmem:[#allocation2 + $0x2dc] ss:$24 sps:$4 sm:$0xff]   ;;  %v16505_v57 = vpop.f32.mrf.mxu0 }
0x1271   : > { %8326 = vmatmul.mubr.bf16.gmra.mxu1 %v13287_v37  ;;  %11958 = vmatprep.subr.bf16.mxu0 %v13362_v31 }
0x1272   : > { %6399 = vst [vmem:[#allocation2 + $0x74] sm:$0xf] %v10856_v11  ;;  %v10859_v13 = vpack.c.bf16 %v6242_v39, %v6242_v39  ;;  %v6240_v2 = vmax.f32 %v6128_v10, 0.0  ;;  %8335 = vmatprep.mubr.bf16.mxu1 %v13299_v20  ;;  %v13378_v11 = vld [vmem:[#allocation14 + $0x260] ss:$12 sps:$4 sm:$0xff]   ;;  %v16507_v10 = vpop.f32.mrf.mxu0 }
0x1273   : > { %v16509_v20 = vld [vmem:[#allocation2 + $0xa0] ss:$24 sps:$4 sm:$0xff]  }
0x1274   : > { %6402 = vst [vmem:[#allocation2 + $0xbc] sm:$0xf] %v10859_v13  ;;  %v10857_v50 = vpack.c.bf16 %v6240_v2, %v6240_v2  ;;  %11959 = vmatpush3.bf16.msra.mxu0 %v13363_v62  ;;  %v13379_v13 = vld [vmem:[#allocation14 + $0x1a0] ss:$12 sps:$4 sm:$0xff]   ;;  %v13380_v62 = vld [vmem:[#allocation14 + $0x248] ss:$12 sps:$4 sm:$0xff]  }
0x1275   : > { %11960 = vmatprep.subr.bf16.mxu0 %v13364_v28  ;;  %v13317_v2 = vld [vmem:[#allocation2 + $0x2d8] ss:$24 sps:$4 sm:$0xff]  }
0x1276   : > { %6400 = vst [vmem:[#allocation2 + $0x8c] sm:$0xf] %v10857_v50  ;;  %v16512_v50 = vpop.f32.mrf.mxu0 }
0x1277   : > { %8409 = vmatmul.mubr.bf16.gmra.mxu0 %v16485_v18 }
0x1278   : > { %11961 = vmatpush3.bf16.msra.mxu0 %v13365_v24 }
0x1279   : > { %v12762_v14 = vpop.f32.mrf.mxu1  ;;  %8336 = vmatmul.mubr.bf16.gmra.mxu1 %v13297_v27  ;;  %11962 = vmatprep.subr.bf16.mxu0 %v13366_v30  ;;  %v13684_v27 = vld [vmem:[#allocation2 + $0x4] ss:$24 sps:$4 sm:$0xff]   ;;  %v13381_v30 = vld [vmem:[#allocation14 + $0x188] ss:$12 sps:$4 sm:$0xff]  }
0x127a   : > { %v6149_v23 = vadd.f32 %v12762_v14, %v16450_v63  ;;  %8345 = vmatprep.mubr.bf16.mxu1 %v13309_v7 }
0x127b   : > { %v6140_v58 = vpop.f32.mrf.mxu1  ;;  %v16500_v61 = vld [vmem:[#allocation2 + $0xa4] ss:$24 sps:$4 sm:$0xff]  }
0x127c   : > { %v6245_v42 = vmax.f32 %v6149_v23, 0.0  ;;  %v6141_v51 = vadd.f32 %v16450_v63, %v6140_v58  ;;  %11963 = vmatpush3.bf16.msra.mxu0 %v13367_v33  ;;  %v16516_v58 = vld [vmem:[#allocation2 + $0xd0] ss:$24 sps:$4 sm:$0xff]  }
0x127d   : > { %v12763_v29 = vpop.f32.mrf.mxu1  ;;  %v16494_v56 = vld [vmem:[#allocation2 + $0x74] ss:$24 sps:$4 sm:$0xff]   ;;  %11964 = vmatprep.subr.bf16.mxu0 %v13371_v43 }
0x127e   : > { %v10862_v25 = vpack.c.bf16 %v6245_v42, %v6245_v42  ;;  %v6243_v34 = vmax.f32 %v6141_v51, 0.0  ;;  %v6152_v6 = vadd.f32 %v12763_v29, %v16450_v63  ;;  %8418 = vmatprep.mubr.bf16.mxu0 %v16494_v56  ;;  %v16520_v42 = vpop.f32.mrf.mxu0 }
0x127f   : > { %v6143_v41 = vpop.f32.mrf.mxu1  ;;  %8419 = vmatmul.mubr.bf16.gmra.mxu0 %v16492_v15  ;;  %17590 = vst [vmem:[#allocation29_spill] sm:$0xff] %v16520_v42 }
0x1280   : > { %6405 = vst [vmem:[#allocation2 + $0x104] sm:$0xf] %v10862_v25  ;;  %v10860_v21 = vpack.c.bf16 %v6243_v34, %v6243_v34  ;;  %v6246_v37 = vmax.f32 %v6152_v6, 0.0  ;;  %v6144_v44 = vadd.f32 %v16450_v63, %v6143_v41  ;;  %8428 = vmatprep.mubr.bf16.mxu0 %v16500_v61  ;;  %11965 = vmatpush3.bf16.msra.mxu0 %v13375_v12  ;;  %v13383_v34 = vld [vmem:[#allocation14 + $0x3b0] ss:$12 sps:$4 sm:$0xff]  }
0x1281   : > { %8346 = vmatmul.mubr.bf16.gmra.mxu1 %v13307_v35  ;;  %11966 = vmatprep.subr.bf16.mxu0 %v13376_v36  ;;  %v13384_v35 = vld [vmem:[#allocation14 + $0x458] ss:$12 sps:$4 sm:$0xff]  }
0x1282   : > { %6403 = vst [vmem:[#allocation2 + $0xd4] sm:$0xf] %v10860_v21  ;;  %v10863_v4 = vpack.c.bf16 %v6246_v37, %v6246_v37  ;;  %v6244_v31 = vmax.f32 %v6144_v44, 0.0  ;;  %8355 = vmatprep.mubr.bf16.mxu1 %v13319_v52  ;;  %v13685_v37 = vld [vmem:[#allocation2] ss:$24 sps:$4 sm:$0xff]   ;;  %v16529_v44 = vpop.f32.mrf.mxu0 }
0x1284   : > { %6406 = vst [vmem:[#allocation2 + $0x11c] sm:$0xf] %v10863_v4  ;;  %v10861_v39 = vpack.c.bf16 %v6244_v31, %v6244_v31  ;;  %11967 = vmatpush3.bf16.msra.mxu0 %v13377_v5  ;;  %v13686_v31 = vld [vmem:[#allocation2 + $0x34] ss:$24 sps:$4 sm:$0xff]   ;;  %v13385_v5 = vld [vmem:[#allocation14 + $0x398] ss:$12 sps:$4 sm:$0xff]  }
0x1285   : > { %11968 = vmatprep.subr.bf16.mxu0 %v13378_v11  ;;  %v13386_v11 = vld [vmem:[#allocation14 + $0x440] ss:$12 sps:$4 sm:$0xff]  }
0x1286   : > { %6404 = vst [vmem:[#allocation2 + $0xec] sm:$0xf] %v10861_v39 }
0x1287   : > { %8429 = vmatmul.mubr.bf16.gmra.mxu0 %v16509_v20 }
0x1288   : > { %11969 = vmatpush3.bf16.msra.mxu0 %v13379_v13  ;;  %v16531_v13 = vpop.f32.mrf.mxu0 }
0x1289   : > { %v12766_v28 = vpop.f32.mrf.mxu1  ;;  %8356 = vmatmul.mubr.bf16.gmra.mxu1 %v13317_v2  ;;  %11970 = vmatprep.subr.bf16.mxu0 %v13380_v62  ;;  %v16533_v2 = vld [vmem:[#allocation2 + $0x100] ss:$24 sps:$4 sm:$0xff]  }
0x128a   : > { %v6165_v24 = vadd.f32 %v12766_v28, %v16450_v63  ;;  %8591 = vmatprep.mubr.bf16.mxu1 %v13684_v27  ;;  %v13387_v62 = vld [vmem:[#allocation14 + $0x380] ss:$12 sps:$4 sm:$0xff]   ;;  %v13388_v28 = vld [vmem:[#allocation14 + $0x428] ss:$12 sps:$4 sm:$0xff]  }
0x128b   : > { %v6156_v7 = vpop.f32.mrf.mxu1  ;;  %v16524_v12 = vld [vmem:[#allocation2 + $0x104] ss:$24 sps:$4 sm:$0xff]   ;;  %v13687_v27 = vld [vmem:[#allocation2 + $0x30] ss:$24 sps:$4 sm:$0xff]  }
0x128c   : > { %v6249_v14 = vmax.f32 %v6165_v24, 0.0  ;;  %v6157_v23 = vadd.f32 %v16450_v63, %v6156_v7  ;;  %11971 = vmatpush3.bf16.msra.mxu0 %v13381_v30  ;;  %v16536_v30 = vpop.f32.mrf.mxu0 }
0x128d   : > { %v12767_v33 = vpop.f32.mrf.mxu1  ;;  %v16518_v43 = vld [vmem:[#allocation2 + $0xd4] ss:$24 sps:$4 sm:$0xff]  }
0x128e   : > { %v10866_v51 = vpack.c.bf16 %v6249_v14, %v6249_v14  ;;  %v6247_v29 = vmax.f32 %v6157_v23, 0.0  ;;  %v6168_v25 = vadd.f32 %v12767_v33, %v16450_v63  ;;  %8438 = vmatprep.mubr.bf16.mxu0 %v16518_v43  ;;  %v13688_v14 = vld [vmem:[#allocation2 + $0x64] ss:$24 sps:$4 sm:$0xff]   ;;  %v13389_v23 = vld [vmem:[#allocation14 + $0x368] ss:$12 sps:$4 sm:$0xff]  }
0x128f   : > { %v6159_v6 = vpop.f32.mrf.mxu1  ;;  %8439 = vmatmul.mubr.bf16.gmra.mxu0 %v16516_v58 }
0x1290   : > { %6409 = vst [vmem:[#allocation2 + $0x164] sm:$0xf] %v10866_v51  ;;  %v10864_v41 = vpack.c.bf16 %v6247_v29, %v6247_v29  ;;  %v6250_v36 = vmax.f32 %v6168_v25, 0.0  ;;  %v6160_v21 = vadd.f32 %v16450_v63, %v6159_v6  ;;  %8448 = vmatprep.mubr.bf16.mxu0 %v16524_v12  ;;  %v13390_v51 = vld [vmem:[#allocation14 + $0x410] ss:$12 sps:$4 sm:$0xff]  }
0x1291   : > { %8592 = vmatmul.mubr.bf16.vlgmr.msra.gmra.mxu1 %v13685_v37  ;;  %v16540_v6 = vld [vmem:[#allocation2 + $0x130] ss:$24 sps:$4 sm:$0xff]  }
0x1292   : > { %6407 = vst [vmem:[#allocation2 + $0x134] sm:$0xf] %v10864_v41  ;;  %v10867_v52 = vpack.c.bf16 %v6250_v36, %v6250_v36  ;;  %v6248_v4 = vmax.f32 %v6160_v21, 0.0  ;;  %8599 = vmatprep.mubr.bf16.mxu1 %v13686_v31  ;;  %12069 = vmatpush3.bf16.msra.mxu1 %v13383_v34  ;;  %17591 = vst [vmem:[#allocation30_spill] sm:$0xff] %v16540_v6  ;;  %v16544_v41 = vpop.f32.mrf.mxu0 }
0x1293   : > { %12070 = vmatprep.subr.bf16.mxu1 %v13384_v35  ;;  %17592 = vst [vmem:[#allocation31_spill] sm:$0xff] %v16544_v41  ;;  %v16588_v41 = vld [vmem:[#allocation2 + $0x1f0] ss:$24 sps:$4 sm:$0xff]  }
0x1294   : > { %6410 = vst [vmem:[#allocation2 + $0x17c] sm:$0xf] %v10867_v52  ;;  %v10865_v39 = vpack.c.bf16 %v6248_v4, %v6248_v4  ;;  %v13391_v52 = vld [vmem:[#allocation14 + $0x350] ss:$12 sps:$4 sm:$0xff]   ;;  %17600 = vst [vmem:[#allocation39_spill] sm:$0xff] %v16588_v41 }
0x1296   : > { %6408 = vst [vmem:[#allocation2 + $0x14c] sm:$0xf] %v10865_v39  ;;  %12071 = vmatpush3.bf16.msra.mxu1 %v13385_v5  ;;  %v13392_v5 = vld [vmem:[#allocation14 + $0x3f8] ss:$12 sps:$4 sm:$0xff]  }
0x1297   : > { %12072 = vmatprep.subr.bf16.mxu1 %v13386_v11  ;;  %8449 = vmatmul.mubr.bf16.gmra.mxu0 %v16533_v2 }
0x1299   : > { %v12770_v24 = vpop.f32.mrf.mxu1  ;;  %8600 = vmatmul.mubr.bf16.gmra.mxu1 %v13687_v27 }
0x129a   : > { %v6181_v7 = vadd.f32 %v12770_v24, %v16450_v63  ;;  %8607 = vmatprep.mubr.bf16.mxu1 %v13688_v14  ;;  %12073 = vmatpush3.bf16.msra.mxu1 %v13387_v62  ;;  %v16553_v24 = vpop.f32.mrf.mxu0  ;;  %v13690_v14 = vld [vmem:[#allocation2 + $0x94] ss:$24 sps:$4 sm:$0xff]  }
0x129b   : > { %v6172_v33 = vpop.f32.mrf.mxu1  ;;  %12074 = vmatprep.subr.bf16.mxu1 %v13388_v28  ;;  %v16548_v31 = vld [vmem:[#allocation2 + $0x164] ss:$24 sps:$4 sm:$0xff]   ;;  %v13689_v28 = vld [vmem:[#allocation2 + $0x60] ss:$24 sps:$4 sm:$0xff]  }
0x129c   : > { %v6253_v29 = vmax.f32 %v6181_v7, 0.0  ;;  %v6173_v25 = vadd.f32 %v16450_v63, %v6172_v33  ;;  %17593 = vst [vmem:[#allocation32_spill] sm:$0xff] %v16548_v31  ;;  %v13394_v33 = vld [vmem:[#allocation14 + $0x3e0] ss:$12 sps:$4 sm:$0xff]  }
0x129d   : > { %v12771_v34 = vpop.f32.mrf.mxu1  ;;  %v16542_v35 = vld [vmem:[#allocation2 + $0x134] ss:$24 sps:$4 sm:$0xff]  }
0x129e   : > { %v10870_v36 = vpack.c.bf16 %v6253_v29, %v6253_v29  ;;  %v6251_v21 = vmax.f32 %v6173_v25, 0.0  ;;  %v6184_v37 = vadd.f32 %v12771_v34, %v16450_v63  ;;  %12075 = vmatpush3.bf16.msra.mxu1 %v13389_v23  ;;  %8458 = vmatprep.mubr.bf16.mxu0 %v16542_v35  ;;  %v13393_v23 = vld [vmem:[#allocation14 + $0x338] ss:$12 sps:$4 sm:$0xff]   ;;  %v16555_v29 = vpop.f32.mrf.mxu0  ;;  %v13395_v34 = vld [vmem:[#allocation14 + $0x320] ss:$12 sps:$4 sm:$0xff]  }
0x129f   : > { %v6175_v4 = vpop.f32.mrf.mxu1  ;;  %12076 = vmatprep.subr.bf16.mxu1 %v13390_v51  ;;  %8459 = vmatmul.mubr.bf16.gmra.mxu0 %v16540_v6  ;;  %v16557_v25 = vld [vmem:[#allocation2 + $0x160] ss:$24 sps:$4 sm:$0xff]  }
0x12a0   : > { %6413 = vst [vmem:[#allocation2 + $0x1c4] sm:$0xf] %v10870_v36  ;;  %v10868_v11 = vpack.c.bf16 %v6251_v21, %v6251_v21  ;;  %v6254_v39 = vmax.f32 %v6184_v37, 0.0  ;;  %v6176_v62 = vadd.f32 %v16450_v63, %v6175_v4  ;;  %8468 = vmatprep.mubr.bf16.mxu0 %v16548_v31  ;;  %17594 = vst [vmem:[#allocation33_spill] sm:$0xff] %v16557_v25  ;;  %v13396_v36 = vld [vmem:[#allocation14 + $0x3c8] ss:$12 sps:$4 sm:$0xff]  }
0x12a1   : > { %8608 = vmatmul.mubr.bf16.gmra.mxu1 %v13689_v28  ;;  %v13691_v37 = vld [vmem:[#allocation2 + $0x90] ss:$24 sps:$4 sm:$0xff]  }
0x12a2   : > { %6411 = vst [vmem:[#allocation2 + $0x194] sm:$0xf] %v10868_v11  ;;  %v10871_v27 = vpack.c.bf16 %v6254_v39, %v6254_v39  ;;  %v6252_v7 = vmax.f32 %v6176_v62, 0.0  ;;  %8615 = vmatprep.mubr.bf16.mxu1 %v13690_v14  ;;  %12077 = vmatpush3.bf16.msra.mxu1 %v13391_v52  ;;  %v16560_v52 = vpop.f32.mrf.mxu0  ;;  %v13397_v11 = vld [vmem:[#allocation14 + $0x308] ss:$12 sps:$4 sm:$0xff]  }
0x12a3   : > { %12078 = vmatprep.subr.bf16.mxu1 %v13392_v5  ;;  %v13692_v5 = vld [vmem:[#allocation2 + $0xc4] ss:$24 sps:$4 sm:$0xff]  }
0x12a4   : > { %6414 = vst [vmem:[#allocation2 + $0x1dc] sm:$0xf] %v10871_v27  ;;  %v10869_v51 = vpack.c.bf16 %v6252_v7, %v6252_v7  ;;  %v16564_v7 = vld [vmem:[#allocation2 + $0x190] ss:$24 sps:$4 sm:$0xff]  }
0x12a5   : > { %17595 = vst [vmem:[#allocation34_spill] sm:$0xff] %v16564_v7 }
0x12a6   : > { %6412 = vst [vmem:[#allocation2 + $0x1ac] sm:$0xf] %v10869_v51  ;;  %12079 = vmatpush3.bf16.msra.mxu1 %v13393_v23  ;;  %v16568_v23 = vpop.f32.mrf.mxu0 }
0x12a7   : > { %12080 = vmatprep.subr.bf16.mxu1 %v13394_v33  ;;  %8469 = vmatmul.mubr.bf16.gmra.mxu0 %v16557_v25  ;;  %17597 = vst [vmem:[#allocation36_spill] sm:$0xff] %v16568_v23 }
0x12a9   : > { %v12774_v21 = vpop.f32.mrf.mxu1  ;;  %8616 = vmatmul.mubr.bf16.gmra.mxu1 %v13691_v37 }
0x12aa   : > { %v6197_v4 = vadd.f32 %v12774_v21, %v16450_v63  ;;  %8623 = vmatprep.mubr.bf16.mxu1 %v13692_v5  ;;  %12081 = vmatpush3.bf16.msra.mxu1 %v13395_v34 }
0x12ab   : > { %v6188_v39 = vpop.f32.mrf.mxu1  ;;  %12082 = vmatprep.subr.bf16.mxu1 %v13396_v36  ;;  %v16572_v34 = vld [vmem:[#allocation2 + $0x1c4] ss:$24 sps:$4 sm:$0xff]  }
0x12ac   : > { %v6257_v62 = vmax.f32 %v6197_v4, 0.0  ;;  %v6189_v28 = vadd.f32 %v16450_v63, %v6188_v39  ;;  %17598 = vst [vmem:[#allocation37_spill] sm:$0xff] %v16572_v34  ;;  %v13693_v39 = vld [vmem:[#allocation2 + $0xc0] ss:$24 sps:$4 sm:$0xff]  }
0x12ad   : > { %v12775_v27 = vpop.f32.mrf.mxu1  ;;  %v16566_v14 = vld [vmem:[#allocation2 + $0x194] ss:$24 sps:$4 sm:$0xff]  }
0x12ae   : > { %17596 = vst [vmem:[#allocation35_spill] sm:$0xff] %v16566_v14  ;;  %v10874_v33 = vpack.c.bf16 %v6257_v62, %v6257_v62  ;;  %v6255_v51 = vmax.f32 %v6189_v28, 0.0  ;;  %v6200_v21 = vadd.f32 %v12775_v27, %v16450_v63  ;;  %12083 = vmatpush3.bf16.msra.mxu1 %v13397_v11  ;;  %8478 = vmatprep.mubr.bf16.mxu0 %v16566_v14  ;;  %v16577_v62 = vpop.f32.mrf.mxu0  ;;  %v13694_v27 = vld [vmem:[#allocation2 + $0xf4] ss:$24 sps:$4 sm:$0xff]   ;;  %v16626_v14 = vld [vmem:[#allocation2 + $0x250] ss:$24 sps:$4 sm:$0xff]  }
0x12af   : > { %v6191_v37 = vpop.f32.mrf.mxu1  ;;  %8479 = vmatmul.mubr.bf16.gmra.mxu0 %v16564_v7  ;;  %17609 = vst [vmem:[#allocation47_spill] sm:$0xff] %v16626_v14 }
0x12b0   : > { %6417 = vst [vmem:[#allocation2 + $0x224] sm:$0xf] %v10874_v33  ;;  %v10872_v36 = vpack.c.bf16 %v6255_v51, %v6255_v51  ;;  %v6258_v4 = vmax.f32 %v6200_v21, 0.0  ;;  %v6192_v5 = vadd.f32 %v16450_v63, %v6191_v37  ;;  %8488 = vmatprep.mubr.bf16.mxu0 %v16572_v34  ;;  %v16579_v33 = vpop.f32.mrf.mxu0  ;;  %v16581_v51 = vld [vmem:[#allocation2 + $0x1c0] ss:$24 sps:$4 sm:$0xff]  }
0x12b1   : > { %8624 = vmatmul.mubr.bf16.gmra.mxu1 %v13693_v39  ;;  %17599 = vst [vmem:[#allocation38_spill] sm:$0xff] %v16581_v51  ;;  %v13695_v37 = vld [vmem:[#allocation2 + $0xf0] ss:$24 sps:$4 sm:$0xff]  }
0x12b2   : > { %6415 = vst [vmem:[#allocation2 + $0x1f4] sm:$0xf] %v10872_v36  ;;  %v10875_v11 = vpack.c.bf16 %v6258_v4, %v6258_v4  ;;  %v6256_v28 = vmax.f32 %v6192_v5, 0.0  ;;  %8631 = vmatprep.mubr.bf16.mxu1 %v13694_v27  ;;  %v16584_v39 = vpop.f32.mrf.mxu0  ;;  %v13696_v4 = vld [vmem:[#allocation2 + $0x124] ss:$24 sps:$4 sm:$0xff]  }
0x12b4   : > { %6418 = vst [vmem:[#allocation2 + $0x23c] sm:$0xf] %v10875_v11  ;;  %v10873_v23 = vpack.c.bf16 %v6256_v28, %v6256_v28  ;;  %v16592_v42 = vpop.f32.mrf.mxu0 }
0x12b5   : > { %17602 = vst [vmem:[#allocation41_spill] sm:$0xff] %v16592_v42  ;;  %v13698_v42 = vld [vmem:[#allocation2 + $0x154] ss:$24 sps:$4 sm:$0xff]  }
0x12b6   : > { %6416 = vst [vmem:[#allocation2 + $0x20c] sm:$0xf] %v10873_v23 }
0x12b7   : > { %8489 = vmatmul.mubr.bf16.gmra.mxu0 %v16581_v51 }
0x12b9   : > { %v12778_v21 = vpop.f32.mrf.mxu1  ;;  %8632 = vmatmul.mubr.bf16.gmra.mxu1 %v13695_v37 }
0x12ba   : > { %v6213_v36 = vadd.f32 %v12778_v21, %v16450_v63  ;;  %8639 = vmatprep.mubr.bf16.mxu1 %v13696_v4  ;;  %v6717_v4 = vlaneseq }
0x12bb   : > { %v6204_v5 = vpop.f32.mrf.mxu1  ;;  %v16596_v21 = vld [vmem:[#allocation2 + $0x224] ss:$24 sps:$4 sm:$0xff]  }
0x12bc   : > { %v6261_v27 = vmax.f32 %v6213_v36, 0.0  ;;  %v6205_v11 = vadd.f32 %v16450_v63, %v6204_v5  ;;  %17603 = vst [vmem:[#allocation42_spill] sm:$0xff] %v16596_v21 }
0x12bd   : > { %v12779_v28 = vpop.f32.mrf.mxu1  ;;  %v16590_v23 = vld [vmem:[#allocation2 + $0x1f4] ss:$24 sps:$4 sm:$0xff]  }
0x12be   : > { %17601 = vst [vmem:[#allocation40_spill] sm:$0xff] %v16590_v23  ;;  %v10878_v51 = vpack.c.bf16 %v6261_v27, %v6261_v27  ;;  %v6259_v17 = vmax.f32 %v6205_v11, 0.0  ;;  %v6216_v37 = vadd.f32 %v12779_v28, %v16450_v63  ;;  %8498 = vmatprep.mubr.bf16.mxu0 %v16590_v23  ;;  %v16601_v27 = vpop.f32.mrf.mxu0  ;;  %v16603_v23 = vshrl.u32 %v6717_v4, 7 }
0x12bf   : > { %v6207_v34 = vpop.f32.mrf.mxu1  ;;  %8499 = vmatmul.mubr.bf16.gmra.mxu0 %v16588_v41 }
0x12c0   : > { %6421 = vst [vmem:[#allocation2 + $0x284] sm:$0xf] %v10878_v51  ;;  %v10876_v36 = vpack.c.bf16 %v6259_v17, %v6259_v17  ;;  %v6262_v5 = vmax.f32 %v6216_v37, 0.0  ;;  %v6208_v7 = vadd.f32 %v16450_v63, %v6207_v34  ;;  %8508 = vmatprep.mubr.bf16.mxu0 %v16596_v21  ;;  %17604 = vst [vmem:[#allocation43_spill] sm:$0xff] %v16603_v23  ;;  %v16605_v51 = vpop.f32.mrf.mxu0  ;;  %v16607_v34 = vld [vmem:[#allocation2 + $0x220] ss:$24 sps:$4 sm:$0xff]  }
0x12c1   : > { %8640 = vmatmul.mubr.bf16.gmra.mxu1 %v13697_v54  ;;  %17605 = vst [vmem:[#allocation44_spill] sm:$0xff] %v16607_v34  ;;  %v16610_v54 = vsub.s32 0, %v16603_v23  ;;  %v16617_v4 = vsub.s32 1, %v16603_v23 }
0x12c2   : > { %6419 = vst [vmem:[#allocation2 + $0x254] sm:$0xf] %v10876_v36  ;;  %v10879_v11 = vpack.c.bf16 %v6262_v5, %v6262_v5  ;;  %v6260_v28 = vmax.f32 %v6208_v7, 0.0  ;;  %8647 = vmatprep.mubr.bf16.mxu1 %v13698_v42  ;;  %v6715_v7 = vld [vmem:[%s17607_s27] sm:$0x7]  ;;  %v16619_v36 = vpop.f32.mrf.mxu0 }
0x12c3   : > { %17606 = vst [vmem:[#allocation45_spill] sm:$0xff] %v16610_v54  ;;  %v13699_v42 = vld [vmem:[#allocation2 + $0x150] ss:$24 sps:$4 sm:$0xff]   ;;  %17608 = vst [vmem:[#allocation46_spill] sm:$0xff] %v16617_v4  ;;  %v16631_v23 = vrot.slane %v6715_v7, %v16617_v4 }
0x12c4   : > { %6422 = vst [vmem:[#allocation2 + $0x29c] sm:$0xf] %v10879_v11  ;;  %v10877_v17 = vpack.c.bf16 %v6260_v28, %v6260_v28  ;;  %v13700_v11 = vld [vmem:[#allocation2 + $0x184] ss:$24 sps:$4 sm:$0xff]   ;;  %v16633_v25 = vpop.f32.mrf.mxu0 }
0x12c5   : > { %17611 = vst [vmem:[#allocation49_spill] sm:$0xff] %v16633_v25 }
0x12c6   : > { %6420 = vst [vmem:[#allocation2 + $0x26c] sm:$0xf] %v10877_v17  ;;  %v16623_v17 = vrot.slane %v6715_v7, %v16610_v54 }
0x12c7   : > { %8509 = vmatmul.mubr.bf16.gmra.mxu0 %v16607_v34 }
0x12c9   : > { %v12782_v37 = vpop.f32.mrf.mxu1  ;;  %8648 = vmatmul.mubr.bf16.gmra.mxu1 %v13699_v42 }
0x12ca   : > { %v6229_v5 = vadd.f32 %v12782_v37, %v16450_v63  ;;  %8655 = vmatprep.mubr.bf16.mxu1 %v13700_v11 }
0x12cb   : > { %v6220_v28 = vpop.f32.mrf.mxu1 }
0x12cc   : > { %v6265_v34 = vmax.f32 %v6229_v5, 0.0  ;;  %v6221_v21 = vadd.f32 %v16450_v63, %v6220_v28  ;;  %v16637_v5 = vld [vmem:[#allocation2 + $0x284] ss:$24 sps:$4 sm:$0xff]   ;;  %v8015_v28 = vadd.f32 %v16427_v53, %v16623_v17 }
0x12cd   : > { %v12783_v41 = vpop.f32.mrf.mxu1  ;;  %v16628_v42 = vld [vmem:[#allocation2 + $0x254] ss:$24 sps:$4 sm:$0xff]   ;;  %17612 = vst [vmem:[#allocation50_spill] sm:$0xff] %v16637_v5 }
0x12ce   : > { %17610 = vst [vmem:[#allocation48_spill] sm:$0xff] %v16628_v42  ;;  %v10882_v37 = vpack.c.bf16 %v6265_v34, %v6265_v34  ;;  %v6263_v60 = vmax.f32 %v6221_v21, 0.0  ;;  %v6232_v11 = vadd.f32 %v12783_v41, %v16450_v63  ;;  %8518 = vmatprep.mubr.bf16.mxu0 %v16628_v42  ;;  %v13701_v34 = vld [vmem:[#allocation2 + $0x180] ss:$24 sps:$4 sm:$0xff]   ;;  %v8017_v41 = vadd.f32 %v16429_v22, %v16631_v23  ;;  %v16646_v21 = vpop.f32.mrf.mxu0 }
0x12cf   : > { %v6223_v31 = vpop.f32.mrf.mxu1  ;;  %8519 = vmatmul.mubr.bf16.gmra.mxu0 %v16626_v14  ;;  %v16656_v22 = vld [vmem:[#allocation2 + $0x280] ss:$24 sps:$4 sm:$0xff]  }
0x12d0   : > { %6425 = vst [vmem:[#allocation2 + $0x2e4] sm:$0xf] %v10882_v37  ;;  %v10880_v54 = vpack.c.bf16 %v6263_v60, %v6263_v60  ;;  %v6266_v6 = vmax.f32 %v6232_v11, 0.0  ;;  %v6224_v7 = vadd.f32 %v16450_v63, %v6223_v31  ;;  %8528 = vmatprep.mubr.bf16.mxu0 %v16637_v5  ;;  %v13702_v60 = vld [vmem:[#allocation2 + $0x1b4] ss:$24 sps:$4 sm:$0xff]   ;;  %v8019_v31 = vadd.f32 %v16431_v47, %v16623_v17  ;;  %v16654_v14 = vpop.f32.mrf.mxu0 }
0x12d1   : > { %v8207_v4 = vpop.f32.mrf.mxu1  ;;  %8656 = vmatmul.mubr.bf16.gmra.mxu1 %v13701_v34  ;;  %17613 = vst [vmem:[#allocation51_spill] sm:$0xff] %v16656_v22 }
0x12d2   : > { %6423 = vst [vmem:[#allocation2 + $0x2b4] sm:$0xf] %v10880_v54  ;;  %v10883_v25 = vpack.c.bf16 %v6266_v6, %v6266_v6  ;;  %v6264_v53 = vmax.f32 %v6224_v7, 0.0  ;;  %v16648_v37 = vadd.f32 %v8207_v4, %v8015_v28  ;;  %8663 = vmatprep.mubr.bf16.mxu1 %v13702_v60  ;;  %v8025_v4 = vadd.f32 %v16435_v19, %v16623_v17  ;;  %v16667_v7 = vpop.f32.mrf.mxu0 }
0x12d3   : > { %v8209_v63 = vpop.f32.mrf.mxu1  ;;  %v8027_v28 = vadd.f32 %v16437_v3, %v16631_v23  ;;  %v8029_v60 = vadd.f32 %v16439_v8, %v16623_v17  ;;  %v8035_v8 = vadd.f32 %v16443_v45, %v16623_v17  ;;  %v8039_v45 = vadd.f32 %v16452_v1, %v16623_v17  ;;  %v13708_v1 = vld [vmem:[#allocation2 + $0xc] ss:$24 sps:$4 sm:$0xff]  }
0x12d4   : > { %6426 = vst [vmem:[#allocation2 + $0x2fc] sm:$0xf] %v10883_v25  ;;  %v10881_v11 = vpack.c.bf16 %v6264_v53, %v6264_v53  ;;  %v16652_v34 = vadd.f32 %v8209_v63, %v8017_v41  ;;  %v13703_v25 = vld [vmem:[#allocation2 + $0x1b0] ss:$24 sps:$4 sm:$0xff]   ;;  %v13704_v53 = vld [vmem:[#allocation2 + $0x1e4] ss:$24 sps:$4 sm:$0xff]  }
0x12d5   : > { %v8211_v5 = vpop.f32.mrf.mxu1 }
0x12d6   : > { %6424 = vst [vmem:[#allocation2 + $0x2cc] sm:$0xf] %v10881_v11  ;;  %v16658_v6 = vadd.f32 %v8211_v5, %v8019_v31  ;;  %v16675_v31 = vld [vmem:[#allocation2 + $0x2b0] ss:$24 sps:$4 sm:$0xff]  }
0x12d7   : > { %v16660_v54 = vpop.f32.mrf.mxu1  ;;  %8529 = vmatmul.mubr.bf16.gmra.mxu0 %v16656_v22  ;;  %17614 = vst [vmem:[#allocation52_spill] sm:$0xff] %v16675_v31 }
0x12d9   : > { %v8217_v47 = vpop.f32.mrf.mxu1  ;;  %8664 = vmatmul.mubr.bf16.gmra.mxu1 %v13703_v25  ;;  %v16679_v25 = vpop.f32.mrf.mxu0 }
0x12da   : > { %v16669_v41 = vadd.f32 %v8217_v47, %v8025_v4  ;;  %8671 = vmatprep.mubr.bf16.mxu1 %v13704_v53  ;;  %17616 = vst [vmem:[#allocation54_spill] sm:$0xff] %v16679_v25  ;;  %v8037_v53 = vadd.f32 %v16445_v55, %v16631_v23 }
0x12db   : > { %v8219_v5 = vpop.f32.mrf.mxu1  ;;  %v16686_v4 = vld [vmem:[#allocation2 + $0x2e4] ss:$24 sps:$4 sm:$0xff]  }
0x12dc   : > { %v16673_v63 = vadd.f32 %v8219_v5, %v8027_v28  ;;  %17617 = vst [vmem:[#allocation55_spill] sm:$0xff] %v16686_v4  ;;  %v13705_v28 = vld [vmem:[#allocation2 + $0x1e0] ss:$24 sps:$4 sm:$0xff]   ;;  %v16694_v5 = vpop.f32.mrf.mxu0 }
0x12dd   : > { %v8221_v19 = vpop.f32.mrf.mxu1  ;;  %v16677_v11 = vld [vmem:[#allocation2 + $0x2b4] ss:$24 sps:$4 sm:$0xff]  }
0x12de   : > { %17615 = vst [vmem:[#allocation53_spill] sm:$0xff] %v16677_v11  ;;  %v16681_v3 = vadd.f32 %v8221_v19, %v8029_v60  ;;  %8538 = vmatprep.mubr.bf16.mxu0 %v16677_v11  ;;  %v13706_v19 = vld [vmem:[#allocation2 + $0x214] ss:$24 sps:$4 sm:$0xff]   ;;  %v16702_v42 = vpop.f32.mrf.mxu0 }
0x12df   : > { %v16683_v22 = vpop.f32.mrf.mxu1  ;;  %8539 = vmatmul.mubr.bf16.gmra.mxu0 %v16675_v31 }
0x12e0   : > { %8548 = vmatprep.mubr.bf16.mxu0 %v16686_v4 }
0x12e1   : > { %v8227_v47 = vpop.f32.mrf.mxu1  ;;  %8672 = vmatmul.mubr.bf16.gmra.mxu1 %v13705_v28  ;;  %v16704_v28 = vld [vmem:[#allocation2 + $0x2e0] ss:$24 sps:$4 sm:$0xff]  }
0x12e2   : > { %v16696_v60 = vadd.f32 %v8227_v47, %v8035_v8  ;;  %8679 = vmatprep.mubr.bf16.mxu1 %v13706_v19  ;;  %17619 = vst [vmem:[#allocation57_spill] sm:$0xff] %v16704_v28  ;;  %v8045_v8 = vadd.f32 %v16460_v9, %v16623_v17  ;;  %v13707_v19 = vld [vmem:[#allocation2 + $0x210] ss:$24 sps:$4 sm:$0xff]   ;;  %v8049_v9 = vadd.f32 %v16464_v46, %v16623_v17 }
0x12e3   : > { %v8229_v25 = vpop.f32.mrf.mxu1  ;;  %v8057_v46 = vadd.f32 %v16483_v49, %v16631_v23  ;;  %v8065_v49 = vadd.f32 %v16505_v57, %v16623_v17  ;;  %v8069_v57 = vadd.f32 %v16512_v50, %v16623_v17  ;;  %v8077_v50 = vadd.f32 %v16531_v13, %v16631_v23 }
0x12e4   : > { %v16700_v11 = vadd.f32 %v8229_v25, %v8037_v53  ;;  %v8047_v25 = vadd.f32 %v16462_v40, %v16631_v23  ;;  %v16715_v53 = vpop.f32.mrf.mxu0  ;;  %v8055_v40 = vadd.f32 %v16481_v38, %v16623_v17  ;;  %v8059_v38 = vadd.f32 %v16488_v16, %v16623_v17 }
0x12e5   : > { %v8231_v31 = vpop.f32.mrf.mxu1  ;;  %v8067_v16 = vadd.f32 %v16507_v10, %v16631_v23  ;;  %v8075_v10 = vadd.f32 %v16529_v44, %v16623_v17  ;;  %v8079_v44 = vadd.f32 %v16536_v30, %v16623_v17  ;;  %v8085_v13 = vadd.f32 %v16553_v24, %v16623_v17 }
0x12e6   : > { %17618 = vst [vmem:[#allocation56_spill] sm:$0xff] %v16700_v11  ;;  %v16706_v4 = vadd.f32 %v8231_v31, %v8039_v45  ;;  %v13709_v31 = vld [vmem:[#allocation2 + $0x244] ss:$24 sps:$4 sm:$0xff]   ;;  %v8087_v30 = vadd.f32 %v16555_v29, %v16631_v23  ;;  %v8089_v24 = vadd.f32 %v16560_v52, %v16623_v17  ;;  %v8095_v29 = vadd.f32 %v16577_v62, %v16623_v17 }
0x12e7   : > { %v16708_v55 = vpop.f32.mrf.mxu1  ;;  %8549 = vmatmul.mubr.bf16.gmra.mxu0 %v16704_v28  ;;  %v8097_v52 = vadd.f32 %v16579_v33, %v16631_v23  ;;  %v8099_v62 = vadd.f32 %v16584_v39, %v16623_v17  ;;  %v8105_v33 = vadd.f32 %v16601_v27, %v16623_v17  ;;  %v8107_v39 = vadd.f32 %v16605_v51, %v16631_v23 }
0x12e8   : > { %17620 = vst [vmem:[#allocation58_spill] sm:$0xff] %v16706_v4  ;;  %17621 = vst [vmem:[#allocation59_spill] sm:$0xff] %v16708_v55  ;;  %8752 = vmatprep.mubr.bf16.mxu0 %v13708_v1  ;;  %v16723_v55 = vpop.f32.mrf.mxu0  ;;  %v8109_v27 = vadd.f32 %v16619_v36, %v16623_v17  ;;  %v8115_v51 = vadd.f32 %v16646_v21, %v16623_v17  ;;  %v8117_v36 = vadd.f32 %v16654_v14, %v16631_v23 }
0x12e9   : > { %v8237_v47 = vpop.f32.mrf.mxu1  ;;  %8680 = vmatmul.mubr.bf16.gmra.mxu1 %v13707_v19  ;;  %17623 = vst [vmem:[#allocation61_spill] sm:$0xff] %v16723_v55  ;;  %v8119_v21 = vadd.f32 %v16667_v7, %v16623_v17  ;;  %v8125_v14 = vadd.f32 %v16694_v5, %v16623_v17  ;;  %v8127_v7 = vadd.f32 %v16702_v42, %v16631_v23 }
0x12ea   : > { %v16717_v11 = vadd.f32 %v8237_v47, %v8045_v8  ;;  %8687 = vmatprep.mubr.bf16.mxu1 %v13709_v31  ;;  %v13710_v8 = vld [vmem:[#allocation2 + $0x8] ss:$24 sps:$4 sm:$0xff]   ;;  %v8129_v5 = vadd.f32 %v16715_v53, %v16623_v17  ;;  %v13734_v53 = vld [vmem:[#allocation2 + $0x1bc] ss:$24 sps:$4 sm:$0xff]  }
0x12eb   : > { %v8239_v45 = vpop.f32.mrf.mxu1  ;;  %v13711_v31 = vld [vmem:[#allocation2 + $0x240] ss:$24 sps:$4 sm:$0xff]  }
0x12ec   : > { %17622 = vst [vmem:[#allocation60_spill] sm:$0xff] %v16717_v11  ;;  %v16721_v4 = vadd.f32 %v8239_v45, %v8047_v25  ;;  %v13712_v11 = vld [vmem:[#allocation2 + $0x3c] ss:$24 sps:$4 sm:$0xff]   ;;  %v16733_v25 = vpop.f32.mrf.mxu0 }
0x12ed   : > { %v8241_v28 = vpop.f32.mrf.mxu1  ;;  %v8135_v42 = vadd.f32 %v16733_v25, %v16623_v17  ;;  %v8021_v25 = vadd.f32 %v16433_v59, %v16631_v23 }
0x12ee   : > { %v16725_v19 = vadd.f32 %v8241_v28, %v8049_v9  ;;  %v13713_v28 = vld [vmem:[#allocation2 + $0x274] ss:$24 sps:$4 sm:$0xff]  }
0x12ef   : > { %v16727_v1 = vpop.f32.mrf.mxu1  ;;  %8753 = vmatmul.mubr.bf16.vlgmr.msra.gmra.mxu0 %v13710_v8 }
0x12f0   : > { %17624 = vst [vmem:[#allocation62_spill] sm:$0xff] %v16725_v19  ;;  %8760 = vmatprep.mubr.bf16.mxu0 %v13712_v11  ;;  %v16741_v19 = vpop.f32.mrf.mxu0 }
0x12f1   : > { %v8247_v47 = vpop.f32.mrf.mxu1  ;;  %8688 = vmatmul.mubr.bf16.gmra.mxu1 %v13711_v31 }
0x12f2   : > { %v16735_v45 = vadd.f32 %v8247_v47, %v8055_v40  ;;  %8695 = vmatprep.mubr.bf16.mxu1 %v13713_v28  ;;  %v13714_v40 = vld [vmem:[#allocation2 + $0x38] ss:$24 sps:$4 sm:$0xff]  }
0x12f3   : > { %v8249_v9 = vpop.f32.mrf.mxu1  ;;  %v13715_v28 = vld [vmem:[#allocation2 + $0x270] ss:$24 sps:$4 sm:$0xff]  }
0x12f4   : > { %17625 = vst [vmem:[#allocation63_spill] sm:$0xff] %v16735_v45  ;;  %v16739_v55 = vadd.f32 %v8249_v9, %v8057_v46  ;;  %v13716_v45 = vld [vmem:[#allocation2 + $0x6c] ss:$24 sps:$4 sm:$0xff]   ;;  %v16751_v46 = vpop.f32.mrf.mxu0 }
0x12f5   : > { %v8251_v8 = vpop.f32.mrf.mxu1 }
0x12f6   : > { %17626 = vst [vmem:[#allocation64_spill] sm:$0xff] %v16739_v55  ;;  %v16743_v31 = vadd.f32 %v8251_v8, %v8059_v38  ;;  %v13717_v38 = vld [vmem:[#allocation2 + $0x2a4] ss:$24 sps:$4 sm:$0xff]   ;;  %v16759_v55 = vpop.f32.mrf.mxu0 }
0x12f7   : > { %v16745_v11 = vpop.f32.mrf.mxu1  ;;  %8761 = vmatmul.mubr.bf16.gmra.mxu0 %v13714_v40  ;;  %17629 = vst [vmem:[#allocation67_spill] sm:$0xff] %v16759_v55 }
0x12f8   : > { %17627 = vst [vmem:[#allocation65_spill] sm:$0xff] %v16743_v31  ;;  %8768 = vmatprep.mubr.bf16.mxu0 %v13716_v45 }
0x12f9   : > { %v8257_v47 = vpop.f32.mrf.mxu1  ;;  %8696 = vmatmul.mubr.bf16.gmra.mxu1 %v13715_v28 }
0x12fa   : > { %v16753_v9 = vadd.f32 %v8257_v47, %v8065_v49  ;;  %8703 = vmatprep.mubr.bf16.mxu1 %v13717_v38  ;;  %v13718_v49 = vld [vmem:[#allocation2 + $0x68] ss:$24 sps:$4 sm:$0xff]  }
0x12fb   : > { %v8259_v8 = vpop.f32.mrf.mxu1  ;;  %v13719_v38 = vld [vmem:[#allocation2 + $0x2a0] ss:$24 sps:$4 sm:$0xff]  }
0x12fc   : > { %17628 = vst [vmem:[#allocation66_spill] sm:$0xff] %v16753_v9  ;;  %v16757_v31 = vadd.f32 %v8259_v8, %v8067_v16  ;;  %v13720_v9 = vld [vmem:[#allocation2 + $0x9c] ss:$24 sps:$4 sm:$0xff]   ;;  %v16769_v16 = vpop.f32.mrf.mxu0 }
0x12fd   : > { %v8261_v40 = vpop.f32.mrf.mxu1 }
0x12fe   : > { %v16761_v28 = vadd.f32 %v8261_v40, %v8069_v57  ;;  %v13721_v57 = vld [vmem:[#allocation2 + $0x2d4] ss:$24 sps:$4 sm:$0xff]  }
0x12ff   : > { %v16763_v45 = vpop.f32.mrf.mxu1  ;;  %8769 = vmatmul.mubr.bf16.gmra.mxu0 %v13718_v49 }
0x1300   : > { %17630 = vst [vmem:[#allocation68_spill] sm:$0xff] %v16761_v28  ;;  %8776 = vmatprep.mubr.bf16.mxu0 %v13720_v9  ;;  %v16777_v28 = vpop.f32.mrf.mxu0 }
0x1301   : > { %v8267_v47 = vpop.f32.mrf.mxu1  ;;  %8704 = vmatmul.mubr.bf16.gmra.mxu1 %v13719_v38 }
0x1302   : > { %v16771_v8 = vadd.f32 %v8267_v47, %v8075_v10  ;;  %8711 = vmatprep.mubr.bf16.mxu1 %v13721_v57  ;;  %v13722_v10 = vld [vmem:[#allocation2 + $0x98] ss:$24 sps:$4 sm:$0xff]  }
0x1303   : > { %v8269_v40 = vpop.f32.mrf.mxu1  ;;  %v13723_v57 = vld [vmem:[#allocation2 + $0x2d0] ss:$24 sps:$4 sm:$0xff]  }
0x1304   : > { %17631 = vst [vmem:[#allocation69_spill] sm:$0xff] %v16771_v8  ;;  %v16775_v55 = vadd.f32 %v8269_v40, %v8077_v50  ;;  %v13724_v8 = vld [vmem:[#allocation2 + $0xcc] ss:$24 sps:$4 sm:$0xff]   ;;  %v16787_v50 = vpop.f32.mrf.mxu0 }
0x1305   : > { %v8271_v49 = vpop.f32.mrf.mxu1 }
0x1306   : > { %v16779_v38 = vadd.f32 %v8271_v49, %v8079_v44 }
0x1307   : > { %v16781_v9 = vpop.f32.mrf.mxu1  ;;  %8777 = vmatmul.mubr.bf16.gmra.mxu0 %v13722_v10 }
0x1308   : > { %17632 = vst [vmem:[#allocation70_spill] sm:$0xff] %v16779_v38  ;;  %8784 = vmatprep.mubr.bf16.mxu0 %v13724_v8  ;;  %v16796_v38 = vpop.f32.mrf.mxu0 }
0x1309   : > { %v8277_v47 = vpop.f32.mrf.mxu1  ;;  %8712 = vmatmul.mubr.bf16.gmra.mxu1 %v13723_v57  ;;  %17633 = vst [vmem:[#allocation71_spill] sm:$0xff] %v16796_v38 }
0x130a   : > { %v16789_v40 = vadd.f32 %v8277_v47, %v8085_v13  ;;  %8913 = vmatprep.mubr.bf16.mxu1 %v16470_v0  ;;  %v13725_v13 = vld [vmem:[#allocation2 + $0xc8] ss:$24 sps:$4 sm:$0xff]   ;;  %v13726_v0 = vld [vmem:[#allocation2 + $0xfc] ss:$24 sps:$4 sm:$0xff]  }
0x130b   : > { %v8279_v44 = vpop.f32.mrf.mxu1 }
0x130c   : > { %v16794_v49 = vadd.f32 %v8279_v44, %v8087_v30  ;;  %v16807_v30 = vpop.f32.mrf.mxu0 }
0x130d   : > { %v8281_v10 = vpop.f32.mrf.mxu1 }
0x130e   : > { %v16798_v57 = vadd.f32 %v8281_v10, %v8089_v24  ;;  %v16816_v38 = vpop.f32.mrf.mxu0 }
0x130f   : > { %v16800_v8 = vpop.f32.mrf.mxu1  ;;  %8785 = vmatmul.mubr.bf16.gmra.mxu0 %v13725_v13 }
0x1310   : > { %8792 = vmatprep.mubr.bf16.mxu0 %v13726_v0 }
0x1311   : > { %v8287_v47 = vpop.f32.mrf.mxu1  ;;  %8914 = vmatmul.mubr.bf16.vlgmr.msra.gmra.mxu1 %v16468_v48 }
0x1312   : > { %v16809_v44 = vadd.f32 %v8287_v47, %v8095_v29  ;;  %8921 = vmatprep.mubr.bf16.mxu1 %v16476_v32  ;;  %v13727_v29 = vld [vmem:[#allocation2 + $0xf8] ss:$24 sps:$4 sm:$0xff]   ;;  %v13728_v32 = vld [vmem:[#allocation2 + $0x12c] ss:$24 sps:$4 sm:$0xff]  }
0x1313   : > { %v8289_v24 = vpop.f32.mrf.mxu1 }
0x1314   : > { %v16814_v10 = vadd.f32 %v8289_v24, %v8097_v52  ;;  %v16827_v52 = vpop.f32.mrf.mxu0 }
0x1315   : > { %v8291_v13 = vpop.f32.mrf.mxu1 }
0x1316   : > { %v16818_v48 = vadd.f32 %v8291_v13, %v8099_v62 }
0x1317   : > { %v16820_v0 = vpop.f32.mrf.mxu1  ;;  %8793 = vmatmul.mubr.bf16.gmra.mxu0 %v13727_v29 }
0x1318   : > { %17634 = vst [vmem:[#allocation72_spill] sm:$0xff] %v16818_v48  ;;  %8800 = vmatprep.mubr.bf16.mxu0 %v13728_v32  ;;  %v16836_v48 = vpop.f32.mrf.mxu0 }
0x1319   : > { %v8297_v47 = vpop.f32.mrf.mxu1  ;;  %8922 = vmatmul.mubr.bf16.gmra.mxu1 %v16485_v18  ;;  %17635 = vst [vmem:[#allocation73_spill] sm:$0xff] %v16836_v48 }
0x131a   : > { %v16829_v24 = vadd.f32 %v8297_v47, %v8105_v33  ;;  %8929 = vmatprep.mubr.bf16.mxu1 %v16494_v56  ;;  %v13729_v33 = vld [vmem:[#allocation2 + $0x128] ss:$24 sps:$4 sm:$0xff]   ;;  %v13730_v56 = vld [vmem:[#allocation2 + $0x15c] ss:$24 sps:$4 sm:$0xff]  }
0x131b   : > { %v8299_v62 = vpop.f32.mrf.mxu1 }
0x131c   : > { %v16834_v13 = vadd.f32 %v8299_v62, %v8107_v39  ;;  %v16847_v39 = vpop.f32.mrf.mxu0 }
0x131d   : > { %v8301_v29 = vpop.f32.mrf.mxu1 }
0x131e   : > { %v16838_v18 = vadd.f32 %v8301_v29, %v8109_v27  ;;  %v16856_v48 = vpop.f32.mrf.mxu0 }
0x131f   : > { %v16840_v32 = vpop.f32.mrf.mxu1  ;;  %8801 = vmatmul.mubr.bf16.gmra.mxu0 %v13729_v33 }
0x1320   : > { %8808 = vmatprep.mubr.bf16.mxu0 %v13730_v56 }
0x1321   : > { %v8307_v47 = vpop.f32.mrf.mxu1  ;;  %8930 = vmatmul.mubr.bf16.gmra.mxu1 %v16492_v15 }
0x1322   : > { %v16849_v62 = vadd.f32 %v8307_v47, %v8115_v51  ;;  %8937 = vmatprep.mubr.bf16.mxu1 %v16500_v61  ;;  %v13731_v51 = vld [vmem:[#allocation2 + $0x158] ss:$24 sps:$4 sm:$0xff]   ;;  %v13732_v61 = vld [vmem:[#allocation2 + $0x18c] ss:$24 sps:$4 sm:$0xff]  }
0x1323   : > { %v8309_v27 = vpop.f32.mrf.mxu1 }
0x1324   : > { %v16854_v29 = vadd.f32 %v8309_v27, %v8117_v36  ;;  %v16867_v36 = vpop.f32.mrf.mxu0 }
0x1325   : > { %v8311_v33 = vpop.f32.mrf.mxu1 }
0x1326   : > { %v16858_v15 = vadd.f32 %v8311_v33, %v8119_v21 }
0x1327   : > { %v16860_v56 = vpop.f32.mrf.mxu1  ;;  %8809 = vmatmul.mubr.bf16.gmra.mxu0 %v13731_v51 }
0x1328   : > { %17636 = vst [vmem:[#allocation74_spill] sm:$0xff] %v16858_v15  ;;  %8816 = vmatprep.mubr.bf16.mxu0 %v13732_v61  ;;  %v16876_v15 = vpop.f32.mrf.mxu0 }
0x1329   : > { %v8317_v47 = vpop.f32.mrf.mxu1  ;;  %8938 = vmatmul.mubr.bf16.gmra.mxu1 %v16509_v20  ;;  %17638 = vst [vmem:[#allocation76_spill] sm:$0xff] %v16876_v15 }
0x132a   : > { %v16869_v27 = vadd.f32 %v8317_v47, %v8125_v14  ;;  %8945 = vmatprep.mubr.bf16.mxu1 %v16518_v43  ;;  %v13733_v47 = vld [vmem:[#allocation2 + $0x188] ss:$24 sps:$4 sm:$0xff]  }
0x132b   : > { %v8319_v21 = vpop.f32.mrf.mxu1 }
0x132c   : > { %17637 = vst [vmem:[#allocation75_spill] sm:$0xff] %v16869_v27  ;;  %v16874_v33 = vadd.f32 %v8319_v21, %v8127_v7  ;;  %v8137_v7 = vadd.f32 %v16741_v19, %v16631_v23 }
0x132d   : > { %v8321_v51 = vpop.f32.mrf.mxu1 }
0x132e   : > { %v16878_v20 = vadd.f32 %v8321_v51, %v8129_v5 }
0x132f   : > { %v16880_v61 = vpop.f32.mrf.mxu1  ;;  %v8400_v14 = vpop.f32.mrf.mxu0  ;;  %8817 = vmatmul.mubr.bf16.gmra.mxu0 %v13733_v47 }
0x1330   : > { %17639 = vst [vmem:[#allocation77_spill] sm:$0xff] %v16878_v20  ;;  %v8401_v27 = vadd.f32 %v8400_v14, %v16648_v37  ;;  %8824 = vmatprep.mubr.bf16.mxu0 %v13734_v53  ;;  %v8139_v37 = vadd.f32 %v16751_v46, %v16623_v17  ;;  %v8214_v53 = vadd.f32 %v16660_v54, %v8021_v25 }
0x1331   : > { %v8327_v43 = vpop.f32.mrf.mxu1  ;;  %8946 = vmatmul.mubr.bf16.gmra.mxu1 %v16516_v58  ;;  %v8402_v5 = vpop.f32.mrf.mxu0 }
0x1332   : > { %v16888_v21 = vadd.f32 %v8327_v43, %v8135_v42  ;;  %8953 = vmatprep.mubr.bf16.mxu1 %v16524_v12  ;;  %v8403_v47 = vadd.f32 %v8402_v5, %v16652_v34  ;;  %v9042_v15 = vmax.f32 %v8401_v27, 0.0  ;;  %v8145_v34 = vadd.f32 %v16769_v16, %v16623_v17  ;;  %v13736_v27 = vld [vmem:[#allocation2 + $0x1ec] ss:$24 sps:$4 sm:$0xff]  }
0x1333   : > { %v8329_v51 = vpop.f32.mrf.mxu1  ;;  %v8404_v14 = vpop.f32.mrf.mxu0 }
0x1334   : > { %17640 = vst [vmem:[#allocation78_spill] sm:$0xff] %v16888_v21  ;;  %v16896_v58 = vadd.f32 %v8329_v51, %v8137_v7  ;;  %v8405_v42 = vadd.f32 %v8404_v14, %v16658_v6  ;;  %v13735_v7 = vld [vmem:[#allocation2 + $0x1b8] ss:$24 sps:$4 sm:$0xff]   ;;  %v9043_v5 = vmax.f32 %v8403_v47, 0.0 }
0x1335   : > { %v8331_v19 = vpop.f32.mrf.mxu1  ;;  %v8406_v12 = vpop.f32.mrf.mxu0 }
0x1336   : > { %v16900_v43 = vadd.f32 %v8331_v19, %v8139_v37  ;;  %v9045_v21 = vmax.f32 %v8405_v42, 0.0  ;;  %v8407_v20 = vadd.f32 %v8406_v12, %v8214_v53  ;;  %v8147_v37 = vadd.f32 %v16777_v28, %v16631_v23 }
0x1337   : > { %v16902_v59 = vpop.f32.mrf.mxu1  ;;  %v8410_v46 = vpop.f32.mrf.mxu0  ;;  %8825 = vmatmul.mubr.bf16.gmra.mxu0 %v13735_v7  ;;  %v8155_v7 = vadd.f32 %v16807_v30, %v16623_v17  ;;  %v17642_v30 = vld [vmem:[#allocation32_spill] sm:$0xff] }
0x1338   : > { %v16906_v51 = vpack.c.bf16 %v9045_v21, %v9042_v15  ;;  %v9046_v54 = vmax.f32 %v8407_v20, 0.0  ;;  %v8411_v6 = vadd.f32 %v8410_v46, %v16669_v41  ;;  %8832 = vmatprep.mubr.bf16.mxu0 %v13736_v27  ;;  %v8031_v15 = vadd.f32 %v16441_v26, %v16631_v23 }
0x1339   : > { %v8337_v25 = vpop.f32.mrf.mxu1  ;;  %8954 = vmatmul.mubr.bf16.gmra.mxu1 %v16533_v2  ;;  %v8412_v16 = vpop.f32.mrf.mxu0  ;;  %v8149_v2 = vadd.f32 %v16787_v50, %v16623_v17 }
0x133a   : > { %v16912_v14 = vadd.f32 %v8337_v25, %v8145_v34  ;;  %8961 = vmatprep.mubr.bf16.mxu1 %v16542_v35  ;;  %v8413_v20 = vadd.f32 %v8412_v16, %v16673_v63  ;;  %v16918_v47 = vpack.c.bf16 %v9046_v54, %v9043_v5  ;;  %v8224_v28 = vadd.f32 %v16683_v22, %v8031_v15  ;;  %v13737_v5 = vld [vmem:[#allocation2 + $0x1e8] ss:$24 sps:$4 sm:$0xff]  }
0x133b   : > { %v8339_v21 = vpop.f32.mrf.mxu1  ;;  %v8414_v53 = vpop.f32.mrf.mxu0  ;;  %v9048_v26 = vmax.f32 %v8411_v6, 0.0  ;;  %v13738_v6 = vld [vmem:[#allocation2 + $0x21c] ss:$24 sps:$4 sm:$0xff]   ;;  %v8157_v16 = vadd.f32 %v16816_v38, %v16631_v23 }
0x133c   : > { %v16922_v41 = vadd.f32 %v8339_v21, %v8147_v37  ;;  %v8415_v35 = vadd.f32 %v8414_v53, %v16681_v3  ;;  %v9049_v54 = vmax.f32 %v8413_v20, 0.0  ;;  %v17641_v37 = vld [vmem:[#allocation30_spill] sm:$0xff]  ;;  %v17645_v38 = vld [vmem:[#allocation56_spill] sm:$0xff] }
0x133d   : > { %v8341_v19 = vpop.f32.mrf.mxu1  ;;  %v8416_v12 = vpop.f32.mrf.mxu0  ;;  %v17643_v20 = vld [vmem:[#allocation26_spill] sm:$0xff] }
0x133e   : > { %v16926_v42 = vadd.f32 %v8341_v19, %v8149_v2  ;;  %v9051_v34 = vmax.f32 %v8415_v35, 0.0  ;;  %v8417_v63 = vadd.f32 %v8416_v12, %v8224_v28  ;;  %v8041_v2 = vadd.f32 %v17643_v20, %v16631_v23  ;;  %v17644_v12 = vld [vmem:[#allocation59_spill] sm:$0xff] }
0x133f   : > { %v16928_v46 = vpop.f32.mrf.mxu1  ;;  %v8420_v50 = vpop.f32.mrf.mxu0  ;;  %8833 = vmatmul.mubr.bf16.gmra.mxu0 %v13737_v5 }
0x1340   : > { %v16932_v25 = vpack.c.bf16 %v9051_v34, %v9048_v26  ;;  %v9052_v22 = vmax.f32 %v8417_v63, 0.0  ;;  %v8421_v3 = vadd.f32 %v8420_v50, %v16696_v60  ;;  %8840 = vmatprep.mubr.bf16.mxu0 %v13738_v6  ;;  %v8159_v60 = vadd.f32 %v16827_v52, %v16623_v17 }
0x1341   : > { %v8347_v27 = vpop.f32.mrf.mxu1  ;;  %8962 = vmatmul.mubr.bf16.gmra.mxu1 %v17641_v37  ;;  %v8422_v21 = vpop.f32.mrf.mxu0  ;;  %v8234_v26 = vadd.f32 %v17644_v12, %v8041_v2  ;;  %v8165_v52 = vadd.f32 %v16847_v39, %v16623_v17 }
0x1342   : > { %v16938_v15 = vadd.f32 %v8347_v27, %v8155_v7  ;;  %8969 = vmatprep.mubr.bf16.mxu1 %v17642_v30  ;;  %v16943_v28 = vpack.c.bf16 %v9052_v22, %v9049_v54  ;;  %v8423_v34 = vadd.f32 %v8422_v21, %v17645_v38  ;;  %v17646_v7 = vld [vmem:[#allocation58_spill] sm:$0xff]  ;;  %v9054_v37 = vmax.f32 %v8421_v3, 0.0  ;;  %v13739_v30 = vld [vmem:[#allocation2 + $0x218] ss:$24 sps:$4 sm:$0xff]  }
0x1343   : > { %v8349_v53 = vpop.f32.mrf.mxu1  ;;  %v8424_v35 = vpop.f32.mrf.mxu0  ;;  %v8167_v3 = vadd.f32 %v16856_v48, %v16631_v23  ;;  %v17650_v38 = vld [vmem:[#allocation27_spill] sm:$0xff] }
0x1344   : > { %v16947_v19 = vadd.f32 %v8349_v53, %v8157_v16  ;;  %v8425_v50 = vadd.f32 %v8424_v35, %v17646_v7  ;;  %v9055_v20 = vmax.f32 %v8423_v34, 0.0  ;;  %v17647_v35 = vld [vmem:[#allocation33_spill] sm:$0xff]  ;;  %v17651_v34 = vld [vmem:[#allocation60_spill] sm:$0xff] }
0x1345   : > { %v8351_v63 = vpop.f32.mrf.mxu1  ;;  %v8426_v27 = vpop.f32.mrf.mxu0 }
0x1346   : > { %v16952_v5 = vadd.f32 %v8351_v63, %v8159_v60  ;;  %v9057_v6 = vmax.f32 %v8425_v50, 0.0  ;;  %v8427_v22 = vadd.f32 %v8426_v27, %v8234_v26  ;;  %v13740_v60 = vld [vmem:[#allocation2 + $0x24c] ss:$24 sps:$4 sm:$0xff]   ;;  %v8051_v63 = vadd.f32 %v17650_v38, %v16631_v23 }
0x1347   : > { %v16954_v54 = vpop.f32.mrf.mxu1  ;;  %v8430_v16 = vpop.f32.mrf.mxu0  ;;  %8841 = vmatmul.mubr.bf16.gmra.mxu0 %v13739_v30  ;;  %v17649_v26 = vld [vmem:[#allocation35_spill] sm:$0xff] }
0x1348   : > { %v16958_v2 = vpack.c.bf16 %v9057_v6, %v9054_v37  ;;  %v9058_v21 = vmax.f32 %v8427_v22, 0.0  ;;  %8848 = vmatprep.mubr.bf16.mxu0 %v13740_v60  ;;  %v8431_v7 = vadd.f32 %v8430_v16, %v17651_v34  ;;  %v8169_v37 = vadd.f32 %v16867_v36, %v16623_v17  ;;  %v13741_v17 = vld [vmem:[#allocation2 + $0x248] ss:$24 sps:$4 sm:$0xff]  }
0x1349   : > { %v8357_v53 = vpop.f32.mrf.mxu1  ;;  %8970 = vmatmul.mubr.bf16.gmra.mxu1 %v17647_v35  ;;  %v8432_v39 = vpop.f32.mrf.mxu0  ;;  %v8244_v48 = vadd.f32 %v16727_v1, %v8051_v63 }
0x134a   : > { %v16963_v12 = vadd.f32 %v8357_v53, %v8165_v52  ;;  %8977 = vmatprep.mubr.bf16.mxu1 %v17649_v26  ;;  %v16969_v27 = vpack.c.bf16 %v9058_v21, %v9055_v20  ;;  %v8433_v52 = vadd.f32 %v8432_v39, %v16721_v4  ;;  %v17653_v53 = vld [vmem:[#allocation62_spill] sm:$0xff]  ;;  %v9060_v16 = vmax.f32 %v8431_v7, 0.0  ;;  %v13742_v39 = vld [vmem:[#allocation2 + $0x27c] ss:$24 sps:$4 sm:$0xff]  }
0x134b   : > { %v8359_v50 = vpop.f32.mrf.mxu1  ;;  %v8434_v22 = vpop.f32.mrf.mxu0  ;;  %v17656_v4 = vld [vmem:[#allocation34_spill] sm:$0xff]  ;;  %v17658_v7 = vld [vmem:[#allocation28_spill] sm:$0xff] }
0x134c   : > { %17648 = vst [vmem:[#allocation30_spill] sm:$0xff] %v16963_v12  ;;  %v16973_v6 = vadd.f32 %v8359_v50, %v8167_v3  ;;  %v8435_v35 = vadd.f32 %v8434_v22, %v17653_v53  ;;  %v9061_v36 = vmax.f32 %v8433_v52, 0.0  ;;  %v17657_v50 = vld [vmem:[#allocation37_spill] sm:$0xff]  ;;  %v8061_v22 = vadd.f32 %v17658_v7, %v16631_v23 }
0x134d   : > { %v8361_v30 = vpop.f32.mrf.mxu1  ;;  %v8436_v26 = vpop.f32.mrf.mxu0 }
0x134e   : > { %17652 = vst [vmem:[#allocation32_spill] sm:$0xff] %v16973_v6  ;;  %v16978_v60 = vadd.f32 %v8361_v30, %v8169_v37  ;;  %v9063_v38 = vmax.f32 %v8435_v35, 0.0  ;;  %v8437_v21 = vadd.f32 %v8436_v26, %v8244_v48  ;;  %v17659_v30 = vld [vmem:[#allocation63_spill] sm:$0xff] }
0x134f   : > { %v16980_v20 = vpop.f32.mrf.mxu1  ;;  %v8440_v34 = vpop.f32.mrf.mxu0  ;;  %8849 = vmatmul.mubr.bf16.gmra.mxu0 %v13741_v17  ;;  %v17662_v17 = vld [vmem:[#allocation65_spill] sm:$0xff] }
0x1350   : > { %17654 = vst [vmem:[#allocation26_spill] sm:$0xff] %v16978_v60  ;;  %17655 = vst [vmem:[#allocation59_spill] sm:$0xff] %v16980_v20  ;;  %v16982_v3 = vpack.c.bf16 %v9063_v38, %v9060_v16  ;;  %v9064_v1 = vmax.f32 %v8437_v21, 0.0  ;;  %8856 = vmatprep.mubr.bf16.mxu0 %v13742_v39  ;;  %v8441_v48 = vadd.f32 %v8440_v34, %v17659_v30  ;;  %v17661_v38 = vld [vmem:[#allocation64_spill] sm:$0xff] }
0x1351   : > { %v11860_v63 = vpop.f32.mrf.mxu1  ;;  %8978 = vmatmul.mubr.bf16.gmra.mxu1 %v17656_v4  ;;  %v8442_v37 = vpop.f32.mrf.mxu0  ;;  %v8254_v16 = vadd.f32 %v16745_v11, %v8061_v22  ;;  %v17664_v22 = vld [vmem:[#allocation38_spill] sm:$0xff] }
0x1352   : > { %8985 = vmatprep.mubr.bf16.mxu1 %v17657_v50  ;;  %v16989_v35 = vpack.c.bf16 %v9064_v1, %v9061_v36  ;;  %v8443_v21 = vadd.f32 %v8442_v37, %v17661_v38  ;;  %v9066_v60 = vmax.f32 %v8441_v48, 0.0  ;;  %v13743_v36 = vld [vmem:[#allocation2 + $0x278] ss:$24 sps:$4 sm:$0xff]   ;;  %v13744_v37 = vld [vmem:[#allocation2 + $0x2ac] ss:$24 sps:$4 sm:$0xff]  }
0x1353   : > { %v11861_v53 = vpop.f32.mrf.mxu1  ;;  %v8444_v26 = vpop.f32.mrf.mxu0  ;;  %v17667_v38 = vld [vmem:[#allocation66_spill] sm:$0xff] }
0x1354   : > { %v16991_v52 = vadd.f32 %v11861_v53, %v11860_v63  ;;  %v8445_v4 = vadd.f32 %v8444_v26, %v17662_v17  ;;  %v9067_v1 = vmax.f32 %v8443_v21, 0.0  ;;  %v17665_v53 = vld [vmem:[#allocation40_spill] sm:$0xff]  ;;  %v17666_v26 = vld [vmem:[#allocation29_spill] sm:$0xff] }
0x1355   : > { %v11863_v39 = vpop.f32.mrf.mxu1  ;;  %v8446_v50 = vpop.f32.mrf.mxu0 }
0x1356   : > { %17660 = vst [vmem:[#allocation56_spill] sm:$0xff] %v16991_v52  ;;  %v9069_v6 = vmax.f32 %v8445_v4, 0.0  ;;  %v8447_v20 = vadd.f32 %v8446_v50, %v8254_v16  ;;  %v8071_v16 = vadd.f32 %v17666_v26, %v16631_v23  ;;  %v17669_v50 = vld [vmem:[#allocation68_spill] sm:$0xff] }
0x1357   : > { %v11864_v7 = vpop.f32.mrf.mxu1  ;;  %v8450_v34 = vpop.f32.mrf.mxu0  ;;  %8857 = vmatmul.mubr.bf16.gmra.mxu0 %v13743_v36 }
0x1358   : > { %v16996_v12 = vadd.f32 %v11864_v7, %v11863_v39  ;;  %v16998_v63 = vpack.c.bf16 %v9069_v6, %v9066_v60  ;;  %v9070_v30 = vmax.f32 %v8447_v20, 0.0  ;;  %8864 = vmatprep.mubr.bf16.mxu0 %v13744_v37  ;;  %v8451_v17 = vadd.f32 %v8450_v34, %v17667_v38 }
0x1359   : > { %v11866_v11 = vpop.f32.mrf.mxu1  ;;  %8986 = vmatmul.mubr.bf16.gmra.mxu1 %v17664_v22  ;;  %v8452_v48 = vpop.f32.mrf.mxu0  ;;  %v8264_v60 = vadd.f32 %v16763_v45, %v8071_v16  ;;  %v17671_v16 = vld [vmem:[#allocation39_spill] sm:$0xff] }
0x135a   : > { %17663 = vst [vmem:[#allocation58_spill] sm:$0xff] %v16996_v12  ;;  %8993 = vmatprep.mubr.bf16.mxu1 %v17665_v53  ;;  %v17005_v39 = vpack.c.bf16 %v9070_v30, %v9067_v1  ;;  %v8453_v20 = vadd.f32 %v8452_v48, %v16757_v31  ;;  %v9072_v37 = vmax.f32 %v8451_v17, 0.0  ;;  %v13745_v1 = vld [vmem:[#allocation2 + $0x2a8] ss:$24 sps:$4 sm:$0xff]   ;;  %v13746_v31 = vld [vmem:[#allocation2 + $0x2dc] ss:$24 sps:$4 sm:$0xff]  }
0x135b   : > { %v11867_v4 = vpop.f32.mrf.mxu1  ;;  %v8454_v6 = vpop.f32.mrf.mxu0  ;;  %v17672_v48 = vld [vmem:[#allocation42_spill] sm:$0xff] }
0x135c   : > { %v17007_v21 = vadd.f32 %v11867_v4, %v11866_v11  ;;  %v8455_v7 = vadd.f32 %v8454_v6, %v17669_v50  ;;  %v9073_v30 = vmax.f32 %v8453_v20, 0.0  ;;  %v17673_v4 = vld [vmem:[#allocation31_spill] sm:$0xff] }
0x135d   : > { %v11869_v36 = vpop.f32.mrf.mxu1  ;;  %v8456_v22 = vpop.f32.mrf.mxu0  ;;  %v8081_v6 = vadd.f32 %v17673_v4, %v16631_v23 }
0x135e   : > { %17668 = vst [vmem:[#allocation33_spill] sm:$0xff] %v17007_v21  ;;  %v9075_v53 = vmax.f32 %v8455_v7, 0.0  ;;  %v8457_v12 = vadd.f32 %v8456_v22, %v8264_v60  ;;  %v17674_v60 = vld [vmem:[#allocation69_spill] sm:$0xff] }
0x135f   : > { %v11870_v26 = vpop.f32.mrf.mxu1  ;;  %v8460_v34 = vpop.f32.mrf.mxu0  ;;  %8865 = vmatmul.mubr.bf16.gmra.mxu0 %v13745_v1 }
0x1360   : > { %v17012_v52 = vadd.f32 %v11870_v26, %v11869_v36  ;;  %v17014_v11 = vpack.c.bf16 %v9075_v53, %v9072_v37  ;;  %v9076_v38 = vmax.f32 %v8457_v12, 0.0  ;;  %8872 = vmatprep.mubr.bf16.mxu0 %v13746_v31  ;;  %v8461_v50 = vadd.f32 %v8460_v34, %v17674_v60  ;;  %v17675_v53 = vld [vmem:[#allocation70_spill] sm:$0xff] }
0x1361   : > { %v11872_v45 = vpop.f32.mrf.mxu1  ;;  %8994 = vmatmul.mubr.bf16.gmra.mxu1 %v17671_v16  ;;  %v8462_v17 = vpop.f32.mrf.mxu0  ;;  %v8274_v12 = vadd.f32 %v16781_v9, %v8081_v6  ;;  %v17676_v9 = vld [vmem:[#allocation44_spill] sm:$0xff] }
0x1362   : > { %17670 = vst [vmem:[#allocation35_spill] sm:$0xff] %v17012_v52  ;;  %9001 = vmatprep.mubr.bf16.mxu1 %v17672_v48  ;;  %v17021_v36 = vpack.c.bf16 %v9076_v38, %v9073_v30  ;;  %v8463_v37 = vadd.f32 %v8462_v17, %v16775_v55  ;;  %v9078_v31 = vmax.f32 %v8461_v50, 0.0  ;;  %v13747_v30 = vld [vmem:[#allocation2 + $0x2d8] ss:$24 sps:$4 sm:$0xff]  }
0x1363   : > { %v11873_v7 = vpop.f32.mrf.mxu1  ;;  %v8464_v22 = vpop.f32.mrf.mxu0  ;;  %v17677_v55 = vld [vmem:[#allocation48_spill] sm:$0xff] }
0x1364   : > { %v17023_v20 = vadd.f32 %v11873_v7, %v11872_v45  ;;  %v8465_v26 = vadd.f32 %v8464_v22, %v17675_v53  ;;  %v9079_v38 = vmax.f32 %v8463_v37, 0.0  ;;  %v17678_v6 = vld [vmem:[#allocation36_spill] sm:$0xff] }
0x1365   : > { %v11875_v1 = vpop.f32.mrf.mxu1  ;;  %v8466_v16 = vpop.f32.mrf.mxu0  ;;  %v8091_v50 = vadd.f32 %v17678_v6, %v16631_v23 }
0x1366   : > { %v9081_v48 = vmax.f32 %v8465_v26, 0.0  ;;  %v8467_v52 = vadd.f32 %v8466_v16, %v8274_v12 }
0x1367   : > { %v11876_v4 = vpop.f32.mrf.mxu1  ;;  %v8470_v34 = vpop.f32.mrf.mxu0  ;;  %8873 = vmatmul.mubr.bf16.gmra.mxu0 %v13747_v30  ;;  %v8284_v37 = vadd.f32 %v16800_v8, %v8091_v50  ;;  %v17679_v8 = vld [vmem:[#allocation47_spill] sm:$0xff] }
0x1368   : > { %v17028_v21 = vadd.f32 %v11876_v4, %v11875_v1  ;;  %v9160_v45 = vpack.c.bf16 %v9081_v48, %v9078_v31  ;;  %v9082_v60 = vmax.f32 %v8467_v52, 0.0  ;;  %v8471_v22 = vadd.f32 %v8470_v34, %v16789_v40 }
0x1369   : > { %v11878_v7 = vpop.f32.mrf.mxu1  ;;  %9002 = vmatmul.mubr.bf16.gmra.mxu1 %v17676_v9  ;;  %v8472_v17 = vpop.f32.mrf.mxu0 }
0x136a   : > { %9009 = vmatprep.mubr.bf16.mxu1 %v17677_v55  ;;  %v9161_v53 = vpack.c.bf16 %v9082_v60, %v9079_v38  ;;  %v8473_v52 = vadd.f32 %v8472_v17, %v16794_v49  ;;  %v9084_v4 = vmax.f32 %v8471_v22, 0.0  ;;  %v17680_v49 = vld [vmem:[#allocation50_spill] sm:$0xff]  ;;  %v17681_v17 = vld [vmem:[#allocation41_spill] sm:$0xff] }
0x136b   : > { %v11879_v12 = vpop.f32.mrf.mxu1  ;;  %v8474_v1 = vpop.f32.mrf.mxu0  ;;  %v8101_v50 = vadd.f32 %v17681_v17, %v16631_v23  ;;  %v17684_v17 = vld [vmem:[#allocation53_spill] sm:$0xff] }
0x136c   : > { %v17035_v26 = vadd.f32 %v11879_v12, %v11878_v7  ;;  %v8475_v16 = vadd.f32 %v8474_v1, %v16798_v57  ;;  %v9085_v34 = vmax.f32 %v8473_v52, 0.0 }
0x136d   : > { %v11881_v31 = vpop.f32.mrf.mxu1  ;;  %v8476_v48 = vpop.f32.mrf.mxu0 }
0x136e   : > { %v9087_v30 = vmax.f32 %v8475_v16, 0.0  ;;  %v8477_v9 = vadd.f32 %v8476_v48, %v8284_v37  ;;  %v17682_v48 = vld [vmem:[#allocation72_spill] sm:$0xff] }
0x136f   : > { %v11882_v55 = vpop.f32.mrf.mxu1  ;;  %v8480_v40 = vpop.f32.mrf.mxu0 }
0x1370   : > { %v17040_v6 = vadd.f32 %v11882_v55, %v11881_v31  ;;  %v9163_v38 = vpack.c.bf16 %v9087_v30, %v9084_v4  ;;  %v9088_v60 = vmax.f32 %v8477_v9, 0.0  ;;  %v8481_v7 = vadd.f32 %v8480_v40, %v16809_v44 }
0x1371   : > { %v11884_v12 = vpop.f32.mrf.mxu1  ;;  %9010 = vmatmul.mubr.bf16.gmra.mxu1 %v17679_v8  ;;  %v8482_v57 = vpop.f32.mrf.mxu0  ;;  %v8294_v31 = vadd.f32 %v16820_v0, %v8101_v50 }
0x1372   : > { %9017 = vmatprep.mubr.bf16.mxu1 %v17680_v49  ;;  %v8483_v22 = vadd.f32 %v8482_v57, %v16814_v10  ;;  %v9164_v37 = vpack.c.bf16 %v9088_v60, %v9085_v34  ;;  %v9090_v9 = vmax.f32 %v8481_v7, 0.0  ;;  %v17683_v57 = vld [vmem:[#allocation51_spill] sm:$0xff] }
0x1373   : > { %v11885_v1 = vpop.f32.mrf.mxu1  ;;  %v8484_v52 = vpop.f32.mrf.mxu0 }
0x1374   : > { %v17048_v16 = vadd.f32 %v11885_v1, %v11884_v12  ;;  %v8485_v44 = vadd.f32 %v8484_v52, %v17682_v48  ;;  %9210 = vmatprep.subr.bf16.mxu0 %v9164_v37  ;;  %v9091_v34 = vmax.f32 %v8483_v22, 0.0 }
0x1375   : > { %v17052_v4 = vpop.f32.mrf.mxu1  ;;  %v8486_v30 = vpop.f32.mrf.mxu0  ;;  %9211 = vmatpush1.bf16.msra.mxu0 %v9163_v38  ;;  %v17685_v38 = vld [vmem:[#allocation49_spill] sm:$0xff] }
0x1376   : > { %v9093_v55 = vmax.f32 %v8485_v44, 0.0  ;;  %v8487_v40 = vadd.f32 %v8486_v30, %v8294_v31  ;;  %9212 = vmatprep.subr.bf16.mxu0 %v9161_v53  ;;  %v8111_v7 = vadd.f32 %v17685_v38, %v16631_v23 }
0x1377   : > { %v17054_v8 = vpop.f32.mrf.mxu1  ;;  %v8490_v10 = vpop.f32.mrf.mxu0 }
0x1378   : > { %v17056_v60 = vpack.c.bf16 %v9093_v55, %v9090_v9  ;;  %v9094_v12 = vmax.f32 %v8487_v40, 0.0  ;;  %v8491_v0 = vadd.f32 %v8490_v10, %v16829_v24  ;;  %v8304_v52 = vadd.f32 %v16840_v32, %v8111_v7  ;;  %v17689_v7 = vld [vmem:[#allocation74_spill] sm:$0xff] }
0x1379   : > { %v11890_v49 = vpop.f32.mrf.mxu1  ;;  %9018 = vmatmul.mubr.bf16.gmra.mxu1 %v17683_v57  ;;  %v8492_v50 = vpop.f32.mrf.mxu0  ;;  %9213 = vmatpush1.bf16.msra.mxu0 %v9160_v45 }
0x137a   : > { %9025 = vmatprep.mubr.bf16.mxu1 %v17684_v17  ;;  %v17063_v1 = vpack.c.bf16 %v9094_v12, %v9091_v34  ;;  %v8493_v53 = vadd.f32 %v8492_v50, %v16834_v13  ;;  %9214 = vmatprep.subr.bf16.mxu0 %v17021_v36  ;;  %v9096_v44 = vmax.f32 %v8491_v0, 0.0  ;;  %v17686_v34 = vld [vmem:[#allocation52_spill] sm:$0xff]  ;;  %v17687_v12 = vld [vmem:[#allocation55_spill] sm:$0xff]  ;;  %v17688_v0 = vld [vmem:[#allocation54_spill] sm:$0xff] }
0x137b   : > { %v11891_v22 = vpop.f32.mrf.mxu1  ;;  %v8494_v24 = vpop.f32.mrf.mxu0 }
0x137c   : > { %v17067_v37 = vadd.f32 %v11891_v22, %v11890_v49  ;;  %v8495_v31 = vadd.f32 %v8494_v24, %v16838_v18  ;;  %v9097_v36 = vmax.f32 %v8493_v53, 0.0  ;;  %v8121_v49 = vadd.f32 %v17688_v0, %v16631_v23 }
0x137d   : > { %v17071_v48 = vpop.f32.mrf.mxu1  ;;  %v8496_v45 = vpop.f32.mrf.mxu0  ;;  %9215 = vmatpush1.bf16.msra.mxu0 %v17014_v11 }
0x137e   : > { %v9099_v30 = vmax.f32 %v8495_v31, 0.0  ;;  %v8497_v9 = vadd.f32 %v8496_v45, %v8304_v52  ;;  %9216 = vmatprep.subr.bf16.mxu0 %v17005_v39 }
0x137f   : > { %v17074_v55 = vpop.f32.mrf.mxu1  ;;  %v8500_v13 = vpop.f32.mrf.mxu0 }
0x1380   : > { %v17077_v40 = vpack.c.bf16 %v9099_v30, %v9096_v44  ;;  %v9100_v10 = vmax.f32 %v8497_v9, 0.0  ;;  %v8501_v32 = vadd.f32 %v8500_v13, %v16849_v62  ;;  %v8314_v62 = vadd.f32 %v16860_v56, %v8121_v49  ;;  %v17690_v9 = vld [vmem:[#allocation57_spill] sm:$0xff] }
0x1381   : > { %v11896_v18 = vpop.f32.mrf.mxu1  ;;  %9026 = vmatmul.mubr.bf16.gmra.mxu1 %v17686_v34  ;;  %v8502_v11 = vpop.f32.mrf.mxu0  ;;  %9217 = vmatpush1.bf16.msra.mxu0 %v16998_v63  ;;  %v17693_v49 = vld [vmem:[#allocation77_spill] sm:$0xff] }
0x1382   : > { %9033 = vmatprep.mubr.bf16.mxu1 %v17687_v12  ;;  %v17085_v57 = vpack.c.bf16 %v9100_v10, %v9097_v36  ;;  %9218 = vmatprep.subr.bf16.mxu0 %v16989_v35  ;;  %v8503_v38 = vadd.f32 %v8502_v11, %v16854_v29  ;;  %v9102_v24 = vmax.f32 %v8501_v32, 0.0  ;;  %v17692_v32 = vld [vmem:[#allocation75_spill] sm:$0xff] }
0x1383   : > { %v11897_v39 = vpop.f32.mrf.mxu1  ;;  %v8504_v50 = vpop.f32.mrf.mxu0 }
0x1384   : > { %v17088_v17 = vadd.f32 %v11897_v39, %v11896_v18  ;;  %v8505_v53 = vadd.f32 %v8504_v50, %v17689_v7  ;;  %v9103_v44 = vmax.f32 %v8503_v38, 0.0 }
0x1385   : > { %v17093_v22 = vpop.f32.mrf.mxu1  ;;  %v8506_v63 = vpop.f32.mrf.mxu0  ;;  %9219 = vmatpush1.bf16.msra.mxu0 %v16982_v3  ;;  %v17691_v3 = vld [vmem:[#allocation61_spill] sm:$0xff] }
0x1386   : > { %v9105_v52 = vmax.f32 %v8505_v53, 0.0  ;;  %v8507_v31 = vadd.f32 %v8506_v63, %v8314_v62  ;;  %9220 = vmatprep.subr.bf16.mxu0 %v16969_v27  ;;  %v8131_v36 = vadd.f32 %v17691_v3, %v16631_v23 }
0x1387   : > { %v17096_v45 = vpop.f32.mrf.mxu1  ;;  %v8510_v35 = vpop.f32.mrf.mxu0 }
0x1388   : > { %v17099_v30 = vpack.c.bf16 %v9105_v52, %v9102_v24  ;;  %v9106_v56 = vmax.f32 %v8507_v31, 0.0  ;;  %v8511_v18 = vadd.f32 %v8510_v35, %v17692_v32  ;;  %v8324_v11 = vadd.f32 %v16880_v61, %v8131_v36  ;;  %v17694_v31 = vld [vmem:[#allocation67_spill] sm:$0xff] }
0x1389   : > { %v11902_v29 = vpop.f32.mrf.mxu1  ;;  %9034 = vmatmul.mubr.bf16.gmra.mxu1 %v17690_v9  ;;  %v8512_v13 = vpop.f32.mrf.mxu0  ;;  %9221 = vmatpush1.bf16.msra.mxu0 %v16958_v2  ;;  %v8141_v35 = vadd.f32 %v17694_v31, %v16631_v23 }
0x138a   : > { %v17105_v10 = vpack.c.bf16 %v9106_v56, %v9103_v44  ;;  %9222 = vmatprep.subr.bf16.mxu0 %v16943_v28  ;;  %v8513_v0 = vadd.f32 %v8512_v13, %v16874_v33  ;;  %v9108_v62 = vmax.f32 %v8511_v18, 0.0  ;;  %v17695_v44 = vld [vmem:[#allocation78_spill] sm:$0xff] }
0x138b   : > { %v11903_v34 = vpop.f32.mrf.mxu1  ;;  %v8514_v12 = vpop.f32.mrf.mxu0  ;;  %v8334_v13 = vadd.f32 %v16902_v59, %v8141_v35  ;;  %v17696_v59 = vld [vmem:[#allocation71_spill] sm:$0xff] }
0x138c   : > { %v17109_v27 = vadd.f32 %v11903_v34, %v11902_v29  ;;  %v8515_v39 = vadd.f32 %v8514_v12, %v17693_v49  ;;  %v9109_v63 = vmax.f32 %v8513_v0, 0.0 }
0x138d   : > { %v17114_v2 = vpop.f32.mrf.mxu1  ;;  %v8516_v50 = vpop.f32.mrf.mxu0  ;;  %9223 = vmatpush1.bf16.msra.mxu0 %v16932_v25 }
0x138e   : > { %v9111_v38 = vmax.f32 %v8515_v39, 0.0  ;;  %v8517_v7 = vadd.f32 %v8516_v50, %v8324_v11  ;;  %9224 = vmatprep.subr.bf16.mxu0 %v16918_v47 }
0x138f   : > { %v17117_v53 = vpop.f32.mrf.mxu1  ;;  %v8520_v28 = vpop.f32.mrf.mxu0 }
0x1390   : > { %v17120_v24 = vpack.c.bf16 %v9111_v38, %v9108_v62  ;;  %v9112_v61 = vmax.f32 %v8517_v7, 0.0  ;;  %v8521_v56 = vadd.f32 %v8520_v28, %v17695_v44 }
0x1391   : > { %v11908_v33 = vpop.f32.mrf.mxu1  ;;  %v8522_v52 = vpop.f32.mrf.mxu0  ;;  %9225 = vmatpush1.bf16.msra.mxu0 %v16906_v51 }
0x1392   : > { %v17125_v25 = vpack.c.bf16 %v9112_v61, %v9109_v63  ;;  %v8523_v3 = vadd.f32 %v8522_v52, %v16896_v58  ;;  %v9114_v51 = vmax.f32 %v8521_v56, 0.0  ;;  %v8151_v58 = vadd.f32 %v17696_v59, %v16631_v23 }
0x1393   : > { %v11909_v29 = vpop.f32.mrf.mxu1  ;;  %v8524_v47 = vpop.f32.mrf.mxu0 }
0x1394   : > { %v17128_v9 = vadd.f32 %v11909_v29, %v11908_v33  ;;  %v8525_v36 = vadd.f32 %v8524_v47, %v16900_v43  ;;  %v9115_v39 = vmax.f32 %v8523_v3, 0.0  ;;  %v8344_v52 = vadd.f32 %v16928_v46, %v8151_v58  ;;  %v17697_v46 = vld [vmem:[#allocation73_spill] sm:$0xff] }
0x1395   : > { %v11911_v32 = vpop.f32.mrf.mxu1  ;;  %v8526_v18 = vpop.f32.mrf.mxu0 }
0x1396   : > { %v9117_v34 = vmax.f32 %v8525_v36, 0.0  ;;  %v8527_v12 = vadd.f32 %v8526_v18, %v8334_v13 }
0x1397   : > { %v11912_v11 = vpop.f32.mrf.mxu1  ;;  %v8530_v49 = vpop.f32.mrf.mxu0 }
0x1398   : > { %v17133_v0 = vadd.f32 %v11912_v11, %v11911_v32  ;;  %v17135_v50 = vpack.c.bf16 %v9117_v34, %v9114_v51  ;;  %v9118_v62 = vmax.f32 %v8527_v12, 0.0  ;;  %v8531_v43 = vadd.f32 %v8530_v49, %v16912_v14 }
0x1399   : > { %v11914_v38 = vpop.f32.mrf.mxu1  ;;  %v8532_v7 = vpop.f32.mrf.mxu0 }
0x139a   : > { %v17139_v28 = vpack.c.bf16 %v9118_v62, %v9115_v39  ;;  %v8533_v31 = vadd.f32 %v8532_v7, %v16922_v41  ;;  %v9120_v29 = vmax.f32 %v8531_v43, 0.0  ;;  %v8161_v41 = vadd.f32 %v17697_v46, %v16631_v23 }
0x139b   : > { %v11915_v63 = vpop.f32.mrf.mxu1  ;;  %v8534_v33 = vpop.f32.mrf.mxu0 }
0x139c   : > { %v17142_v61 = vadd.f32 %v11915_v63, %v11914_v38  ;;  %v8535_v35 = vadd.f32 %v8534_v33, %v16926_v42  ;;  %v9121_v14 = vmax.f32 %v8533_v31, 0.0  ;;  %v8354_v38 = vadd.f32 %v16954_v54, %v8161_v41  ;;  %v17698_v54 = vld [vmem:[#allocation76_spill] sm:$0xff]  ;;  %v17701_v41 = vld [vmem:[#allocation59_spill] sm:$0xff] }
0x139d   : > { %v11917_v44 = vpop.f32.mrf.mxu1  ;;  %v8536_v56 = vpop.f32.mrf.mxu0 }
0x139e   : > { %v9123_v47 = vmax.f32 %v8535_v35, 0.0  ;;  %v8537_v13 = vadd.f32 %v8536_v56, %v8344_v52 }
0x139f   : > { %v11918_v3 = vpop.f32.mrf.mxu1  ;;  %v8540_v32 = vpop.f32.mrf.mxu0 }
0x13a0   : > { %v17147_v36 = vadd.f32 %v11918_v3, %v11917_v44  ;;  %v17149_v18 = vpack.c.bf16 %v9123_v47, %v9120_v29  ;;  %v9124_v51 = vmax.f32 %v8537_v13, 0.0  ;;  %v8541_v42 = vadd.f32 %v8540_v32, %v16938_v15 }
0x13a1   : > { %v11920_v34 = vpop.f32.mrf.mxu1  ;;  %v8542_v12 = vpop.f32.mrf.mxu0  ;;  %v8171_v3 = vadd.f32 %v17698_v54, %v16631_v23  ;;  %v13748_v23 = vld [vmem:[%s17607_s27] sm:$0x7] }
0x13a2   : > { %v17153_v11 = vpack.c.bf16 %v9124_v51, %v9121_v14  ;;  %v8543_v7 = vadd.f32 %v8542_v12, %v16947_v19  ;;  %v9126_v63 = vmax.f32 %v8541_v42, 0.0  ;;  %v17699_v19 = vld [vmem:[#allocation43_spill] sm:$0xff]  ;;  %v17700_v14 = vld [vmem:[#allocation30_spill] sm:$0xff] }
0x13a3   : > { %v11921_v49 = vpop.f32.mrf.mxu1  ;;  %v8544_v62 = vpop.f32.mrf.mxu0  ;;  %v6727_v32 = vsub.s32 2, %v17699_v19  ;;  %v8364_v42 = vadd.f32 %v17701_v41, %v8171_v3  ;;  %v17704_v19 = vld [vmem:[#allocation56_spill] sm:$0xff] }
0x13a4   : > { %v17156_v39 = vadd.f32 %v11921_v49, %v11920_v34  ;;  %v8545_v59 = vadd.f32 %v8544_v62, %v16952_v5  ;;  %v9127_v15 = vmax.f32 %v8543_v7, 0.0  ;;  %v17702_v49 = vld [vmem:[#allocation32_spill] sm:$0xff] }
0x13a5   : > { %v11923_v58 = vpop.f32.mrf.mxu1  ;;  %v8546_v43 = vpop.f32.mrf.mxu0 }
0x13a6   : > { %v9129_v33 = vmax.f32 %v8545_v59, 0.0  ;;  %v8547_v52 = vadd.f32 %v8546_v43, %v8354_v38  ;;  %v17703_v38 = vld [vmem:[#allocation26_spill] sm:$0xff]  ;;  %v17175_v43 = vrot.slane %v13748_v23, %v6727_v32 }
0x13a7   : > { %v11924_v31 = vpop.f32.mrf.mxu1  ;;  %v8550_v44 = vpop.f32.mrf.mxu0 }
0x13a8   : > { %v17161_v35 = vadd.f32 %v11924_v31, %v11923_v58  ;;  %v9184_v56 = vpack.c.bf16 %v9129_v33, %v9126_v63  ;;  %v9130_v29 = vmax.f32 %v8547_v52, 0.0  ;;  %v8551_v51 = vadd.f32 %v8550_v44, %v17700_v14 }
0x13a9   : > { %v11926_v47 = vpop.f32.mrf.mxu1  ;;  %v8552_v13 = vpop.f32.mrf.mxu0  ;;  %v8594_v14 = vadd.f32 %v17704_v19, %v17175_v43 }
0x13aa   : > { %v9185_v5 = vpack.c.bf16 %v9130_v29, %v9127_v15  ;;  %v8553_v62 = vadd.f32 %v8552_v13, %v17702_v49  ;;  %v9132_v63 = vmax.f32 %v8551_v51, 0.0 }
0x13ab   : > { %v11927_v34 = vpop.f32.mrf.mxu1  ;;  %v8554_v46 = vpop.f32.mrf.mxu0 }
0x13ac   : > { %v17167_v12 = vadd.f32 %v11927_v34, %v11926_v47  ;;  %v8555_v7 = vadd.f32 %v8554_v46, %v17703_v38  ;;  %v9133_v29 = vmax.f32 %v8553_v62, 0.0  ;;  %v17705_v62 = vld [vmem:[#allocation58_spill] sm:$0xff] }
0x13ad   : > { %v11929_v59 = vpop.f32.mrf.mxu1  ;;  %v8556_v58 = vpop.f32.mrf.mxu0 }
0x13ae   : > { %v9135_v33 = vmax.f32 %v8555_v7, 0.0  ;;  %v8557_v52 = vadd.f32 %v8556_v58, %v8364_v42  ;;  %v8597_v7 = vadd.f32 %v17705_v62, %v17175_v43 }
0x13af   : > { %v11930_v31 = vpop.f32.mrf.mxu1  ;;  %v11972_v15 = vpop.f32.mrf.mxu0 }
0x13b0   : > { %v17177_v44 = vadd.f32 %v11930_v31, %v11929_v59  ;;  %v9187_v47 = vpack.c.bf16 %v9135_v33, %v9132_v63  ;;  %v9136_v13 = vmax.f32 %v8557_v52, 0.0 }
0x13b1   : > { %v11932_v54 = vpop.f32.mrf.mxu1  ;;  %v11973_v3 = vpop.f32.mrf.mxu0 }
0x13b2   : > { %v9188_v34 = vpack.c.bf16 %v9136_v13, %v9133_v29  ;;  %v11974_v41 = vadd.f32 %v11973_v3, %v11972_v15  ;;  %v17706_v15 = vld [vmem:[#allocation33_spill] sm:$0xff] }
0x13b3   : > { %v11933_v46 = vpop.f32.mrf.mxu1  ;;  %v11975_v51 = vpop.f32.mrf.mxu0  ;;  %v8602_v29 = vadd.f32 %v17706_v15, %v17175_v43  ;;  %v8613_v15 = vadd.f32 %v17028_v21, %v17175_v43 }
0x13b4   : > { %v17181_v32 = vadd.f32 %v11933_v46, %v11932_v54  ;;  %v17183_v49 = vadd.f32 %v11974_v41, %v8594_v14  ;;  %9226 = vmatprep.subr.bf16.mxu0 %v9188_v34  ;;  %v17707_v34 = vld [vmem:[#allocation35_spill] sm:$0xff] }
0x13b5   : > { %v11935_v42 = vpop.f32.mrf.mxu1  ;;  %v11976_v38 = vpop.f32.mrf.mxu0  ;;  %9227 = vmatpush2.bf16.msra.mxu0 %v9187_v47  ;;  %v8605_v46 = vadd.f32 %v17707_v34, %v17175_v43 }
0x13b6   : > { %v11977_v58 = vadd.f32 %v11976_v38, %v11975_v51  ;;  %9228 = vmatprep.subr.bf16.mxu0 %v9185_v5 }
0x13b7   : > { %v11936_v59 = vpop.f32.mrf.mxu1  ;;  %v11978_v63 = vpop.f32.mrf.mxu0 }
0x13b8   : > { %v17187_v23 = vadd.f32 %v11936_v59, %v11935_v42  ;;  %v17189_v33 = vadd.f32 %v11977_v58, %v8597_v7  ;;  %v8610_v7 = vadd.f32 %v17023_v20, %v17175_v43 }
0x13b9   : > { %v11938_v52 = vpop.f32.mrf.mxu1  ;;  %v11979_v31 = vpop.f32.mrf.mxu0  ;;  %9229 = vmatpush2.bf16.msra.mxu0 %v9184_v56 }
0x13ba   : > { %v11980_v54 = vadd.f32 %v11979_v31, %v11978_v63  ;;  %9230 = vmatprep.subr.bf16.mxu0 %v17153_v11 }
0x13bb   : > { %v11939_v13 = vpop.f32.mrf.mxu1  ;;  %v11981_v3 = vpop.f32.mrf.mxu0 }
0x13bc   : > { %v17194_v47 = vadd.f32 %v11939_v13, %v11938_v52  ;;  %v17196_v19 = vadd.f32 %v11980_v54, %v8602_v29 }
0x13bd   : > { %v11941_v5 = vpop.f32.mrf.mxu1  ;;  %v11982_v14 = vpop.f32.mrf.mxu0  ;;  %9231 = vmatpush2.bf16.msra.mxu0 %v17149_v18 }
0x13be   : > { %v11983_v41 = vadd.f32 %v11982_v14, %v11981_v3  ;;  %9232 = vmatprep.subr.bf16.mxu0 %v17139_v28 }
0x13bf   : > { %v11942_v56 = vpop.f32.mrf.mxu1  ;;  %v11984_v42 = vpop.f32.mrf.mxu0 }
0x13c0   : > { %v17202_v51 = vadd.f32 %v11942_v56, %v11941_v5  ;;  %v17204_v11 = vadd.f32 %v11983_v41, %v8605_v46  ;;  %v8618_v5 = vadd.f32 %v17035_v26, %v17175_v43  ;;  %v8621_v41 = vadd.f32 %v17040_v6, %v17175_v43 }
0x13c1   : > { %v11944_v38 = vpop.f32.mrf.mxu1  ;;  %v11985_v62 = vpop.f32.mrf.mxu0  ;;  %9233 = vmatpush2.bf16.msra.mxu0 %v17135_v50 }
0x13c2   : > { %v11986_v59 = vadd.f32 %v11985_v62, %v11984_v42  ;;  %9234 = vmatprep.subr.bf16.mxu0 %v17125_v25 }
0x13c3   : > { %v11945_v18 = vpop.f32.mrf.mxu1  ;;  %v11987_v63 = vpop.f32.mrf.mxu0 }
0x13c4   : > { %v17210_v58 = vadd.f32 %v11945_v18, %v11944_v38  ;;  %v17212_v28 = vadd.f32 %v11986_v59, %v8610_v7  ;;  %v8626_v18 = vadd.f32 %v17048_v16, %v17175_v43 }
0x13c5   : > { %v11947_v52 = vpop.f32.mrf.mxu1  ;;  %v11988_v31 = vpop.f32.mrf.mxu0  ;;  %9235 = vmatpush2.bf16.msra.mxu0 %v17120_v24 }
0x13c6   : > { %v11989_v29 = vadd.f32 %v11988_v31, %v11987_v63  ;;  %9236 = vmatprep.subr.bf16.mxu0 %v17105_v10 }
0x13c7   : > { %v11948_v50 = vpop.f32.mrf.mxu1  ;;  %v11990_v13 = vpop.f32.mrf.mxu0 }
0x13c8   : > { %v17218_v20 = vadd.f32 %v11948_v50, %v11947_v52  ;;  %v17220_v25 = vadd.f32 %v11989_v29, %v8613_v15 }
0x13c9   : > { %v11950_v54 = vpop.f32.mrf.mxu1  ;;  %v11991_v3 = vpop.f32.mrf.mxu0  ;;  %9237 = vmatpush2.bf16.msra.mxu0 %v17099_v30 }
0x13ca   : > { %v11992_v14 = vadd.f32 %v11991_v3, %v11990_v13  ;;  %9238 = vmatprep.subr.bf16.mxu0 %v17085_v57 }
0x13cb   : > { %v11951_v24 = vpop.f32.mrf.mxu1  ;;  %v11993_v34 = vpop.f32.mrf.mxu0 }
0x13cc   : > { %v17226_v21 = vadd.f32 %v11951_v24, %v11950_v54  ;;  %v17228_v10 = vadd.f32 %v11992_v14, %v8618_v5  ;;  %v8634_v24 = vadd.f32 %v17067_v37, %v17175_v43  ;;  %v11895_v14 = vadd.f32 %v17074_v55, %v17071_v48 }
0x13cd   : > { %v11953_v46 = vpop.f32.mrf.mxu1  ;;  %v11994_v56 = vpop.f32.mrf.mxu0  ;;  %9239 = vmatpush2.bf16.msra.mxu0 %v17077_v40  ;;  %v11889_v40 = vadd.f32 %v17054_v8, %v17052_v4 }
0x13ce   : > { %v11995_v42 = vadd.f32 %v11994_v56, %v11993_v34  ;;  %9240 = vmatprep.subr.bf16.mxu0 %v17063_v1 }
0x13cf   : > { %v11954_v30 = vpop.f32.mrf.mxu1  ;;  %v11996_v38 = vpop.f32.mrf.mxu0  ;;  %v8629_v29 = vadd.f32 %v11889_v40, %v17175_v43 }
0x13d0   : > { %v17234_v26 = vadd.f32 %v11954_v30, %v11953_v46  ;;  %v17236_v57 = vadd.f32 %v11995_v42, %v8621_v41 }
0x13d1   : > { %v12084_v62 = vpop.f32.mrf.mxu1  ;;  %v11997_v7 = vpop.f32.mrf.mxu0  ;;  %9241 = vmatpush2.bf16.msra.mxu0 %v17056_v60 }
0x13d2   : > { %v11998_v6 = vadd.f32 %v11997_v7, %v11996_v38 }
0x13d3   : > { %v12085_v59 = vpop.f32.mrf.mxu1  ;;  %v11999_v52 = vpop.f32.mrf.mxu0 }
0x13d4   : > { %v12086_v63 = vadd.f32 %v12085_v59, %v12084_v62  ;;  %v17243_v1 = vadd.f32 %v11998_v6, %v8626_v18  ;;  %v8637_v18 = vadd.f32 %v11895_v14, %v17175_v43 }
0x13d5   : > { %v12087_v31 = vpop.f32.mrf.mxu1  ;;  %v12000_v50 = vpop.f32.mrf.mxu0 }
0x13d6   : > { %v8916_v15 = vadd.f32 %v12086_v63, %v17183_v49  ;;  %v12001_v13 = vadd.f32 %v12000_v50, %v11999_v52 }
0x13d7   : > { %v12088_v60 = vpop.f32.mrf.mxu1  ;;  %v12002_v3 = vpop.f32.mrf.mxu0 }
0x13d8   : > { %v12089_v54 = vadd.f32 %v12088_v60, %v12087_v31  ;;  %v17247_v16 = vadd.f32 %v12001_v13, %v8629_v29  ;;  %v9044_v46 = vmax.f32 %v8916_v15, 0.0  ;;  %v8642_v31 = vadd.f32 %v17088_v17, %v17175_v43 }
0x13d9   : > { %v12090_v5 = vpop.f32.mrf.mxu1  ;;  %v12003_v8 = vpop.f32.mrf.mxu0 }
0x13da   : > { %v8919_v4 = vadd.f32 %v12089_v54, %v17189_v33  ;;  %v12004_v49 = vadd.f32 %v12003_v8, %v12002_v3 }
0x13db   : > { %v12091_v34 = vpop.f32.mrf.mxu1  ;;  %v12005_v30 = vpop.f32.mrf.mxu0 }
0x13dc   : > { %v9047_v56 = vmax.f32 %v8919_v4, 0.0  ;;  %v12092_v41 = vadd.f32 %v12091_v34, %v12090_v5  ;;  %v17254_v42 = vadd.f32 %v12004_v49, %v8634_v24  ;;  %v17275_v34 = vld [vmem:[%s14436_s30] ss:$8 sps:$4 sm:$0xff]  }
0x13dd   : > { %v12093_v38 = vpop.f32.mrf.mxu1  ;;  %v12006_v7 = vpop.f32.mrf.mxu0 }
0x13de   : > { %v17256_v62 = vpack.c.bf16 %v9047_v56, %v9044_v46  ;;  %v8924_v33 = vadd.f32 %v12092_v41, %v17196_v19  ;;  %v12007_v37 = vadd.f32 %v12006_v7, %v12005_v30  ;;  %v11901_v19 = vadd.f32 %v17096_v45, %v17093_v22  ;;  %v13400_v22 = vld [vmem:[%s14436_s30 + $0x4] ss:$8 sps:$4 sm:$0xff]  }
0x13df   : > { %v12094_v40 = vpop.f32.mrf.mxu1  ;;  %v12008_v48 = vpop.f32.mrf.mxu0  ;;  %9242 = vmatprep.mubr.bf16.mxu0 %v13400_v22  ;;  %9295 = vmatprep.mubr.bf16.mxu1 %v13400_v22 }
0x13e0   : > { %v12095_v6 = vadd.f32 %v12094_v40, %v12093_v38  ;;  %v17260_v55 = vadd.f32 %v12007_v37, %v8637_v18  ;;  %v9050_v29 = vmax.f32 %v8924_v33, 0.0  ;;  %v8645_v17 = vadd.f32 %v11901_v19, %v17175_v43  ;;  %9243 = vmatmul.mubr.bf16.vlgmr.msra.gmra.mxu0 %v17275_v34 }
0x13e1   : > { %v12096_v59 = vpop.f32.mrf.mxu1  ;;  %v12009_v52 = vpop.f32.mrf.mxu0  ;;  %v11907_v38 = vadd.f32 %v17117_v53, %v17114_v2  ;;  %v17292_v2 = vld [vmem:[%s14436_s30 + $0x14] ss:$8 sps:$4 sm:$0xff]  }
0x13e2   : > { %v8927_v63 = vadd.f32 %v12095_v6, %v17204_v11  ;;  %v12010_v15 = vadd.f32 %v12009_v52, %v12008_v48  ;;  %9252 = vmatprep.mubr.bf16.mxu0 %v17292_v2 }
0x13e3   : > { %v12097_v50 = vpop.f32.mrf.mxu1  ;;  %v12011_v54 = vpop.f32.mrf.mxu0 }
0x13e4   : > { %v9053_v13 = vmax.f32 %v8927_v63, 0.0  ;;  %v12098_v60 = vadd.f32 %v12097_v50, %v12096_v59  ;;  %v17267_v3 = vadd.f32 %v12010_v15, %v8642_v31  ;;  %v17295_v50 = vld [vmem:[%s14436_s30 + $0x10] ss:$8 sps:$4 sm:$0xff]   ;;  %s10049_s30 = sshll.u32 %s14167_s28, 2 }
0x13e5   : > { %v12099_v5 = vpop.f32.mrf.mxu1  ;;  %v12012_v8 = vpop.f32.mrf.mxu0  ;;  %p693_p13 = scmp.lt.s32.totalorder %s10049_s30, 7 }
0x13e6   : > { %v17269_v4 = vpack.c.bf16 %v9053_v13, %v9050_v29  ;;  %v8932_v11 = vadd.f32 %v12098_v60, %v17212_v28  ;;  %v12013_v24 = vadd.f32 %v12012_v8, %v12011_v54  ;;  %v8650_v28 = vadd.f32 %v17109_v27, %v17175_v43 }
0x13e7   : > { %v12100_v14 = vpop.f32.mrf.mxu1  ;;  %v12014_v49 = vpop.f32.mrf.mxu0  ;;  %v8653_v27 = vadd.f32 %v11907_v38, %v17175_v43  ;;  %s17723_s30 = smov (!%p693_p13, %s10049_s30), 7 }
0x13e8   : > { %v12101_v45 = vadd.f32 %v12100_v14, %v12099_v5  ;;  %v17277_v46 = vadd.f32 %v12013_v24, %v8645_v17  ;;  %v9056_v18 = vmax.f32 %v8932_v11, 0.0  ;;  %9253 = vmatmul.mubr.bf16.gmra.mxu0 %v17295_v50  ;;  %s10050_s28 = sshll.u32 %s17723_s30, 3 }
0x13e9   : > { %v12102_v56 = vpop.f32.mrf.mxu1  ;;  %v12015_v30 = vpop.f32.mrf.mxu0  ;;  %s696_s4 = scalar_lea.vmem %s17708_s0, %s10050_s28  ;;  %s702_s22 = scalar_lea.vmem %s17713_s16, %s10050_s28 }
0x13ea   : > { %v8935_v41 = vadd.f32 %v12101_v45, %v17220_v25  ;;  %v12016_v33 = vadd.f32 %v12015_v30, %v12014_v49 }
0x13eb   : > { %v12103_v7 = vpop.f32.mrf.mxu1  ;;  %v12017_v6 = vpop.f32.mrf.mxu0 }
0x13ec   : > { %v9059_v37 = vmax.f32 %v8935_v41, 0.0  ;;  %v12104_v40 = vadd.f32 %v12103_v7, %v12102_v56  ;;  %v17285_v48 = vadd.f32 %v12016_v33, %v8650_v28  ;;  %v8661_v41 = vadd.f32 %v17133_v0, %v17175_v43 }
0x13ed   : > { %v12105_v25 = vpop.f32.mrf.mxu1  ;;  %v12018_v52 = vpop.f32.mrf.mxu0 }
0x13ee   : > { %v17287_v59 = vpack.c.bf16 %v9059_v37, %v9056_v18  ;;  %v8940_v63 = vadd.f32 %v12104_v40, %v17228_v10  ;;  %v12019_v31 = vadd.f32 %v12018_v52, %v12017_v6  ;;  %v8658_v10 = vadd.f32 %v17128_v9, %v17175_v43 }
0x13ef   : > { %v12106_v19 = vpop.f32.mrf.mxu1  ;;  %v12020_v15 = vpop.f32.mrf.mxu0  ;;  %v8666_v40 = vadd.f32 %v17142_v61, %v17175_v43 }
0x13f0   : > { %v12107_v53 = vadd.f32 %v12106_v19, %v12105_v25  ;;  %v17297_v29 = vadd.f32 %v12019_v31, %v8653_v27  ;;  %v9062_v8 = vmax.f32 %v8940_v63, 0.0 }
0x13f1   : > { %v12108_v13 = vpop.f32.mrf.mxu1  ;;  %v12021_v54 = vpop.f32.mrf.mxu0 }
0x13f2   : > { %v8943_v60 = vadd.f32 %v12107_v53, %v17236_v57  ;;  %v12022_v5 = vadd.f32 %v12021_v54, %v12020_v15 }
0x13f3   : > { %v12109_v11 = vpop.f32.mrf.mxu1  ;;  %v12023_v14 = vpop.f32.mrf.mxu0 }
0x13f4   : > { %v9065_v17 = vmax.f32 %v8943_v60, 0.0  ;;  %v12110_v24 = vadd.f32 %v12109_v11, %v12108_v13  ;;  %v17304_v22 = vadd.f32 %v12022_v5, %v8658_v10  ;;  %v13404_v10 = vld [vmem:[#allocation16 + $0x70] ss:$8 sps:$4 sm:$0xff]  }
0x13f5   : > { %v12111_v45 = vpop.f32.mrf.mxu1  ;;  %v12024_v57 = vpop.f32.mrf.mxu0 }
0x13f6   : > { %v17306_v49 = vpack.c.bf16 %v9065_v17, %v9062_v8  ;;  %v8948_v56 = vadd.f32 %v12110_v24, %v17243_v1  ;;  %v12025_v30 = vadd.f32 %v12024_v57, %v12023_v14  ;;  %v14047_v8 = vmov 0  }
0x13f7   : > { %v12112_v28 = vpop.f32.mrf.mxu1  ;;  %v12026_v38 = vpop.f32.mrf.mxu0  ;;  %12916 = vset.pattern.permute.xlu0 %v14047_v8  ;;  %12917 = vset.pattern.permute.xlu1 %v14047_v8  ;;  %v8674_v14 = vadd.f32 %v17156_v39, %v17175_v43 }
0x13f8   : > { %v12113_v9 = vadd.f32 %v12112_v28, %v12111_v45  ;;  %v17311_v33 = vadd.f32 %v12025_v30, %v8661_v41  ;;  %v9068_v25 = vmax.f32 %v8948_v56, 0.0 }
0x13f9   : > { %v12114_v7 = vpop.f32.mrf.mxu1  ;;  %v12027_v37 = vpop.f32.mrf.mxu0 }
0x13fa   : > { %v8951_v18 = vadd.f32 %v12113_v9, %v17247_v16  ;;  %v12028_v6 = vadd.f32 %v12027_v37, %v12026_v38  ;;  %v8669_v16 = vadd.f32 %v17147_v36, %v17175_v43  ;;  %v13409_v36 = vld [vmem:[#allocation16 + $0x64] ss:$8 sps:$4 sm:$0xff]   ;;  %v13407_v38 = vld [vmem:[#allocation16 + $0x60] ss:$8 sps:$4 sm:$0xff]   ;;  %v13412_v37 = vld [vmem:[#allocation16 + $0x54] ss:$8 sps:$4 sm:$0xff]  }
0x13fb   : > { %v12115_v1 = vpop.f32.mrf.mxu1  ;;  %v12029_v0 = vpop.f32.mrf.mxu0 }
0x13fc   : > { %v9071_v63 = vmax.f32 %v8951_v18, 0.0  ;;  %v12116_v52 = vadd.f32 %v12115_v1, %v12114_v7  ;;  %v17316_v27 = vadd.f32 %v12028_v6, %v8666_v40  ;;  %v9312_v6 = vld [vmem:[%s696_s4] sm:$0xff]  ;;  %v9314_v1 = vld [vmem:[%s696_s4 + $0x10] sm:$0xff] }
0x13fd   : > { %v12117_v31 = vpop.f32.mrf.mxu1  ;;  %v12030_v15 = vpop.f32.mrf.mxu0  ;;  %9318 = vperm.xlu0 %12916, %v9312_v6   ;;  %9328 = vperm.xlu1 %12917, %v9314_v1  }
0x13fe   : > { %v17318_v19 = vpack.c.bf16 %v9071_v63, %v9068_v25  ;;  %v8956_v53 = vadd.f32 %v12116_v52, %v17254_v42  ;;  %v12031_v13 = vadd.f32 %v12030_v15, %v12029_v0  ;;  %v13406_v42 = vld [vmem:[#allocation16 + $0x74] ss:$8 sps:$4 sm:$0xff]   ;;  %v9313_v0 = vld [vmem:[%s696_s4 + $0x8] sm:$0xff] }
0x13ff   : > { %v12118_v61 = vpop.f32.mrf.mxu1  ;;  %v12032_v54 = vpop.f32.mrf.mxu0  ;;  %9654 = vmatprep.subr.bf16.mxu0 %v13406_v42  ;;  %v13413_v42 = vld [vmem:[#allocation16 + $0x40] ss:$8 sps:$4 sm:$0xff]  }
0x1400   : > { %v12119_v60 = vadd.f32 %v12118_v61, %v12117_v31  ;;  %v17324_v5 = vadd.f32 %v12031_v13, %v8669_v16  ;;  %v9074_v57 = vmax.f32 %v8956_v53, 0.0  ;;  %9655 = vmatpush1.bf16.msra.mxu0 %v13404_v10  ;;  %v9315_v31 = vld [vmem:[%s696_s4 + $0x18] sm:$0xff]  ;;  %v13415_v16 = vld [vmem:[#allocation16 + $0x44] ss:$8 sps:$4 sm:$0xff]  }
0x1401   : > { %v12120_v11 = vpop.f32.mrf.mxu1  ;;  %v12033_v24 = vpop.f32.mrf.mxu0  ;;  %9656 = vmatprep.subr.bf16.mxu0 %v13409_v36  ;;  %9323 = vperm.xlu0 %12916, %v9313_v0   ;;  %v13418_v36 = vld [vmem:[#allocation16 + $0x34] ss:$8 sps:$4 sm:$0xff]  }
0x1402   : > { %v8959_v17 = vadd.f32 %v12119_v60, %v17260_v55  ;;  %v12034_v45 = vadd.f32 %v12033_v24, %v12032_v54  ;;  %9333 = vperm.xlu1 %12917, %v9315_v31   ;;  %v13424_v31 = vld [vmem:[#allocation16 + $0x14] ss:$8 sps:$4 sm:$0xff]  }
0x1403   : > { %v12121_v56 = vpop.f32.mrf.mxu1  ;;  %v17333_v28 = vpop.f32.mrf.mxu0 }
0x1404   : > { %v9077_v41 = vmax.f32 %v8959_v17, 0.0  ;;  %v12122_v30 = vadd.f32 %v12121_v56, %v12120_v11  ;;  %v17335_v9 = vadd.f32 %v12034_v45, %v8674_v14  ;;  %9657 = vmatpush1.bf16.msra.mxu0 %v13407_v38  ;;  %v13421_v38 = vld [vmem:[#allocation16 + $0x24] ss:$8 sps:$4 sm:$0xff]  }
0x1405   : > { %v12123_v55 = vpop.f32.mrf.mxu1  ;;  %v17341_v18 = vpop.f32.mrf.mxu0  ;;  %9658 = vmatprep.subr.bf16.mxu0 %v13412_v37 }
0x1406   : > { %v17338_v39 = vpack.c.bf16 %v9077_v41, %v9074_v57  ;;  %v8964_v7 = vadd.f32 %v12122_v30, %v17267_v3  ;;  %v13410_v3 = vld [vmem:[#allocation16 + $0x50] ss:$8 sps:$4 sm:$0xff]  }
0x1407   : > { %v12124_v40 = vpop.f32.mrf.mxu1  ;;  %v17348_v63 = vpop.f32.mrf.mxu0  ;;  %v13416_v41 = vld [vmem:[#allocation16 + $0x30] ss:$8 sps:$4 sm:$0xff]  }
0x1408   : > { %v12125_v25 = vadd.f32 %v12124_v40, %v12123_v55  ;;  %v9080_v61 = vmax.f32 %v8964_v7, 0.0  ;;  %9659 = vmatpush1.bf16.msra.mxu0 %v13410_v3 }
0x1409   : > { %v12126_v52 = vpop.f32.mrf.mxu1  ;;  %v17351_v15 = vpop.f32.mrf.mxu0  ;;  %9660 = vmatprep.subr.bf16.mxu0 %v13415_v16 }
0x140a   : > { %v8967_v53 = vadd.f32 %v12125_v25, %v17277_v46  ;;  %v13419_v25 = vld [vmem:[#allocation16 + $0x20] ss:$8 sps:$4 sm:$0xff]  }
0x140b   : > { %v12127_v13 = vpop.f32.mrf.mxu1  ;;  %v17353_v10 = vpop.f32.mrf.mxu0 }
0x140c   : > { %v9083_v60 = vmax.f32 %v8967_v53, 0.0  ;;  %v12128_v54 = vadd.f32 %v12127_v13, %v12126_v52  ;;  %9661 = vmatpush1.bf16.msra.mxu0 %v13413_v42  ;;  %v13422_v13 = vld [vmem:[#allocation16 + $0x10] ss:$8 sps:$4 sm:$0xff]  }
0x140d   : > { %v12129_v11 = vpop.f32.mrf.mxu1  ;;  %v17358_v46 = vpop.f32.mrf.mxu0  ;;  %9662 = vmatprep.subr.bf16.mxu0 %v13418_v36 }
0x140e   : > { %v17355_v17 = vpack.c.bf16 %v9083_v60, %v9080_v61  ;;  %v8972_v24 = vadd.f32 %v12128_v54, %v17285_v48  ;;  %v13427_v60 = vld [vmem:[#allocation16 + $0x4] ss:$8 sps:$4 sm:$0xff]  }
0x140f   : > { %v12130_v14 = vpop.f32.mrf.mxu1  ;;  %v17360_v56 = vpop.f32.mrf.mxu0 }
0x1410   : > { %v12131_v45 = vadd.f32 %v12130_v14, %v12129_v11  ;;  %v9086_v37 = vmax.f32 %v8972_v24, 0.0  ;;  %9663 = vmatpush1.bf16.msra.mxu0 %v13416_v41  ;;  %v13425_v14 = vld [vmem:[#allocation16] ss:$8 sps:$4 sm:$0xff]   ;;  %v13430_v41 = vld [vmem:[#allocation16 + $0xf4] ss:$8 sps:$4 sm:$0xff]  }
0x1411   : > { %v12132_v57 = vpop.f32.mrf.mxu1  ;;  %v17363_v55 = vpop.f32.mrf.mxu0  ;;  %9664 = vmatprep.subr.bf16.mxu0 %v13421_v38 }
0x1412   : > { %v8975_v30 = vadd.f32 %v12131_v45, %v17297_v29 }
0x1413   : > { %v12133_v7 = vpop.f32.mrf.mxu1  ;;  %v17365_v6 = vpop.f32.mrf.mxu0 }
0x1414   : > { %v9089_v48 = vmax.f32 %v8975_v30, 0.0  ;;  %v12134_v40 = vadd.f32 %v12133_v7, %v12132_v57  ;;  %9665 = vmatpush1.bf16.msra.mxu0 %v13419_v25  ;;  %v12037_v25 = vadd.f32 %v17341_v18, %v17333_v28 }
0x1415   : > { %v12135_v1 = vpop.f32.mrf.mxu1  ;;  %v17370_v53 = vpop.f32.mrf.mxu0  ;;  %9666 = vmatprep.subr.bf16.mxu0 %v13424_v31 }
0x1416   : > { %v17367_v52 = vpack.c.bf16 %v9089_v48, %v9086_v37  ;;  %v8980_v0 = vadd.f32 %v12134_v40, %v17304_v22  ;;  %v13428_v37 = vld [vmem:[#allocation16 + $0xf0] ss:$8 sps:$4 sm:$0xff]   ;;  %v13436_v40 = vld [vmem:[#allocation16 + $0xe4] ss:$8 sps:$4 sm:$0xff]  }
0x1417   : > { %v12136_v29 = vpop.f32.mrf.mxu1  ;;  %v17373_v36 = vpop.f32.mrf.mxu0 }
0x1418   : > { %v12137_v3 = vadd.f32 %v12136_v29, %v12135_v1  ;;  %v9092_v11 = vmax.f32 %v8980_v0, 0.0  ;;  %9667 = vmatpush1.bf16.msra.mxu0 %v13422_v13  ;;  %v8677_v13 = vadd.f32 %v17161_v35, %v17175_v43  ;;  %v8682_v35 = vadd.f32 %v17167_v12, %v17175_v43 }
0x1419   : > { %v12138_v16 = vpop.f32.mrf.mxu1  ;;  %9668 = vmatprep.subr.bf16.mxu0 %v13427_v60  ;;  %v13442_v60 = vld [vmem:[#allocation16 + $0xd4] ss:$8 sps:$4 sm:$0xff]  }
0x141a   : > { %v8983_v61 = vadd.f32 %v12137_v3, %v17311_v33  ;;  %v17378_v33 = vpop.f32.mrf.mxu0 }
0x141b   : > { %v12139_v54 = vpop.f32.mrf.mxu1 }
0x141c   : > { %v9095_v42 = vmax.f32 %v8983_v61, 0.0  ;;  %v12140_v24 = vadd.f32 %v12139_v54, %v12138_v16  ;;  %9669 = vmatpush1.bf16.msra.mxu0 %v13425_v14  ;;  %v17383_v29 = vpop.f32.mrf.mxu0  ;;  %v13434_v16 = vld [vmem:[#allocation16 + $0xe0] ss:$8 sps:$4 sm:$0xff]  }
0x141d   : > { %v12141_v22 = vpop.f32.mrf.mxu1  ;;  %9670 = vmatprep.subr.bf16.mxu0 %v13430_v41  ;;  %v12043_v41 = vadd.f32 %v17358_v46, %v17353_v10 }
0x141e   : > { %v8988_v45 = vadd.f32 %v12140_v24, %v17316_v27  ;;  %v17376_v57 = vpack.c.bf16 %v9095_v42, %v9092_v11  ;;  %v8838_v11 = vadd.f32 %v12037_v25, %v8677_v13  ;;  %v12054_v18 = vpop.f32.mrf.mxu0  ;;  %v13440_v24 = vld [vmem:[#allocation16 + $0xd0] ss:$8 sps:$4 sm:$0xff]   ;;  %v13454_v25 = vld [vmem:[#allocation16 + $0xb4] ss:$8 sps:$4 sm:$0xff]  }
0x141f   : > { %v12142_v30 = vpop.f32.mrf.mxu1 }
0x1420   : > { %v12143_v38 = vadd.f32 %v12142_v30, %v12141_v22  ;;  %v9098_v27 = vmax.f32 %v8988_v45, 0.0  ;;  %9671 = vmatpush2.bf16.msra.mxu0 %v13428_v37  ;;  %v12040_v22 = vadd.f32 %v17351_v15, %v17348_v63  ;;  %v13448_v45 = vld [vmem:[#allocation16 + $0xc4] ss:$8 sps:$4 sm:$0xff]   ;;  %v12056_v37 = vpop.f32.mrf.mxu0  ;;  %v8685_v63 = vadd.f32 %v17177_v44, %v17175_v43 }
0x1421   : > { %v12144_v7 = vpop.f32.mrf.mxu1  ;;  %9672 = vmatprep.subr.bf16.mxu0 %v13436_v40  ;;  %v13446_v40 = vld [vmem:[#allocation16 + $0xc0] ss:$8 sps:$4 sm:$0xff]   ;;  %v8690_v44 = vadd.f32 %v17181_v32, %v17175_v43 }
0x1422   : > { %v8991_v48 = vadd.f32 %v12143_v38, %v17324_v5  ;;  %v8843_v15 = vadd.f32 %v12040_v22, %v8682_v35  ;;  %v12057_v10 = vpop.f32.mrf.mxu0 }
0x1423   : > { %v12145_v1 = vpop.f32.mrf.mxu1 }
0x1424   : > { %v9101_v0 = vmax.f32 %v8991_v48, 0.0  ;;  %v12146_v31 = vadd.f32 %v12145_v1, %v12144_v7  ;;  %9673 = vmatpush2.bf16.msra.mxu0 %v13434_v16  ;;  %v12046_v16 = vadd.f32 %v17363_v55, %v17360_v56  ;;  %v8693_v56 = vadd.f32 %v17187_v23, %v17175_v43 }
0x1425   : > { %v12147_v3 = vpop.f32.mrf.mxu1  ;;  %9674 = vmatprep.subr.bf16.mxu0 %v13442_v60  ;;  %v12055_v23 = vadd.f32 %v12054_v18, %v17383_v29  ;;  %v8706_v29 = vadd.f32 %v17210_v58, %v17175_v43 }
0x1426   : > { %v8996_v61 = vadd.f32 %v12146_v31, %v17335_v9  ;;  %v17388_v5 = vpack.c.bf16 %v9101_v0, %v9098_v27  ;;  %v8846_v27 = vadd.f32 %v12043_v41, %v8685_v63  ;;  %v8851_v55 = vadd.f32 %v12046_v16, %v8690_v44 }
0x1427   : > { %v12148_v54 = vpop.f32.mrf.mxu1 }
0x1428   : > { %v12149_v28 = vadd.f32 %v12148_v54, %v12147_v3  ;;  %v9104_v30 = vmax.f32 %v8996_v61, 0.0  ;;  %9675 = vmatpush2.bf16.msra.mxu0 %v13440_v24  ;;  %v13452_v3 = vld [vmem:[#allocation16 + $0xb0] ss:$8 sps:$4 sm:$0xff]   ;;  %v13460_v61 = vld [vmem:[#allocation16 + $0xa4] ss:$8 sps:$4 sm:$0xff]   ;;  %v12049_v54 = vadd.f32 %v17370_v53, %v17365_v6  ;;  %v12059_v24 = vpop.f32.mrf.mxu0  ;;  %v12052_v53 = vadd.f32 %v17378_v33, %v17373_v36 }
0x1429   : > { %v12150_v42 = vpop.f32.mrf.mxu1  ;;  %9676 = vmatprep.subr.bf16.mxu0 %v13448_v45 }
0x142a   : > { %v8999_v14 = vadd.f32 %v12149_v28, %v8838_v11  ;;  %v8854_v32 = vadd.f32 %v12049_v54, %v8693_v56 }
0x142b   : > { %v12151_v9 = vpop.f32.mrf.mxu1 }
0x142c   : > { %v9107_v38 = vmax.f32 %v8999_v14, 0.0  ;;  %v12152_v7 = vadd.f32 %v12151_v9, %v12150_v42  ;;  %9677 = vmatpush2.bf16.msra.mxu0 %v13446_v40  ;;  %v13458_v14 = vld [vmem:[#allocation16 + $0xa0] ss:$8 sps:$4 sm:$0xff]  }
0x142d   : > { %v12153_v48 = vpop.f32.mrf.mxu1  ;;  %9678 = vmatprep.subr.bf16.mxu0 %v13454_v25 }
0x142e   : > { %v17398_v1 = vpack.c.bf16 %v9107_v38, %v9104_v30  ;;  %v9004_v0 = vadd.f32 %v12152_v7, %v8843_v15  ;;  %v12060_v30 = vpop.f32.mrf.mxu0  ;;  %v8698_v7 = vadd.f32 %v17194_v47, %v17175_v43  ;;  %v12058_v47 = vadd.f32 %v12057_v10, %v12056_v37 }
0x142f   : > { %v12154_v12 = vpop.f32.mrf.mxu1  ;;  %v12061_v44 = vadd.f32 %v12060_v30, %v12059_v24  ;;  %v8714_v24 = vadd.f32 %v17226_v21, %v17175_v43  ;;  %v13431_v21 = vld [vmem:[#allocation16 + $0x170] ss:$8 sps:$4 sm:$0xff]  }
0x1430   : > { %v12155_v31 = vadd.f32 %v12154_v12, %v12153_v48  ;;  %v9110_v11 = vmax.f32 %v9004_v0, 0.0  ;;  %9679 = vmatpush2.bf16.msra.mxu0 %v13452_v3  ;;  %v12062_v25 = vpop.f32.mrf.mxu0  ;;  %v8859_v0 = vadd.f32 %v12052_v53, %v8698_v7 }
0x1431   : > { %v12156_v46 = vpop.f32.mrf.mxu1  ;;  %9680 = vmatprep.subr.bf16.mxu0 %v13460_v61 }
0x1432   : > { %v9007_v13 = vadd.f32 %v12155_v31, %v8846_v27  ;;  %v8701_v27 = vadd.f32 %v17202_v51, %v17175_v43  ;;  %v12063_v16 = vpop.f32.mrf.mxu0 }
0x1433   : > { %v12157_v60 = vpop.f32.mrf.mxu1 }
0x1434   : > { %v9113_v28 = vmax.f32 %v9007_v13, 0.0  ;;  %v12158_v42 = vadd.f32 %v12157_v60, %v12156_v46  ;;  %9681 = vmatpush2.bf16.msra.mxu0 %v13458_v14  ;;  %v8862_v3 = vadd.f32 %v12055_v23, %v8701_v27 }
0x1435   : > { %v12159_v22 = vpop.f32.mrf.mxu1 }
0x1436   : > { %v17408_v45 = vpack.c.bf16 %v9113_v28, %v9110_v11  ;;  %v9012_v9 = vadd.f32 %v12158_v42, %v8851_v55  ;;  %v12065_v28 = vpop.f32.mrf.mxu0  ;;  %v8709_v42 = vadd.f32 %v17218_v20, %v17175_v43  ;;  %v8717_v20 = vadd.f32 %v17234_v26, %v17175_v43  ;;  %v13433_v43 = vld [vmem:[#allocation16 + $0x174] ss:$8 sps:$4 sm:$0xff]   ;;  %v13439_v26 = vld [vmem:[#allocation16 + $0x164] ss:$8 sps:$4 sm:$0xff]  }
0x1437   : > { %v12160_v35 = vpop.f32.mrf.mxu1 }
0x1438   : > { %v12161_v41 = vadd.f32 %v12160_v35, %v12159_v22  ;;  %v9116_v40 = vmax.f32 %v9012_v9, 0.0  ;;  %v8867_v22 = vadd.f32 %v12058_v47, %v8706_v29  ;;  %v8870_v55 = vadd.f32 %v12061_v44, %v8709_v42  ;;  %v12066_v10 = vpop.f32.mrf.mxu0 }
0x1439   : > { %v12162_v6 = vpop.f32.mrf.mxu1  ;;  %v12064_v9 = vadd.f32 %v12063_v16, %v12062_v25  ;;  %v12067_v30 = vadd.f32 %v12066_v10, %v12065_v28 }
0x143a   : > { %v9015_v38 = vadd.f32 %v12161_v41, %v8854_v32 }
0x143b   : > { %v12163_v48 = vpop.f32.mrf.mxu1 }
0x143c   : > { %v9119_v63 = vmax.f32 %v9015_v38, 0.0  ;;  %v12164_v15 = vadd.f32 %v12163_v48, %v12162_v6  ;;  %v8875_v48 = vadd.f32 %v12064_v9, %v8714_v24  ;;  %v13473_v9 = vld [vmem:[#allocation16 + $0x100] ss:$8 sps:$4 sm:$0xff]  }
0x143d   : > { %v12165_v12 = vpop.f32.mrf.mxu1 }
0x143e   : > { %v9180_v31 = vpack.c.bf16 %v9119_v63, %v9116_v40  ;;  %v9020_v36 = vadd.f32 %v12164_v15, %v8859_v0  ;;  %v8878_v63 = vadd.f32 %v12067_v30, %v8717_v20 }
0x143f   : > { %v12166_v46 = vpop.f32.mrf.mxu1 }
0x1440   : > { %v12167_v33 = vadd.f32 %v12166_v46, %v12165_v12  ;;  %v9122_v60 = vmax.f32 %v9020_v36, 0.0 }
0x1441   : > { %v12168_v13 = vpop.f32.mrf.mxu1 }
0x1442   : > { %v9023_v61 = vadd.f32 %v12167_v33, %v8862_v3  ;;  %v13470_v33 = vld [vmem:[#allocation16 + $0x80] ss:$8 sps:$4 sm:$0xff]  }
0x1443   : > { %v12169_v18 = vpop.f32.mrf.mxu1 }
0x1444   : > { %v9125_v54 = vmax.f32 %v9023_v61, 0.0  ;;  %v12170_v11 = vadd.f32 %v12169_v18, %v12168_v13 }
0x1445   : > { %v12171_v51 = vpop.f32.mrf.mxu1 }
0x1446   : > { %v9183_v14 = vpack.c.bf16 %v9125_v54, %v9122_v60  ;;  %v9028_v35 = vadd.f32 %v12170_v11, %v8867_v22  ;;  %v13463_v54 = vld [vmem:[#allocation16 + $0x124] ss:$8 sps:$4 sm:$0xff]   ;;  %v13461_v11 = vld [vmem:[#allocation16 + $0x120] ss:$8 sps:$4 sm:$0xff]  }
0x1447   : > { %v12172_v56 = vpop.f32.mrf.mxu1 }
0x1448   : > { %v12173_v37 = vadd.f32 %v12172_v56, %v12171_v51  ;;  %v9128_v6 = vmax.f32 %v9028_v35, 0.0 }
0x1449   : > { %v12174_v32 = vpop.f32.mrf.mxu1 }
0x144a   : > { %v9031_v58 = vadd.f32 %v12173_v37, %v8870_v55  ;;  %v13469_v55 = vld [vmem:[#allocation16 + $0x114] ss:$8 sps:$4 sm:$0xff]   ;;  %v13467_v37 = vld [vmem:[#allocation16 + $0x110] ss:$8 sps:$4 sm:$0xff]  }
0x144b   : > { %v12175_v41 = vpop.f32.mrf.mxu1 }
0x144c   : > { %v9131_v53 = vmax.f32 %v9031_v58, 0.0  ;;  %v12176_v38 = vadd.f32 %v12175_v41, %v12174_v32  ;;  %v13475_v32 = vld [vmem:[#allocation16 + $0x104] ss:$8 sps:$4 sm:$0xff]  }
0x144d   : > { %v12177_v7 = vpop.f32.mrf.mxu1 }
0x144e   : > { %v9186_v23 = vpack.c.bf16 %v9131_v53, %v9128_v6  ;;  %v9036_v15 = vadd.f32 %v12176_v38, %v8875_v48 }
0x144f   : > { %v12178_v40 = vpop.f32.mrf.mxu1 }
0x1450   : > { %v12179_v12 = vadd.f32 %v12178_v40, %v12177_v7  ;;  %v9134_v27 = vmax.f32 %v9036_v15, 0.0 }
0x1452   : > { %v9039_v25 = vadd.f32 %v12179_v12, %v8878_v63 }
0x1454   : > { %v9137_v0 = vmax.f32 %v9039_v25, 0.0 }
0x1456   : > { %v9189_v46 = vpack.c.bf16 %v9137_v0, %v9134_v27 }
0x1458   : > { %12180 = vmatprep.subr.bf16.mxu1 %v9189_v46 }
0x1459   : > { %12181 = vmatpush3.bf16.msra.mxu1 %v17367_v52 }
0x145a   : > { %12182 = vmatprep.subr.bf16.mxu1 %v9186_v23 }
0x145d   : > { %12183 = vmatpush3.bf16.msra.mxu1 %v17355_v17 }
0x145e   : > { %12184 = vmatprep.subr.bf16.mxu1 %v9183_v14 }
0x1461   : > { %12185 = vmatpush3.bf16.msra.mxu1 %v17338_v39  ;;  %v13449_v39 = vld [vmem:[#allocation16 + $0x140] ss:$8 sps:$4 sm:$0xff]  }
0x1462   : > { %12186 = vmatprep.subr.bf16.mxu1 %v9180_v31  ;;  %v13472_v31 = vld [vmem:[#allocation16 + $0x84] ss:$8 sps:$4 sm:$0xff]  }
0x1465   : > { %12187 = vmatpush3.bf16.msra.mxu1 %v17318_v19  ;;  %v13443_v19 = vld [vmem:[#allocation16 + $0x150] ss:$8 sps:$4 sm:$0xff]  }
0x1466   : > { %12188 = vmatprep.subr.bf16.mxu1 %v17408_v45 }
0x1469   : > { %12189 = vmatpush3.bf16.msra.mxu1 %v17306_v49  ;;  %v13437_v49 = vld [vmem:[#allocation16 + $0x160] ss:$8 sps:$4 sm:$0xff]  }
0x146a   : > { %12190 = vmatprep.subr.bf16.mxu1 %v17398_v1 }
0x146d   : > { %12191 = vmatpush3.bf16.msra.mxu1 %v17287_v59  ;;  %v13445_v59 = vld [vmem:[#allocation16 + $0x154] ss:$8 sps:$4 sm:$0xff]  }
0x146e   : > { %12192 = vmatprep.subr.bf16.mxu1 %v17388_v5  ;;  %v13464_v5 = vld [vmem:[#allocation16 + $0x90] ss:$8 sps:$4 sm:$0xff]  }
0x1471   : > { %12193 = vmatpush3.bf16.msra.mxu1 %v17269_v4  ;;  %v13451_v4 = vld [vmem:[#allocation16 + $0x144] ss:$8 sps:$4 sm:$0xff]  }
0x1472   : > { %12194 = vmatprep.subr.bf16.mxu1 %v17376_v57  ;;  %v13466_v57 = vld [vmem:[#allocation16 + $0x94] ss:$8 sps:$4 sm:$0xff]  }
0x1473   : > { %9682 = vmatprep.subr.bf16.mxu0 %v13466_v57 }
0x1474   : > { %9683 = vmatpush2.bf16.msra.mxu0 %v13464_v5 }
0x1475   : > { %12195 = vmatpush3.bf16.msra.mxu1 %v17256_v62  ;;  %v13457_v62 = vld [vmem:[#allocation16 + $0x134] ss:$8 sps:$4 sm:$0xff]   ;;  %9684 = vmatprep.subr.bf16.mxu0 %v13472_v31 }
0x1476   : > { %9707 = vmatprep.subr.bf16.mxu1 %v13433_v43 }
0x1478   : > { %9296 = vmatmul.mubr.bf16.vlgmr.msra.gmra.mxu1 %v17275_v34  ;;  %v13455_v34 = vld [vmem:[#allocation16 + $0x130] ss:$8 sps:$4 sm:$0xff]   ;;  %v9319_v52 = vpop.permute.xlu0 %9318  ;;  %9685 = vmatpush2.bf16.msra.mxu0 %v13470_v33  ;;  %v9329_v44 = vpop.permute.xlu1 %9328 }
0x1479   : > { %9303 = vmatprep.mubr.bf16.mxu1 %v17292_v2  ;;  %9708 = vmatpush1.bf16.msra.mxu1 %v13431_v21 }
0x147a   : > { %9709 = vmatprep.subr.bf16.mxu1 %v13439_v26  ;;  %v9402_v26 = vld [vmem:[%s17709_s12] sm:$0x3] }
0x147d   : > { %9710 = vmatpush1.bf16.msra.mxu1 %v13437_v49  ;;  %v9334_v51 = vpop.permute.xlu1 %9333 }
0x147e   : > { %9711 = vmatprep.subr.bf16.mxu1 %v13445_v59  ;;  %v17710_v59 = vld [vmem:[#allocation45_spill] sm:$0xff] }
0x1480   : > { %9304 = vmatmul.mubr.bf16.gmra.mxu1 %v17295_v50  ;;  %v9324_v50 = vpop.permute.xlu0 %9323 }
0x1481   : > { %9712 = vmatpush1.bf16.msra.mxu1 %v13443_v19  ;;  %9739 = vmatprep.mubr.bf16.mxu1 %v14047_v8  ;;  %v9407_v19 = vrot.slane %v9402_v26, %v17710_v59 }
0x1482   : > { %9713 = vmatprep.subr.bf16.mxu1 %v13451_v4  ;;  %v17711_v4 = vld [vmem:[#allocation46_spill] sm:$0xff] }
0x1485   : > { %9714 = vmatpush1.bf16.msra.mxu1 %v13449_v39  ;;  %v9411_v39 = vrot.slane %v9402_v26, %v17711_v4 }
0x1486   : > { %9715 = vmatprep.subr.bf16.mxu1 %v13457_v62 }
0x1489   : > { %9716 = vmatpush1.bf16.msra.mxu1 %v13455_v34 }
0x148a   : > { %9717 = vmatprep.subr.bf16.mxu1 %v13463_v54 }
0x148d   : > { %9718 = vmatpush1.bf16.msra.mxu1 %v13461_v11 }
0x148e   : > { %9719 = vmatprep.subr.bf16.mxu1 %v13469_v55 }
0x1491   : > { %9720 = vmatpush1.bf16.msra.mxu1 %v13467_v37 }
0x1492   : > { %9721 = vmatprep.subr.bf16.mxu1 %v13475_v32 }
0x1495   : > { %9722 = vmatpush1.bf16.msra.mxu1 %v13473_v9 }
0x14a0   : > { %v9244_v2 = vpop.f32.mrf.mxu0 }
0x14a1   : > { %v9336_v16 = vmul.f32 %v9319_v52, %v9244_v2  ;;  %v9768_v2 = vld [vmem:[%s17712_s8] sm:$0x3] }
0x14a2   : > { %v9246_v17 = vpop.f32.mrf.mxu0 }
0x14a3   : > { %v9337_v3 = vmul.f32 %v9319_v52, %v9246_v17 }
0x14a4   : > { %v9248_v1 = vpop.f32.mrf.mxu0 }
0x14a5   : > { %v9339_v13 = vmul.f32 %v9324_v50, %v9248_v1 }
0x14a6   : > { %v9250_v45 = vpop.f32.mrf.mxu0 }
0x14a7   : > { %v9340_v36 = vmul.f32 %v9324_v50, %v9250_v45  ;;  %v9348_v29 = vpack.c.bf16 %v9339_v13, %v9336_v16 }
0x14a8   : > { %v9254_v47 = vpop.f32.mrf.mxu0 }
0x14a9   : > { %v9349_v61 = vpack.c.bf16 %v9340_v36, %v9337_v3  ;;  %v9342_v14 = vmul.f32 %v9329_v44, %v9254_v47  ;;  %v9777_v3 = vrot.slane %v9768_v2, %v17711_v4 }
0x14aa   : > { %v9256_v18 = vpop.f32.mrf.mxu0 }
0x14ab   : > { %9686 = vmatprep.mubr.bf16.mxu0 %v9349_v61  ;;  %v9343_v42 = vmul.f32 %v9329_v44, %v9256_v18 }
0x14ac   : > { %v9258_v60 = vpop.f32.mrf.mxu0  ;;  %9687 = vmatmul.mubr.bf16.vlgmr.msra.gmra.mxu0 %v9348_v29 }
0x14ad   : > { %v9345_v56 = vmul.f32 %v9334_v51, %v9258_v60 }
0x14ae   : > { %v9260_v28 = vpop.f32.mrf.mxu0 }
0x14af   : > { %v9346_v22 = vmul.f32 %v9334_v51, %v9260_v28  ;;  %v9351_v10 = vpack.c.bf16 %v9345_v56, %v9342_v14 }
0x14b1   : > { %v9352_v35 = vpack.c.bf16 %v9346_v22, %v9343_v42 }
0x14b3   : > { %9696 = vmatprep.mubr.bf16.mxu0 %v9352_v35 }
0x14b4   : > { %9697 = vmatmul.mubr.bf16.gmra.mxu0 %v9351_v10 }
0x1538   : > { %v12196_v58 = vpop.f32.mrf.mxu1 }
0x153a   : > { %v12197_v24 = vpop.f32.mrf.mxu1 }
0x153b   : > { %v12198_v30 = vadd.f32 %v12197_v24, %v12196_v58 }
0x153c   : > { %v12199_v41 = vpop.f32.mrf.mxu1 }
0x153d   : > { %v9338_v7 = vmul.f32 %v12198_v30, %v9319_v52 }
0x153e   : > { %v12200_v6 = vpop.f32.mrf.mxu1 }
0x153f   : > { %v12201_v53 = vadd.f32 %v12200_v6, %v12199_v41 }
0x1540   : > { %v12202_v38 = vpop.f32.mrf.mxu1 }
0x1541   : > { %v9341_v20 = vmul.f32 %v12201_v53, %v9324_v50  ;;  %v9773_v50 = vrot.slane %v9768_v2, %v17710_v59 }
0x1542   : > { %v12203_v48 = vpop.f32.mrf.mxu1 }
0x1543   : > { %v9350_v23 = vpack.c.bf16 %v9341_v20, %v9338_v7  ;;  %v12204_v63 = vadd.f32 %v12203_v48, %v12202_v38 }
0x1544   : > { %v12205_v40 = vpop.f32.mrf.mxu1 }
0x1545   : > { %9740 = vmatmul.mubr.bf16.vlgmr.msra.gmra.mxu1 %v9350_v23  ;;  %v9344_v25 = vmul.f32 %v12204_v63, %v9329_v44 }
0x1546   : > { %v12206_v15 = vpop.f32.mrf.mxu1  ;;  %9749 = vmatprep.mubr.bf16.mxu1 %v14047_v8 }
0x1547   : > { %v12207_v12 = vadd.f32 %v12206_v15, %v12205_v40 }
0x1549   : > { %v9347_v27 = vmul.f32 %v12207_v12, %v9334_v51  ;;  %v10682_v12 = vld [vmem:[#allocation3] ss:$0 sm:$0xff] }
0x154b   : > { %v9353_v0 = vpack.c.bf16 %v9347_v27, %v9344_v25 }
0x154d   : > { %9750 = vmatmul.mubr.bf16.gmra.mxu1 %v9353_v0 }
0x156c   : > { %v9688_v46 = vpop.f32.mrf.mxu0 }
0x156d   : > { %v9689_v34 = vadd.f32 %v9688_v46, %v9407_v19 }
0x156e   : > { %v9690_v43 = vpop.f32.mrf.mxu0 }
0x156f   : > { %v9691_v17 = vadd.f32 %v9690_v43, %v9411_v39 }
0x1570   : > { %v9692_v21 = vpop.f32.mrf.mxu0 }
0x1571   : > { %v9693_v57 = vadd.f32 %v9692_v21, %v9407_v19 }
0x1572   : > { %v9694_v49 = vpop.f32.mrf.mxu0 }
0x1573   : > { %v9695_v16 = vadd.f32 %v9694_v49, %v9411_v39 }
0x1574   : > { %v9698_v62 = vpop.f32.mrf.mxu0 }
0x1575   : > { %v9699_v47 = vadd.f32 %v9698_v62, %v9407_v19 }
0x1576   : > { %v9700_v1 = vpop.f32.mrf.mxu0 }
0x1577   : > { %v9701_v51 = vadd.f32 %v9700_v1, %v9411_v39 }
0x1578   : > { %v9702_v29 = vpop.f32.mrf.mxu0 }
0x1579   : > { %v9703_v14 = vadd.f32 %v9702_v29, %v9407_v19 }
0x157a   : > { %v9704_v55 = vpop.f32.mrf.mxu0 }
0x157b   : > { %v9705_v24 = vadd.f32 %v9704_v55, %v9411_v39 }
0x1605   : > { %v9741_v8 = vpop.f32.mrf.mxu1 }
0x1606   : > { %v9742_v52 = vadd.f32 %v9741_v8, %v9689_v34 }
0x1607   : > { %v9743_v5 = vpop.f32.mrf.mxu1 }
0x1608   : > { %v9760_v45 = vmax.f32 %v9742_v52, 0.0  ;;  %v9744_v31 = vadd.f32 %v9743_v5, %v9691_v17 }
0x1609   : > { %v9745_v36 = vpop.f32.mrf.mxu1 }
0x160a   : > { %v9761_v33 = vmax.f32 %v9744_v31, 0.0  ;;  %v9746_v13 = vadd.f32 %v9745_v36, %v9693_v57  ;;  %v9780_v18 = vmul.f32 %v9773_v50, %v9760_v45 }
0x160b   : > { %v9747_v61 = vpop.f32.mrf.mxu1 }
0x160c   : > { %v9781_v44 = vmul.f32 %v9777_v3, %v9761_v33  ;;  %v9762_v60 = vmax.f32 %v9746_v13, 0.0  ;;  %v9748_v54 = vadd.f32 %v9747_v61, %v9695_v16 }
0x160d   : > { %v9751_v11 = vpop.f32.mrf.mxu1 }
0x160e   : > { %v9763_v28 = vmax.f32 %v9748_v54, 0.0  ;;  %v9752_v42 = vadd.f32 %v9751_v11, %v9699_v47  ;;  %v9788_v22 = vadd.f32 %v9781_v44, %v9780_v18  ;;  %v9782_v35 = vmul.f32 %v9773_v50, %v9762_v60 }
0x160f   : > { %v9753_v56 = vpop.f32.mrf.mxu1 }
0x1610   : > { %v9783_v37 = vmul.f32 %v9777_v3, %v9763_v28  ;;  %v9764_v10 = vmax.f32 %v9752_v42, 0.0  ;;  %v9754_v32 = vadd.f32 %v9753_v56, %v9701_v51  ;;  %9789 = vadd.xlane.f32.xlu0 %v9788_v22 }
0x1611   : > { %v9755_v9 = vpop.f32.mrf.mxu1 }
0x1612   : > { %v9765_v58 = vmax.f32 %v9754_v32, 0.0  ;;  %v9756_v41 = vadd.f32 %v9755_v9, %v9703_v14  ;;  %v9791_v30 = vadd.f32 %v9783_v37, %v9782_v35  ;;  %v9784_v53 = vmul.f32 %v9773_v50, %v9764_v10 }
0x1613   : > { %v9757_v6 = vpop.f32.mrf.mxu1 }
0x1614   : > { %v9785_v38 = vmul.f32 %v9777_v3, %v9765_v58  ;;  %v9766_v7 = vmax.f32 %v9756_v41, 0.0  ;;  %v9758_v20 = vadd.f32 %v9757_v6, %v9705_v24  ;;  %9792 = vadd.xlane.f32.xlu1 %v9791_v30 }
0x1616   : > { %v9767_v48 = vmax.f32 %v9758_v20, 0.0  ;;  %v9794_v23 = vadd.f32 %v9785_v38, %v9784_v53  ;;  %v9786_v40 = vmul.f32 %v9773_v50, %v9766_v7 }
0x1618   : > { %v9787_v63 = vmul.f32 %v9777_v3, %v9767_v48  ;;  %9795 = vadd.xlane.f32.xlu0 %v9794_v23 }
0x161a   : > { %v9797_v15 = vadd.f32 %v9787_v63, %v9786_v40 }
0x161c   : > { %9798 = vadd.xlane.f32.xlu0 %v9797_v15 }
0x1699   : > { %v9790_v25 = vpop.xlane.xlu0 %9789 }
0x169a   : > { %v9807_v27 = vadd.f32 %v10682_v12, %v9790_v25 }
0x169c   : > { %v10683_v0 = vmul.f32 -1.442695, %v9807_v27 }
0x169d   : > { %v9793_v46 = vpop.xlane.xlu1 %9792 }
0x169e   : > { %13476 = vpow2.f32 %v10683_v0  ;;  %v9808_v43 = vadd.f32 %v10682_v12, %v9793_v46 }
0x16a0   : > { %v10684_v21 = vmul.f32 -1.442695, %v9808_v43 }
0x16a1   : > { %v9796_v26 = vpop.xlane.xlu0 %9795 }
0x16a2   : > { %13478 = vpow2.f32 %v10684_v21  ;;  %v9809_v49 = vadd.f32 %v10682_v12, %v9796_v26 }
0x16a4   : > { %v10685_v59 = vmul.f32 -1.442695, %v9809_v49 }
0x16a5   : > { %v9799_v19 = vpop.xlane.xlu0 %9798 }
0x16a6   : > { %13480 = vpow2.f32 %v10685_v59  ;;  %v9810_v4 = vadd.f32 %v10682_v12, %v9799_v19 }
0x16a8   : > { %v10686_v39 = vmul.f32 -1.442695, %v9810_v4 }
0x16aa   : > { %13482 = vpow2.f32 %v10686_v39 }
0x16ab   : > { %v13477_v62 = vpop.eup %13476 }
0x16ac   : > { %v9823_v34 = vadd.f32 1.0, %v13477_v62 }
0x16ae   : > { %13484 = vrcp.f32 %v9823_v34 }
0x16af   : > { %v13479_v8 = vpop.eup %13478 }
0x16b0   : > { %v9824_v2 = vadd.f32 1.0, %v13479_v8 }
0x16b2   : > { %13486 = vrcp.f32 %v9824_v2 }
0x16b3   : > { %v13481_v17 = vpop.eup %13480 }
0x16b4   : > { %v9825_v52 = vadd.f32 1.0, %v13481_v17 }
0x16b6   : > { %13488 = vrcp.f32 %v9825_v52 }
0x16b7   : > { %v13483_v57 = vpop.eup %13482 }
0x16b8   : > { %v9826_v5 = vadd.f32 1.0, %v13483_v57 }
0x16ba   : > { %13490 = vrcp.f32 %v9826_v5 }
0x16bb   : > { %v13485_v1 = vpop.eup %13484 }
0x16bc   : > { %9836 = vst.msk [vmem:[%s702_s22] sm:$0xff] %vm9835_vm0, %v13485_v1 }
0x16bf   : > { %v13487_v45 = vpop.eup %13486 }
0x16c0   : > { %9837 = vst.msk [vmem:[%s702_s22 + $0x8] sm:$0xff] %vm9835_vm0, %v13487_v45 }
0x16c3   : > { %v13489_v50 = vpop.eup %13488 }
0x16c4   : > { %9838 = vst.msk [vmem:[%s702_s22 + $0x10] sm:$0xff] %vm9835_vm0, %v13489_v50 }
0x16c7   : > { %v13491_v31 = vpop.eup %13490 }
0x16c8   : > { %9839 = vst.msk [vmem:[%s702_s22 + $0x18] sm:$0xff] %vm9835_vm0, %v13491_v31 }
0x16c9 PF: > { %s17714_s14 = sld [smem:[#allocation24_spill]]  ;;  %s17717_s20 = smov %s14010_s21 }
0x16ca   : > { %s17715_s23 = sld [smem:[#allocation23_spill]] }
0x16cb   : > { %s17716_s22 = sld [smem:[#allocation25_spill]] }
0x16cf   : > { %p33_p8 = scmp.ge.s32.totalorder %s17714_s14, 4  }
0x16d0   : > { %s17718_s21 = smov %s17715_s23  ;;  %s17719_s23 = smov %s14022_s24 }
0x16d1   : > { %s17720_s24 = smov %s14026_s25  ;;  %s17721_s25 = smov %s14314_s18 }
0x16d2   :  { %35 = sbr.rel (!%p33_p8) target bundleno = 21 (0x15), region = 178 }
0x16d7   :  { %9862 = vsyncpa [#allocation5], 1 }
0x16d8   :  { %9864 = vsyncpa [#allocation5 + $0x1], 1 }
0x16d9   :  { %9865 = vsyncpa [#allocation9], 1 }
0x16da   :  { %9867 = vsyncpa [#allocation9 + $0x1], 1 }
0x16db   :  { %9868 = vsyncpa [#allocation12], 1 }
0x16dc   :  { %9869 = vsyncpa [#allocation15], 1 }
0x16dd   :  { %9870 = vsyncpa [#allocation6], 1 }
0x16de   :  { %9872 = vsyncpa [#allocation6 + $0x1], 1 }

</bundles_post_ra>
